<compile_context>
chip_gen: v7x
topology: tpu7x:2x2x1
jax: 0.10.0
libtpu: 0.0.40
codegen_flags: <defaults>
</compile_context>

<pallas_src>
import jax
import jax.numpy as jnp
from jax.experimental import pallas as pl
from jax.experimental.pallas import tpu as pltpu

NEG_SLOPE = 0.01                     # nn.LeakyReLU default
VMEM_LIMIT = 48 * 1024 * 1024        # raised scoped-VMEM limit (see review)


def _mm(a, w):
    """Matmul with bf16 operands and f32 accumulation (MXU-native)."""
    return jnp.dot(a.astype(jnp.bfloat16), w.astype(jnp.bfloat16),
                   preferred_element_type=jnp.float32)


def _mmf(a, w):
    """Full-f32 matmul (used only for the tiny 3/9-channel first layers)."""
    return jnp.dot(a, w, preferred_element_type=jnp.float32)


# -----------------------------------------------------------------------------
# Kernel A: row-tiled fused point MLP
#   convs1: Conv1d(3,64)+ReLU, Conv1d(64,128)
#   convs : Conv1d(256,256)+ReLU, Conv1d(256,128)
#   The conv_feat / global-feature half of convs' first layer is precomputed in
#   plain JAX as gterm = conv_feat(g) @ W3b + b3 and broadcast-added in-kernel.
#   Output f is stored in bf16 (only ever consumed as a bf16 MXU operand).
# -----------------------------------------------------------------------------
def point_mlp_kernel(x_ref, gterm_ref, w1, b1, w2, b2, w3a, w4, b4, f_ref):
    x = x_ref[...]                                                  # (tile_n, 3) f32
    h = jnp.maximum(_mmf(x, w1[...]) + b1[...], 0.0)                # f32 coord layer
    h = h.astype(jnp.bfloat16)                                      # (tile_n, 64)
    f0 = (_mm(h, w2[...]) + b2[...]).astype(jnp.bfloat16)           # (tile_n, 128)
    h2 = jnp.maximum(_mm(f0, w3a[...]) + gterm_ref[...], 0.0)
    h2 = h2.astype(jnp.bfloat16)                                    # (tile_n, 256)
    f_ref[...] = (_mm(h2, w4[...]) + b4[...]).astype(jnp.bfloat16)  # (tile_n, 128)


def point_mlp(x, gterm, p, *, tile_n=2048):
    B, N, _ = x.shape
    tile_n = int(min(tile_n, N))
    if tile_n != N:
        tile_n = max(8, (tile_n // 8) * 8)     # sublane-aligned tile when tiled
    n_tiles = pl.cdiv(N, tile_n)
    n_pad = n_tiles * tile_n
    xp = x if n_pad == N else jnp.pad(x, ((0, 0), (0, n_pad - N), (0, 0)))
    gterm3 = gterm.reshape(B, 1, 256)

    weight_args = [p["w1"], p["b1"],                       # f32 coordinate layer
                   p["w2"].astype(jnp.bfloat16), p["b2"],
                   p["w3a"].astype(jnp.bfloat16),
                   p["w4"].astype(jnp.bfloat16), p["b4"]]
    w_specs = [pl.BlockSpec(w.shape, lambda b, n: (0, 0)) for w in weight_args]

    f = pl.pallas_call(
        point_mlp_kernel,
        out_shape=jax.ShapeDtypeStruct((B, n_pad, 128), jnp.bfloat16),
        grid=(B, n_tiles),
        in_specs=[pl.BlockSpec((None, tile_n, 3), lambda b, n: (b, n, 0)),
                  pl.BlockSpec((None, 1, 256), lambda b, n: (b, 0, 0))] + w_specs,
        out_specs=pl.BlockSpec((None, tile_n, 128), lambda b, n: (b, n, 0)),
        compiler_params=pltpu.CompilerParams(
            dimension_semantics=("parallel", "parallel"),
            vmem_limit_bytes=VMEM_LIMIT),
    )(xp, gterm3, *weight_args)
    return f[:, :N, :] if n_pad != N else f


# -----------------------------------------------------------------------------
# Kernel B: Tc centers per grid step (Tc = 256 by default -> full MXU rows).
#   convs2 (Conv2d 9->64->64->128, 1x1; eval BN folded into the weights,
#   LeakyReLU), fused conv_query / conv_key (256-deep matmul over [knn_f | r]),
#   softmax over the k key neighbors (approx-reciprocal), weighted coord sum.
# -----------------------------------------------------------------------------
def attn_kernel(featq_ref, knnfq_ref, featk_ref, knnfk_ref, knnx_ref,
                wc1, bc1, wc2, bc2, wc3, bc3, wq, bq, wk, bk, out_ref):
    def convs2(v):                                          # v: (rows, 9) f32
        h = _mmf(v, wc1[...]) + bc1[...]                    # f32 geometry layer (BN folded)
        h = jnp.where(h >= 0.0, h, NEG_SLOPE * h).astype(jnp.bfloat16)
        h = _mm(h, wc2[...]) + bc2[...]                     # (rows, 64), BN folded
        h = jnp.where(h >= 0.0, h, NEG_SLOPE * h).astype(jnp.bfloat16)
        return (_mm(h, wc3[...]) + bc3[...]).astype(jnp.bfloat16)   # (rows, 128)

    rq = convs2(featq_ref[...])                             # (Tc, 128) bf16
    rk = convs2(featk_ref[...])                             # (Tc*Kk, 128) bf16

    # Fused 256-deep q/k projections: lane-concat [knn_f | r], one matmul each.
    qin = jnp.concatenate([knnfq_ref[...], rq], axis=-1)    # (Tc, 256) bf16
    kin = jnp.concatenate([knnfk_ref[...], rk], axis=-1)    # (Tc*Kk, 256) bf16
    q = _mm(qin, wq[...]) + bq[...]                         # (Tc, 256) f32
    kk = _mm(kin, wk[...]) + bk[...]                        # (Tc*Kk, 256) f32

    tc_rows = q.shape[0]
    kk3 = kk.reshape(tc_rows, -1, kk.shape[-1])             # (Tc, Kk, 256)
    scores = jnp.sum(q[:, None, :] * kk3, axis=-1)          # (Tc, Kk)
    scores = scores - jnp.max(scores, axis=-1, keepdims=True)
    e = jnp.exp(scores)
    inv = pl.reciprocal(jnp.sum(e, axis=-1, keepdims=True), approx=True)
    w = e * inv                                             # softmax over keys
    out_ref[...] = jnp.sum(w[:, :, None] * knnx_ref[...], axis=1)   # (Tc, 3)


def attn_pool(down_x, knn_x, knn_f, p, *, tc=256):
    # tc=256 fills the 256-row MXU on v6e/v7x; with VMEM_LIMIT raised it also
    # fits v5e (use tc=128 there if you prefer the default scoped limit).
    B, M, K, _ = knn_x.shape
    BM, Kk = B * M, K - 1
    tc = int(min(tc, BM))
    if tc != BM:
        tc = max(8, (tc // 8) * 8)
    steps = pl.cdiv(BM, tc)
    bmp = steps * tc

    # Pack the 9-channel convs2 input and pre-split query / key rows (plain JAX,
    # cheap) so the kernel only sees dense row-slab matmuls.  Pad rows so the
    # grid needs no divisibility assumptions; padded rows are sliced off below.
    rep = jnp.broadcast_to(down_x[:, :, None, :], knn_x.shape)
    feat9 = jnp.concatenate([rep, knn_x, rep - knn_x], axis=-1).reshape(BM, K, 9)
    knnf = knn_f.reshape(BM, K, knn_f.shape[-1])
    knnx = knn_x.reshape(BM, K, 3)
    if bmp != BM:
        pad = ((0, bmp - BM), (0, 0), (0, 0))
        feat9, knnf, knnx = jnp.pad(feat9, pad), jnp.pad(knnf, pad), jnp.pad(knnx, pad)
    featq9 = feat9[:, 0, :]                                 # (BMp, 9)
    featk9 = feat9[:, 1:, :].reshape(bmp * Kk, 9)           # (BMp*Kk, 9)
    knnf_q = knnf[:, 0, :]                                  # (BMp, 128) bf16
    knnf_k = knnf[:, 1:, :].reshape(bmp * Kk, knnf.shape[-1])
    knnx_k = knnx[:, 1:, :]                                 # (BMp, Kk, 3)

    # Fold eval-mode BatchNorm into the conv weights; fuse q/k weight halves.
    wc1 = jnp.concatenate([p["wc1r"], p["wc1k"], p["wc1d"]], axis=0) * p["s1"]
    bc1 = p["bc1"] * p["s1"] + p["t1"]
    wc2 = (p["wc2"] * p["s2"]).astype(jnp.bfloat16)
    bc2 = p["bc2"] * p["s2"] + p["t2"]
    wq = jnp.concatenate([p["wqf"], p["wqr"]], axis=0).astype(jnp.bfloat16)  # (256,256)
    wk = jnp.concatenate([p["wkf"], p["wkr"]], axis=0).astype(jnp.bfloat16)

    weight_args = [wc1, bc1, wc2, bc2,
                   p["wc3"].astype(jnp.bfloat16), p["bc3"],
                   wq, p["bq"], wk, p["bk"]]
    w_specs = [pl.BlockSpec(w.shape, lambda i: (0, 0)) for w in weight_args]

    out = pl.pallas_call(
        attn_kernel,
        out_shape=jax.ShapeDtypeStruct((bmp, 3), jnp.float32),
        grid=(steps,),
        in_specs=[pl.BlockSpec((tc, 9), lambda i: (i, 0)),
                  pl.BlockSpec((tc, knnf.shape[-1]), lambda i: (i, 0)),
                  pl.BlockSpec((tc * Kk, 9), lambda i: (i, 0)),
                  pl.BlockSpec((tc * Kk, knnf.shape[-1]), lambda i: (i, 0)),
                  pl.BlockSpec((tc, Kk, 3), lambda i: (i, 0, 0))] + w_specs,
        out_specs=pl.BlockSpec((tc, 3), lambda i: (i, 0)),
        compiler_params=pltpu.CompilerParams(
            dimension_semantics=("parallel",),
            vmem_limit_bytes=VMEM_LIMIT),
    )(featq9, knnf_q, featk9, knnf_k, knnx_k, *weight_args)
    return out[:BM].reshape(B, M, 3)


# -----------------------------------------------------------------------------
# Plain-JAX glue: FPS + kNN (data-dependent / sequential — no clean Pallas form)
# TODO(synk): fps is an inherently sequential data-dependent argmax loop and
# knn_points/knn_gather need top-k + gather; both kept in plain JAX glue.
# -----------------------------------------------------------------------------
def fps_points(x, m):
    """x: (B, N, 3) -> (B, m, 3). Deterministic start at index 0."""
    def single(pts):
        n = pts.shape[0]
        def body(i, carry):
            idxs, min_d = carry
            last = pts[idxs[i - 1]]
            d = jnp.sum((pts - last) ** 2, axis=-1)
            min_d = jnp.minimum(min_d, d)
            idxs = idxs.at[i].set(jnp.argmax(min_d).astype(jnp.int32))
            return idxs, min_d
        idxs0 = jnp.zeros((m,), jnp.int32)
        mind0 = jnp.full((n,), jnp.inf, jnp.float32)
        idxs, _ = jax.lax.fori_loop(1, m, body, (idxs0, mind0))
        return pts[idxs]
    return jax.vmap(single)(x)


def knn(down_x, x, K):
    """Return (idx (B,M,K), knn_x (B,M,K,3)) of K nearest x-points per down_x point."""
    d2 = jnp.sum((down_x[:, :, None, :] - x[:, None, :, :]) ** 2, axis=-1)  # (B,M,N)
    _, idx = jax.lax.top_k(-d2, K)
    knn_x = jax.vmap(lambda pts, i: pts[i])(x, idx)
    return idx, knn_x


# -----------------------------------------------------------------------------
# Full forward (kernels + glue) and a pure-JAX reference (same matmul math)
# -----------------------------------------------------------------------------
def denoiser_forward(x, global_feat, p, *, num_down, k, tile_n=2048, tc=256):
    K = k + 1
    B = x.shape[0]
    # conv_feat hoisted out of the kernel: one matmul chain per batch, then folded
    # with W3b + b3 into a single (B, 256) broadcast term for Kernel A.
    g = global_feat.reshape(B, 512)
    hg = jnp.maximum(_mm(g, p["wg1"]) + p["bg1"], 0.0)          # (B, 256)
    gf = _mm(hg, p["wg2"]) + p["bg2"]                           # (B, 128)
    gterm = _mm(gf, p["w3b"]) + p["b3"]                         # (B, 256)

    f = point_mlp(x, gterm, p, tile_n=tile_n)                   # (B, N, 128) bf16, Pallas
    down_x = fps_points(x, num_down)                            # (B, M, 3)
    idx, knn_x = knn(down_x, x, K)                              # (B,M,K), (B,M,K,3)
    # TODO(synk): gather knn_f in-kernel (scalar-prefetched idx + f in pl.ANY HBM)
    # instead of materializing the (B,M,K,128) intermediate in HBM (already bf16).
    knn_f = jax.vmap(lambda fb, ib: fb[ib])(f, idx)             # (B,M,K,128) bf16
    new_x = attn_pool(down_x, knn_x, knn_f, p, tc=tc)           # (B, M, 3)    Pallas
    return down_x, new_x


def denoiser_reference(x, global_feat, p, *, num_down, k):
    K = k + 1
    h = jnp.maximum(_mmf(x, p["w1"]) + p["b1"], 0.0)
    f0 = _mm(h, p["w2"]) + p["b2"]
    g = global_feat.reshape(global_feat.shape[0], 1, 512)
    hg = jnp.maximum(_mm(g, p["wg1"]) + p["bg1"], 0.0)
    gf = _mm(hg, p["wg2"]) + p["bg2"]
    h2 = jnp.maximum(_mm(f0, p["w3a"]) + _mm(gf, p["w3b"]) + p["b3"], 0.0)
    f = _mm(h2, p["w4"]) + p["b4"]

    down_x = fps_points(x, num_down)
    idx, knn_x = knn(down_x, x, K)
    knn_f = jax.vmap(lambda fb, ib: fb[ib])(f, idx)

    rep = jnp.broadcast_to(down_x[:, :, None, :], knn_x.shape)
    feat9 = jnp.concatenate([rep, knn_x, rep - knn_x], axis=-1)
    wc1 = jnp.concatenate([p["wc1r"], p["wc1k"], p["wc1d"]], axis=0)
    r = _mmf(feat9, wc1) + p["bc1"]
    r = r * p["s1"] + p["t1"]
    r = jnp.where(r >= 0, r, NEG_SLOPE * r)
    r = _mm(r, p["wc2"]) + p["bc2"]
    r = r * p["s2"] + p["t2"]
    r = jnp.where(r >= 0, r, NEG_SLOPE * r)
    r = _mm(r, p["wc3"]) + p["bc3"]                             # (B,M,K,128)

    q = _mm(knn_f[:, :, 0, :], p["wqf"]) + _mm(r[:, :, 0, :], p["wqr"]) + p["bq"]
    kk = _mm(knn_f[:, :, 1:, :], p["wkf"]) + _mm(r[:, :, 1:, :], p["wkr"]) + p["bk"]
    scores = jnp.sum(q[:, :, None, :] * kk, axis=-1)            # (B,M,k)
    w = jax.nn.softmax(scores, axis=-1)
    new_x = jnp.sum(w[..., None] * knn_x[:, :, 1:, :], axis=2)
    return down_x, new_x


# -----------------------------------------------------------------------------
# Deterministic parameter init (synthetic; shapes mirror the PyTorch module)
# -----------------------------------------------------------------------------
def init_params(key):
    ks = iter(jax.random.split(key, 40))

    def nrm(shape, scale=0.1):
        return scale * jax.random.normal(next(ks), shape, jnp.float32)

    p = {}
    # convs1: MLP_CONV(3, [64, 128])
    p["w1"], p["b1"] = nrm((3, 64)), nrm((1, 64), 0.02)
    p["w2"], p["b2"] = nrm((64, 128), 0.05), nrm((1, 128), 0.02)
    # conv_feat: MLP_CONV(512, [256, 128])
    p["wg1"], p["bg1"] = nrm((512, 256), 0.05), nrm((1, 256), 0.02)
    p["wg2"], p["bg2"] = nrm((256, 128), 0.05), nrm((1, 128), 0.02)
    # convs: MLP_CONV(256, [256, 128]); first conv split over [f | g_feat] halves
    p["w3a"], p["w3b"] = nrm((128, 256), 0.05), nrm((128, 256), 0.05)
    p["b3"] = nrm((1, 256), 0.02)
    p["w4"], p["b4"] = nrm((256, 128), 0.05), nrm((1, 128), 0.02)
    # convs2: Conv2d(9,64)+BN+LReLU, Conv2d(64,64)+BN+LReLU, Conv2d(64,128)
    p["wc1r"], p["wc1k"], p["wc1d"] = nrm((3, 64)), nrm((3, 64)), nrm((3, 64))
    p["bc1"] = nrm((1, 64), 0.02)
    p["wc2"], p["bc2"] = nrm((64, 64), 0.05), nrm((1, 64), 0.02)
    p["wc3"], p["bc3"] = nrm((64, 128), 0.05), nrm((1, 128), 0.02)
    # BatchNorm2d params (eval mode -> folded per-channel scale / shift)
    eps = 1e-5
    for tag in ("1", "2"):
        gamma = 1.0 + nrm((1, 64))
        beta = nrm((1, 64))
        rmean = nrm((1, 64))
        rvar = 1.0 + jnp.abs(nrm((1, 64)))
        p["s" + tag] = gamma / jnp.sqrt(rvar + eps)
        p["t" + tag] = beta - rmean * p["s" + tag]
    # conv_query / conv_key: Conv2d(256,256,1x1), split over [knn_f | r] halves
    p["wqf"], p["wqr"], p["bq"] = nrm((128, 256), 0.05), nrm((128, 256), 0.05), nrm((1, 256), 0.02)
    p["wkf"], p["wkr"], p["bk"] = nrm((128, 256), 0.05), nrm((128, 256), 0.05), nrm((1, 256), 0.02)
    return p


if __name__ == "__main__":
    B, N, NUM_DOWN, K_NEIGH = 2, 64, 16, 16   # small shapes; module's k=16 hard-wired

    key = jax.random.PRNGKey(0)
    kx, kg, kp = jax.random.split(key, 3)
    x = jax.random.normal(kx, (B, N, 3), jnp.float32)               # (B, N, 3)
    global_feat = jax.random.normal(kg, (B, 512, 1), jnp.float32)   # (B, 512, 1)
    params = init_params(kp)

    fwd = jax.jit(lambda a, b: denoiser_forward(a, b, params,
                                                num_down=NUM_DOWN, k=K_NEIGH))
    down_x, new_x = fwd(x, global_feat)
    jax.block_until_ready((down_x, new_x))

    d_ref, n_ref = denoiser_reference(x, global_feat, params,
                                      num_down=NUM_DOWN, k=K_NEIGH)

    assert down_x.shape == (B, NUM_DOWN, 3) and new_x.shape == (B, NUM_DOWN, 3)
    assert bool(jnp.all(jnp.isfinite(new_x)))
    assert bool(jnp.allclose(down_x, d_ref, atol=5e-2, rtol=5e-2))
    assert bool(jnp.allclose(new_x, n_ref, atol=5e-2, rtol=5e-2))
    print("KERNEL_OK")
</pallas_src>

<mosaic_0001>
module attributes {stable_mosaic.version = 11 : i64} {
  func.func @point_mlp_kernel(%arg0: i32, %arg1: i32, %arg2: memref<1x64x3xf32, #tpu.memory_space<vmem>>, %arg3: memref<1x1x256xf32, #tpu.memory_space<vmem>>, %arg4: memref<3x64xf32, #tpu.memory_space<vmem>>, %arg5: memref<1x64xf32, #tpu.memory_space<vmem>>, %arg6: memref<64x128xbf16, #tpu.memory_space<vmem>>, %arg7: memref<1x128xf32, #tpu.memory_space<vmem>>, %arg8: memref<128x256xbf16, #tpu.memory_space<vmem>>, %arg9: memref<256x128xbf16, #tpu.memory_space<vmem>>, %arg10: memref<1x128xf32, #tpu.memory_space<vmem>>, %arg11: memref<1x64x128xbf16, #tpu.memory_space<vmem>>) attributes {dimension_semantics = [#tpu.dimension_semantics<parallel>, #tpu.dimension_semantics<parallel>], iteration_bounds = array<i64: 2, 1>, scalar_prefetch = 0 : i64, scratch_operands = 0 : i64, tpu.core_type = #tpu.core_type<tc>, window_params = [{transform_indices = @transform_0, window_bounds = array<i64: 1, 64, 3>}, {transform_indices = @transform_1, window_bounds = array<i64: 1, 1, 256>}, {pipeline_mode = #tpu.pipeline_mode<synchronous>, transform_indices = @transform_2, window_bounds = array<i64: 3, 64>}, {pipeline_mode = #tpu.pipeline_mode<synchronous>, transform_indices = @transform_3, window_bounds = array<i64: 1, 64>}, {pipeline_mode = #tpu.pipeline_mode<synchronous>, transform_indices = @transform_4, window_bounds = array<i64: 64, 128>}, {pipeline_mode = #tpu.pipeline_mode<synchronous>, transform_indices = @transform_5, window_bounds = array<i64: 1, 128>}, {pipeline_mode = #tpu.pipeline_mode<synchronous>, transform_indices = @transform_6, window_bounds = array<i64: 128, 256>}, {pipeline_mode = #tpu.pipeline_mode<synchronous>, transform_indices = @transform_7, window_bounds = array<i64: 256, 128>}, {pipeline_mode = #tpu.pipeline_mode<synchronous>, transform_indices = @transform_8, window_bounds = array<i64: 1, 128>}, {transform_indices = @transform_9, window_bounds = array<i64: 1, 64, 128>}]} {
    %c0 = arith.constant 0 : index
    %c0_0 = arith.constant 0 : index
    %c0_1 = arith.constant 0 : index
    %0 = vector.load %arg2[%c0, %c0_0, %c0_1] : memref<1x64x3xf32, #tpu.memory_space<vmem>>, vector<1x64x3xf32>
    %1 = vector.shape_cast %0 : vector<1x64x3xf32> to vector<64x3xf32>
    %c0_2 = arith.constant 0 : index
    %c0_3 = arith.constant 0 : index
    %2 = vector.load %arg4[%c0_2, %c0_3] : memref<3x64xf32, #tpu.memory_space<vmem>>, vector<3x64xf32>
    %cst = arith.constant dense<0.000000e+00> : vector<64x64xf32>
    %3 = tpu.matmul %1, %2, %cst {dimension_numbers = #tpu.dot_dimension_numbers<[1], [0], [0], [1], [0, 0, 1, 1], [], []>} : vector<64x3xf32>, vector<3x64xf32>, vector<64x64xf32> -> vector<64x64xf32>
    %c0_4 = arith.constant 0 : index
    %c0_5 = arith.constant 0 : index
    %4 = vector.load %arg5[%c0_4, %c0_5] : memref<1x64xf32, #tpu.memory_space<vmem>>, vector<1x64xf32>
    %5 = vector.broadcast %4 : vector<1x64xf32> to vector<64x64xf32>
    %6 = arith.addf %3, %5 : vector<64x64xf32>
    %cst_6 = arith.constant 0.000000e+00 : f32
    %7 = vector.broadcast %cst_6 : f32 to vector<64x64xf32>
    %8 = arith.maximumf %6, %7 : vector<64x64xf32>
    %9 = arith.truncf %8 : vector<64x64xf32> to vector<64x64xbf16>
    %c0_7 = arith.constant 0 : index
    %c0_8 = arith.constant 0 : index
    %10 = vector.load %arg6[%c0_7, %c0_8] : memref<64x128xbf16, #tpu.memory_space<vmem>>, vector<64x128xbf16>
    %cst_9 = arith.constant dense<0.000000e+00> : vector<64x128xf32>
    %11 = tpu.matmul %9, %10, %cst_9 {dimension_numbers = #tpu.dot_dimension_numbers<[1], [0], [0], [1], [0, 0, 1, 1], [], []>} : vector<64x64xbf16>, vector<64x128xbf16>, vector<64x128xf32> -> vector<64x128xf32>
    %c0_10 = arith.constant 0 : index
    %c0_11 = arith.constant 0 : index
    %12 = vector.load %arg7[%c0_10, %c0_11] : memref<1x128xf32, #tpu.memory_space<vmem>>, vector<1x128xf32>
    %13 = vector.broadcast %12 : vector<1x128xf32> to vector<64x128xf32>
    %14 = arith.addf %11, %13 : vector<64x128xf32>
    %15 = arith.truncf %14 : vector<64x128xf32> to vector<64x128xbf16>
    %c0_12 = arith.constant 0 : index
    %c0_13 = arith.constant 0 : index
    %16 = vector.load %arg8[%c0_12, %c0_13] : memref<128x256xbf16, #tpu.memory_space<vmem>>, vector<128x256xbf16>
    %cst_14 = arith.constant dense<0.000000e+00> : vector<64x256xf32>
    %17 = tpu.matmul %15, %16, %cst_14 {dimension_numbers = #tpu.dot_dimension_numbers<[1], [0], [0], [1], [0, 0, 1, 1], [], []>} : vector<64x128xbf16>, vector<128x256xbf16>, vector<64x256xf32> -> vector<64x256xf32>
    %c0_15 = arith.constant 0 : index
    %c0_16 = arith.constant 0 : index
    %c0_17 = arith.constant 0 : index
    %18 = vector.load %arg3[%c0_15, %c0_16, %c0_17] : memref<1x1x256xf32, #tpu.memory_space<vmem>>, vector<1x1x256xf32>
    %19 = vector.shape_cast %18 : vector<1x1x256xf32> to vector<1x256xf32>
    %20 = vector.broadcast %19 : vector<1x256xf32> to vector<64x256xf32>
    %21 = arith.addf %17, %20 : vector<64x256xf32>
    %cst_18 = arith.constant 0.000000e+00 : f32
    %22 = vector.broadcast %cst_18 : f32 to vector<64x256xf32>
    %23 = arith.maximumf %21, %22 : vector<64x256xf32>
    %24 = arith.truncf %23 : vector<64x256xf32> to vector<64x256xbf16>
    %c0_19 = arith.constant 0 : index
    %c0_20 = arith.constant 0 : index
    %25 = vector.load %arg9[%c0_19, %c0_20] : memref<256x128xbf16, #tpu.memory_space<vmem>>, vector<256x128xbf16>
    %cst_21 = arith.constant dense<0.000000e+00> : vector<64x128xf32>
    %26 = tpu.matmul %24, %25, %cst_21 {dimension_numbers = #tpu.dot_dimension_numbers<[1], [0], [0], [1], [0, 0, 1, 1], [], []>} : vector<64x256xbf16>, vector<256x128xbf16>, vector<64x128xf32> -> vector<64x128xf32>
    %c0_22 = arith.constant 0 : index
    %c0_23 = arith.constant 0 : index
    %27 = vector.load %arg10[%c0_22, %c0_23] : memref<1x128xf32, #tpu.memory_space<vmem>>, vector<1x128xf32>
    %28 = vector.broadcast %27 : vector<1x128xf32> to vector<64x128xf32>
    %29 = arith.addf %26, %28 : vector<64x128xf32>
    %30 = arith.truncf %29 : vector<64x128xf32> to vector<64x128xbf16>
    %c0_24 = arith.constant 0 : index
    %c0_25 = arith.constant 0 : index
    %c0_26 = arith.constant 0 : index
    %31 = vector.load %arg11[%c0_24, %c0_25, %c0_26] : memref<1x64x128xbf16, #tpu.memory_space<vmem>>, vector<1x64x128xbf16>
    %32 = vector.shape_cast %31 : vector<1x64x128xbf16> to vector<64x128xbf16>
    %33 = vector.shape_cast %30 : vector<64x128xbf16> to vector<1x64x128xbf16>
    tpu.vector_store %arg11[%c0_24, %c0_25, %c0_26], %33 {strides = array<i32>} : memref<1x64x128xbf16, #tpu.memory_space<vmem>>, vector<1x64x128xbf16>,
    return
  }
  func.func @transform_0(%arg0: i32, %arg1: i32) -> (i32, i32, i32) {
    %c0_i32 = arith.constant 0 : i32
    %c0_i32_0 = arith.constant 0 : i32
    return %arg0, %arg1, %c0_i32 : i32, i32, i32
  }
  func.func @transform_1(%arg0: i32, %arg1: i32) -> (i32, i32, i32) {
    %c0_i32 = arith.constant 0 : i32
    %c0_i32_0 = arith.constant 0 : i32
    %c0_i32_1 = arith.constant 0 : i32
    return %arg0, %c0_i32, %c0_i32_0 : i32, i32, i32
  }
  func.func @transform_2(%arg0: i32, %arg1: i32) -> (i32, i32) {
    %c0_i32 = arith.constant 0 : i32
    %c0_i32_0 = arith.constant 0 : i32
    %c0_i32_1 = arith.constant 0 : i32
    return %c0_i32, %c0_i32_0 : i32, i32
  }
  func.func @transform_3(%arg0: i32, %arg1: i32) -> (i32, i32) {
    %c0_i32 = arith.constant 0 : i32
    %c0_i32_0 = arith.constant 0 : i32
    %c0_i32_1 = arith.constant 0 : i32
    return %c0_i32, %c0_i32_0 : i32, i32
  }
  func.func @transform_4(%arg0: i32, %arg1: i32) -> (i32, i32) {
    %c0_i32 = arith.constant 0 : i32
    %c0_i32_0 = arith.constant 0 : i32
    %c0_i32_1 = arith.constant 0 : i32
    return %c0_i32, %c0_i32_0 : i32, i32
  }
  func.func @transform_5(%arg0: i32, %arg1: i32) -> (i32, i32) {
    %c0_i32 = arith.constant 0 : i32
    %c0_i32_0 = arith.constant 0 : i32
    %c0_i32_1 = arith.constant 0 : i32
    return %c0_i32, %c0_i32_0 : i32, i32
  }
  func.func @transform_6(%arg0: i32, %arg1: i32) -> (i32, i32) {
    %c0_i32 = arith.constant 0 : i32
    %c0_i32_0 = arith.constant 0 : i32
    %c0_i32_1 = arith.constant 0 : i32
    return %c0_i32, %c0_i32_0 : i32, i32
  }
  func.func @transform_7(%arg0: i32, %arg1: i32) -> (i32, i32) {
    %c0_i32 = arith.constant 0 : i32
    %c0_i32_0 = arith.constant 0 : i32
    %c0_i32_1 = arith.constant 0 : i32
    return %c0_i32, %c0_i32_0 : i32, i32
  }
  func.func @transform_8(%arg0: i32, %arg1: i32) -> (i32, i32) {
    %c0_i32 = arith.constant 0 : i32
    %c0_i32_0 = arith.constant 0 : i32
    %c0_i32_1 = arith.constant 0 : i32
    return %c0_i32, %c0_i32_0 : i32, i32
  }
  func.func @transform_9(%arg0: i32, %arg1: i32) -> (i32, i32, i32) {
    %c0_i32 = arith.constant 0 : i32
    %c0_i32_0 = arith.constant 0 : i32
    return %arg0, %arg1, %c0_i32 : i32, i32, i32
  }
}

module attributes {stable_mosaic.version = 11 : i64} {
  func.func @attn_kernel(%arg0: i32, %arg1: memref<32x9xf32, #tpu.memory_space<vmem>>, %arg2: memref<32x128xbf16, #tpu.memory_space<vmem>>, %arg3: memref<512x9xf32, #tpu.memory_space<vmem>>, %arg4: memref<512x128xbf16, #tpu.memory_space<vmem>>, %arg5: memref<32x16x3xf32, #tpu.memory_space<vmem>>, %arg6: memref<9x64xf32, #tpu.memory_space<vmem>>, %arg7: memref<1x64xf32, #tpu.memory_space<vmem>>, %arg8: memref<64x64xbf16, #tpu.memory_space<vmem>>, %arg9: memref<1x64xf32, #tpu.memory_space<vmem>>, %arg10: memref<64x128xbf16, #tpu.memory_space<vmem>>, %arg11: memref<1x128xf32, #tpu.memory_space<vmem>>, %arg12: memref<256x256xbf16, #tpu.memory_space<vmem>>, %arg13: memref<1x256xf32, #tpu.memory_space<vmem>>, %arg14: memref<256x256xbf16, #tpu.memory_space<vmem>>, %arg15: memref<1x256xf32, #tpu.memory_space<vmem>>, %arg16: memref<32x3xf32, #tpu.memory_space<vmem>>) attributes {dimension_semantics = [#tpu.dimension_semantics<parallel>], iteration_bounds = array<i64: 1>, scalar_prefetch = 0 : i64, scratch_operands = 0 : i64, tpu.core_type = #tpu.core_type<tc>, window_params = [{transform_indices = @transform_0, window_bounds = array<i64: 32, 9>}, {transform_indices = @transform_1, window_bounds = array<i64: 32, 128>}, {transform_indices = @transform_2, window_bounds = array<i64: 512, 9>}, {transform_indices = @transform_3, window_bounds = array<i64: 512, 128>}, {transform_indices = @transform_4, window_bounds = array<i64: 32, 16, 3>}, {pipeline_mode = #tpu.pipeline_mode<synchronous>, transform_indices = @transform_5, window_bounds = array<i64: 9, 64>}, {pipeline_mode = #tpu.pipeline_mode<synchronous>, transform_indices = @transform_6, window_bounds = array<i64: 1, 64>}, {pipeline_mode = #tpu.pipeline_mode<synchronous>, transform_indices = @transform_7, window_bounds = array<i64: 64, 64>}, {pipeline_mode = #tpu.pipeline_mode<synchronous>, transform_indices = @transform_8, window_bounds = array<i64: 1, 64>}, {pipeline_mode = #tpu.pipeline_mode<synchronous>, transform_indices = @transform_9, window_bounds = array<i64: 64, 128>}, {pipeline_mode = #tpu.pipeline_mode<synchronous>, transform_indices = @transform_10, window_bounds = array<i64: 1, 128>}, {pipeline_mode = #tpu.pipeline_mode<synchronous>, transform_indices = @transform_11, window_bounds = array<i64: 256, 256>}, {pipeline_mode = #tpu.pipeline_mode<synchronous>, transform_indices = @transform_12, window_bounds = array<i64: 1, 256>}, {pipeline_mode = #tpu.pipeline_mode<synchronous>, transform_indices = @transform_13, window_bounds = array<i64: 256, 256>}, {pipeline_mode = #tpu.pipeline_mode<synchronous>, transform_indices = @transform_14, window_bounds = array<i64: 1, 256>}, {transform_indices = @transform_15, window_bounds = array<i64: 32, 3>}]} {
    %c0 = arith.constant 0 : index
    %c0_0 = arith.constant 0 : index
    %0 = vector.load %arg1[%c0, %c0_0] : memref<32x9xf32, #tpu.memory_space<vmem>>, vector<32x9xf32>
    %c0_1 = arith.constant 0 : index
    %c0_2 = arith.constant 0 : index
    %1 = vector.load %arg6[%c0_1, %c0_2] : memref<9x64xf32, #tpu.memory_space<vmem>>, vector<9x64xf32>
    %cst = arith.constant dense<0.000000e+00> : vector<32x64xf32>
    %2 = tpu.matmul %0, %1, %cst {dimension_numbers = #tpu.dot_dimension_numbers<[1], [0], [0], [1], [0, 0, 1, 1], [], []>} : vector<32x9xf32>, vector<9x64xf32>, vector<32x64xf32> -> vector<32x64xf32>
    %c0_3 = arith.constant 0 : index
    %c0_4 = arith.constant 0 : index
    %3 = vector.load %arg7[%c0_3, %c0_4] : memref<1x64xf32, #tpu.memory_space<vmem>>, vector<1x64xf32>
    %4 = vector.broadcast %3 : vector<1x64xf32> to vector<32x64xf32>
    %5 = arith.addf %2, %4 : vector<32x64xf32>
    %cst_5 = arith.constant 0.000000e+00 : f32
    %6 = vector.broadcast %cst_5 : f32 to vector<32x64xf32>
    %7 = arith.cmpf oge, %5, %6 : vector<32x64xf32>
    %cst_6 = arith.constant 0.00999999977 : f32
    %8 = vector.broadcast %cst_6 : f32 to vector<32x64xf32>
    %9 = arith.mulf %8, %5 : vector<32x64xf32>
    %10 = arith.select %7, %5, %9 : vector<32x64xi1>, vector<32x64xf32>
    %11 = arith.truncf %10 : vector<32x64xf32> to vector<32x64xbf16>
    %c0_7 = arith.constant 0 : index
    %c0_8 = arith.constant 0 : index
    %12 = vector.load %arg8[%c0_7, %c0_8] : memref<64x64xbf16, #tpu.memory_space<vmem>>, vector<64x64xbf16>
    %cst_9 = arith.constant dense<0.000000e+00> : vector<32x64xf32>
    %13 = tpu.matmul %11, %12, %cst_9 {dimension_numbers = #tpu.dot_dimension_numbers<[1], [0], [0], [1], [0, 0, 1, 1], [], []>} : vector<32x64xbf16>, vector<64x64xbf16>, vector<32x64xf32> -> vector<32x64xf32>
    %c0_10 = arith.constant 0 : index
    %c0_11 = arith.constant 0 : index
    %14 = vector.load %arg9[%c0_10, %c0_11] : memref<1x64xf32, #tpu.memory_space<vmem>>, vector<1x64xf32>
    %15 = vector.broadcast %14 : vector<1x64xf32> to vector<32x64xf32>
    %16 = arith.addf %13, %15 : vector<32x64xf32>
    %cst_12 = arith.constant 0.000000e+00 : f32
    %17 = vector.broadcast %cst_12 : f32 to vector<32x64xf32>
    %18 = arith.cmpf oge, %16, %17 : vector<32x64xf32>
    %cst_13 = arith.constant 0.00999999977 : f32
    %19 = vector.broadcast %cst_13 : f32 to vector<32x64xf32>
    %20 = arith.mulf %19, %16 : vector<32x64xf32>
    %21 = arith.select %18, %16, %20 : vector<32x64xi1>, vector<32x64xf32>
    %22 = arith.truncf %21 : vector<32x64xf32> to vector<32x64xbf16>
    %c0_14 = arith.constant 0 : index
    %c0_15 = arith.constant 0 : index
    %23 = vector.load %arg10[%c0_14, %c0_15] : memref<64x128xbf16, #tpu.memory_space<vmem>>, vector<64x128xbf16>
    %cst_16 = arith.constant dense<0.000000e+00> : vector<32x128xf32>
    %24 = tpu.matmul %22, %23, %cst_16 {dimension_numbers = #tpu.dot_dimension_numbers<[1], [0], [0], [1], [0, 0, 1, 1], [], []>} : vector<32x64xbf16>, vector<64x128xbf16>, vector<32x128xf32> -> vector<32x128xf32>
    %c0_17 = arith.constant 0 : index
    %c0_18 = arith.constant 0 : index
    %25 = vector.load %arg11[%c0_17, %c0_18] : memref<1x128xf32, #tpu.memory_space<vmem>>, vector<1x128xf32>
    %26 = vector.broadcast %25 : vector<1x128xf32> to vector<32x128xf32>
    %27 = arith.addf %24, %26 : vector<32x128xf32>
    %28 = arith.truncf %27 : vector<32x128xf32> to vector<32x128xbf16>
    %c0_19 = arith.constant 0 : index
    %c0_20 = arith.constant 0 : index
    %29 = vector.load %arg3[%c0_19, %c0_20] : memref<512x9xf32, #tpu.memory_space<vmem>>, vector<512x9xf32>
    %c0_21 = arith.constant 0 : index
    %c0_22 = arith.constant 0 : index
    %30 = vector.load %arg6[%c0_21, %c0_22] : memref<9x64xf32, #tpu.memory_space<vmem>>, vector<9x64xf32>
    %cst_23 = arith.constant dense<0.000000e+00> : vector<512x64xf32>
    %31 = tpu.matmul %29, %30, %cst_23 {dimension_numbers = #tpu.dot_dimension_numbers<[1], [0], [0], [1], [0, 0, 1, 1], [], []>} : vector<512x9xf32>, vector<9x64xf32>, vector<512x64xf32> -> vector<512x64xf32>
    %c0_24 = arith.constant 0 : index
    %c0_25 = arith.constant 0 : index
    %32 = vector.load %arg7[%c0_24, %c0_25] : memref<1x64xf32, #tpu.memory_space<vmem>>, vector<1x64xf32>
    %33 = vector.broadcast %32 : vector<1x64xf32> to vector<512x64xf32>
    %34 = arith.addf %31, %33 : vector<512x64xf32>
    %cst_26 = arith.constant 0.000000e+00 : f32
    %35 = vector.broadcast %cst_26 : f32 to vector<512x64xf32>
    %36 = arith.cmpf oge, %34, %35 : vector<512x64xf32>
    %cst_27 = arith.constant 0.00999999977 : f32
    %37 = vector.broadcast %cst_27 : f32 to vector<512x64xf32>
    %38 = arith.mulf %37, %34 : vector<512x64xf32>
    %39 = arith.select %36, %34, %38 : vector<512x64xi1>, vector<512x64xf32>
    %40 = arith.truncf %39 : vector<512x64xf32> to vector<512x64xbf16>
    %c0_28 = arith.constant 0 : index
    %c0_29 = arith.constant 0 : index
    %41 = vector.load %arg8[%c0_28, %c0_29] : memref<64x64xbf16, #tpu.memory_space<vmem>>, vector<64x64xbf16>
    %cst_30 = arith.constant dense<0.000000e+00> : vector<512x64xf32>
    %42 = tpu.matmul %40, %41, %cst_30 {dimension_numbers = #tpu.dot_dimension_numbers<[1], [0], [0], [1], [0, 0, 1, 1], [], []>} : vector<512x64xbf16>, vector<64x64xbf16>, vector<512x64xf32> -> vector<512x64xf32>
    %c0_31 = arith.constant 0 : index
    %c0_32 = arith.constant 0 : index
    %43 = vector.load %arg9[%c0_31, %c0_32] : memref<1x64xf32, #tpu.memory_space<vmem>>, vector<1x64xf32>
    %44 = vector.broadcast %43 : vector<1x64xf32> to vector<512x64xf32>
    %45 = arith.addf %42, %44 : vector<512x64xf32>
    %cst_33 = arith.constant 0.000000e+00 : f32
    %46 = vector.broadcast %cst_33 : f32 to vector<512x64xf32>
    %47 = arith.cmpf oge, %45, %46 : vector<512x64xf32>
    %cst_34 = arith.constant 0.00999999977 : f32
    %48 = vector.broadcast %cst_34 : f32 to vector<512x64xf32>
    %49 = arith.mulf %48, %45 : vector<512x64xf32>
    %50 = arith.select %47, %45, %49 : vector<512x64xi1>, vector<512x64xf32>
    %51 = arith.truncf %50 : vector<512x64xf32> to vector<512x64xbf16>
    %c0_35 = arith.constant 0 : index
    %c0_36 = arith.constant 0 : index
    %52 = vector.load %arg10[%c0_35, %c0_36] : memref<64x128xbf16, #tpu.memory_space<vmem>>, vector<64x128xbf16>
    %cst_37 = arith.constant dense<0.000000e+00> : vector<512x128xf32>
    %53 = tpu.matmul %51, %52, %cst_37 {dimension_numbers = #tpu.dot_dimension_numbers<[1], [0], [0], [1], [0, 0, 1, 1], [], []>} : vector<512x64xbf16>, vector<64x128xbf16>, vector<512x128xf32> -> vector<512x128xf32>
    %c0_38 = arith.constant 0 : index
    %c0_39 = arith.constant 0 : index
    %54 = vector.load %arg11[%c0_38, %c0_39] : memref<1x128xf32, #tpu.memory_space<vmem>>, vector<1x128xf32>
    %55 = vector.broadcast %54 : vector<1x128xf32> to vector<512x128xf32>
    %56 = arith.addf %53, %55 : vector<512x128xf32>
    %57 = arith.truncf %56 : vector<512x128xf32> to vector<512x128xbf16>
    %c0_40 = arith.constant 0 : index
    %c0_41 = arith.constant 0 : index
    %58 = vector.load %arg2[%c0_40, %c0_41] : memref<32x128xbf16, #tpu.memory_space<vmem>>, vector<32x128xbf16>
    %59 = tpu.concatenate %58, %28 in 1 : vector<32x128xbf16>, vector<32x128xbf16> -> vector<32x256xbf16>
    %c0_42 = arith.constant 0 : index
    %c0_43 = arith.constant 0 : index
    %60 = vector.load %arg4[%c0_42, %c0_43] : memref<512x128xbf16, #tpu.memory_space<vmem>>, vector<512x128xbf16>
    %61 = tpu.concatenate %60, %57 in 1 : vector<512x128xbf16>, vector<512x128xbf16> -> vector<512x256xbf16>
    %c0_44 = arith.constant 0 : index
    %c0_45 = arith.constant 0 : index
    %62 = vector.load %arg12[%c0_44, %c0_45] : memref<256x256xbf16, #tpu.memory_space<vmem>>, vector<256x256xbf16>
    %cst_46 = arith.constant dense<0.000000e+00> : vector<32x256xf32>
    %63 = tpu.matmul %59, %62, %cst_46 {dimension_numbers = #tpu.dot_dimension_numbers<[1], [0], [0], [1], [0, 0, 1, 1], [], []>} : vector<32x256xbf16>, vector<256x256xbf16>, vector<32x256xf32> -> vector<32x256xf32>
    %c0_47 = arith.constant 0 : index
    %c0_48 = arith.constant 0 : index
    %64 = vector.load %arg13[%c0_47, %c0_48] : memref<1x256xf32, #tpu.memory_space<vmem>>, vector<1x256xf32>
    %65 = vector.broadcast %64 : vector<1x256xf32> to vector<32x256xf32>
    %66 = arith.addf %63, %65 : vector<32x256xf32>
    %c0_49 = arith.constant 0 : index
    %c0_50 = arith.constant 0 : index
    %67 = vector.load %arg14[%c0_49, %c0_50] : memref<256x256xbf16, #tpu.memory_space<vmem>>, vector<256x256xbf16>
    %cst_51 = arith.constant dense<0.000000e+00> : vector<512x256xf32>
    %68 = tpu.matmul %61, %67, %cst_51 {dimension_numbers = #tpu.dot_dimension_numbers<[1], [0], [0], [1], [0, 0, 1, 1], [], []>} : vector<512x256xbf16>, vector<256x256xbf16>, vector<512x256xf32> -> vector<512x256xf32>
    %c0_52 = arith.constant 0 : index
    %c0_53 = arith.constant 0 : index
    %69 = vector.load %arg15[%c0_52, %c0_53] : memref<1x256xf32, #tpu.memory_space<vmem>>, vector<1x256xf32>
    %70 = vector.broadcast %69 : vector<1x256xf32> to vector<512x256xf32>
    %71 = arith.addf %68, %70 : vector<512x256xf32>
    %72 = vector.shape_cast %71 : vector<512x256xf32> to vector<32x16x256xf32>
    %73 = vector.shape_cast %66 : vector<32x256xf32> to vector<32x1x256xf32>
    %74 = vector.broadcast %73 : vector<32x1x256xf32> to vector<32x16x256xf32>
    %75 = arith.mulf %74, %72 : vector<32x16x256xf32>
    %cst_54 = arith.constant dense<0.000000e+00> : vector<32x16xf32>
    %76 = vector.multi_reduction <add>, %75, %cst_54 [2] : vector<32x16x256xf32> to vector<32x16xf32>
    %cst_55 = arith.constant dense<0xFF800000> : vector<32xf32>
    %77 = vector.multi_reduction <maximumf>, %76, %cst_55 [1] : vector<32x16xf32> to vector<32xf32>
    %78 = vector.shape_cast %77 : vector<32xf32> to vector<32x1xf32>
    %79 = vector.broadcast %78 : vector<32x1xf32> to vector<32x16xf32>
    %80 = arith.subf %76, %79 : vector<32x16xf32>
    %81 = math.exp %80 : vector<32x16xf32>
    %cst_56 = arith.constant dense<0.000000e+00> : vector<32xf32>
    %82 = vector.multi_reduction <add>, %81, %cst_56 [1] : vector<32x16xf32> to vector<32xf32>
    %83 = vector.shape_cast %82 : vector<32xf32> to vector<32x1xf32>
    %84 = tpu.reciprocal %83 {approx = true} : vector<32x1xf32> -> vector<32x1xf32>
    %85 = vector.broadcast %84 : vector<32x1xf32> to vector<32x16xf32>
    %86 = arith.mulf %81, %85 : vector<32x16xf32>
    %87 = vector.shape_cast %86 : vector<32x16xf32> to vector<32x16x1xf32>
    %c0_57 = arith.constant 0 : index
    %c0_58 = arith.constant 0 : index
    %c0_59 = arith.constant 0 : index
    %88 = vector.load %arg5[%c0_57, %c0_58, %c0_59] : memref<32x16x3xf32, #tpu.memory_space<vmem>>, vector<32x16x3xf32>
    %89 = vector.broadcast %87 : vector<32x16x1xf32> to vector<32x16x3xf32>
    %90 = arith.mulf %89, %88 : vector<32x16x3xf32>
    %cst_60 = arith.constant dense<0.000000e+00> : vector<32x3xf32>
    %91 = vector.multi_reduction <add>, %90, %cst_60 [1] : vector<32x16x3xf32> to vector<32x3xf32>
    %c0_61 = arith.constant 0 : index
    %c0_62 = arith.constant 0 : index
    %92 = vector.load %arg16[%c0_61, %c0_62] : memref<32x3xf32, #tpu.memory_space<vmem>>, vector<32x3xf32>
    tpu.vector_store %arg16[%c0_61, %c0_62], %91 {strides = array<i32>} : memref<32x3xf32, #tpu.memory_space<vmem>>, vector<32x3xf32>,
    return
  }
  func.func @transform_0(%arg0: i32) -> (i32, i32) {
    %c0_i32 = arith.constant 0 : i32
    %c0_i32_0 = arith.constant 0 : i32
    return %arg0, %c0_i32 : i32, i32
  }
  func.func @transform_1(%arg0: i32) -> (i32, i32) {
    %c0_i32 = arith.constant 0 : i32
    %c0_i32_0 = arith.constant 0 : i32
    return %arg0, %c0_i32 : i32, i32
  }
  func.func @transform_2(%arg0: i32) -> (i32, i32) {
    %c0_i32 = arith.constant 0 : i32
    %c0_i32_0 = arith.constant 0 : i32
    return %arg0, %c0_i32 : i32, i32
  }
  func.func @transform_3(%arg0: i32) -> (i32, i32) {
    %c0_i32 = arith.constant 0 : i32
    %c0_i32_0 = arith.constant 0 : i32
    return %arg0, %c0_i32 : i32, i32
  }
  func.func @transform_4(%arg0: i32) -> (i32, i32, i32) {
    %c0_i32 = arith.constant 0 : i32
    %c0_i32_0 = arith.constant 0 : i32
    %c0_i32_1 = arith.constant 0 : i32
    return %arg0, %c0_i32, %c0_i32_0 : i32, i32, i32
  }
  func.func @transform_5(%arg0: i32) -> (i32, i32) {
    %c0_i32 = arith.constant 0 : i32
    %c0_i32_0 = arith.constant 0 : i32
    %c0_i32_1 = arith.constant 0 : i32
    return %c0_i32, %c0_i32_0 : i32, i32
  }
  func.func @transform_6(%arg0: i32) -> (i32, i32) {
    %c0_i32 = arith.constant 0 : i32
    %c0_i32_0 = arith.constant 0 : i32
    %c0_i32_1 = arith.constant 0 : i32
    return %c0_i32, %c0_i32_0 : i32, i32
  }
  func.func @transform_7(%arg0: i32) -> (i32, i32) {
    %c0_i32 = arith.constant 0 : i32
    %c0_i32_0 = arith.constant 0 : i32
    %c0_i32_1 = arith.constant 0 : i32
    return %c0_i32, %c0_i32_0 : i32, i32
  }
  func.func @transform_8(%arg0: i32) -> (i32, i32) {
    %c0_i32 = arith.constant 0 : i32
    %c0_i32_0 = arith.constant 0 : i32
    %c0_i32_1 = arith.constant 0 : i32
    return %c0_i32, %c0_i32_0 : i32, i32
  }
  func.func @transform_9(%arg0: i32) -> (i32, i32) {
    %c0_i32 = arith.constant 0 : i32
    %c0_i32_0 = arith.constant 0 : i32
    %c0_i32_1 = arith.constant 0 : i32
    return %c0_i32, %c0_i32_0 : i32, i32
  }
  func.func @transform_10(%arg0: i32) -> (i32, i32) {
    %c0_i32 = arith.constant 0 : i32
    %c0_i32_0 = arith.constant 0 : i32
    %c0_i32_1 = arith.constant 0 : i32
    return %c0_i32, %c0_i32_0 : i32, i32
  }
  func.func @transform_11(%arg0: i32) -> (i32, i32) {
    %c0_i32 = arith.constant 0 : i32
    %c0_i32_0 = arith.constant 0 : i32
    %c0_i32_1 = arith.constant 0 : i32
    return %c0_i32, %c0_i32_0 : i32, i32
  }
  func.func @transform_12(%arg0: i32) -> (i32, i32) {
    %c0_i32 = arith.constant 0 : i32
    %c0_i32_0 = arith.constant 0 : i32
    %c0_i32_1 = arith.constant 0 : i32
    return %c0_i32, %c0_i32_0 : i32, i32
  }
  func.func @transform_13(%arg0: i32) -> (i32, i32) {
    %c0_i32 = arith.constant 0 : i32
    %c0_i32_0 = arith.constant 0 : i32
    %c0_i32_1 = arith.constant 0 : i32
    return %c0_i32, %c0_i32_0 : i32, i32
  }
  func.func @transform_14(%arg0: i32) -> (i32, i32) {
    %c0_i32 = arith.constant 0 : i32
    %c0_i32_0 = arith.constant 0 : i32
    %c0_i32_1 = arith.constant 0 : i32
    return %c0_i32, %c0_i32_0 : i32, i32
  }
  func.func @transform_15(%arg0: i32) -> (i32, i32) {
    %c0_i32 = arith.constant 0 : i32
    %c0_i32_0 = arith.constant 0 : i32
    return %arg0, %c0_i32 : i32, i32
  }
}

</mosaic_0001>

<bundles_post_ra>
// kernel: custom-call.8
= control target key start
LH: loop header
LB: loop body
LE: loop exit
PB: predicated region body
PF: predicated region fallthrough
CT: control target
= control target key end

     0   :  { %s6_s0 = inlined_call_operand.vmem [shape: f32[2,64], index: 0, kind: output, shape index: {}]  }

// kernel: neg.1
= control target key start
LH: loop header
LB: loop body
LE: loop exit
PB: predicated region body
PF: predicated region fallthrough
CT: control target
= control target key end

     0   :  { %s72_s0 = inlined_call_operand.vmem [shape: f32[2,16,64], index: 0, kind: input, shape index: {}]   ;;  %s73_s1 = inlined_call_operand.vmem [shape: f32[2,16,64], index: 1, kind: output, shape index: {}]  }
   0x1   :  { %v2_v0 = vld [vmem:[%s72_s0] sm:$0xff]  ;;  %v32_v1 = vld [vmem:[%s72_s0 + $0x10] sm:$0xff]  ;;  %v34_v2 = vld [vmem:[%s72_s0 + $0x8] sm:$0xff] }
   0x2   :  { %v5_v3 = vxor.u32 2147483648, %v2_v0  ;;  %v12_v4 = vxor.u32 2147483648, %v32_v1  ;;  %v20_v5 = vxor.u32 2147483648, %v34_v2  ;;  %v36_v6 = vld [vmem:[%s72_s0 + $0x18] sm:$0xff] }
   0x3   :  { %v28_v7 = vxor.u32 2147483648, %v36_v6 }
   0x4   :  { %7 = vst [vmem:[%s73_s1] sm:$0xff] %v5_v3  ;;  %33 = vst [vmem:[%s73_s1 + $0x10] sm:$0xff] %v12_v4 }
   0x5   :  { %35 = vst [vmem:[%s73_s1 + $0x8] sm:$0xff] %v20_v5  ;;  %37 = vst [vmem:[%s73_s1 + $0x18] sm:$0xff] %v28_v7 }

// kernel: _lambda_.2
= control target key start
LH: loop header
LB: loop body
LE: loop exit
PB: predicated region body
PF: predicated region fallthrough
CT: control target
= control target key end

     0   :  { %s1553_s30 = smov 0   ;;  %s1555_s10 = smov 0   ;;  %s1732_s0 = inlined_call_operand.vmem [shape: f32[2,64,3], index: 0, kind: input, shape index: {}]   ;;  %s1733_s1 = inlined_call_operand.vmem [shape: f32[2,1,256], index: 1, kind: input, shape index: {}]   ;;  %s1734_s2 = inlined_call_operand.vmem [shape: f32[3,64], index: 2, kind: input, shape index: {}]   ;;  %s1735_s3 = inlined_call_operand.vmem [shape: f32[1,64], index: 3, kind: input, shape index: {}]   ;;  %s1736_s4 = inlined_call_operand.vmem [shape: bf16[64,128], index: 4, kind: input, shape index: {}]   ;;  %s1737_s5 = inlined_call_operand.vmem [shape: f32[1,128], index: 5, kind: input, shape index: {}]   ;;  %s1738_s6 = inlined_call_operand.vmem [shape: bf16[128,256], index: 6, kind: input, shape index: {}]   ;;  %s1739_s7 = inlined_call_operand.vmem [shape: bf16[256,128], index: 7, kind: input, shape index: {}]   ;;  %s1740_s8 = inlined_call_operand.vmem [shape: f32[1,128], index: 8, kind: input, shape index: {}]   ;;  %s1741_s9 = inlined_call_operand.vmem [shape: bf16[2,64,128], index: 9, kind: output, shape index: {}]  }
   0x1   :  { %s1557_s11 = smov 0  }
   0x2 LB: > { %s31_s12 = sadd.s32 1, %s1496_s10  ;;  %p1221_p0 = scmp.ge.s32.totalorder %s1500_s11, 1  ;;  %s1500_s11 = sphi %s1557_s11, %s19_s11   ;;  %s1496_s10 = sphi %s1555_s10, %s1743_s10   ;;  %s1492_s30 = sphi %s1553_s30, %s1742_s30  }
   0x3   : > { %p33_p1 = scmp.ge.s32.totalorder %s31_s12, 2  ;;  %p317_p2 = scmp.lt.s32.totalorder %s1500_s11, 3 }
   0x5   : > { %s1745_s12 = smov (%p33_p1, %s31_s12), 0  ;;  %p318_p3 = pnand %p1221_p0, %p317_p2 }
   0x6   : > { %v398_v0 = vld [vmem:[%s1734_s2] sm:$0x7] (!%p318_p3)  ;;  %vm431_vm0 = vcmask (!%p318_p3), 1042432   ;;  %p366_p4 = scmp.lt.s32.totalorder (!%p318_p3), %s1492_s30, 1  ;;  %vm406_vm1 = vcmask (!%p318_p3), 23552   ;;  %v1435_v10 = vld [vmem:[%s1736_s4 + $0x8] sm:$0xff] (!%p318_p3)  }
   0x7   : > { %321 = sbr.rel (%p318_p3) target bundleno = 929 (0x3a1), region = 56  ;;  %v1434_v1 = vld [vmem:[%s1736_s4] sm:$0xff] (!%p318_p3)   ;;  %1379 = vmatprep.subr.msk.mxu0 (!%p318_p3), %vm431_vm0, %v398_v0  ;;  %v1436_v11 = vld [vmem:[%s1736_s4 + $0x10] sm:$0xff] (!%p318_p3)   ;;  %v1437_v12 = vld [vmem:[%s1736_s4 + $0x18] sm:$0xff] (!%p318_p3)   ;;  %vm591_vm2 = vcmask (!%p318_p3), 523264   ;;  %v1502_v58 = vmov (!%p318_p3), 0  }
   0x8   : > { %1380 = vmatpush3.msk.msra.mxu0 (!%p318_p3), %vm431_vm0, %v398_v0  ;;  %1393 = vmatprep.subr.bf16.mxu1 (!%p318_p3), %v1434_v1  ;;  %v1438_v13 = vld [vmem:[%s1738_s6] ss:$8 sps:$4 sm:$0xff] (!%p318_p3)   ;;  %v1440_v14 = vld [vmem:[%s1738_s6 + $0x4] ss:$8 sps:$4 sm:$0xff] (!%p318_p3)   ;;  %v1443_v15 = vld [vmem:[%s1738_s6 + $0x14] ss:$8 sps:$4 sm:$0xff] (!%p318_p3)  }
   0x9   : > { %1394 = vmatpush3.bf16.msra.mxu1 (!%p318_p3), %v1434_v1  ;;  %781 = vmatprep.subr.bf16.mxu0 (!%p318_p3), %v1440_v14  ;;  %v1441_v16 = vld [vmem:[%s1738_s6 + $0x10] ss:$8 sps:$4 sm:$0xff] (!%p318_p3)   ;;  %v1446_v17 = vld [vmem:[%s1738_s6 + $0x24] ss:$8 sps:$4 sm:$0xff] (!%p318_p3)   ;;  %v1444_v18 = vld [vmem:[%s1738_s6 + $0x20] ss:$8 sps:$4 sm:$0xff] (!%p318_p3)  }
   0xa   : > { %1395 = vmatprep.subr.bf16.mxu1 (!%p318_p3), %v1435_v10  ;;  %v1449_v19 = vld [vmem:[%s1738_s6 + $0x34] ss:$8 sps:$4 sm:$0xff] (!%p318_p3)   ;;  %v1447_v20 = vld [vmem:[%s1738_s6 + $0x30] ss:$8 sps:$4 sm:$0xff] (!%p318_p3)   ;;  %v1452_v21 = vld [vmem:[%s1738_s6 + $0x44] ss:$8 sps:$4 sm:$0xff] (!%p318_p3)  }
   0xb   : > { %v1450_v22 = vld [vmem:[%s1738_s6 + $0x40] ss:$8 sps:$4 sm:$0xff] (!%p318_p3)   ;;  %v1455_v23 = vld [vmem:[%s1738_s6 + $0x54] ss:$8 sps:$4 sm:$0xff] (!%p318_p3)   ;;  %v1453_v24 = vld [vmem:[%s1738_s6 + $0x50] ss:$8 sps:$4 sm:$0xff] (!%p318_p3)  }
   0xc   : > { %v1227_v25 = vld [vmem:[%s1735_s3] ss:$0 sm:$0xff] (!%p318_p3)  ;;  %v1458_v54 = vld [vmem:[%s1738_s6 + $0x64] ss:$8 sps:$4 sm:$0xff] (!%p318_p3)   ;;  %v1461_v56 = vld [vmem:[%s1738_s6 + $0x74] ss:$8 sps:$4 sm:$0xff] (!%p318_p3)  }
   0xd   : > { %1396 = vmatpush3.bf16.msra.mxu1 (!%p318_p3), %v1435_v10  ;;  %v1456_v55 = vld [vmem:[%s1738_s6 + $0x60] ss:$8 sps:$4 sm:$0xff] (!%p318_p3)   ;;  %v1459_v57 = vld [vmem:[%s1738_s6 + $0x70] ss:$8 sps:$4 sm:$0xff] (!%p318_p3)  }
   0xe   : > { %s1747_s30 = smov (!%p366_p4, %s1492_s30), 1  ;;  %1397 = vmatprep.subr.bf16.mxu1 %v1436_v11  ;;  %v1462_v59 = vld [vmem:[%s1739_s7 + $0x40] sm:$0xff]   ;;  %v1464_v61 = vld [vmem:[%s1739_s7 + $0x48] sm:$0xff]   ;;  %v1466_v63 = vld [vmem:[%s1739_s7 + $0x50] sm:$0xff]  }
   0xf   : > { %s1289_s17 = sshll.u32 %s1747_s30, 6  ;;  %v1463_v60 = vld [vmem:[%s1739_s7] sm:$0xff]   ;;  %v1465_v62 = vld [vmem:[%s1739_s7 + $0x8] sm:$0xff]   ;;  %v1467_v0 = vld [vmem:[%s1739_s7 + $0x10] sm:$0xff]   ;;  %s1224_s27 = sshll.u32 %s1747_s30, 1 }
  0x10   : > { %s373_s20 = scalar_lea.vmem %s1732_s0, %s1289_s17  ;;  %v1468_v1 = vld [vmem:[%s1739_s7 + $0x58] sm:$0xff]   ;;  %s378_s13 = scalar_lea.vmem %s1733_s1, %s1224_s27 }
  0x11   : > { %v390_v2 = vld [vmem:[%s373_s20] sm:$0xff]  ;;  %v391_v3 = vld [vmem:[%s373_s20 + $0x8] sm:$0xff]  ;;  %v392_v4 = vld [vmem:[%s373_s20 + $0x10] sm:$0xff]  ;;  %1398 = vmatpush3.bf16.msra.mxu1 %v1436_v11  ;;  %s1290_s16 = sshll.u32 %s1747_s30, 5 }
  0x12   : > { %1381 = vmatprep.mubr.msk.f32.mxu0 %vm406_vm1, %v390_v2  ;;  %v393_v5 = vld [vmem:[%s373_s20 + $0x18] sm:$0xff]  ;;  %v394_v6 = vld [vmem:[%s373_s20 + $0x20] sm:$0xff]  ;;  %v395_v7 = vld [vmem:[%s373_s20 + $0x28] sm:$0xff]  ;;  %1399 = vmatprep.subr.bf16.mxu1 %v1437_v12  ;;  %s1717_s19 = scalar_lea.vmem %s1741_s9, %s1290_s16 }
  0x13   : > { %1382 = vmatmul.mubr.msk.f32.vlgmr.msra.gmra.mrb[0].mxu0 %vm406_vm1, %v391_v3  ;;  %v396_v8 = vld [vmem:[%s373_s20 + $0x30] sm:$0xff]  ;;  %v397_v9 = vld [vmem:[%s373_s20 + $0x38] sm:$0xff]  ;;  %v1470_v3 = vld [vmem:[%s1739_s7 + $0x60] sm:$0xff]  }
  0x14   : > { %1384 = vmatprep.mubr.msk.f32.mxu0 %vm406_vm1, %v392_v4  ;;  %782 = vmatpush1.bf16.msra.mxu0 %v1438_v13  ;;  %v1469_v2 = vld [vmem:[%s1739_s7 + $0x18] sm:$0xff]   ;;  %v1471_v4 = vld [vmem:[%s1739_s7 + $0x20] sm:$0xff]  }
  0x15   : > { %1400 = vmatpush3.bf16.msra.mxu1 %v1437_v12  ;;  %783 = vmatprep.subr.bf16.mxu0 %v1443_v15 }
  0x16   : > { %1339 = vmatprep.subr.bf16.mxu1 %v1462_v59 }
  0x17   : > { %1385 = vmatmul.mubr.msk.f32.gmra.mrb[2].mxu0 %vm406_vm1, %v393_v5  ;;  %v1472_v5 = vld [vmem:[%s1739_s7 + $0x68] sm:$0xff]  }
  0x18   : > { %1387 = vmatprep.mubr.msk.f32.mxu0 %vm406_vm1, %v394_v6  ;;  %784 = vmatpush1.bf16.msra.mxu0 %v1441_v16 }
  0x19   : > { %785 = vmatprep.subr.bf16.mxu0 %v1446_v17 }
  0x1b   : > { %1388 = vmatmul.mubr.msk.f32.gmra.mrb[4].mxu0 %vm406_vm1, %v395_v7  ;;  %v1237_v7 = vld [vmem:[%s1737_s5] ss:$0 sm:$0xff] }
  0x1c   : > { %1390 = vmatprep.mubr.msk.f32.mxu0 %vm406_vm1, %v396_v8  ;;  %786 = vmatpush1.bf16.msra.mxu0 %v1444_v18 }
  0x1d   : > { %787 = vmatprep.subr.bf16.mxu0 %v1449_v19 }
  0x1f   : > { %1391 = vmatmul.mubr.msk.f32.gmra.mrb[6].mxu0 %vm406_vm1, %v397_v9 }
  0x20   : > { %788 = vmatpush1.bf16.msra.mxu0 %v1447_v20  ;;  %813 = vmatprep.mubr.bf16.mxu0 %v1502_v58 }
  0x21   : > { %789 = vmatprep.subr.bf16.mxu0 %v1452_v21 }
  0x24   : > { %790 = vmatpush1.bf16.msra.mxu0 %v1450_v22 }
  0x25   : > { %791 = vmatprep.subr.bf16.mxu0 %v1455_v23 }
  0x28   : > { %792 = vmatpush1.bf16.msra.mxu0 %v1453_v24 }
  0x29   : > { %793 = vmatprep.subr.bf16.mxu0 %v1458_v54 }
  0x2c   : > { %794 = vmatpush1.bf16.msra.mxu0 %v1456_v55 }
  0x2d   : > { %795 = vmatprep.subr.bf16.mxu0 %v1461_v56 }
  0x30   : > { %796 = vmatpush1.bf16.msra.mxu0 %v1459_v57 }
  0xe6   : > { %v1383_v26 = vpop.f32.mrb[0].mxu0 }
  0xe7   : > { %v507_v27 = vadd.f32 %v1383_v26, %v1227_v25  ;;  %v501_v28 = vpop.f32.mrb[1].mxu0 }
  0xe8   : > { %v502_v29 = vadd.f32 %v1227_v25, %v501_v28  ;;  %v1474_v28 = vld [vmem:[%s1739_s7 + $0x70] sm:$0xff]  }
  0xe9   : > { %v541_v30 = vmax.f32 %v507_v27, 0.0  ;;  %v1473_v27 = vld [vmem:[%s1739_s7 + $0x28] sm:$0xff]  }
  0xea   : > { %v540_v31 = vmax.f32 %v502_v29, 0.0  ;;  %v1386_v32 = vpop.f32.mrb[2].mxu0  ;;  %v1475_v29 = vld [vmem:[%s1739_s7 + $0x30] sm:$0xff]  }
  0xeb   : > { %v517_v33 = vadd.f32 %v1386_v32, %v1227_v25  ;;  %v511_v34 = vpop.f32.mrb[3].mxu0  ;;  %v691_v32 = vlaneseq }
  0xec   : > { %v512_v35 = vadd.f32 %v1227_v25, %v511_v34  ;;  %v548_v36 = vpack.c.bf16 %v541_v30, %v540_v31  ;;  %v1476_v30 = vld [vmem:[%s1739_s7 + $0x78] sm:$0xff]  }
  0xed   : > { %v543_v37 = vmax.f32 %v517_v33, 0.0  ;;  %v1477_v31 = vld [vmem:[%s1739_s7 + $0x38] sm:$0xff]   ;;  %v692_v33 = vshrl.u32 %v691_v32, 7 }
  0xee   : > { %v542_v38 = vmax.f32 %v512_v35, 0.0  ;;  %1401 = vmatprep.mubr.msk.bf16.mxu1 %vm591_vm2, %v548_v36  ;;  %v1389_v39 = vpop.f32.mrb[4].mxu0  ;;  %v689_v35 = vld [vmem:[%s378_s13] sm:$0x3] }
  0xef   : > { %v527_v40 = vadd.f32 %v1389_v39, %v1227_v25  ;;  %v521_v41 = vpop.f32.mrb[5].mxu0  ;;  %v693_v34 = vsub.s32 0, %v692_v33  ;;  %v697_v36 = vsub.s32 1, %v692_v33 }
  0xf0   : > { %v549_v42 = vpack.c.bf16 %v543_v37, %v542_v38  ;;  %v522_v43 = vadd.f32 %v1227_v25, %v521_v41 }
  0xf1   : > { %v545_v44 = vmax.f32 %v527_v40, 0.0  ;;  %v694_v37 = vrot.slane %v689_v35, %v693_v34  ;;  %v698_v38 = vrot.slane %v689_v35, %v697_v36  ;;  %v1262_v35 = vld [vmem:[%s1740_s8] ss:$0 sm:$0xff] }
  0xf2   : > { %1402 = vmatmul.mubr.msk.bf16.vlgmr.msra.gmra.mrb[0].mxu1 %vm591_vm2, %v549_v42  ;;  %v544_v45 = vmax.f32 %v522_v43, 0.0  ;;  %v1392_v46 = vpop.f32.mrb[6].mxu0 }
  0xf3   : > { %v537_v47 = vadd.f32 %v1392_v46, %v1227_v25  ;;  %v531_v48 = vpop.f32.mrb[7].mxu0  ;;  %1340 = vmatpush3.bf16.msra.mxu1 %v1463_v60 }
  0xf4   : > { %v550_v49 = vpack.c.bf16 %v545_v44, %v544_v45  ;;  %v532_v50 = vadd.f32 %v1227_v25, %v531_v48  ;;  %1341 = vmatprep.subr.bf16.mxu1 %v1464_v61 }
  0xf5   : > { %v547_v51 = vmax.f32 %v537_v47, 0.0 }
  0xf6   : > { %v546_v52 = vmax.f32 %v532_v50, 0.0  ;;  %1405 = vmatprep.mubr.msk.bf16.mxu1 %vm591_vm2, %v550_v49 }
  0xf7   : > { %1342 = vmatpush3.bf16.msra.mxu1 %v1465_v62 }
  0xf8   : > { %v551_v53 = vpack.c.bf16 %v547_v51, %v546_v52  ;;  %1343 = vmatprep.subr.bf16.mxu1 %v1466_v63 }
  0xfa   : > { %1406 = vmatmul.mubr.msk.bf16.gmra.mrb[4].mxu1 %vm591_vm2, %v551_v53 }
  0xfb   : > { %1344 = vmatpush3.bf16.msra.mxu1 %v1467_v0 }
  0xfc   : > { %1345 = vmatprep.subr.bf16.mxu1 %v1468_v1 }
  0xff   : > { %1346 = vmatpush3.bf16.msra.mxu1 %v1469_v2 }
 0x100   : > { %1347 = vmatprep.subr.bf16.mxu1 %v1470_v3 }
 0x103   : > { %1348 = vmatpush3.bf16.msra.mxu1 %v1471_v4 }
 0x104   : > { %1349 = vmatprep.subr.bf16.mxu1 %v1472_v5 }
 0x107   : > { %1350 = vmatpush3.bf16.msra.mxu1 %v1473_v27 }
 0x108   : > { %1351 = vmatprep.subr.bf16.mxu1 %v1474_v28 }
 0x10b   : > { %1352 = vmatpush3.bf16.msra.mxu1 %v1475_v29 }
 0x10c   : > { %1353 = vmatprep.subr.bf16.mxu1 %v1476_v30 }
 0x10f   : > { %1354 = vmatpush3.bf16.msra.mxu1 %v1477_v31 }
 0x1c5   : > { %v1403_v6 = vpop.f32.mrb[0].mxu1 }
 0x1c6   : > { %v638_v8 = vpop.f32.mrb[1].mxu1  ;;  %v647_v10 = vadd.f32 %v1403_v6, %v1237_v7 }
 0x1c7   : > { %v1404_v9 = vpop.f32.mrb[2].mxu1  ;;  %v639_v13 = vadd.f32 %v1237_v7, %v638_v8 }
 0x1c8   : > { %v650_v11 = vadd.f32 %v1404_v9, %v1237_v7  ;;  %v641_v12 = vpop.f32.mrb[3].mxu1 }
 0x1c9   : > { %v642_v14 = vadd.f32 %v1237_v7, %v641_v12 }
 0x1ca   : > { %v670_v15 = vpack.c.bf16 %v650_v11, %v647_v10 }
 0x1cb   : > { %v669_v16 = vpack.c.bf16 %v642_v14, %v639_v13 }
 0x1cd   : > { %814 = vmatmul.mubr.bf16.vlgmr.msra.gmra.mrb[8].mxu0 %v669_v16  ;;  %v1407_v17 = vpop.f32.mrb[4].mxu1 }
 0x1ce   : > { %v663_v18 = vadd.f32 %v1407_v17, %v1237_v7  ;;  %v654_v19 = vpop.f32.mrb[5].mxu1  ;;  %823 = vmatprep.mubr.bf16.mxu0 %v1502_v58 }
 0x1cf   : > { %v655_v20 = vadd.f32 %v1237_v7, %v654_v19  ;;  %v1408_v21 = vpop.f32.mrb[6].mxu1 }
 0x1d0   : > { %v666_v22 = vadd.f32 %v1408_v21, %v1237_v7  ;;  %v657_v23 = vpop.f32.mrb[7].mxu1 }
 0x1d1   : > { %v658_v24 = vadd.f32 %v1237_v7, %v657_v23 }
 0x1d2   : > { %v672_v25 = vpack.c.bf16 %v666_v22, %v663_v18 }
 0x1d3   : > { %v671_v26 = vpack.c.bf16 %v658_v24, %v655_v20 }
 0x1d5   : > { %824 = vmatmul.mubr.bf16.gmra.mrb[12].mxu0 %v670_v15 }
 0x1d6   : > { %833 = vmatprep.mubr.bf16.mxu0 %v1502_v58 }
 0x1dd   : > { %834 = vmatmul.mubr.bf16.gmra.mrb[16].mxu0 %v671_v26 }
 0x1de   : > { %843 = vmatprep.mubr.bf16.mxu0 %v1502_v58 }
 0x1e5   : > { %844 = vmatmul.mubr.bf16.gmra.mrb[20].mxu0 %v672_v25 }
 0x2a0   : > { %v815_v39 = vpop.f32.mrb[8].mxu0 }
 0x2a1   : > { %v816_v40 = vadd.f32 %v815_v39, %v694_v37  ;;  %v817_v41 = vpop.f32.mrb[9].mxu0 }
 0x2a2   : > { %v818_v42 = vadd.f32 %v817_v41, %v698_v38  ;;  %v819_v43 = vpop.f32.mrb[10].mxu0 }
 0x2a3   : > { %v820_v44 = vadd.f32 %v819_v43, %v694_v37  ;;  %v821_v45 = vpop.f32.mrb[11].mxu0  ;;  %v854_v47 = vmax.f32 %v816_v40, 0.0 }
 0x2a4   : > { %v822_v46 = vadd.f32 %v821_v45, %v698_v38  ;;  %v855_v49 = vmax.f32 %v818_v42, 0.0 }
 0x2a5   : > { %v856_v48 = vmax.f32 %v820_v44, 0.0 }
 0x2a6   : > { %v857_v50 = vmax.f32 %v822_v46, 0.0 }
 0x2a7   : > { %v870_v51 = vpack.c.bf16 %v856_v48, %v854_v47 }
 0x2a8   : > { %v871_v52 = vpack.c.bf16 %v857_v50, %v855_v49  ;;  %v825_v53 = vpop.f32.mrb[12].mxu0 }
 0x2a9   : > { %v826_v54 = vadd.f32 %v825_v53, %v694_v37  ;;  %v827_v55 = vpop.f32.mrb[13].mxu0 }
 0x2aa   : > { %v828_v56 = vadd.f32 %v827_v55, %v698_v38  ;;  %v829_v57 = vpop.f32.mrb[14].mxu0  ;;  %1045 = vmatprep.mubr.bf16.mxu1 %v871_v52 }
 0x2ab   : > { %v830_v58 = vadd.f32 %v829_v57, %v694_v37  ;;  %v831_v59 = vpop.f32.mrb[15].mxu0  ;;  %1046 = vmatmul.mubr.bf16.vlgmr.msra.gmra.mrb[8].mxu1 %v870_v51  ;;  %v858_v61 = vmax.f32 %v826_v54, 0.0 }
 0x2ac   : > { %v832_v60 = vadd.f32 %v831_v59, %v698_v38  ;;  %v859_v63 = vmax.f32 %v828_v56, 0.0 }
 0x2ad   : > { %v860_v62 = vmax.f32 %v830_v58, 0.0 }
 0x2ae   : > { %v861_v0 = vmax.f32 %v832_v60, 0.0 }
 0x2af   : > { %v872_v1 = vpack.c.bf16 %v860_v62, %v858_v61 }
 0x2b0   : > { %v873_v2 = vpack.c.bf16 %v861_v0, %v859_v63  ;;  %v835_v3 = vpop.f32.mrb[16].mxu0 }
 0x2b1   : > { %v836_v4 = vadd.f32 %v835_v3, %v694_v37  ;;  %v837_v5 = vpop.f32.mrb[17].mxu0 }
 0x2b2   : > { %v838_v6 = vadd.f32 %v837_v5, %v698_v38  ;;  %v839_v7 = vpop.f32.mrb[18].mxu0  ;;  %1053 = vmatprep.mubr.bf16.mxu1 %v873_v2 }
 0x2b3   : > { %v840_v8 = vadd.f32 %v839_v7, %v694_v37  ;;  %v841_v9 = vpop.f32.mrb[19].mxu0  ;;  %1054 = vmatmul.mubr.bf16.gmra.mrb[12].mxu1 %v872_v1  ;;  %v862_v11 = vmax.f32 %v836_v4, 0.0 }
 0x2b4   : > { %v842_v10 = vadd.f32 %v841_v9, %v698_v38  ;;  %v863_v13 = vmax.f32 %v838_v6, 0.0 }
 0x2b5   : > { %v864_v12 = vmax.f32 %v840_v8, 0.0 }
 0x2b6   : > { %v865_v14 = vmax.f32 %v842_v10, 0.0 }
 0x2b7   : > { %v874_v15 = vpack.c.bf16 %v864_v12, %v862_v11 }
 0x2b8   : > { %v875_v16 = vpack.c.bf16 %v865_v14, %v863_v13  ;;  %v845_v17 = vpop.f32.mrb[20].mxu0 }
 0x2b9   : > { %v846_v18 = vadd.f32 %v845_v17, %v694_v37  ;;  %v847_v19 = vpop.f32.mrb[21].mxu0 }
 0x2ba   : > { %v848_v20 = vadd.f32 %v847_v19, %v698_v38  ;;  %v849_v21 = vpop.f32.mrb[22].mxu0  ;;  %1061 = vmatprep.mubr.bf16.mxu1 %v875_v16 }
 0x2bb   : > { %v850_v22 = vadd.f32 %v849_v21, %v694_v37  ;;  %v851_v23 = vpop.f32.mrb[23].mxu0  ;;  %1062 = vmatmul.mubr.bf16.gmra.mrb[16].mxu1 %v874_v15  ;;  %v866_v25 = vmax.f32 %v846_v18, 0.0 }
 0x2bc   : > { %v852_v24 = vadd.f32 %v851_v23, %v698_v38  ;;  %v867_v27 = vmax.f32 %v848_v20, 0.0 }
 0x2bd   : > { %v868_v26 = vmax.f32 %v850_v22, 0.0 }
 0x2be   : > { %v869_v28 = vmax.f32 %v852_v24, 0.0 }
 0x2bf   : > { %v876_v29 = vpack.c.bf16 %v868_v26, %v866_v25 }
 0x2c0   : > { %v877_v30 = vpack.c.bf16 %v869_v28, %v867_v27 }
 0x2c2   : > { %1069 = vmatprep.mubr.bf16.mxu1 %v877_v30 }
 0x2c3   : > { %1070 = vmatmul.mubr.bf16.gmra.mrb[20].mxu1 %v876_v29 }
 0x37e   : > { %v1355_v31 = vpop.f32.mrb[8].mxu1 }
 0x37f   : > { %v1356_v32 = vpop.f32.mrb[9].mxu1 }
 0x380   : > { %v1357_v33 = vadd.f32 %v1356_v32, %v1355_v31  ;;  %v1358_v34 = vpop.f32.mrb[10].mxu1 }
 0x381   : > { %v1359_v36 = vpop.f32.mrb[11].mxu1 }
 0x382   : > { %v1360_v37 = vadd.f32 %v1359_v36, %v1358_v34  ;;  %v1048_v38 = vadd.f32 %v1357_v33, %v1262_v35 }
 0x384   : > { %v1051_v39 = vadd.f32 %v1360_v37, %v1262_v35 }
 0x386   : > { %v1302_v40 = vpack.c.bf16 %v1051_v39, %v1048_v38  ;;  %v1361_v41 = vpop.f32.mrb[12].mxu1 }
 0x387   : > { %v1362_v42 = vpop.f32.mrb[13].mxu1 }
 0x388   : > { %1303 = vst [vmem:[%s1717_s19] sm:$0xff] %v1302_v40   ;;  %v1363_v43 = vadd.f32 %v1362_v42, %v1361_v41  ;;  %v1364_v44 = vpop.f32.mrb[14].mxu1 }
 0x389   : > { %v1365_v45 = vpop.f32.mrb[15].mxu1 }
 0x38a   : > { %v1366_v46 = vadd.f32 %v1365_v45, %v1364_v44  ;;  %v1056_v47 = vadd.f32 %v1363_v43, %v1262_v35 }
 0x38c   : > { %v1059_v48 = vadd.f32 %v1366_v46, %v1262_v35 }
 0x38e   : > { %v1307_v49 = vpack.c.bf16 %v1059_v48, %v1056_v47  ;;  %v1367_v50 = vpop.f32.mrb[16].mxu1 }
 0x38f   : > { %v1368_v51 = vpop.f32.mrb[17].mxu1 }
 0x390   : > { %1319 = vst [vmem:[%s1717_s19 + $0x8] sm:$0xff] %v1307_v49   ;;  %v1369_v52 = vadd.f32 %v1368_v51, %v1367_v50  ;;  %v1370_v53 = vpop.f32.mrb[18].mxu1 }
 0x391   : > { %v1371_v54 = vpop.f32.mrb[19].mxu1 }
 0x392   : > { %v1372_v55 = vadd.f32 %v1371_v54, %v1370_v53  ;;  %v1064_v56 = vadd.f32 %v1369_v52, %v1262_v35 }
 0x394   : > { %v1067_v57 = vadd.f32 %v1372_v55, %v1262_v35 }
 0x396   : > { %v1312_v58 = vpack.c.bf16 %v1067_v57, %v1064_v56  ;;  %v1373_v59 = vpop.f32.mrb[20].mxu1 }
 0x397   : > { %v1374_v60 = vpop.f32.mrb[21].mxu1 }
 0x398   : > { %1320 = vst [vmem:[%s1717_s19 + $0x10] sm:$0xff] %v1312_v58   ;;  %v1375_v61 = vadd.f32 %v1374_v60, %v1373_v59  ;;  %v1376_v62 = vpop.f32.mrb[22].mxu1 }
 0x399   : > { %v1377_v63 = vpop.f32.mrb[23].mxu1 }
 0x39a   : > { %v1378_v0 = vadd.f32 %v1377_v63, %v1376_v62  ;;  %v1072_v1 = vadd.f32 %v1375_v61, %v1262_v35 }
 0x39c   : > { %v1075_v2 = vadd.f32 %v1378_v0, %v1262_v35 }
 0x39e   : > { %v1317_v3 = vpack.c.bf16 %v1075_v2, %v1072_v1 }
 0x3a0   : > { %1321 = vst [vmem:[%s1717_s19 + $0x18] sm:$0xff] %v1317_v3  }
 0x3a1 PF: > { %s19_s11 = sadd.s32 1, %s1500_s11   ;;  %s1742_s30 = smov %s1496_s10 }
 0x3a2   : > { %p16_p5 = scmp.ge.s32.totalorder %s19_s11, 4   ;;  %s1743_s10 = smov %s1745_s12 }
 0x3a4   :  { %18 = sbr.rel (!%p16_p5) target bundleno = 2 (0x2), region = 89 }

// kernel: _lambda_.3
= control target key start
LH: loop header
LB: loop body
LE: loop exit
PB: predicated region body
PF: predicated region fallthrough
CT: control target
= control target key end

     0   :  { %vm77_vm0 = vcmask 1040384   ;;  %vm64_vm1 = vcmask 72704   ;;  %vm7611_vm2 = vmmov 1   ;;  %vm219_vm6 = vcmask 523264   ;;  %s10348_s5 = inlined_call_operand.vmem [shape: f32[9,64], index: 5, kind: input, shape index: {}]   ;;  %s10349_s0 = inlined_call_operand.vmem [shape: f32[32,9], index: 0, kind: input, shape index: {}]   ;;  %s10350_s7 = inlined_call_operand.vmem [shape: bf16[64,64], index: 7, kind: input, shape index: {}]   ;;  %s10351_s6 = inlined_call_operand.vmem [shape: f32[1,64], index: 6, kind: input, shape index: {}]   ;;  %s10352_s2 = inlined_call_operand.vmem [shape: f32[512,9], index: 2, kind: input, shape index: {}]   ;;  %s10353_s9 = inlined_call_operand.vmem [shape: bf16[64,128], index: 9, kind: input, shape index: {}]   ;;  %s10354_s8 = inlined_call_operand.vmem [shape: f32[1,64], index: 8, kind: input, shape index: {}]   ;;  %s10355_s11 = inlined_call_operand.vmem [shape: bf16[256,256], index: 11, kind: input, shape index: {}]   ;;  %s10356_s1 = inlined_call_operand.vmem [shape: bf16[32,128], index: 1, kind: input, shape index: {}]   ;;  %s10357_s10 = inlined_call_operand.vmem [shape: f32[1,128], index: 10, kind: input, shape index: {}]   ;;  %s10358_s13 = inlined_call_operand.vmem [shape: bf16[256,256], index: 13, kind: input, shape index: {}]   ;;  %s10359_s3 = inlined_call_operand.vmem [shape: bf16[512,128], index: 3, kind: input, shape index: {}]   ;;  %s10360_s12 = inlined_call_operand.vmem [shape: f32[1,256], index: 12, kind: input, shape index: {}]   ;;  %s10361_s14 = inlined_call_operand.vmem [shape: f32[1,256], index: 14, kind: input, shape index: {}]   ;;  %s10362_s4 = inlined_call_operand.vmem [shape: f32[32,16,3], index: 4, kind: input, shape index: {}]   ;;  %s10363_s15 = inlined_call_operand.vmem [shape: f32[32,3], index: 15, kind: output, shape index: {}]  }
   0x1   :  { %v55_v0 = vld [vmem:[%s10348_s5] sm:$0xff]  ;;  %v56_v1 = vld [vmem:[%s10348_s5 + $0x8] sm:$0x1]  ;;  %vm7700_vm3 = vmpackc.low %vm77_vm0, %vm7611_vm2 }
   0x2   :  { %v7284_v3 = vpack.c.bf16 %v56_v1, %v55_v0  ;;  %v51_v4 = vld [vmem:[%s10349_s0] sm:$0xff]  ;;  %v52_v5 = vld [vmem:[%s10349_s0 + $0x8] sm:$0xff]  ;;  %v53_v7 = vld [vmem:[%s10349_s0 + $0x10] sm:$0xff] }
   0x3   :  { %7010 = vmatprep.mubr.msk.f32.mxu1 %vm64_vm1, %v51_v4  ;;  %v7716_v6 = vld [vmem:[%s10350_s7] sm:$0xff]   ;;  %v54_v8 = vld [vmem:[%s10349_s0 + $0x18] sm:$0xff]  ;;  %v7734_v9 = vld [vmem:[%s10350_s7 + $0x8] sm:$0xff]  }
   0x4   :  { %7286 = vmatprep.subr.msk.bf16.mxu1 %vm7700_vm3, %v7284_v3  ;;  %v7741_v10 = vld [vmem:[%s10350_s7 + $0x10] sm:$0xff]   ;;  %v7748_v11 = vld [vmem:[%s10350_s7 + $0x18] sm:$0xff]   ;;  %v7757_v12 = vld [vmem:[%s10351_s6] ss:$0 sm:$0xff] }
   0x5   :  { %7289 = vmatpush3.bf16.msk.msra.mxu1 %vm7700_vm3, %v7284_v3  ;;  %v385_v31 = vld [vmem:[%s10352_s2] sm:$0xff]  ;;  %v386_v32 = vld [vmem:[%s10352_s2 + $0x8] sm:$0xff]  ;;  %v387_v33 = vld [vmem:[%s10352_s2 + $0x10] sm:$0xff] }
   0x6   :  { %7016 = vmatprep.subr.bf16.mxu1 %v7716_v6  ;;  %v7337_v34 = vld [vmem:[%s10353_s9] sm:$0xff]   ;;  %v7338_v35 = vld [vmem:[%s10353_s9 + $0x8] sm:$0xff]   ;;  %v388_v36 = vld [vmem:[%s10352_s2 + $0x18] sm:$0xff] }
   0x7   :  { %7028 = vmatprep.subr.bf16.mxu0 %v7337_v34  ;;  %v389_v37 = vld [vmem:[%s10352_s2 + $0x20] sm:$0xff]  ;;  %v390_v38 = vld [vmem:[%s10352_s2 + $0x28] sm:$0xff]  ;;  %v391_v39 = vld [vmem:[%s10352_s2 + $0x30] sm:$0xff] }
   0x8   :  { %7011 = vmatmul.mubr.msk.f32.vlgmr.msra.gmra.mrb[0].mxu1 %vm64_vm1, %v52_v5  ;;  %7029 = vmatpush3.bf16.msra.mxu0 %v7337_v34  ;;  %v392_v40 = vld [vmem:[%s10352_s2 + $0x38] sm:$0xff]  ;;  %v393_v41 = vld [vmem:[%s10352_s2 + $0x40] sm:$0xff]  ;;  %v394_v42 = vld [vmem:[%s10352_s2 + $0x48] sm:$0xff] }
   0x9   :  { %7013 = vmatprep.mubr.msk.f32.mxu1 %vm64_vm1, %v53_v7  ;;  %7017 = vmatpush3.bf16.msra.mxu1 %v7716_v6  ;;  %v395_v43 = vld [vmem:[%s10352_s2 + $0x50] sm:$0xff]  ;;  %v396_v44 = vld [vmem:[%s10352_s2 + $0x58] sm:$0xff]  ;;  %v397_v45 = vld [vmem:[%s10352_s2 + $0x60] sm:$0xff] }
   0xa   :  { %7018 = vmatprep.subr.bf16.mxu1 %v7734_v9  ;;  %7030 = vmatprep.subr.bf16.mxu0 %v7338_v35  ;;  %v398_v46 = vld [vmem:[%s10352_s2 + $0x68] sm:$0xff]  ;;  %v399_v47 = vld [vmem:[%s10352_s2 + $0x70] sm:$0xff]  ;;  %v400_v48 = vld [vmem:[%s10352_s2 + $0x78] sm:$0xff] }
   0xb   :  { %v401_v49 = vld [vmem:[%s10352_s2 + $0x80] sm:$0xff]  ;;  %v402_v50 = vld [vmem:[%s10352_s2 + $0x88] sm:$0xff]  ;;  %v403_v51 = vld [vmem:[%s10352_s2 + $0x90] sm:$0xff] }
   0xc   :  { %7014 = vmatmul.mubr.msk.f32.gmra.mrb[2].mxu1 %vm64_vm1, %v54_v8  ;;  %7031 = vmatpush3.bf16.msra.mxu0 %v7338_v35  ;;  %v404_v52 = vld [vmem:[%s10352_s2 + $0x98] sm:$0xff]  ;;  %v405_v53 = vld [vmem:[%s10352_s2 + $0xa0] sm:$0xff]  ;;  %v406_v54 = vld [vmem:[%s10352_s2 + $0xa8] sm:$0xff] }
   0xd   :  { %7019 = vmatpush3.bf16.msra.mxu1 %v7734_v9  ;;  %v407_v55 = vld [vmem:[%s10352_s2 + $0xb0] sm:$0xff]  ;;  %v408_v56 = vld [vmem:[%s10352_s2 + $0xb8] sm:$0xff]  ;;  %v409_v57 = vld [vmem:[%s10352_s2 + $0xc0] sm:$0xff] }
   0xe   :  { %7020 = vmatprep.subr.bf16.mxu1 %v7741_v10  ;;  %v410_v58 = vld [vmem:[%s10352_s2 + $0xc8] sm:$0xff]  ;;  %v411_v59 = vld [vmem:[%s10352_s2 + $0xd0] sm:$0xff]  ;;  %v412_v60 = vld [vmem:[%s10352_s2 + $0xd8] sm:$0xff] }
   0xf   :  { %v413_v61 = vld [vmem:[%s10352_s2 + $0xe0] sm:$0xff]  ;;  %v414_v62 = vld [vmem:[%s10352_s2 + $0xe8] sm:$0xff]  ;;  %v415_v63 = vld [vmem:[%s10352_s2 + $0xf0] sm:$0xff] }
  0x10   :  { %v416_v0 = vld [vmem:[%s10352_s2 + $0xf8] sm:$0xff]  ;;  %v417_v1 = vld [vmem:[%s10352_s2 + $0x100] sm:$0xff]  ;;  %v418_v2 = vld [vmem:[%s10352_s2 + $0x108] sm:$0xff] }
  0x11   :  { %7021 = vmatpush3.bf16.msra.mxu1 %v7741_v10  ;;  %v420_v4 = vld [vmem:[%s10352_s2 + $0x118] sm:$0xff]  ;;  %v421_v5 = vld [vmem:[%s10352_s2 + $0x120] sm:$0xff]  ;;  %v422_v7 = vld [vmem:[%s10352_s2 + $0x128] sm:$0xff] }
  0x12   :  { %7022 = vmatprep.subr.bf16.mxu1 %v7748_v11  ;;  %v423_v8 = vld [vmem:[%s10352_s2 + $0x130] sm:$0xff] }
  0x15   :  { %7023 = vmatpush3.bf16.msra.mxu1 %v7748_v11 }
  0x16   :  { %7292 = vmatprep.subr.msk.bf16.mxu1 %vm7700_vm3, %v7284_v3 }
  0xdb   :  { %v7012_v13 = vpop.f32.mrb[0].mxu1 }
  0xdc   :  { %v153_v14 = vadd.f32 %v7012_v13, %v7757_v12  ;;  %v147_v15 = vpop.f32.mrb[1].mxu1  ;;  %v424_v13 = vld [vmem:[%s10352_s2 + $0x138] sm:$0xff] }
  0xdd   :  { %v148_v16 = vadd.f32 %v7757_v12, %v147_v15  ;;  %v7339_v15 = vld [vmem:[%s10353_s9 + $0x10] sm:$0xff]  }
  0xde   :  { %vm167_vm4 = vcmp.ge.f32.partialorder %v153_v14, 0.0  ;;  %v171_v17 = vmul.f32 0.01, %v153_v14  ;;  %7032 = vmatprep.subr.bf16.mxu0 %v7339_v15 }
  0xdf   :  { %vm166_vm5 = vcmp.ge.f32.partialorder %v148_v16, 0.0  ;;  %v170_v18 = vmul.f32 0.01, %v148_v16  ;;  %v7015_v19 = vpop.f32.mrb[2].mxu1  ;;  %7033 = vmatpush3.bf16.msra.mxu0 %v7339_v15 }
  0xe0   :  { %v175_v20 = vsel %vm167_vm4, %v153_v14, %v171_v17  ;;  %v163_v21 = vadd.f32 %v7015_v19, %v7757_v12  ;;  %v157_v22 = vpop.f32.mrb[3].mxu1  ;;  %v425_v14 = vld [vmem:[%s10352_s2 + $0x140] sm:$0xff]  ;;  %v427_v17 = vld [vmem:[%s10352_s2 + $0x150] sm:$0xff]  ;;  %v428_v19 = vld [vmem:[%s10352_s2 + $0x158] sm:$0xff] }
  0xe1   :  { %v174_v23 = vsel %vm166_vm5, %v148_v16, %v170_v18  ;;  %v158_v24 = vadd.f32 %v7757_v12, %v157_v22  ;;  %v426_v16 = vld [vmem:[%s10352_s2 + $0x148] sm:$0xff]  ;;  %v7340_v18 = vld [vmem:[%s10353_s9 + $0x18] sm:$0xff]   ;;  %v431_v22 = vld [vmem:[%s10352_s2 + $0x170] sm:$0xff] }
  0xe2   :  { %v178_v25 = vpack.c.bf16 %v175_v20, %v174_v23  ;;  %vm169_vm7 = vcmp.ge.f32.partialorder %v163_v21, 0.0  ;;  %v173_v26 = vmul.f32 0.01, %v163_v21  ;;  %v429_v20 = vld [vmem:[%s10352_s2 + $0x160] sm:$0xff]  ;;  %7034 = vmatprep.subr.bf16.mxu0 %v7340_v18  ;;  %v432_v23 = vld [vmem:[%s10352_s2 + $0x178] sm:$0xff] }
  0xe3   :  { %vm168_vm8 = vcmp.ge.f32.partialorder %v158_v24, 0.0  ;;  %v172_v27 = vmul.f32 0.01, %v158_v24  ;;  %7035 = vmatpush3.bf16.msra.mxu0 %v7340_v18 }
  0xe4   :  { %v177_v28 = vsel %vm169_vm7, %v163_v21, %v173_v26  ;;  %7024 = vmatprep.mubr.msk.bf16.mxu1 %vm219_vm6, %v178_v25  ;;  %7140 = vmatprep.subr.bf16.mxu0 %v7716_v6  ;;  %v430_v21 = vld [vmem:[%s10352_s2 + $0x168] sm:$0xff]  ;;  %v435_v26 = vld [vmem:[%s10352_s2 + $0x190] sm:$0xff] }
  0xe5   :  { %v176_v29 = vsel %vm168_vm8, %v158_v24, %v172_v27  ;;  %v433_v24 = vld [vmem:[%s10352_s2 + $0x180] sm:$0xff]  ;;  %v434_v25 = vld [vmem:[%s10352_s2 + $0x188] sm:$0xff]  ;;  %v436_v27 = vld [vmem:[%s10352_s2 + $0x198] sm:$0xff] }
  0xe6   :  { %v179_v30 = vpack.c.bf16 %v177_v28, %v176_v29  ;;  %v437_v28 = vld [vmem:[%s10352_s2 + $0x1a0] sm:$0xff]  ;;  %v438_v29 = vld [vmem:[%s10352_s2 + $0x1a8] sm:$0xff] }
  0xe8   :  { %7025 = vmatmul.mubr.msk.bf16.vlgmr.msra.gmra.mrb[4].mxu1 %vm219_vm6, %v179_v30  ;;  %v439_v30 = vld [vmem:[%s10352_s2 + $0x1b0] sm:$0xff] }
  0xe9   :  { %7295 = vmatpush3.bf16.msk.msra.mxu1 %vm7700_vm3, %v7284_v3  ;;  %7044 = vmatprep.mubr.msk.f32.mxu1 %vm64_vm1, %v385_v31  ;;  %v419_v3 = vld [vmem:[%s10352_s2 + $0x110] sm:$0xff]  ;;  %v440_v31 = vld [vmem:[%s10352_s2 + $0x1b8] sm:$0xff] }
  0xea   :  { %7212 = vmatprep.subr.bf16.mxu1 %v7337_v34 }
  0xf0   :  { %7045 = vmatmul.mubr.msk.f32.vlgmr.msra.gmra.mrb[8].mxu1 %vm64_vm1, %v386_v32  ;;  %v441_v32 = vld [vmem:[%s10352_s2 + $0x1c0] sm:$0xff] }
  0xf1   :  { %7047 = vmatprep.mubr.msk.f32.mxu1 %vm64_vm1, %v387_v33  ;;  %7213 = vmatpush3.bf16.msra.mxu1 %v7337_v34  ;;  %v442_v33 = vld [vmem:[%s10352_s2 + $0x1c8] sm:$0xff]  ;;  %v443_v34 = vld [vmem:[%s10352_s2 + $0x1d0] sm:$0xff] }
  0xf2   :  { %7214 = vmatprep.subr.bf16.mxu1 %v7338_v35 }
  0xf4   :  { %7048 = vmatmul.mubr.msk.f32.gmra.mrb[10].mxu1 %vm64_vm1, %v388_v36  ;;  %v445_v36 = vld [vmem:[%s10352_s2 + $0x1e0] sm:$0xff] }
  0xf5   :  { %7050 = vmatprep.mubr.msk.f32.mxu1 %vm64_vm1, %v389_v37  ;;  %7215 = vmatpush3.bf16.msra.mxu1 %v7338_v35  ;;  %v444_v35 = vld [vmem:[%s10352_s2 + $0x1d8] sm:$0xff]  ;;  %v446_v37 = vld [vmem:[%s10352_s2 + $0x1e8] sm:$0xff] }
  0xf6   :  { %7216 = vmatprep.subr.bf16.mxu1 %v7339_v15 }
  0xf8   :  { %7051 = vmatmul.mubr.msk.f32.gmra.mrb[12].mxu1 %vm64_vm1, %v390_v38  ;;  %v447_v38 = vld [vmem:[%s10352_s2 + $0x1f0] sm:$0xff] }
  0xf9   :  { %7053 = vmatprep.mubr.msk.f32.mxu1 %vm64_vm1, %v391_v39  ;;  %7217 = vmatpush3.bf16.msra.mxu1 %v7339_v15  ;;  %v448_v39 = vld [vmem:[%s10352_s2 + $0x1f8] sm:$0xff] }
  0xfa   :  { %7218 = vmatprep.subr.bf16.mxu1 %v7340_v18 }
  0xfc   :  { %7054 = vmatmul.mubr.msk.f32.gmra.mrb[14].mxu1 %vm64_vm1, %v392_v40  ;;  %v6609_v40 = vld [vmem:[%s10354_s8] ss:$0 sm:$0xff] }
  0xfd   :  { %7056 = vmatprep.mubr.msk.f32.mxu1 %vm64_vm1, %v393_v41  ;;  %7219 = vmatpush3.bf16.msra.mxu1 %v7340_v18 }
 0x100   :  { %7057 = vmatmul.mubr.msk.f32.gmra.mrb[16].mxu1 %vm64_vm1, %v394_v42 }
 0x101   :  { %7059 = vmatprep.mubr.msk.f32.mxu1 %vm64_vm1, %v395_v43 }
 0x104   :  { %7060 = vmatmul.mubr.msk.f32.gmra.mrb[18].mxu1 %vm64_vm1, %v396_v44 }
 0x105   :  { %7062 = vmatprep.mubr.msk.f32.mxu1 %vm64_vm1, %v397_v45 }
 0x108   :  { %7063 = vmatmul.mubr.msk.f32.gmra.mrb[20].mxu1 %vm64_vm1, %v398_v46 }
 0x109   :  { %7065 = vmatprep.mubr.msk.f32.mxu1 %vm64_vm1, %v399_v47 }
 0x10c   :  { %7066 = vmatmul.mubr.msk.f32.gmra.mrb[22].mxu1 %vm64_vm1, %v400_v48 }
 0x10d   :  { %7068 = vmatprep.mubr.msk.f32.mxu1 %vm64_vm1, %v401_v49 }
 0x110   :  { %7069 = vmatmul.mubr.msk.f32.gmra.mrb[24].mxu1 %vm64_vm1, %v402_v50 }
 0x111   :  { %7071 = vmatprep.mubr.msk.f32.mxu1 %vm64_vm1, %v403_v51 }
 0x114   :  { %7072 = vmatmul.mubr.msk.f32.gmra.mrb[26].mxu1 %vm64_vm1, %v404_v52 }
 0x115   :  { %7074 = vmatprep.mubr.msk.f32.mxu1 %vm64_vm1, %v405_v53 }
 0x118   :  { %7075 = vmatmul.mubr.msk.f32.gmra.mrb[28].mxu1 %vm64_vm1, %v406_v54 }
 0x119   :  { %7077 = vmatprep.mubr.msk.f32.mxu1 %vm64_vm1, %v407_v55 }
 0x11c   :  { %7078 = vmatmul.mubr.msk.f32.gmra.mrb[30].mxu1 %vm64_vm1, %v408_v56 }
 0x11d   :  { %7080 = vmatprep.mubr.msk.f32.mxu1 %vm64_vm1, %v409_v57 }
 0x120   :  { %7081 = vmatmul.mubr.msk.f32.gmra.mrb[32].mxu1 %vm64_vm1, %v410_v58 }
 0x121   :  { %7083 = vmatprep.mubr.msk.f32.mxu1 %vm64_vm1, %v411_v59 }
 0x124   :  { %7084 = vmatmul.mubr.msk.f32.gmra.mrb[34].mxu1 %vm64_vm1, %v412_v60 }
 0x125   :  { %7086 = vmatprep.mubr.msk.f32.mxu1 %vm64_vm1, %v413_v61 }
 0x128   :  { %7087 = vmatmul.mubr.msk.f32.gmra.mrb[36].mxu1 %vm64_vm1, %v414_v62 }
 0x129   :  { %7089 = vmatprep.mubr.msk.f32.mxu1 %vm64_vm1, %v415_v63 }
 0x12c   :  { %7090 = vmatmul.mubr.msk.f32.gmra.mrb[38].mxu1 %vm64_vm1, %v416_v0 }
 0x12d   :  { %7092 = vmatprep.mubr.msk.f32.mxu1 %vm64_vm1, %v417_v1 }
 0x130   :  { %7093 = vmatmul.mubr.msk.f32.gmra.mrb[40].mxu1 %vm64_vm1, %v418_v2 }
 0x131   :  { %7095 = vmatprep.mubr.msk.f32.mxu1 %vm64_vm1, %v419_v3 }
 0x134   :  { %7096 = vmatmul.mubr.msk.f32.gmra.mrb[42].mxu1 %vm64_vm1, %v420_v4 }
 0x135   :  { %7098 = vmatprep.mubr.msk.f32.mxu1 %vm64_vm1, %v421_v5 }
 0x138   :  { %7099 = vmatmul.mubr.msk.f32.gmra.mrb[44].mxu1 %vm64_vm1, %v422_v7 }
 0x139   :  { %7101 = vmatprep.mubr.msk.f32.mxu1 %vm64_vm1, %v423_v8 }
 0x13c   :  { %7102 = vmatmul.mubr.msk.f32.gmra.mrb[46].mxu1 %vm64_vm1, %v424_v13 }
 0x13d   :  { %7104 = vmatprep.mubr.msk.f32.mxu1 %vm64_vm1, %v425_v14 }
 0x140   :  { %7105 = vmatmul.mubr.msk.f32.gmra.mrb[48].mxu1 %vm64_vm1, %v426_v16 }
 0x141   :  { %7107 = vmatprep.mubr.msk.f32.mxu1 %vm64_vm1, %v427_v17 }
 0x144   :  { %7108 = vmatmul.mubr.msk.f32.gmra.mrb[50].mxu1 %vm64_vm1, %v428_v19 }
 0x145   :  { %7110 = vmatprep.mubr.msk.f32.mxu1 %vm64_vm1, %v429_v20 }
 0x148   :  { %7111 = vmatmul.mubr.msk.f32.gmra.mrb[52].mxu1 %vm64_vm1, %v430_v21 }
 0x149   :  { %7113 = vmatprep.mubr.msk.f32.mxu1 %vm64_vm1, %v431_v22 }
 0x14c   :  { %7114 = vmatmul.mubr.msk.f32.gmra.mrb[54].mxu1 %vm64_vm1, %v432_v23 }
 0x14d   :  { %7116 = vmatprep.mubr.msk.f32.mxu1 %vm64_vm1, %v433_v24 }
 0x150   :  { %7117 = vmatmul.mubr.msk.f32.gmra.mrb[56].mxu1 %vm64_vm1, %v434_v25 }
 0x151   :  { %7119 = vmatprep.mubr.msk.f32.mxu1 %vm64_vm1, %v435_v26 }
 0x154   :  { %7120 = vmatmul.mubr.msk.f32.gmra.mrb[58].mxu1 %vm64_vm1, %v436_v27 }
 0x155   :  { %7122 = vmatprep.mubr.msk.f32.mxu1 %vm64_vm1, %v437_v28  ;;  %v7343_v28 = vld [vmem:[%s10355_s11 + $0x4] ss:$8 sps:$4 sm:$0xff]  }
 0x158   :  { %7123 = vmatmul.mubr.msk.f32.gmra.mrb[60].mxu1 %vm64_vm1, %v438_v29 }
 0x159   :  { %7125 = vmatprep.mubr.msk.f32.mxu1 %vm64_vm1, %v439_v30 }
 0x15c   :  { %7126 = vmatmul.mubr.msk.f32.gmra.mrb[62].mxu1 %vm64_vm1, %v440_v31 }
 0x15d   :  { %7128 = vmatprep.mubr.msk.f32.mxu1 %vm64_vm1, %v441_v32 }
 0x160   :  { %7129 = vmatmul.mubr.msk.f32.gmra.mrb[64].mxu1 %vm64_vm1, %v442_v33 }
 0x161   :  { %7131 = vmatprep.mubr.msk.f32.mxu1 %vm64_vm1, %v443_v34 }
 0x164   :  { %7132 = vmatmul.mubr.msk.f32.gmra.mrb[66].mxu1 %vm64_vm1, %v444_v35  ;;  %v7341_v35 = vld [vmem:[%s10355_s11] ss:$8 sps:$4 sm:$0xff]  }
 0x165   :  { %7134 = vmatprep.mubr.msk.f32.mxu1 %vm64_vm1, %v445_v36 }
 0x168   :  { %7135 = vmatmul.mubr.msk.f32.gmra.mrb[68].mxu1 %vm64_vm1, %v446_v37 }
 0x169   :  { %7137 = vmatprep.mubr.msk.f32.mxu1 %vm64_vm1, %v447_v38  ;;  %v7346_v38 = vld [vmem:[%s10355_s11 + $0x14] ss:$8 sps:$4 sm:$0xff]  }
 0x16c   :  { %7138 = vmatmul.mubr.msk.f32.gmra.mrb[70].mxu1 %vm64_vm1, %v448_v39 }
 0x1bb   :  { %v7026_v41 = vpop.f32.mrb[4].mxu1 }
 0x1bc   :  { %v269_v42 = vadd.f32 %v7026_v41, %v6609_v40  ;;  %v260_v43 = vpop.f32.mrb[5].mxu1 }
 0x1bd   :  { %v261_v44 = vadd.f32 %v6609_v40, %v260_v43  ;;  %v7027_v45 = vpop.f32.mrb[6].mxu1 }
 0x1be   :  { %v281_v46 = vmul.f32 0.01, %v269_v42  ;;  %v272_v47 = vadd.f32 %v7027_v45, %v6609_v40  ;;  %v263_v48 = vpop.f32.mrb[7].mxu1  ;;  %vm277_vm9 = vcmp.ge.f32.partialorder %v269_v42, 0.0  ;;  %v7344_v45 = vld [vmem:[%s10355_s11 + $0x10] ss:$8 sps:$4 sm:$0xff]  }
 0x1bf   :  { %v279_v49 = vmul.f32 0.01, %v261_v44  ;;  %v264_v50 = vadd.f32 %v6609_v40, %v263_v48  ;;  %vm275_vm11 = vcmp.ge.f32.partialorder %v261_v44, 0.0  ;;  %v7349_v48 = vld [vmem:[%s10355_s11 + $0x24] ss:$8 sps:$4 sm:$0xff]  }
 0x1c0   :  { %vm278_vm10 = vcmp.ge.f32.partialorder %v272_v47, 0.0  ;;  %v282_v51 = vmul.f32 0.01, %v272_v47  ;;  %v285_v53 = vsel %vm277_vm9, %v269_v42, %v281_v46 }
 0x1c1   :  { %v280_v52 = vmul.f32 0.01, %v264_v50  ;;  %vm276_vm12 = vcmp.ge.f32.partialorder %v264_v50, 0.0  ;;  %v283_v56 = vsel %vm275_vm11, %v261_v44, %v279_v49 }
 0x1c2   :  { %v286_v54 = vsel %vm278_vm10, %v272_v47, %v282_v51 }
 0x1c3   :  { %v288_v55 = vpack.c.bf16 %v286_v54, %v285_v53  ;;  %v284_v57 = vsel %vm276_vm12, %v264_v50, %v280_v52  ;;  %v7046_v58 = vpop.f32.mrb[8].mxu1 }
 0x1c4   :  { %v287_v59 = vpack.c.bf16 %v284_v57, %v283_v56  ;;  %v713_v60 = vadd.f32 %v7046_v58, %v7757_v12  ;;  %v707_v61 = vpop.f32.mrb[9].mxu1  ;;  %v7347_v56 = vld [vmem:[%s10355_s11 + $0x20] ss:$8 sps:$4 sm:$0xff]  }
 0x1c5   :  { %v708_v62 = vadd.f32 %v7757_v12, %v707_v61 }
 0x1c6   :  { %7036 = vmatprep.mubr.msk.bf16.mxu0 %vm219_vm6, %v287_v59  ;;  %vm1027_vm13 = vcmp.ge.f32.partialorder %v713_v60, 0.0  ;;  %v1091_v63 = vmul.f32 0.01, %v713_v60  ;;  %v7352_v59 = vld [vmem:[%s10355_s11 + $0x34] ss:$8 sps:$4 sm:$0xff]  }
 0x1c7   :  { %7037 = vmatmul.mubr.msk.bf16.vlgmr.msra.gmra.mrb[0].mxu0 %vm219_vm6, %v288_v55  ;;  %vm1026_vm14 = vcmp.ge.f32.partialorder %v708_v62, 0.0  ;;  %v1090_v0 = vmul.f32 0.01, %v708_v62  ;;  %v7049_v1 = vpop.f32.mrb[10].mxu1 }
 0x1c8   :  { %v1155_v2 = vsel %vm1027_vm13, %v713_v60, %v1091_v63  ;;  %7141 = vmatpush3.bf16.msra.mxu0 %v7716_v6  ;;  %v723_v3 = vadd.f32 %v7049_v1, %v7757_v12  ;;  %v717_v4 = vpop.f32.mrb[11].mxu1 }
 0x1c9   :  { %v1154_v5 = vsel %vm1026_vm14, %v708_v62, %v1090_v0  ;;  %7142 = vmatprep.subr.bf16.mxu0 %v7734_v9  ;;  %v718_v7 = vadd.f32 %v7757_v12, %v717_v4  ;;  %v7350_v0 = vld [vmem:[%s10355_s11 + $0x30] ss:$8 sps:$4 sm:$0xff]  }
 0x1ca   :  { %v1218_v8 = vpack.c.bf16 %v1155_v2, %v1154_v5  ;;  %vm1029_vm15 = vcmp.ge.f32.partialorder %v723_v3, 0.0  ;;  %v1093_v13 = vmul.f32 0.01, %v723_v3 }
 0x1cb   :  { %vm1028_vm0 = vcmp.ge.f32.partialorder %v718_v7, 0.0  ;;  %v1092_v14 = vmul.f32 0.01, %v718_v7  ;;  %v7052_v15 = vpop.f32.mrb[12].mxu1 }
 0x1cc   :  { %v1157_v16 = vsel %vm1029_vm15, %v723_v3, %v1093_v13  ;;  %7143 = vmatpush3.bf16.msra.mxu0 %v7734_v9  ;;  %7148 = vmatprep.mubr.msk.bf16.mxu0 %vm219_vm6, %v1218_v8  ;;  %v733_v6 = vadd.f32 %v7052_v15, %v7757_v12  ;;  %v727_v17 = vpop.f32.mrb[13].mxu1 }
 0x1cd   :  { %v1156_v18 = vsel %vm1028_vm0, %v718_v7, %v1092_v14  ;;  %7144 = vmatprep.subr.bf16.mxu0 %v7741_v10  ;;  %v728_v19 = vadd.f32 %v7757_v12, %v727_v17  ;;  %v7355_v7 = vld [vmem:[%s10355_s11 + $0x44] ss:$8 sps:$4 sm:$0xff]  }
 0x1ce   :  { %v1219_v20 = vpack.c.bf16 %v1157_v16, %v1156_v18  ;;  %vm1031_vm1 = vcmp.ge.f32.partialorder %v733_v6, 0.0  ;;  %v1095_v21 = vmul.f32 0.01, %v733_v6  ;;  %v7353_v18 = vld [vmem:[%s10355_s11 + $0x40] ss:$8 sps:$4 sm:$0xff]  }
 0x1cf   :  { %vm1030_vm2 = vcmp.ge.f32.partialorder %v728_v19, 0.0  ;;  %v1094_v22 = vmul.f32 0.01, %v728_v19  ;;  %v7055_v23 = vpop.f32.mrb[14].mxu1 }
 0x1d0   :  { %7145 = vmatpush3.bf16.msra.mxu0 %v7741_v10  ;;  %v1159_v24 = vsel %vm1031_vm1, %v733_v6, %v1095_v21  ;;  %v743_v9 = vadd.f32 %v7055_v23, %v7757_v12  ;;  %v737_v25 = vpop.f32.mrb[15].mxu1  ;;  %v7358_v21 = vld [vmem:[%s10355_s11 + $0x54] ss:$8 sps:$4 sm:$0xff]  }
 0x1d1   :  { %7146 = vmatprep.subr.bf16.mxu0 %v7748_v11  ;;  %v1158_v26 = vsel %vm1030_vm2, %v728_v19, %v1094_v22  ;;  %v738_v27 = vadd.f32 %v7757_v12, %v737_v25 }
 0x1d2   :  { %v1220_v29 = vpack.c.bf16 %v1159_v24, %v1158_v26  ;;  %vm1033_vm3 = vcmp.ge.f32.partialorder %v743_v9, 0.0  ;;  %v1097_v30 = vmul.f32 0.01, %v743_v9 }
 0x1d3   :  { %vm1032_vm4 = vcmp.ge.f32.partialorder %v738_v27, 0.0  ;;  %v1096_v31 = vmul.f32 0.01, %v738_v27  ;;  %v7058_v32 = vpop.f32.mrb[16].mxu1 }
 0x1d4   :  { %7147 = vmatpush3.bf16.msra.mxu0 %v7748_v11  ;;  %v1161_v10 = vsel %vm1033_vm3, %v743_v9, %v1097_v30  ;;  %v753_v33 = vadd.f32 %v7058_v32, %v7757_v12  ;;  %v747_v34 = vpop.f32.mrb[17].mxu1 }
 0x1d5   :  { %v1160_v36 = vsel %vm1032_vm4, %v738_v27, %v1096_v31  ;;  %v748_v37 = vadd.f32 %v7757_v12, %v747_v34  ;;  %2752 = vmatprep.subr.bf16.mxu0 %v7343_v28  ;;  %v7356_v28 = vld [vmem:[%s10355_s11 + $0x50] ss:$8 sps:$4 sm:$0xff]   ;;  %v7361_v31 = vld [vmem:[%s10355_s11 + $0x64] ss:$8 sps:$4 sm:$0xff]  }
 0x1d6   :  { %v1221_v39 = vpack.c.bf16 %v1161_v10, %v1160_v36  ;;  %vm1035_vm5 = vcmp.ge.f32.partialorder %v753_v33, 0.0  ;;  %v1099_v40 = vmul.f32 0.01, %v753_v33 }
 0x1d7   :  { %7149 = vmatmul.mubr.msk.bf16.vlgmr.msra.gmra.mrb[4].mxu0 %vm219_vm6, %v1219_v20  ;;  %vm1034_vm7 = vcmp.ge.f32.partialorder %v748_v37, 0.0  ;;  %v1098_v11 = vmul.f32 0.01, %v748_v37  ;;  %v7061_v41 = vpop.f32.mrb[18].mxu1 }
 0x1d8   :  { %v1163_v42 = vsel %vm1035_vm5, %v753_v33, %v1099_v40  ;;  %7152 = vmatprep.mubr.msk.bf16.mxu0 %vm219_vm6, %v1220_v29  ;;  %v763_v43 = vadd.f32 %v7061_v41, %v7757_v12  ;;  %v757_v44 = vpop.f32.mrb[19].mxu1  ;;  %2753 = vmatpush1.bf16.msra.mxu0 %v7341_v35 }
 0x1d9   :  { %v1162_v46 = vsel %vm1034_vm7, %v748_v37, %v1098_v11  ;;  %v758_v47 = vadd.f32 %v7757_v12, %v757_v44  ;;  %2754 = vmatprep.subr.bf16.mxu0 %v7346_v38  ;;  %v7359_v38 = vld [vmem:[%s10355_s11 + $0x60] ss:$8 sps:$4 sm:$0xff]   ;;  %v7364_v11 = vld [vmem:[%s10355_s11 + $0x74] ss:$8 sps:$4 sm:$0xff]  }
 0x1da   :  { %v1222_v49 = vpack.c.bf16 %v1163_v42, %v1162_v46  ;;  %vm1037_vm8 = vcmp.ge.f32.partialorder %v763_v43, 0.0  ;;  %v1101_v50 = vmul.f32 0.01, %v763_v43 }
 0x1db   :  { %vm1036_vm9 = vcmp.ge.f32.partialorder %v758_v47, 0.0  ;;  %v1100_v51 = vmul.f32 0.01, %v758_v47  ;;  %v7064_v52 = vpop.f32.mrb[20].mxu1 }
 0x1dc   :  { %v1165_v53 = vsel %vm1037_vm8, %v763_v43, %v1101_v50  ;;  %v773_v54 = vadd.f32 %v7064_v52, %v7757_v12  ;;  %v767_v55 = vpop.f32.mrb[21].mxu1  ;;  %2755 = vmatpush1.bf16.msra.mxu0 %v7344_v45 }
 0x1dd   :  { %v1164_v57 = vsel %vm1036_vm9, %v758_v47, %v1100_v51  ;;  %v768_v58 = vadd.f32 %v7757_v12, %v767_v55  ;;  %2756 = vmatprep.subr.bf16.mxu0 %v7349_v48  ;;  %v7362_v48 = vld [vmem:[%s10355_s11 + $0x70] ss:$8 sps:$4 sm:$0xff]   ;;  %v7367_v51 = vld [vmem:[%s10355_s11 + $0x84] ss:$8 sps:$4 sm:$0xff]  }
 0x1de   :  { %v1223_v60 = vpack.c.bf16 %v1165_v53, %v1164_v57  ;;  %vm1039_vm10 = vcmp.ge.f32.partialorder %v773_v54, 0.0  ;;  %v1103_v61 = vmul.f32 0.01, %v773_v54 }
 0x1df   :  { %7153 = vmatmul.mubr.msk.bf16.gmra.mrb[8].mxu0 %vm219_vm6, %v1221_v39  ;;  %vm1038_vm11 = vcmp.ge.f32.partialorder %v768_v58, 0.0  ;;  %v1102_v62 = vmul.f32 0.01, %v768_v58  ;;  %v7067_v63 = vpop.f32.mrb[22].mxu1 }
 0x1e0   :  { %v1167_v1 = vsel %vm1039_vm10, %v773_v54, %v1103_v61  ;;  %7156 = vmatprep.mubr.msk.bf16.mxu0 %vm219_vm6, %v1222_v49  ;;  %v783_v2 = vadd.f32 %v7067_v63, %v7757_v12  ;;  %v777_v3 = vpop.f32.mrb[23].mxu1  ;;  %2757 = vmatpush1.bf16.msra.mxu0 %v7347_v56 }
 0x1e1   :  { %v1166_v4 = vsel %vm1038_vm11, %v768_v58, %v1102_v62  ;;  %v778_v5 = vadd.f32 %v7757_v12, %v777_v3  ;;  %2758 = vmatprep.subr.bf16.mxu0 %v7352_v59  ;;  %v7365_v59 = vld [vmem:[%s10355_s11 + $0x80] ss:$8 sps:$4 sm:$0xff]   ;;  %v7370_v62 = vld [vmem:[%s10355_s11 + $0x94] ss:$8 sps:$4 sm:$0xff]  }
 0x1e2   :  { %v1224_v8 = vpack.c.bf16 %v1167_v1, %v1166_v4  ;;  %vm1041_vm12 = vcmp.ge.f32.partialorder %v783_v2, 0.0  ;;  %v1105_v13 = vmul.f32 0.01, %v783_v2 }
 0x1e3   :  { %vm1040_vm13 = vcmp.ge.f32.partialorder %v778_v5, 0.0  ;;  %v1104_v14 = vmul.f32 0.01, %v778_v5  ;;  %v7070_v15 = vpop.f32.mrb[24].mxu1 }
 0x1e4   :  { %v1169_v16 = vsel %vm1041_vm12, %v783_v2, %v1105_v13  ;;  %v793_v6 = vadd.f32 %v7070_v15, %v7757_v12  ;;  %v787_v17 = vpop.f32.mrb[25].mxu1  ;;  %2759 = vmatpush1.bf16.msra.mxu0 %v7350_v0 }
 0x1e5   :  { %v1168_v19 = vsel %vm1040_vm13, %v778_v5, %v1104_v14  ;;  %v788_v20 = vadd.f32 %v7757_v12, %v787_v17  ;;  %2760 = vmatprep.subr.bf16.mxu0 %v7355_v7  ;;  %v7368_v7 = vld [vmem:[%s10355_s11 + $0x90] ss:$8 sps:$4 sm:$0xff]   ;;  %v7373_v14 = vld [vmem:[%s10355_s11 + $0xa4] ss:$8 sps:$4 sm:$0xff]  }
 0x1e6   :  { %v1225_v22 = vpack.c.bf16 %v1169_v16, %v1168_v19  ;;  %vm1043_vm14 = vcmp.ge.f32.partialorder %v793_v6, 0.0  ;;  %v1107_v23 = vmul.f32 0.01, %v793_v6 }
 0x1e7   :  { %7157 = vmatmul.mubr.msk.bf16.gmra.mrb[12].mxu0 %vm219_vm6, %v1223_v60  ;;  %vm1042_vm15 = vcmp.ge.f32.partialorder %v788_v20, 0.0  ;;  %v1106_v24 = vmul.f32 0.01, %v788_v20  ;;  %v7073_v9 = vpop.f32.mrb[26].mxu1 }
 0x1e8   :  { %v1171_v25 = vsel %vm1043_vm14, %v793_v6, %v1107_v23  ;;  %7160 = vmatprep.mubr.msk.bf16.mxu0 %vm219_vm6, %v1224_v8  ;;  %v803_v26 = vadd.f32 %v7073_v9, %v7757_v12  ;;  %v797_v27 = vpop.f32.mrb[27].mxu1  ;;  %2761 = vmatpush1.bf16.msra.mxu0 %v7353_v18 }
 0x1e9   :  { %v1170_v29 = vsel %vm1042_vm15, %v788_v20, %v1106_v24  ;;  %v798_v30 = vadd.f32 %v7757_v12, %v797_v27  ;;  %2762 = vmatprep.subr.bf16.mxu0 %v7358_v21  ;;  %v7371_v21 = vld [vmem:[%s10355_s11 + $0xa0] ss:$8 sps:$4 sm:$0xff]   ;;  %v7376_v24 = vld [vmem:[%s10355_s11 + $0xb4] ss:$8 sps:$4 sm:$0xff]  }
 0x1ea   :  { %v1226_v32 = vpack.c.bf16 %v1171_v25, %v1170_v29  ;;  %vm1045_vm0 = vcmp.ge.f32.partialorder %v803_v26, 0.0  ;;  %v1109_v10 = vmul.f32 0.01, %v803_v26 }
 0x1eb   :  { %vm1044_vm1 = vcmp.ge.f32.partialorder %v798_v30, 0.0  ;;  %v1108_v33 = vmul.f32 0.01, %v798_v30  ;;  %v7076_v34 = vpop.f32.mrb[28].mxu1 }
 0x1ec   :  { %v1173_v35 = vsel %vm1045_vm0, %v803_v26, %v1109_v10  ;;  %v813_v36 = vadd.f32 %v7076_v34, %v7757_v12  ;;  %v807_v37 = vpop.f32.mrb[29].mxu1  ;;  %2763 = vmatpush1.bf16.msra.mxu0 %v7356_v28 }
 0x1ed   :  { %v1172_v39 = vsel %vm1044_vm1, %v798_v30, %v1108_v33  ;;  %v808_v40 = vadd.f32 %v7757_v12, %v807_v37  ;;  %2764 = vmatprep.subr.bf16.mxu0 %v7361_v31  ;;  %v7374_v31 = vld [vmem:[%s10355_s11 + $0xb0] ss:$8 sps:$4 sm:$0xff]   ;;  %v7379_v33 = vld [vmem:[%s10355_s11 + $0xc4] ss:$8 sps:$4 sm:$0xff]  }
 0x1ee   :  { %v1227_v41 = vpack.c.bf16 %v1173_v35, %v1172_v39  ;;  %vm1047_vm2 = vcmp.ge.f32.partialorder %v813_v36, 0.0  ;;  %v1111_v42 = vmul.f32 0.01, %v813_v36 }
 0x1ef   :  { %7161 = vmatmul.mubr.msk.bf16.gmra.mrb[16].mxu0 %vm219_vm6, %v1225_v22  ;;  %vm1046_vm3 = vcmp.ge.f32.partialorder %v808_v40, 0.0  ;;  %v1110_v43 = vmul.f32 0.01, %v808_v40  ;;  %v7079_v44 = vpop.f32.mrb[30].mxu1 }
 0x1f0   :  { %v1175_v45 = vsel %vm1047_vm2, %v813_v36, %v1111_v42  ;;  %7164 = vmatprep.mubr.msk.bf16.mxu0 %vm219_vm6, %v1226_v32  ;;  %v823_v46 = vadd.f32 %v7079_v44, %v7757_v12  ;;  %v817_v47 = vpop.f32.mrb[31].mxu1  ;;  %2765 = vmatpush1.bf16.msra.mxu0 %v7359_v38 }
 0x1f1   :  { %v1174_v49 = vsel %vm1046_vm3, %v808_v40, %v1110_v43  ;;  %v818_v50 = vadd.f32 %v7757_v12, %v817_v47  ;;  %2766 = vmatprep.subr.bf16.mxu0 %v7364_v11  ;;  %v7377_v11 = vld [vmem:[%s10355_s11 + $0xc0] ss:$8 sps:$4 sm:$0xff]   ;;  %v7382_v43 = vld [vmem:[%s10355_s11 + $0xd4] ss:$8 sps:$4 sm:$0xff]  }
 0x1f2   :  { %v1228_v52 = vpack.c.bf16 %v1175_v45, %v1174_v49  ;;  %vm1049_vm4 = vcmp.ge.f32.partialorder %v823_v46, 0.0  ;;  %v1113_v53 = vmul.f32 0.01, %v823_v46 }
 0x1f3   :  { %vm1048_vm5 = vcmp.ge.f32.partialorder %v818_v50, 0.0  ;;  %v1112_v54 = vmul.f32 0.01, %v818_v50  ;;  %v7082_v55 = vpop.f32.mrb[32].mxu1 }
 0x1f4   :  { %v1177_v56 = vsel %vm1049_vm4, %v823_v46, %v1113_v53  ;;  %v833_v57 = vadd.f32 %v7082_v55, %v7757_v12  ;;  %v827_v58 = vpop.f32.mrb[33].mxu1  ;;  %2767 = vmatpush1.bf16.msra.mxu0 %v7362_v48 }
 0x1f5   :  { %v1176_v60 = vsel %vm1048_vm5, %v818_v50, %v1112_v54  ;;  %v828_v61 = vadd.f32 %v7757_v12, %v827_v58  ;;  %2768 = vmatprep.subr.bf16.mxu0 %v7367_v51  ;;  %v7380_v51 = vld [vmem:[%s10355_s11 + $0xd0] ss:$8 sps:$4 sm:$0xff]  }
 0x1f6   :  { %v1229_v63 = vpack.c.bf16 %v1177_v56, %v1176_v60  ;;  %vm1051_vm7 = vcmp.ge.f32.partialorder %v833_v57, 0.0  ;;  %v1115_v0 = vmul.f32 0.01, %v833_v57 }
 0x1f7   :  { %7165 = vmatmul.mubr.msk.bf16.gmra.mrb[20].mxu0 %vm219_vm6, %v1227_v41  ;;  %vm1050_vm8 = vcmp.ge.f32.partialorder %v828_v61, 0.0  ;;  %v1114_v1 = vmul.f32 0.01, %v828_v61  ;;  %v7085_v2 = vpop.f32.mrb[34].mxu1 }
 0x1f8   :  { %v1179_v3 = vsel %vm1051_vm7, %v833_v57, %v1115_v0  ;;  %7168 = vmatprep.mubr.msk.bf16.mxu0 %vm219_vm6, %v1228_v52  ;;  %v843_v4 = vadd.f32 %v7085_v2, %v7757_v12  ;;  %v837_v5 = vpop.f32.mrb[35].mxu1  ;;  %2769 = vmatpush1.bf16.msra.mxu0 %v7365_v59  ;;  %v8186_v59 = vld [vmem:[%s10351_s6] ss:$0 sm:$0xff] }
 0x1f9   :  { %v1178_v8 = vsel %vm1050_vm8, %v828_v61, %v1114_v1  ;;  %v838_v13 = vadd.f32 %v7757_v12, %v837_v5  ;;  %2770 = vmatprep.subr.bf16.mxu0 %v7370_v62 }
 0x1fa   :  { %v1230_v15 = vpack.c.bf16 %v1179_v3, %v1178_v8  ;;  %vm1053_vm9 = vcmp.ge.f32.partialorder %v843_v4, 0.0  ;;  %v1117_v16 = vmul.f32 0.01, %v843_v4 }
 0x1fb   :  { %vm1052_vm10 = vcmp.ge.f32.partialorder %v838_v13, 0.0  ;;  %v1116_v6 = vmul.f32 0.01, %v838_v13  ;;  %v7088_v17 = vpop.f32.mrb[36].mxu1 }
 0x1fc   :  { %v1181_v18 = vsel %vm1053_vm9, %v843_v4, %v1117_v16  ;;  %v853_v19 = vadd.f32 %v7088_v17, %v7757_v12  ;;  %v847_v20 = vpop.f32.mrb[37].mxu1  ;;  %2771 = vmatpush1.bf16.msra.mxu0 %v7368_v7 }
 0x1fd   :  { %v1180_v22 = vsel %vm1052_vm10, %v838_v13, %v1116_v6  ;;  %v848_v23 = vadd.f32 %v7757_v12, %v847_v20  ;;  %2772 = vmatprep.subr.bf16.mxu0 %v7373_v14 }
 0x1fe   :  { %v1231_v9 = vpack.c.bf16 %v1181_v18, %v1180_v22  ;;  %vm1055_vm11 = vcmp.ge.f32.partialorder %v853_v19, 0.0  ;;  %v1119_v25 = vmul.f32 0.01, %v853_v19 }
 0x1ff   :  { %7169 = vmatmul.mubr.msk.bf16.gmra.mrb[24].mxu0 %vm219_vm6, %v1229_v63  ;;  %vm1054_vm12 = vcmp.ge.f32.partialorder %v848_v23, 0.0  ;;  %v1118_v26 = vmul.f32 0.01, %v848_v23  ;;  %v7091_v27 = vpop.f32.mrb[38].mxu1 }
 0x200   :  { %v1183_v28 = vsel %vm1055_vm11, %v853_v19, %v1119_v25  ;;  %7172 = vmatprep.mubr.msk.bf16.mxu0 %vm219_vm6, %v1230_v15  ;;  %v863_v29 = vadd.f32 %v7091_v27, %v7757_v12  ;;  %v857_v30 = vpop.f32.mrb[39].mxu1  ;;  %2773 = vmatpush1.bf16.msra.mxu0 %v7371_v21 }
 0x201   :  { %v1182_v32 = vsel %vm1054_vm12, %v848_v23, %v1118_v26  ;;  %v858_v10 = vadd.f32 %v7757_v12, %v857_v30  ;;  %2774 = vmatprep.subr.bf16.mxu0 %v7376_v24 }
 0x202   :  { %v1232_v34 = vpack.c.bf16 %v1183_v28, %v1182_v32  ;;  %vm1057_vm13 = vcmp.ge.f32.partialorder %v863_v29, 0.0  ;;  %v1121_v35 = vmul.f32 0.01, %v863_v29 }
 0x203   :  { %vm1056_vm14 = vcmp.ge.f32.partialorder %v858_v10, 0.0  ;;  %v1120_v36 = vmul.f32 0.01, %v858_v10  ;;  %v7094_v37 = vpop.f32.mrb[40].mxu1 }
 0x204   :  { %v1185_v38 = vsel %vm1057_vm13, %v863_v29, %v1121_v35  ;;  %v873_v39 = vadd.f32 %v7094_v37, %v7757_v12  ;;  %v867_v40 = vpop.f32.mrb[41].mxu1  ;;  %2775 = vmatpush1.bf16.msra.mxu0 %v7374_v31  ;;  %v7383_v35 = vld [vmem:[%s10355_s11 + $0xe0] ss:$8 sps:$4 sm:$0xff]  }
 0x205   :  { %v1184_v41 = vsel %vm1056_vm14, %v858_v10, %v1120_v36  ;;  %v868_v42 = vadd.f32 %v7757_v12, %v867_v40  ;;  %2776 = vmatprep.subr.bf16.mxu0 %v7379_v33  ;;  %v7385_v36 = vld [vmem:[%s10355_s11 + $0xe4] ss:$8 sps:$4 sm:$0xff]  }
 0x206   :  { %v1233_v44 = vpack.c.bf16 %v1185_v38, %v1184_v41  ;;  %vm1059_vm15 = vcmp.ge.f32.partialorder %v873_v39, 0.0  ;;  %v1123_v45 = vmul.f32 0.01, %v873_v39 }
 0x207   :  { %7173 = vmatmul.mubr.msk.bf16.gmra.mrb[28].mxu0 %vm219_vm6, %v1231_v9  ;;  %vm1058_vm0 = vcmp.ge.f32.partialorder %v868_v42, 0.0  ;;  %v1122_v46 = vmul.f32 0.01, %v868_v42  ;;  %v7097_v47 = vpop.f32.mrb[42].mxu1 }
 0x208   :  { %v1187_v48 = vsel %vm1059_vm15, %v873_v39, %v1123_v45  ;;  %7176 = vmatprep.mubr.msk.bf16.mxu0 %vm219_vm6, %v1232_v34  ;;  %v883_v49 = vadd.f32 %v7097_v47, %v7757_v12  ;;  %v877_v50 = vpop.f32.mrb[43].mxu1  ;;  %2777 = vmatpush1.bf16.msra.mxu0 %v7377_v11  ;;  %v7388_v11 = vld [vmem:[%s10355_s11 + $0xf4] ss:$8 sps:$4 sm:$0xff]  }
 0x209   :  { %v1186_v52 = vsel %vm1058_vm0, %v868_v42, %v1122_v46  ;;  %v878_v53 = vadd.f32 %v7757_v12, %v877_v50  ;;  %2778 = vmatprep.subr.bf16.mxu0 %v7382_v43  ;;  %v7386_v46 = vld [vmem:[%s10355_s11 + $0xf0] ss:$8 sps:$4 sm:$0xff]  }
 0x20a   :  { %v1234_v54 = vpack.c.bf16 %v1187_v48, %v1186_v52  ;;  %vm1061_vm1 = vcmp.ge.f32.partialorder %v883_v49, 0.0  ;;  %v1125_v55 = vmul.f32 0.01, %v883_v49 }
 0x20b   :  { %vm1060_vm2 = vcmp.ge.f32.partialorder %v878_v53, 0.0  ;;  %v1124_v56 = vmul.f32 0.01, %v878_v53  ;;  %v7100_v57 = vpop.f32.mrb[44].mxu1 }
 0x20c   :  { %v1189_v58 = vsel %vm1061_vm1, %v883_v49, %v1125_v55  ;;  %v893_v60 = vadd.f32 %v8186_v59, %v7100_v57  ;;  %v887_v61 = vpop.f32.mrb[45].mxu1  ;;  %2779 = vmatpush1.bf16.msra.mxu0 %v7380_v51 }
 0x20d   :  { %v1188_v62 = vsel %vm1060_vm2, %v878_v53, %v1124_v56  ;;  %v888_v12 = vadd.f32 %v8186_v59, %v887_v61  ;;  %2780 = vmatprep.subr.bf16.mxu0 %v7385_v36 }
 0x20e   :  { %v1235_v63 = vpack.c.bf16 %v1189_v58, %v1188_v62  ;;  %vm1063_vm3 = vcmp.ge.f32.partialorder %v893_v60, 0.0  ;;  %v1127_v0 = vmul.f32 0.01, %v893_v60 }
 0x20f   :  { %7177 = vmatmul.mubr.msk.bf16.gmra.mrb[32].mxu0 %vm219_vm6, %v1233_v44  ;;  %vm1062_vm4 = vcmp.ge.f32.partialorder %v888_v12, 0.0  ;;  %v1126_v1 = vmul.f32 0.01, %v888_v12  ;;  %v7103_v2 = vpop.f32.mrb[46].mxu1 }
 0x210   :  { %v1191_v3 = vsel %vm1063_vm3, %v893_v60, %v1127_v0  ;;  %7180 = vmatprep.mubr.msk.bf16.mxu0 %vm219_vm6, %v1234_v54  ;;  %v903_v4 = vadd.f32 %v8186_v59, %v7103_v2  ;;  %v897_v5 = vpop.f32.mrb[47].mxu1  ;;  %2781 = vmatpush1.bf16.msra.mxu0 %v7383_v35 }
 0x211   :  { %v1190_v7 = vsel %vm1062_vm4, %v888_v12, %v1126_v1  ;;  %v898_v8 = vadd.f32 %v8186_v59, %v897_v5  ;;  %2782 = vmatprep.subr.bf16.mxu0 %v7388_v11 }
 0x212   :  { %v1236_v13 = vpack.c.bf16 %v1191_v3, %v1190_v7  ;;  %vm1065_vm5 = vcmp.ge.f32.partialorder %v903_v4, 0.0  ;;  %v1129_v14 = vmul.f32 0.01, %v903_v4 }
 0x213   :  { %vm1064_vm7 = vcmp.ge.f32.partialorder %v898_v8, 0.0  ;;  %v1128_v15 = vmul.f32 0.01, %v898_v8  ;;  %v7106_v16 = vpop.f32.mrb[48].mxu1 }
 0x214   :  { %v1193_v6 = vsel %vm1065_vm5, %v903_v4, %v1129_v14  ;;  %v913_v17 = vadd.f32 %v8186_v59, %v7106_v16  ;;  %v907_v18 = vpop.f32.mrb[49].mxu1  ;;  %2783 = vmatpush1.bf16.msra.mxu0 %v7386_v46 }
 0x215   :  { %v1192_v19 = vsel %vm1064_vm7, %v898_v8, %v1128_v15  ;;  %v908_v20 = vadd.f32 %v8186_v59, %v907_v18 }
 0x216   :  { %v1237_v21 = vpack.c.bf16 %v1193_v6, %v1192_v19  ;;  %vm1067_vm8 = vcmp.ge.f32.partialorder %v913_v17, 0.0  ;;  %v1131_v22 = vmul.f32 0.01, %v913_v17 }
 0x217   :  { %7181 = vmatmul.mubr.msk.bf16.gmra.mrb[36].mxu0 %vm219_vm6, %v1235_v63  ;;  %vm1066_vm9 = vcmp.ge.f32.partialorder %v908_v20, 0.0  ;;  %v1130_v23 = vmul.f32 0.01, %v908_v20  ;;  %v7109_v24 = vpop.f32.mrb[50].mxu1 }
 0x218   :  { %v1195_v9 = vsel %vm1067_vm8, %v913_v17, %v1131_v22  ;;  %7184 = vmatprep.mubr.msk.bf16.mxu0 %vm219_vm6, %v1236_v13  ;;  %v923_v25 = vadd.f32 %v8186_v59, %v7109_v24  ;;  %v917_v26 = vpop.f32.mrb[51].mxu1 }
 0x219   :  { %v1194_v27 = vsel %vm1066_vm9, %v908_v20, %v1130_v23  ;;  %v918_v28 = vadd.f32 %v8186_v59, %v917_v26 }
 0x21a   :  { %v1238_v29 = vpack.c.bf16 %v1195_v9, %v1194_v27  ;;  %vm1069_vm10 = vcmp.ge.f32.partialorder %v923_v25, 0.0  ;;  %v1133_v30 = vmul.f32 0.01, %v923_v25 }
 0x21b   :  { %vm1068_vm11 = vcmp.ge.f32.partialorder %v918_v28, 0.0  ;;  %v1132_v31 = vmul.f32 0.01, %v918_v28  ;;  %v7112_v32 = vpop.f32.mrb[52].mxu1 }
 0x21c   :  { %v1197_v10 = vsel %vm1069_vm10, %v923_v25, %v1133_v30  ;;  %v933_v33 = vadd.f32 %v8186_v59, %v7112_v32  ;;  %v927_v34 = vpop.f32.mrb[53].mxu1 }
 0x21d   :  { %v1196_v37 = vsel %vm1068_vm11, %v918_v28, %v1132_v31  ;;  %v928_v38 = vadd.f32 %v8186_v59, %v927_v34 }
 0x21e   :  { %v1239_v39 = vpack.c.bf16 %v1197_v10, %v1196_v37  ;;  %vm1071_vm12 = vcmp.ge.f32.partialorder %v933_v33, 0.0  ;;  %v1135_v40 = vmul.f32 0.01, %v933_v33 }
 0x21f   :  { %7185 = vmatmul.mubr.msk.bf16.gmra.mrb[40].mxu0 %vm219_vm6, %v1237_v21  ;;  %vm1070_vm13 = vcmp.ge.f32.partialorder %v928_v38, 0.0  ;;  %v1134_v41 = vmul.f32 0.01, %v928_v38  ;;  %v7115_v42 = vpop.f32.mrb[54].mxu1 }
 0x220   :  { %v1199_v43 = vsel %vm1071_vm12, %v933_v33, %v1135_v40  ;;  %7188 = vmatprep.mubr.msk.bf16.mxu0 %vm219_vm6, %v1238_v29  ;;  %v943_v44 = vadd.f32 %v8186_v59, %v7115_v42  ;;  %v937_v45 = vpop.f32.mrb[55].mxu1 }
 0x221   :  { %v1198_v47 = vsel %vm1070_vm13, %v928_v38, %v1134_v41  ;;  %v938_v48 = vadd.f32 %v8186_v59, %v937_v45 }
 0x222   :  { %v1240_v49 = vpack.c.bf16 %v1199_v43, %v1198_v47  ;;  %vm1073_vm14 = vcmp.ge.f32.partialorder %v943_v44, 0.0  ;;  %v1137_v50 = vmul.f32 0.01, %v943_v44 }
 0x223   :  { %vm1072_vm15 = vcmp.ge.f32.partialorder %v938_v48, 0.0  ;;  %v1136_v51 = vmul.f32 0.01, %v938_v48  ;;  %v7118_v52 = vpop.f32.mrb[56].mxu1 }
 0x224   :  { %v1201_v53 = vsel %vm1073_vm14, %v943_v44, %v1137_v50  ;;  %v953_v54 = vadd.f32 %v8186_v59, %v7118_v52  ;;  %v947_v55 = vpop.f32.mrb[57].mxu1 }
 0x225   :  { %v1200_v56 = vsel %vm1072_vm15, %v938_v48, %v1136_v51  ;;  %v948_v57 = vadd.f32 %v8186_v59, %v947_v55 }
 0x226   :  { %v1241_v58 = vpack.c.bf16 %v1201_v53, %v1200_v56  ;;  %vm1075_vm0 = vcmp.ge.f32.partialorder %v953_v54, 0.0  ;;  %v1139_v60 = vmul.f32 0.01, %v953_v54 }
 0x227   :  { %7189 = vmatmul.mubr.msk.bf16.gmra.mrb[44].mxu0 %vm219_vm6, %v1239_v39  ;;  %vm1074_vm1 = vcmp.ge.f32.partialorder %v948_v57, 0.0  ;;  %v1138_v61 = vmul.f32 0.01, %v948_v57  ;;  %v7121_v62 = vpop.f32.mrb[58].mxu1 }
 0x228   :  { %7192 = vmatprep.mubr.msk.bf16.mxu0 %vm219_vm6, %v1240_v49  ;;  %v1203_v12 = vsel %vm1075_vm0, %v953_v54, %v1139_v60  ;;  %v963_v63 = vadd.f32 %v8186_v59, %v7121_v62  ;;  %v957_v0 = vpop.f32.mrb[59].mxu1 }
 0x229   :  { %v1202_v1 = vsel %vm1074_vm1, %v948_v57, %v1138_v61  ;;  %v958_v2 = vadd.f32 %v8186_v59, %v957_v0 }
 0x22a   :  { %v1242_v3 = vpack.c.bf16 %v1203_v12, %v1202_v1  ;;  %vm1077_vm2 = vcmp.ge.f32.partialorder %v963_v63, 0.0  ;;  %v1141_v4 = vmul.f32 0.01, %v963_v63  ;;  %v6616_v1 = vld [vmem:[%s10357_s10] ss:$0 sm:$0xff] }
 0x22b   :  { %vm1076_vm3 = vcmp.ge.f32.partialorder %v958_v2, 0.0  ;;  %v1140_v5 = vmul.f32 0.01, %v958_v2  ;;  %v7124_v7 = vpop.f32.mrb[60].mxu1 }
 0x22c   :  { %v1205_v8 = vsel %vm1077_vm2, %v963_v63, %v1141_v4  ;;  %v973_v13 = vadd.f32 %v8186_v59, %v7124_v7  ;;  %v967_v14 = vpop.f32.mrb[61].mxu1 }
 0x22d   :  { %v1204_v15 = vsel %vm1076_vm3, %v958_v2, %v1140_v5  ;;  %v968_v16 = vadd.f32 %v8186_v59, %v967_v14  ;;  %v7389_v14 = vld [vmem:[%s10356_s1] sm:$0xff]  }
 0x22e   :  { %v1243_v6 = vpack.c.bf16 %v1205_v8, %v1204_v15  ;;  %vm1079_vm4 = vcmp.ge.f32.partialorder %v973_v13, 0.0  ;;  %v1143_v17 = vmul.f32 0.01, %v973_v13 }
 0x22f   :  { %7193 = vmatmul.mubr.msk.bf16.gmra.mrb[48].mxu0 %vm219_vm6, %v1241_v58  ;;  %vm1078_vm5 = vcmp.ge.f32.partialorder %v968_v16, 0.0  ;;  %v1142_v18 = vmul.f32 0.01, %v968_v16  ;;  %v7127_v19 = vpop.f32.mrb[62].mxu1 }
 0x230   :  { %7196 = vmatprep.mubr.msk.bf16.mxu0 %vm219_vm6, %v1242_v3  ;;  %v1207_v20 = vsel %vm1079_vm4, %v973_v13, %v1143_v17  ;;  %v983_v21 = vadd.f32 %v8186_v59, %v7127_v19  ;;  %v977_v22 = vpop.f32.mrb[63].mxu1 }
 0x231   :  { %v1206_v23 = vsel %vm1078_vm5, %v968_v16, %v1142_v18  ;;  %v978_v24 = vadd.f32 %v8186_v59, %v977_v22 }
 0x232   :  { %v1244_v9 = vpack.c.bf16 %v1207_v20, %v1206_v23  ;;  %vm1081_vm7 = vcmp.ge.f32.partialorder %v983_v21, 0.0  ;;  %v1145_v25 = vmul.f32 0.01, %v983_v21 }
 0x233   :  { %vm1080_vm8 = vcmp.ge.f32.partialorder %v978_v24, 0.0  ;;  %v1144_v26 = vmul.f32 0.01, %v978_v24  ;;  %v7130_v27 = vpop.f32.mrb[64].mxu1 }
 0x234   :  { %v1209_v28 = vsel %vm1081_vm7, %v983_v21, %v1145_v25  ;;  %v993_v29 = vadd.f32 %v8186_v59, %v7130_v27  ;;  %v987_v30 = vpop.f32.mrb[65].mxu1  ;;  %v7390_v21 = vld [vmem:[%s10358_s13] ss:$8 sps:$4 sm:$0xff]  }
 0x235   :  { %v1208_v31 = vsel %vm1080_vm8, %v978_v24, %v1144_v26  ;;  %v988_v32 = vadd.f32 %v8186_v59, %v987_v30  ;;  %v7395_v30 = vld [vmem:[%s10358_s13 + $0x14] ss:$8 sps:$4 sm:$0xff]  }
 0x236   :  { %v1245_v10 = vpack.c.bf16 %v1209_v28, %v1208_v31  ;;  %vm1083_vm9 = vcmp.ge.f32.partialorder %v993_v29, 0.0  ;;  %v1147_v33 = vmul.f32 0.01, %v993_v29  ;;  %v7393_v28 = vld [vmem:[%s10358_s13 + $0x10] ss:$8 sps:$4 sm:$0xff]  }
 0x237   :  { %7197 = vmatmul.mubr.msk.bf16.gmra.mrb[52].mxu0 %vm219_vm6, %v1243_v6  ;;  %vm1082_vm10 = vcmp.ge.f32.partialorder %v988_v32, 0.0  ;;  %v1146_v34 = vmul.f32 0.01, %v988_v32  ;;  %v7133_v35 = vpop.f32.mrb[66].mxu1  ;;  %v8254_v6 = vld [vmem:[%s10354_s8] ss:$0 sm:$0xff] }
 0x238   :  { %7200 = vmatprep.mubr.msk.bf16.mxu0 %vm219_vm6, %v1244_v9  ;;  %v1211_v36 = vsel %vm1083_vm9, %v993_v29, %v1147_v33  ;;  %v1003_v37 = vadd.f32 %v8186_v59, %v7133_v35  ;;  %v997_v38 = vpop.f32.mrb[67].mxu1  ;;  %v7392_v9 = vld [vmem:[%s10358_s13 + $0x4] ss:$8 sps:$4 sm:$0xff]  }
 0x239   :  { %v1210_v39 = vsel %vm1082_vm10, %v988_v32, %v1146_v34  ;;  %v998_v40 = vadd.f32 %v8186_v59, %v997_v38  ;;  %3009 = vmatprep.subr.bf16.mxu0 %v7392_v9  ;;  %7296 = vmatprep.subr.bf16.mxu1 %v7392_v9 }
 0x23a   :  { %v1246_v11 = vpack.c.bf16 %v1211_v36, %v1210_v39  ;;  %vm1085_vm11 = vcmp.ge.f32.partialorder %v1003_v37, 0.0  ;;  %v1149_v41 = vmul.f32 0.01, %v1003_v37 }
 0x23b   :  { %vm1084_vm12 = vcmp.ge.f32.partialorder %v998_v40, 0.0  ;;  %v1148_v42 = vmul.f32 0.01, %v998_v40  ;;  %v7136_v43 = vpop.f32.mrb[68].mxu1 }
 0x23c   :  { %v1213_v44 = vsel %vm1085_vm11, %v1003_v37, %v1149_v41  ;;  %v1013_v45 = vadd.f32 %v8186_v59, %v7136_v43  ;;  %v1007_v46 = vpop.f32.mrb[69].mxu1  ;;  %v7396_v41 = vld [vmem:[%s10358_s13 + $0x20] ss:$8 sps:$4 sm:$0xff]  }
 0x23d   :  { %v1212_v47 = vsel %vm1084_vm12, %v998_v40, %v1148_v42  ;;  %v1008_v48 = vadd.f32 %v8186_v59, %v1007_v46 }
 0x23e   :  { %v1247_v49 = vpack.c.bf16 %v1213_v44, %v1212_v47  ;;  %vm1087_vm13 = vcmp.ge.f32.partialorder %v1013_v45, 0.0  ;;  %v1151_v50 = vmul.f32 0.01, %v1013_v45 }
 0x23f   :  { %7201 = vmatmul.mubr.msk.bf16.gmra.mrb[56].mxu0 %vm219_vm6, %v1245_v10  ;;  %vm1086_vm14 = vcmp.ge.f32.partialorder %v1008_v48, 0.0  ;;  %v1150_v51 = vmul.f32 0.01, %v1008_v48  ;;  %v7139_v52 = vpop.f32.mrb[70].mxu1  ;;  %v7398_v10 = vld [vmem:[%s10358_s13 + $0x24] ss:$8 sps:$4 sm:$0xff]  }
 0x240   :  { %7204 = vmatprep.mubr.msk.bf16.mxu0 %vm219_vm6, %v1246_v11  ;;  %v1215_v53 = vsel %vm1087_vm13, %v1013_v45, %v1151_v50  ;;  %v1023_v54 = vadd.f32 %v8186_v59, %v7139_v52  ;;  %v1017_v55 = vpop.f32.mrb[71].mxu1  ;;  %v7401_v45 = vld [vmem:[%s10358_s13 + $0x34] ss:$8 sps:$4 sm:$0xff]   ;;  %v7399_v50 = vld [vmem:[%s10358_s13 + $0x30] ss:$8 sps:$4 sm:$0xff]  }
 0x241   :  { %v1214_v56 = vsel %vm1086_vm14, %v1008_v48, %v1150_v51  ;;  %v1018_v57 = vadd.f32 %v8186_v59, %v1017_v55 }
 0x242   :  { %v1248_v58 = vpack.c.bf16 %v1215_v53, %v1214_v56  ;;  %vm1089_vm15 = vcmp.ge.f32.partialorder %v1023_v54, 0.0  ;;  %v1153_v60 = vmul.f32 0.01, %v1023_v54  ;;  %v7404_v53 = vld [vmem:[%s10358_s13 + $0x44] ss:$8 sps:$4 sm:$0xff]  }
 0x243   :  { %vm1088_vm0 = vcmp.ge.f32.partialorder %v1018_v57, 0.0  ;;  %v1152_v61 = vmul.f32 0.01, %v1018_v57 }
 0x244   :  { %v1217_v62 = vsel %vm1089_vm15, %v1023_v54, %v1153_v60 }
 0x245   :  { %v1216_v12 = vsel %vm1088_vm0, %v1018_v57, %v1152_v61 }
 0x246   :  { %v1249_v63 = vpack.c.bf16 %v1217_v62, %v1216_v12 }
 0x247   :  { %7205 = vmatmul.mubr.msk.bf16.gmra.mrb[60].mxu0 %vm219_vm6, %v1247_v49 }
 0x248   :  { %7208 = vmatprep.mubr.msk.bf16.mxu0 %vm219_vm6, %v1248_v58 }
 0x24f   :  { %7209 = vmatmul.mubr.msk.bf16.gmra.mrb[64].mxu0 %vm219_vm6, %v1249_v63  ;;  %v7402_v63 = vld [vmem:[%s10358_s13 + $0x40] ss:$8 sps:$4 sm:$0xff]  }
 0x29a   :  { %v7038_v0 = vpop.f32.mrb[0].mxu0 }
 0x29b   :  { %v368_v59 = vpop.f32.mrb[1].mxu0  ;;  %v377_v3 = vadd.f32 %v7038_v0, %v6616_v1 }
 0x29c   :  { %v7039_v2 = vpop.f32.mrb[2].mxu0  ;;  %v369_v7 = vadd.f32 %v6616_v1, %v368_v59 }
 0x29d   :  { %v380_v4 = vadd.f32 %v7039_v2, %v6616_v1  ;;  %v371_v5 = vpop.f32.mrb[3].mxu0  ;;  %v7407_v2 = vld [vmem:[%s10358_s13 + $0x54] ss:$8 sps:$4 sm:$0xff]  }
 0x29e   :  { %v372_v8 = vadd.f32 %v6616_v1, %v371_v5 }
 0x29f   :  { %v384_v13 = vpack.c.bf16 %v380_v4, %v377_v3 }
 0x2a0   :  { %v383_v15 = vpack.c.bf16 %v372_v8, %v369_v7  ;;  %v7405_v8 = vld [vmem:[%s10358_s13 + $0x50] ss:$8 sps:$4 sm:$0xff]  }
 0x2a2   :  { %2784 = vmatprep.mubr.bf16.mxu0 %v383_v15  ;;  %v7410_v15 = vld [vmem:[%s10358_s13 + $0x64] ss:$8 sps:$4 sm:$0xff]  }
 0x2a3   :  { %2785 = vmatmul.mubr.bf16.vlgmr.msra.gmra.mrb[68].mxu0 %v7389_v14 }
 0x2a4   :  { %2794 = vmatprep.mubr.bf16.mxu0 %v384_v13  ;;  %3010 = vmatpush1.bf16.msra.mxu0 %v7390_v21 }
 0x2a5   :  { %3011 = vmatprep.subr.bf16.mxu0 %v7395_v30 }
 0x2a8   :  { %3012 = vmatpush1.bf16.msra.mxu0 %v7393_v28 }
 0x2a9   :  { %3013 = vmatprep.subr.bf16.mxu0 %v7398_v10 }
 0x2aa   :  { %v7150_v16 = vpop.f32.mrb[4].mxu0 }
 0x2ab   :  { %v1389_v17 = vadd.f32 %v8254_v6, %v7150_v16  ;;  %v1380_v18 = vpop.f32.mrb[5].mxu0 }
 0x2ac   :  { %v1381_v19 = vadd.f32 %v8254_v6, %v1380_v18  ;;  %v7151_v20 = vpop.f32.mrb[6].mxu0  ;;  %3014 = vmatpush1.bf16.msra.mxu0 %v7396_v41 }
 0x2ad   :  { %vm1637_vm1 = vcmp.ge.f32.partialorder %v1389_v17, 0.0  ;;  %v1701_v22 = vmul.f32 0.01, %v1389_v17  ;;  %v1392_v23 = vadd.f32 %v8254_v6, %v7151_v20  ;;  %v1383_v24 = vpop.f32.mrb[7].mxu0  ;;  %3015 = vmatprep.subr.bf16.mxu0 %v7401_v45  ;;  %v7432_v20 = vld [vmem:[%s10356_s1 + $0x8] sm:$0xff]  }
 0x2ae   :  { %vm1635_vm2 = vcmp.ge.f32.partialorder %v1381_v19, 0.0  ;;  %v1699_v25 = vmul.f32 0.01, %v1381_v19  ;;  %v1384_v26 = vadd.f32 %v8254_v6, %v1383_v24  ;;  %2795 = vmatmul.mubr.bf16.gmra.mrb[72].mxu0 %v7432_v20 }
 0x2af   :  { %vm1638_vm3 = vcmp.ge.f32.partialorder %v1392_v23, 0.0  ;;  %v1702_v27 = vmul.f32 0.01, %v1392_v23  ;;  %v1765_v31 = vsel %vm1637_vm1, %v1389_v17, %v1701_v22 }
 0x2b0   :  { %vm1636_vm4 = vcmp.ge.f32.partialorder %v1384_v26, 0.0  ;;  %v1700_v29 = vmul.f32 0.01, %v1384_v26  ;;  %v1763_v33 = vsel %vm1635_vm2, %v1381_v19, %v1699_v25  ;;  %3016 = vmatpush1.bf16.msra.mxu0 %v7399_v50  ;;  %v7408_v25 = vld [vmem:[%s10358_s13 + $0x60] ss:$8 sps:$4 sm:$0xff]  }
 0x2b1   :  { %v1766_v32 = vsel %vm1638_vm3, %v1392_v23, %v1702_v27  ;;  %3017 = vmatprep.subr.bf16.mxu0 %v7404_v53 }
 0x2b2   :  { %v1828_v34 = vpack.c.bf16 %v1766_v32, %v1765_v31  ;;  %v1764_v35 = vsel %vm1636_vm4, %v1384_v26, %v1700_v29  ;;  %v7154_v36 = vpop.f32.mrb[8].mxu0  ;;  %v7413_v29 = vld [vmem:[%s10358_s13 + $0x74] ss:$8 sps:$4 sm:$0xff]  }
 0x2b3   :  { %v1827_v37 = vpack.c.bf16 %v1764_v35, %v1763_v33  ;;  %v1405_v38 = vadd.f32 %v8254_v6, %v7154_v36  ;;  %v1396_v39 = vpop.f32.mrb[9].mxu0  ;;  %v7411_v33 = vld [vmem:[%s10358_s13 + $0x70] ss:$8 sps:$4 sm:$0xff]   ;;  %v7416_v36 = vld [vmem:[%s10358_s13 + $0x84] ss:$8 sps:$4 sm:$0xff]  }
 0x2b4   :  { %v1397_v40 = vadd.f32 %v8254_v6, %v1396_v39  ;;  %v7155_v11 = vpop.f32.mrb[10].mxu0  ;;  %3018 = vmatpush1.bf16.msra.mxu0 %v7402_v63 }
 0x2b5   :  { %v1705_v42 = vmul.f32 0.01, %v1405_v38  ;;  %v1408_v43 = vadd.f32 %v8254_v6, %v7155_v11  ;;  %v1399_v44 = vpop.f32.mrb[11].mxu0  ;;  %7220 = vmatprep.mubr.msk.bf16.mxu1 %vm219_vm6, %v1827_v37  ;;  %vm1641_vm5 = vcmp.ge.f32.partialorder %v1405_v38, 0.0  ;;  %3019 = vmatprep.subr.bf16.mxu0 %v7407_v2 }
 0x2b6   :  { %v1703_v46 = vmul.f32 0.01, %v1397_v40  ;;  %v1400_v47 = vadd.f32 %v8254_v6, %v1399_v44  ;;  %7221 = vmatmul.mubr.msk.bf16.vlgmr.msra.gmra.mrb[72].mxu1 %vm219_vm6, %v1828_v34  ;;  %vm1639_vm7 = vcmp.ge.f32.partialorder %v1397_v40, 0.0 }
 0x2b7   :  { %vm1642_vm8 = vcmp.ge.f32.partialorder %v1408_v43, 0.0  ;;  %v1706_v48 = vmul.f32 0.01, %v1408_v43  ;;  %7312 = vmatpush1.bf16.msra.mxu1 %v7390_v21  ;;  %v1769_v51 = vsel %vm1641_vm5, %v1405_v38, %v1705_v42 }
 0x2b8   :  { %vm1640_vm9 = vcmp.ge.f32.partialorder %v1400_v47, 0.0  ;;  %v1704_v49 = vmul.f32 0.01, %v1400_v47  ;;  %7297 = vmatprep.subr.bf16.mxu1 %v7395_v30  ;;  %v1767_v54 = vsel %vm1639_vm7, %v1397_v40, %v1703_v46  ;;  %3020 = vmatpush1.bf16.msra.mxu0 %v7405_v8 }
 0x2b9   :  { %v1770_v52 = vsel %vm1642_vm8, %v1408_v43, %v1706_v48  ;;  %3021 = vmatprep.subr.bf16.mxu0 %v7410_v15 }
 0x2ba   :  { %v1830_v55 = vpack.c.bf16 %v1770_v52, %v1769_v51  ;;  %v1768_v56 = vsel %vm1640_vm9, %v1400_v47, %v1704_v49  ;;  %v7158_v57 = vpop.f32.mrb[12].mxu0  ;;  %v7419_v49 = vld [vmem:[%s10358_s13 + $0x94] ss:$8 sps:$4 sm:$0xff]  }
 0x2bb   :  { %v1829_v58 = vpack.c.bf16 %v1768_v56, %v1767_v54  ;;  %v1421_v60 = vadd.f32 %v8254_v6, %v7158_v57  ;;  %v1412_v61 = vpop.f32.mrb[13].mxu0  ;;  %7313 = vmatpush1.bf16.msra.mxu1 %v7393_v28  ;;  %v7417_v54 = vld [vmem:[%s10358_s13 + $0x90] ss:$8 sps:$4 sm:$0xff]   ;;  %v7422_v57 = vld [vmem:[%s10358_s13 + $0xa4] ss:$8 sps:$4 sm:$0xff]  }
 0x2bc   :  { %v1413_v62 = vadd.f32 %v8254_v6, %v1412_v61  ;;  %v7159_v12 = vpop.f32.mrb[14].mxu0  ;;  %7298 = vmatprep.subr.bf16.mxu1 %v7398_v10  ;;  %3022 = vmatpush1.bf16.msra.mxu0 %v7408_v25 }
 0x2bd   :  { %v1709_v0 = vmul.f32 0.01, %v1421_v60  ;;  %v1424_v1 = vadd.f32 %v8254_v6, %v7159_v12  ;;  %v1415_v59 = vpop.f32.mrb[15].mxu0  ;;  %7224 = vmatprep.mubr.msk.bf16.mxu1 %vm219_vm6, %v1829_v58  ;;  %vm1645_vm10 = vcmp.ge.f32.partialorder %v1421_v60, 0.0  ;;  %3023 = vmatprep.subr.bf16.mxu0 %v7413_v29 }
 0x2be   :  { %v1707_v3 = vmul.f32 0.01, %v1413_v62  ;;  %v1416_v4 = vadd.f32 %v8254_v6, %v1415_v59  ;;  %7225 = vmatmul.mubr.msk.bf16.gmra.mrb[76].mxu1 %vm219_vm6, %v1830_v55  ;;  %vm1643_vm11 = vcmp.ge.f32.partialorder %v1413_v62, 0.0 }
 0x2bf   :  { %vm1646_vm12 = vcmp.ge.f32.partialorder %v1424_v1, 0.0  ;;  %v1710_v5 = vmul.f32 0.01, %v1424_v1  ;;  %7314 = vmatpush1.bf16.msra.mxu1 %v7396_v41  ;;  %v1773_v13 = vsel %vm1645_vm10, %v1421_v60, %v1709_v0 }
 0x2c0   :  { %vm1644_vm13 = vcmp.ge.f32.partialorder %v1416_v4, 0.0  ;;  %v1708_v7 = vmul.f32 0.01, %v1416_v4  ;;  %7299 = vmatprep.subr.bf16.mxu1 %v7401_v45  ;;  %v1771_v16 = vsel %vm1643_vm11, %v1413_v62, %v1707_v3  ;;  %3024 = vmatpush1.bf16.msra.mxu0 %v7411_v33  ;;  %v7414_v45 = vld [vmem:[%s10358_s13 + $0x80] ss:$8 sps:$4 sm:$0xff]  }
 0x2c1   :  { %v1774_v14 = vsel %vm1646_vm12, %v1424_v1, %v1710_v5  ;;  %3025 = vmatprep.subr.bf16.mxu0 %v7416_v36 }
 0x2c2   :  { %v1832_v17 = vpack.c.bf16 %v1774_v14, %v1773_v13  ;;  %v1772_v18 = vsel %vm1644_vm13, %v1416_v4, %v1708_v7  ;;  %v7162_v19 = vpop.f32.mrb[16].mxu0  ;;  %v7425_v7 = vld [vmem:[%s10358_s13 + $0xb4] ss:$8 sps:$4 sm:$0xff]  }
 0x2c3   :  { %v1831_v21 = vpack.c.bf16 %v1772_v18, %v1771_v16  ;;  %v1437_v22 = vadd.f32 %v8254_v6, %v7162_v19  ;;  %v1428_v23 = vpop.f32.mrb[17].mxu0  ;;  %7315 = vmatpush1.bf16.msra.mxu1 %v7399_v50  ;;  %v7423_v16 = vld [vmem:[%s10358_s13 + $0xb0] ss:$8 sps:$4 sm:$0xff]   ;;  %v7428_v19 = vld [vmem:[%s10358_s13 + $0xc4] ss:$8 sps:$4 sm:$0xff]  }
 0x2c4   :  { %v1429_v24 = vadd.f32 %v8254_v6, %v1428_v23  ;;  %v7163_v9 = vpop.f32.mrb[18].mxu0  ;;  %7300 = vmatprep.subr.bf16.mxu1 %v7404_v53  ;;  %3026 = vmatpush1.bf16.msra.mxu0 %v7414_v45 }
 0x2c5   :  { %v1713_v26 = vmul.f32 0.01, %v1437_v22  ;;  %v1440_v27 = vadd.f32 %v8254_v6, %v7163_v9  ;;  %v1431_v28 = vpop.f32.mrb[19].mxu0  ;;  %7228 = vmatprep.mubr.msk.bf16.mxu1 %vm219_vm6, %v1831_v21  ;;  %vm1649_vm14 = vcmp.ge.f32.partialorder %v1437_v22, 0.0  ;;  %3027 = vmatprep.subr.bf16.mxu0 %v7419_v49 }
 0x2c6   :  { %v1711_v30 = vmul.f32 0.01, %v1429_v24  ;;  %v1432_v31 = vadd.f32 %v8254_v6, %v1431_v28  ;;  %7229 = vmatmul.mubr.msk.bf16.gmra.mrb[80].mxu1 %vm219_vm6, %v1832_v17  ;;  %vm1647_vm15 = vcmp.ge.f32.partialorder %v1429_v24, 0.0  ;;  %v7426_v28 = vld [vmem:[%s10358_s13 + $0xc0] ss:$8 sps:$4 sm:$0xff]  }
 0x2c7   :  { %vm1650_vm0 = vcmp.ge.f32.partialorder %v1440_v27, 0.0  ;;  %v1714_v32 = vmul.f32 0.01, %v1440_v27  ;;  %7316 = vmatpush1.bf16.msra.mxu1 %v7402_v63  ;;  %v1777_v34 = vsel %vm1649_vm14, %v1437_v22, %v1713_v26 }
 0x2c8   :  { %vm1648_vm1 = vcmp.ge.f32.partialorder %v1432_v31, 0.0  ;;  %v1712_v10 = vmul.f32 0.01, %v1432_v31  ;;  %7301 = vmatprep.subr.bf16.mxu1 %v7407_v2  ;;  %v1775_v37 = vsel %vm1647_vm15, %v1429_v24, %v1711_v30  ;;  %3028 = vmatpush1.bf16.msra.mxu0 %v7417_v54  ;;  %v7420_v2 = vld [vmem:[%s10358_s13 + $0xa0] ss:$8 sps:$4 sm:$0xff]  }
 0x2c9   :  { %v1778_v35 = vsel %vm1650_vm0, %v1440_v27, %v1714_v32  ;;  %3029 = vmatprep.subr.bf16.mxu0 %v7422_v57  ;;  %v7431_v32 = vld [vmem:[%s10358_s13 + $0xd4] ss:$8 sps:$4 sm:$0xff]  }
 0x2ca   :  { %v1834_v38 = vpack.c.bf16 %v1778_v35, %v1777_v34  ;;  %v1776_v39 = vsel %vm1648_vm1, %v1432_v31, %v1712_v10  ;;  %v7166_v40 = vpop.f32.mrb[20].mxu0 }
 0x2cb   :  { %v1833_v11 = vpack.c.bf16 %v1776_v39, %v1775_v37  ;;  %v1453_v41 = vadd.f32 %v8254_v6, %v7166_v40  ;;  %v1444_v42 = vpop.f32.mrb[21].mxu0  ;;  %7317 = vmatpush1.bf16.msra.mxu1 %v7405_v8 }
 0x2cc   :  { %v1445_v43 = vadd.f32 %v8254_v6, %v1444_v42  ;;  %v7167_v44 = vpop.f32.mrb[22].mxu0  ;;  %7302 = vmatprep.subr.bf16.mxu1 %v7410_v15  ;;  %3030 = vmatpush1.bf16.msra.mxu0 %v7420_v2 }
 0x2cd   :  { %v1717_v46 = vmul.f32 0.01, %v1453_v41  ;;  %v1456_v47 = vadd.f32 %v8254_v6, %v7167_v44  ;;  %v1447_v48 = vpop.f32.mrb[23].mxu0  ;;  %7232 = vmatprep.mubr.msk.bf16.mxu1 %vm219_vm6, %v1833_v11  ;;  %vm1653_vm2 = vcmp.ge.f32.partialorder %v1453_v41, 0.0  ;;  %3031 = vmatprep.subr.bf16.mxu0 %v7425_v7 }
 0x2ce   :  { %v1715_v50 = vmul.f32 0.01, %v1445_v43  ;;  %v1448_v51 = vadd.f32 %v8254_v6, %v1447_v48  ;;  %7233 = vmatmul.mubr.msk.bf16.gmra.mrb[84].mxu1 %vm219_vm6, %v1834_v38  ;;  %vm1651_vm3 = vcmp.ge.f32.partialorder %v1445_v43, 0.0 }
 0x2cf   :  { %vm1654_vm4 = vcmp.ge.f32.partialorder %v1456_v47, 0.0  ;;  %v1718_v52 = vmul.f32 0.01, %v1456_v47  ;;  %7318 = vmatpush1.bf16.msra.mxu1 %v7408_v25  ;;  %v1781_v55 = vsel %vm1653_vm2, %v1453_v41, %v1717_v46 }
 0x2d0   :  { %vm1652_vm5 = vcmp.ge.f32.partialorder %v1448_v51, 0.0  ;;  %v1716_v53 = vmul.f32 0.01, %v1448_v51  ;;  %7303 = vmatprep.subr.bf16.mxu1 %v7413_v29  ;;  %v1779_v58 = vsel %vm1651_vm3, %v1445_v43, %v1715_v50  ;;  %3032 = vmatpush1.bf16.msra.mxu0 %v7423_v16 }
 0x2d1   :  { %v1782_v56 = vsel %vm1654_vm4, %v1456_v47, %v1718_v52  ;;  %3033 = vmatprep.subr.bf16.mxu0 %v7428_v19 }
 0x2d2   :  { %v1836_v60 = vpack.c.bf16 %v1782_v56, %v1781_v55  ;;  %v1780_v61 = vsel %vm1652_vm5, %v1448_v51, %v1716_v53  ;;  %v7170_v62 = vpop.f32.mrb[24].mxu0 }
 0x2d3   :  { %v1835_v12 = vpack.c.bf16 %v1780_v61, %v1779_v58  ;;  %v1469_v63 = vadd.f32 %v8254_v6, %v7170_v62  ;;  %v1460_v0 = vpop.f32.mrb[25].mxu0  ;;  %7319 = vmatpush1.bf16.msra.mxu1 %v7411_v33 }
 0x2d4   :  { %v1461_v1 = vadd.f32 %v8254_v6, %v1460_v0  ;;  %v7171_v59 = vpop.f32.mrb[26].mxu0  ;;  %7304 = vmatprep.subr.bf16.mxu1 %v7416_v36  ;;  %3034 = vmatpush1.bf16.msra.mxu0 %v7426_v28  ;;  %v7429_v36 = vld [vmem:[%s10358_s13 + $0xd0] ss:$8 sps:$4 sm:$0xff]  }
 0x2d5   :  { %v1721_v3 = vmul.f32 0.01, %v1469_v63  ;;  %v1472_v4 = vadd.f32 %v8254_v6, %v7171_v59  ;;  %v1463_v5 = vpop.f32.mrb[27].mxu0  ;;  %7236 = vmatprep.mubr.msk.bf16.mxu1 %vm219_vm6, %v1835_v12  ;;  %vm1657_vm7 = vcmp.ge.f32.partialorder %v1469_v63, 0.0  ;;  %3035 = vmatprep.subr.bf16.mxu0 %v7431_v32 }
 0x2d6   :  { %v1719_v8 = vmul.f32 0.01, %v1461_v1  ;;  %v1464_v13 = vadd.f32 %v8254_v6, %v1463_v5  ;;  %7237 = vmatmul.mubr.msk.bf16.gmra.mrb[88].mxu1 %vm219_vm6, %v1836_v60  ;;  %vm1655_vm8 = vcmp.ge.f32.partialorder %v1461_v1, 0.0 }
 0x2d7   :  { %vm1658_vm9 = vcmp.ge.f32.partialorder %v1472_v4, 0.0  ;;  %v1722_v14 = vmul.f32 0.01, %v1472_v4  ;;  %7320 = vmatpush1.bf16.msra.mxu1 %v7414_v45  ;;  %v1785_v17 = vsel %vm1657_vm7, %v1469_v63, %v1721_v3 }
 0x2d8   :  { %vm1656_vm10 = vcmp.ge.f32.partialorder %v1464_v13, 0.0  ;;  %v1720_v15 = vmul.f32 0.01, %v1464_v13  ;;  %7305 = vmatprep.subr.bf16.mxu1 %v7419_v49  ;;  %v1783_v20 = vsel %vm1655_vm8, %v1461_v1, %v1719_v8  ;;  %3036 = vmatpush1.bf16.msra.mxu0 %v7429_v36 }
 0x2d9   :  { %v1786_v18 = vsel %vm1658_vm9, %v1472_v4, %v1722_v14 }
 0x2da   :  { %v1838_v21 = vpack.c.bf16 %v1786_v18, %v1785_v17  ;;  %v1784_v22 = vsel %vm1656_vm10, %v1464_v13, %v1720_v15  ;;  %v7174_v23 = vpop.f32.mrb[28].mxu0 }
 0x2db   :  { %v1837_v24 = vpack.c.bf16 %v1784_v22, %v1783_v20  ;;  %v1485_v9 = vadd.f32 %v8254_v6, %v7174_v23  ;;  %v1476_v25 = vpop.f32.mrb[29].mxu0  ;;  %7321 = vmatpush1.bf16.msra.mxu1 %v7417_v54 }
 0x2dc   :  { %v1477_v26 = vadd.f32 %v8254_v6, %v1476_v25  ;;  %v7175_v27 = vpop.f32.mrb[30].mxu0  ;;  %7306 = vmatprep.subr.bf16.mxu1 %v7422_v57 }
 0x2dd   :  { %v1725_v29 = vmul.f32 0.01, %v1485_v9  ;;  %v1488_v30 = vadd.f32 %v8254_v6, %v7175_v27  ;;  %v1479_v31 = vpop.f32.mrb[31].mxu0  ;;  %7240 = vmatprep.mubr.msk.bf16.mxu1 %vm219_vm6, %v1837_v24  ;;  %vm1661_vm11 = vcmp.ge.f32.partialorder %v1485_v9, 0.0 }
 0x2de   :  { %v1723_v10 = vmul.f32 0.01, %v1477_v26  ;;  %v1480_v33 = vadd.f32 %v8254_v6, %v1479_v31  ;;  %7241 = vmatmul.mubr.msk.bf16.gmra.mrb[92].mxu1 %vm219_vm6, %v1838_v21  ;;  %vm1659_vm12 = vcmp.ge.f32.partialorder %v1477_v26, 0.0 }
 0x2df   :  { %vm1662_vm13 = vcmp.ge.f32.partialorder %v1488_v30, 0.0  ;;  %v1726_v34 = vmul.f32 0.01, %v1488_v30  ;;  %7322 = vmatpush1.bf16.msra.mxu1 %v7420_v2  ;;  %v1789_v37 = vsel %vm1661_vm11, %v1485_v9, %v1725_v29 }
 0x2e0   :  { %vm1660_vm14 = vcmp.ge.f32.partialorder %v1480_v33, 0.0  ;;  %v1724_v35 = vmul.f32 0.01, %v1480_v33  ;;  %7307 = vmatprep.subr.bf16.mxu1 %v7425_v7  ;;  %v1787_v39 = vsel %vm1659_vm12, %v1477_v26, %v1723_v10 }
 0x2e1   :  { %v1790_v38 = vsel %vm1662_vm13, %v1488_v30, %v1726_v34 }
 0x2e2   :  { %v1840_v40 = vpack.c.bf16 %v1790_v38, %v1789_v37  ;;  %v1788_v11 = vsel %vm1660_vm14, %v1480_v33, %v1724_v35  ;;  %v7178_v41 = vpop.f32.mrb[32].mxu0 }
 0x2e3   :  { %v1839_v42 = vpack.c.bf16 %v1788_v11, %v1787_v39  ;;  %v1501_v43 = vadd.f32 %v8254_v6, %v7178_v41  ;;  %v1492_v44 = vpop.f32.mrb[33].mxu0  ;;  %7323 = vmatpush1.bf16.msra.mxu1 %v7423_v16 }
 0x2e4   :  { %v1493_v45 = vadd.f32 %v8254_v6, %v1492_v44  ;;  %v7179_v46 = vpop.f32.mrb[34].mxu0  ;;  %7308 = vmatprep.subr.bf16.mxu1 %v7428_v19 }
 0x2e5   :  { %v1729_v47 = vmul.f32 0.01, %v1501_v43  ;;  %v1504_v48 = vadd.f32 %v8254_v6, %v7179_v46  ;;  %v1495_v49 = vpop.f32.mrb[35].mxu0  ;;  %7244 = vmatprep.mubr.msk.bf16.mxu1 %vm219_vm6, %v1839_v42  ;;  %vm1665_vm15 = vcmp.ge.f32.partialorder %v1501_v43, 0.0 }
 0x2e6   :  { %v1727_v50 = vmul.f32 0.01, %v1493_v45  ;;  %v1496_v51 = vadd.f32 %v8254_v6, %v1495_v49  ;;  %7245 = vmatmul.mubr.msk.bf16.gmra.mrb[96].mxu1 %vm219_vm6, %v1840_v40  ;;  %vm1663_vm0 = vcmp.ge.f32.partialorder %v1493_v45, 0.0 }
 0x2e7   :  { %vm1666_vm1 = vcmp.ge.f32.partialorder %v1504_v48, 0.0  ;;  %v1730_v52 = vmul.f32 0.01, %v1504_v48  ;;  %7324 = vmatpush1.bf16.msra.mxu1 %v7426_v28  ;;  %v1793_v54 = vsel %vm1665_vm15, %v1501_v43, %v1729_v47 }
 0x2e8   :  { %vm1664_vm2 = vcmp.ge.f32.partialorder %v1496_v51, 0.0  ;;  %v1728_v53 = vmul.f32 0.01, %v1496_v51  ;;  %7309 = vmatprep.subr.bf16.mxu1 %v7431_v32  ;;  %v1791_v56 = vsel %vm1663_vm0, %v1493_v45, %v1727_v50 }
 0x2e9   :  { %v1794_v55 = vsel %vm1666_vm1, %v1504_v48, %v1730_v52 }
 0x2ea   :  { %v1842_v57 = vpack.c.bf16 %v1794_v55, %v1793_v54  ;;  %v1792_v58 = vsel %vm1664_vm2, %v1496_v51, %v1728_v53  ;;  %v7182_v60 = vpop.f32.mrb[36].mxu0 }
 0x2eb   :  { %v1841_v61 = vpack.c.bf16 %v1792_v58, %v1791_v56  ;;  %v1517_v62 = vadd.f32 %v8254_v6, %v7182_v60  ;;  %v1508_v12 = vpop.f32.mrb[37].mxu0  ;;  %7325 = vmatpush1.bf16.msra.mxu1 %v7429_v36 }
 0x2ec   :  { %v1509_v63 = vadd.f32 %v8254_v6, %v1508_v12  ;;  %v7183_v0 = vpop.f32.mrb[38].mxu0 }
 0x2ed   :  { %v1733_v1 = vmul.f32 0.01, %v1517_v62  ;;  %v1520_v59 = vadd.f32 %v8254_v6, %v7183_v0  ;;  %v1511_v2 = vpop.f32.mrb[39].mxu0  ;;  %7248 = vmatprep.mubr.msk.bf16.mxu1 %vm219_vm6, %v1841_v61  ;;  %vm1669_vm3 = vcmp.ge.f32.partialorder %v1517_v62, 0.0 }
 0x2ee   :  { %v1731_v3 = vmul.f32 0.01, %v1509_v63  ;;  %v1512_v4 = vadd.f32 %v8254_v6, %v1511_v2  ;;  %7249 = vmatmul.mubr.msk.bf16.gmra.mrb[100].mxu1 %vm219_vm6, %v1842_v57  ;;  %vm1667_vm4 = vcmp.ge.f32.partialorder %v1509_v63, 0.0  ;;  %v7433_v2 = vld [vmem:[%s10358_s13 + $0xe0] ss:$8 sps:$4 sm:$0xff]  }
 0x2ef   :  { %vm1670_vm5 = vcmp.ge.f32.partialorder %v1520_v59, 0.0  ;;  %v1734_v5 = vmul.f32 0.01, %v1520_v59  ;;  %v1797_v8 = vsel %vm1669_vm3, %v1517_v62, %v1733_v1  ;;  %v7435_v1 = vld [vmem:[%s10358_s13 + $0xe4] ss:$8 sps:$4 sm:$0xff]  }
 0x2f0   :  { %vm1668_vm7 = vcmp.ge.f32.partialorder %v1512_v4, 0.0  ;;  %v1732_v7 = vmul.f32 0.01, %v1512_v4  ;;  %v1795_v14 = vsel %vm1667_vm4, %v1509_v63, %v1731_v3  ;;  %3037 = vmatprep.subr.bf16.mxu0 %v7435_v1  ;;  %7310 = vmatprep.subr.bf16.mxu1 %v7435_v1  ;;  %v7609_v1 = vld [vmem:[%s10354_s8] ss:$0 sm:$0xff] }
 0x2f1   :  { %v1798_v13 = vsel %vm1670_vm5, %v1520_v59, %v1734_v5  ;;  %3038 = vmatpush1.bf16.msra.mxu0 %v7433_v2  ;;  %7326 = vmatpush1.bf16.msra.mxu1 %v7433_v2 }
 0x2f2   :  { %v1844_v15 = vpack.c.bf16 %v1798_v13, %v1797_v8  ;;  %v1796_v16 = vsel %vm1668_vm7, %v1512_v4, %v1732_v7  ;;  %v7186_v17 = vpop.f32.mrb[40].mxu0 }
 0x2f3   :  { %v1843_v18 = vpack.c.bf16 %v1796_v16, %v1795_v14  ;;  %v1533_v19 = vadd.f32 %v8254_v6, %v7186_v17  ;;  %v1524_v20 = vpop.f32.mrb[41].mxu0  ;;  %v7438_v16 = vld [vmem:[%s10358_s13 + $0xf4] ss:$8 sps:$4 sm:$0xff]  }
 0x2f4   :  { %v1525_v21 = vadd.f32 %v8254_v6, %v1524_v20  ;;  %v7187_v22 = vpop.f32.mrb[42].mxu0  ;;  %v7436_v20 = vld [vmem:[%s10358_s13 + $0xf0] ss:$8 sps:$4 sm:$0xff]   ;;  %3039 = vmatprep.subr.bf16.mxu0 %v7438_v16  ;;  %7311 = vmatprep.subr.bf16.mxu1 %v7438_v16 }
 0x2f5   :  { %v1737_v23 = vmul.f32 0.01, %v1533_v19  ;;  %v1536_v24 = vadd.f32 %v8254_v6, %v7187_v22  ;;  %v1527_v9 = vpop.f32.mrb[43].mxu0  ;;  %7252 = vmatprep.mubr.msk.bf16.mxu1 %vm219_vm6, %v1843_v18  ;;  %vm1673_vm8 = vcmp.ge.f32.partialorder %v1533_v19, 0.0  ;;  %3040 = vmatpush1.bf16.msra.mxu0 %v7436_v20 }
 0x2f6   :  { %v1735_v25 = vmul.f32 0.01, %v1525_v21  ;;  %v1528_v26 = vadd.f32 %v8254_v6, %v1527_v9  ;;  %7253 = vmatmul.mubr.msk.bf16.gmra.mrb[104].mxu1 %vm219_vm6, %v1844_v15  ;;  %vm1671_vm9 = vcmp.ge.f32.partialorder %v1525_v21, 0.0 }
 0x2f7   :  { %vm1674_vm10 = vcmp.ge.f32.partialorder %v1536_v24, 0.0  ;;  %v1738_v27 = vmul.f32 0.01, %v1536_v24  ;;  %v1801_v29 = vsel %vm1673_vm8, %v1533_v19, %v1737_v23  ;;  %7327 = vmatpush1.bf16.msra.mxu1 %v7436_v20 }
 0x2f8   :  { %vm1672_vm11 = vcmp.ge.f32.partialorder %v1528_v26, 0.0  ;;  %v1736_v28 = vmul.f32 0.01, %v1528_v26  ;;  %v1799_v31 = vsel %vm1671_vm9, %v1525_v21, %v1735_v25 }
 0x2f9   :  { %v1802_v30 = vsel %vm1674_vm10, %v1536_v24, %v1738_v27 }
 0x2fa   :  { %v1846_v32 = vpack.c.bf16 %v1802_v30, %v1801_v29  ;;  %v1800_v10 = vsel %vm1672_vm11, %v1528_v26, %v1736_v28  ;;  %v7190_v33 = vpop.f32.mrb[44].mxu0 }
 0x2fb   :  { %v1845_v34 = vpack.c.bf16 %v1800_v10, %v1799_v31  ;;  %v1549_v35 = vadd.f32 %v8254_v6, %v7190_v33  ;;  %v1540_v36 = vpop.f32.mrb[45].mxu0 }
 0x2fc   :  { %v1541_v37 = vadd.f32 %v8254_v6, %v1540_v36  ;;  %v7191_v38 = vpop.f32.mrb[46].mxu0 }
 0x2fd   :  { %v1741_v39 = vmul.f32 0.01, %v1549_v35  ;;  %v1552_v40 = vadd.f32 %v8254_v6, %v7191_v38  ;;  %v1543_v11 = vpop.f32.mrb[47].mxu0  ;;  %7256 = vmatprep.mubr.msk.bf16.mxu1 %vm219_vm6, %v1845_v34  ;;  %vm1677_vm12 = vcmp.ge.f32.partialorder %v1549_v35, 0.0 }
 0x2fe   :  { %v1739_v41 = vmul.f32 0.01, %v1541_v37  ;;  %v1544_v42 = vadd.f32 %v8254_v6, %v1543_v11  ;;  %7257 = vmatmul.mubr.msk.bf16.gmra.mrb[108].mxu1 %vm219_vm6, %v1846_v32  ;;  %vm1675_vm13 = vcmp.ge.f32.partialorder %v1541_v37, 0.0 }
 0x2ff   :  { %vm1678_vm14 = vcmp.ge.f32.partialorder %v1552_v40, 0.0  ;;  %v1742_v43 = vmul.f32 0.01, %v1552_v40  ;;  %v1805_v45 = vsel %vm1677_vm12, %v1549_v35, %v1741_v39 }
 0x300   :  { %vm1676_vm15 = vcmp.ge.f32.partialorder %v1544_v42, 0.0  ;;  %v1740_v44 = vmul.f32 0.01, %v1544_v42  ;;  %v1803_v47 = vsel %vm1675_vm13, %v1541_v37, %v1739_v41 }
 0x301   :  { %v1806_v46 = vsel %vm1678_vm14, %v1552_v40, %v1742_v43 }
 0x302   :  { %v1848_v48 = vpack.c.bf16 %v1806_v46, %v1805_v45  ;;  %v1804_v49 = vsel %vm1676_vm15, %v1544_v42, %v1740_v44  ;;  %v7194_v50 = vpop.f32.mrb[48].mxu0 }
 0x303   :  { %v1847_v51 = vpack.c.bf16 %v1804_v49, %v1803_v47  ;;  %v1565_v52 = vadd.f32 %v8254_v6, %v7194_v50  ;;  %v1556_v53 = vpop.f32.mrb[49].mxu0 }
 0x304   :  { %v1557_v54 = vadd.f32 %v8254_v6, %v1556_v53  ;;  %v7195_v55 = vpop.f32.mrb[50].mxu0 }
 0x305   :  { %vm1681_vm0 = vcmp.ge.f32.partialorder %v1565_v52, 0.0  ;;  %v1745_v56 = vmul.f32 0.01, %v1565_v52  ;;  %v1568_v57 = vadd.f32 %v8254_v6, %v7195_v55  ;;  %v1559_v58 = vpop.f32.mrb[51].mxu0  ;;  %7260 = vmatprep.mubr.msk.bf16.mxu1 %vm219_vm6, %v1847_v51 }
 0x306   :  { %vm1679_vm1 = vcmp.ge.f32.partialorder %v1557_v54, 0.0  ;;  %v1743_v60 = vmul.f32 0.01, %v1557_v54  ;;  %v1560_v61 = vadd.f32 %v8254_v6, %v1559_v58  ;;  %7261 = vmatmul.mubr.msk.bf16.gmra.mrb[112].mxu1 %vm219_vm6, %v1848_v48 }
 0x307   :  { %v1809_v62 = vsel %vm1681_vm0, %v1565_v52, %v1745_v56  ;;  %vm1682_vm2 = vcmp.ge.f32.partialorder %v1568_v57, 0.0  ;;  %v1746_v12 = vmul.f32 0.01, %v1568_v57 }
 0x308   :  { %v1807_v63 = vsel %vm1679_vm1, %v1557_v54, %v1743_v60  ;;  %vm1680_vm3 = vcmp.ge.f32.partialorder %v1560_v61, 0.0  ;;  %v1744_v0 = vmul.f32 0.01, %v1560_v61 }
 0x309   :  { %v1810_v59 = vsel %vm1682_vm2, %v1568_v57, %v1746_v12 }
 0x30a   :  { %v1850_v3 = vpack.c.bf16 %v1810_v59, %v1809_v62  ;;  %v1808_v4 = vsel %vm1680_vm3, %v1560_v61, %v1744_v0  ;;  %v7198_v5 = vpop.f32.mrb[52].mxu0 }
 0x30b   :  { %v1849_v7 = vpack.c.bf16 %v1808_v4, %v1807_v63  ;;  %v1581_v8 = vadd.f32 %v8254_v6, %v7198_v5  ;;  %v1572_v13 = vpop.f32.mrb[53].mxu0 }
 0x30c   :  { %v1573_v14 = vadd.f32 %v8254_v6, %v1572_v13  ;;  %v7199_v15 = vpop.f32.mrb[54].mxu0 }
 0x30d   :  { %7264 = vmatprep.mubr.msk.bf16.mxu1 %vm219_vm6, %v1849_v7  ;;  %vm1685_vm4 = vcmp.ge.f32.partialorder %v1581_v8, 0.0  ;;  %v1749_v17 = vmul.f32 0.01, %v1581_v8  ;;  %v1584_v18 = vadd.f32 %v8254_v6, %v7199_v15  ;;  %v1575_v19 = vpop.f32.mrb[55].mxu0 }
 0x30e   :  { %7265 = vmatmul.mubr.msk.bf16.gmra.mrb[116].mxu1 %vm219_vm6, %v1850_v3  ;;  %vm1683_vm5 = vcmp.ge.f32.partialorder %v1573_v14, 0.0  ;;  %v1747_v21 = vmul.f32 0.01, %v1573_v14  ;;  %v1576_v22 = vadd.f32 %v8254_v6, %v1575_v19 }
 0x30f   :  { %v1813_v23 = vsel %vm1685_vm4, %v1581_v8, %v1749_v17  ;;  %vm1686_vm7 = vcmp.ge.f32.partialorder %v1584_v18, 0.0  ;;  %v1750_v24 = vmul.f32 0.01, %v1584_v18 }
 0x310   :  { %v1811_v9 = vsel %vm1683_vm5, %v1573_v14, %v1747_v21  ;;  %vm1684_vm8 = vcmp.ge.f32.partialorder %v1576_v22, 0.0  ;;  %v1748_v25 = vmul.f32 0.01, %v1576_v22  ;;  %vm4566_vm5 = vcmask 1041409  }
 0x311   :  { %v1814_v26 = vsel %vm1686_vm7, %v1584_v18, %v1750_v24  ;;  %vm4568_vm7 = vcmask 1042434  }
 0x312   :  { %v1852_v27 = vpack.c.bf16 %v1814_v26, %v1813_v23  ;;  %v1812_v28 = vsel %vm1684_vm8, %v1576_v22, %v1748_v25  ;;  %v7202_v29 = vpop.f32.mrb[56].mxu0  ;;  %vm4570_vm8 = vcmask 1043459  }
 0x313   :  { %v1851_v30 = vpack.c.bf16 %v1812_v28, %v1811_v9  ;;  %v1597_v31 = vadd.f32 %v8254_v6, %v7202_v29  ;;  %v1588_v32 = vpop.f32.mrb[57].mxu0  ;;  %v8454_v9 = vld [vmem:[%s10357_s10] ss:$0 sm:$0xff] }
 0x314   :  { %v1589_v10 = vadd.f32 %v8254_v6, %v1588_v32  ;;  %v7203_v33 = vpop.f32.mrb[58].mxu0 }
 0x315   :  { %7268 = vmatprep.mubr.msk.bf16.mxu1 %vm219_vm6, %v1851_v30  ;;  %vm1689_vm9 = vcmp.ge.f32.partialorder %v1597_v31, 0.0  ;;  %v1753_v34 = vmul.f32 0.01, %v1597_v31  ;;  %v1600_v35 = vadd.f32 %v8254_v6, %v7203_v33  ;;  %v1591_v36 = vpop.f32.mrb[59].mxu0 }
 0x316   :  { %7269 = vmatmul.mubr.msk.bf16.gmra.mrb[120].mxu1 %vm219_vm6, %v1852_v27  ;;  %vm1687_vm10 = vcmp.ge.f32.partialorder %v1589_v10, 0.0  ;;  %v1751_v37 = vmul.f32 0.01, %v1589_v10  ;;  %v1592_v38 = vadd.f32 %v8254_v6, %v1591_v36 }
 0x317   :  { %v1817_v39 = vsel %vm1689_vm9, %v1597_v31, %v1753_v34  ;;  %vm1690_vm11 = vcmp.ge.f32.partialorder %v1600_v35, 0.0  ;;  %v1754_v40 = vmul.f32 0.01, %v1600_v35  ;;  %v7439_v31 = vld [vmem:[%s10359_s3] sm:$0xff]   ;;  %vm4572_vm9 = vcmask 1044484  }
 0x318   :  { %v1815_v11 = vsel %vm1687_vm10, %v1589_v10, %v1751_v37  ;;  %vm1688_vm12 = vcmp.ge.f32.partialorder %v1592_v38, 0.0  ;;  %v1752_v41 = vmul.f32 0.01, %v1592_v38  ;;  %vm4574_vm10 = vcmask 1045509  }
 0x319   :  { %v1818_v42 = vsel %vm1690_vm11, %v1600_v35, %v1754_v40  ;;  %vm4576_vm11 = vcmask 1046534  }
 0x31a   :  { %v1854_v43 = vpack.c.bf16 %v1818_v42, %v1817_v39  ;;  %v1816_v44 = vsel %vm1688_vm12, %v1592_v38, %v1752_v41  ;;  %v7206_v45 = vpop.f32.mrb[60].mxu0  ;;  %vm4578_vm12 = vcmask 1047559  }
 0x31b   :  { %v1853_v46 = vpack.c.bf16 %v1816_v44, %v1815_v11  ;;  %v1613_v47 = vadd.f32 %v8254_v6, %v7206_v45  ;;  %v1604_v48 = vpop.f32.mrb[61].mxu0  ;;  %v7440_v11 = vld [vmem:[%s10359_s3 + $0x8] sm:$0xff]  }
 0x31c   :  { %v1605_v49 = vadd.f32 %v8254_v6, %v1604_v48  ;;  %v7207_v50 = vpop.f32.mrb[62].mxu0 }
 0x31d   :  { %7272 = vmatprep.mubr.msk.bf16.mxu1 %vm219_vm6, %v1853_v46  ;;  %vm1693_vm13 = vcmp.ge.f32.partialorder %v1613_v47, 0.0  ;;  %v1757_v51 = vmul.f32 0.01, %v1613_v47  ;;  %v1616_v52 = vadd.f32 %v8254_v6, %v7207_v50  ;;  %v1607_v53 = vpop.f32.mrb[63].mxu0 }
 0x31e   :  { %7273 = vmatmul.mubr.msk.bf16.gmra.mrb[124].mxu1 %vm219_vm6, %v1854_v43  ;;  %vm1691_vm14 = vcmp.ge.f32.partialorder %v1605_v49, 0.0  ;;  %v1755_v54 = vmul.f32 0.01, %v1605_v49  ;;  %v1608_v55 = vadd.f32 %v8254_v6, %v1607_v53  ;;  %v2582_v53 = vlaneseq }
 0x31f   :  { %v1821_v56 = vsel %vm1693_vm13, %v1613_v47, %v1757_v51  ;;  %vm1694_vm15 = vcmp.ge.f32.partialorder %v1616_v52, 0.0  ;;  %v1758_v57 = vmul.f32 0.01, %v1616_v52  ;;  %v7441_v51 = vld [vmem:[%s10359_s3 + $0x10] sm:$0xff]   ;;  %vm4605_vm13 = vcmask 130048  }
 0x320   :  { %v1819_v58 = vsel %vm1691_vm14, %v1605_v49, %v1755_v54  ;;  %vm1692_vm0 = vcmp.ge.f32.partialorder %v1608_v55, 0.0  ;;  %v1756_v60 = vmul.f32 0.01, %v1608_v55  ;;  %vm6242_vm14 = vcmask 23552  }
 0x321   :  { %v1822_v61 = vsel %vm1694_vm15, %v1616_v52, %v1758_v57 }
 0x322   :  { %v1856_v62 = vpack.c.bf16 %v1822_v61, %v1821_v56  ;;  %v1820_v12 = vsel %vm1692_vm0, %v1608_v55, %v1756_v60  ;;  %v7210_v63 = vpop.f32.mrb[64].mxu0  ;;  %v8484_v55 = vshrl.u32 %v2582_v53, 7  ;;  %v2580_v60 = vld [vmem:[%s10360_s12] sm:$0x3] }
 0x323   :  { %v1855_v0 = vpack.c.bf16 %v1820_v12, %v1819_v58  ;;  %v1629_v59 = vadd.f32 %v7609_v1, %v7210_v63  ;;  %v1620_v2 = vpop.f32.mrb[65].mxu0 }
 0x324   :  { %v1621_v3 = vadd.f32 %v7609_v1, %v1620_v2  ;;  %v7211_v4 = vpop.f32.mrb[66].mxu0  ;;  %v8490_v61 = vsub.s32 0, %v8484_v55 }
 0x325   :  { %7276 = vmatprep.mubr.msk.bf16.mxu1 %vm219_vm6, %v1855_v0  ;;  %vm1697_vm1 = vcmp.ge.f32.partialorder %v1629_v59, 0.0  ;;  %v1761_v6 = vmul.f32 0.01, %v1629_v59  ;;  %v1632_v5 = vadd.f32 %v7609_v1, %v7211_v4  ;;  %v1623_v7 = vpop.f32.mrb[67].mxu0 }
 0x326   :  { %7277 = vmatmul.mubr.msk.bf16.gmra.mrb[128].mxu1 %vm219_vm6, %v1856_v62  ;;  %vm1695_vm2 = vcmp.ge.f32.partialorder %v1621_v3, 0.0  ;;  %v1759_v8 = vmul.f32 0.01, %v1621_v3  ;;  %v1624_v13 = vadd.f32 %v7609_v1, %v1623_v7  ;;  %v8493_v62 = vsub.s32 1, %v8484_v55 }
 0x327   :  { %v1825_v14 = vsel %vm1697_vm1, %v1629_v59, %v1761_v6  ;;  %vm1698_vm3 = vcmp.ge.f32.partialorder %v1632_v5, 0.0  ;;  %v1762_v15 = vmul.f32 0.01, %v1632_v5  ;;  %v8504_v4 = vrot.slane %v2580_v60, %v8490_v61 }
 0x328   :  { %v1823_v16 = vsel %vm1695_vm2, %v1621_v3, %v1759_v8  ;;  %vm1696_vm4 = vcmp.ge.f32.partialorder %v1624_v13, 0.0  ;;  %v1760_v17 = vmul.f32 0.01, %v1624_v13  ;;  %v8507_v6 = vrot.slane %v2580_v60, %v8493_v62 }
 0x329   :  { %v1826_v18 = vsel %vm1698_vm3, %v1632_v5, %v1762_v15  ;;  %v7612_v5 = vmov 1966171168  }
 0x32a   :  { %v1858_v19 = vpack.c.bf16 %v1826_v18, %v1825_v14  ;;  %v1824_v20 = vsel %vm1696_vm4, %v1624_v13, %v1760_v17  ;;  %v3373_v7 = vunpack.c.l.s4 %v7612_v5  ;;  %v7442_v14 = vld [vmem:[%s10359_s3 + $0x18] sm:$0xff]  }
 0x32b   :  { %v1857_v21 = vpack.c.bf16 %v1824_v20, %v1823_v16 }
 0x32c   :  { %v3374_v18 = vunpack.c.0.s8 %v3373_v7 }
 0x32d   :  { %7280 = vmatprep.mubr.msk.bf16.mxu1 %vm219_vm6, %v1857_v21 }
 0x32e   :  { %7281 = vmatmul.mubr.msk.bf16.gmra.mrb[132].mxu1 %vm219_vm6, %v1858_v19  ;;  %vm4285_vm6 = vcmask 130112  }
 0x376   :  { %v2786_v57 = vpop.f32.mrb[68].mxu0 }
 0x377   :  { %v2788_v12 = vpop.f32.mrb[69].mxu0  ;;  %v8515_v16 = vadd.f32 %v2786_v57, %v8504_v4 }
 0x378   :  { %v2790_v2 = vpop.f32.mrb[70].mxu0  ;;  %v8518_v17 = vadd.f32 %v2788_v12, %v8507_v6 }
 0x379   :  { %v2792_v8 = vpop.f32.mrb[71].mxu0  ;;  %v2791_v19 = vadd.f32 %v2790_v2, %v8504_v4 }
 0x37a   :  { %v2793_v20 = vadd.f32 %v2792_v8, %v8507_v6 }
 0x389   :  { %v7222_v22 = vpop.f32.mrb[72].mxu1 }
 0x38a   :  { %v1989_v23 = vpop.f32.mrb[73].mxu1  ;;  %v1998_v25 = vadd.f32 %v8454_v9, %v7222_v22  ;;  %v3370_v22 = vcombine.low %v8515_v16, %v8518_v17 }
 0x38b   :  { %v7223_v24 = vpop.f32.mrb[74].mxu1  ;;  %v1990_v28 = vadd.f32 %v8454_v9, %v1989_v23  ;;  %v3371_v23 = vcombine.high %v8515_v16, %v8518_v17 }
 0x38c   :  { %v2001_v26 = vadd.f32 %v8454_v9, %v7223_v24  ;;  %v1992_v27 = vpop.f32.mrb[75].mxu1  ;;  %v8527_v24 = vsub.s32 %v3374_v18, %v8484_v55 }
 0x38d   :  { %v1993_v29 = vadd.f32 %v8454_v9, %v1992_v27  ;;  %v3421_v27 = vcombine.high %v2791_v19, %v2793_v20 }
 0x38e   :  { %v2245_v30 = vpack.c.bf16 %v2001_v26, %v1998_v25  ;;  %v3420_v26 = vcombine.low %v2791_v19, %v2793_v20  ;;  %v7445_v20 = vld [vmem:[%s10359_s3 + $0x30] sm:$0xff]  }
 0x38f   :  { %v2244_v32 = vpack.c.bf16 %v1993_v29, %v1990_v28 }
 0x391   :  { %v7226_v10 = vpop.f32.mrb[76].mxu1  ;;  %3041 = vmatprep.mubr.bf16.mxu0 %v2244_v32  ;;  %v3428_v32 = vrot.slane %v3420_v26, %v8527_v24 }
 0x392   :  { %v2005_v33 = vpop.f32.mrb[77].mxu1  ;;  %3042 = vmatmul.mubr.bf16.vlgmr.msra.gmra.mrb[76].mxu0 %v7439_v31  ;;  %v2014_v35 = vadd.f32 %v8454_v9, %v7226_v10  ;;  %v3435_v10 = vrot.slane %v3421_v27, %v8527_v24 }
 0x393   :  { %v7227_v34 = vpop.f32.mrb[78].mxu1  ;;  %3051 = vmatprep.mubr.bf16.mxu0 %v2245_v30  ;;  %v2006_v38 = vadd.f32 %v8454_v9, %v2005_v33 }
 0x394   :  { %v2017_v36 = vadd.f32 %v8454_v9, %v7227_v34  ;;  %v2008_v37 = vpop.f32.mrb[79].mxu1 }
 0x395   :  { %v2009_v39 = vadd.f32 %v8454_v9, %v2008_v37  ;;  %v3436_v37 = vcombine.high %v3428_v32, %v3428_v32 }
 0x396   :  { %v2247_v40 = vpack.c.bf16 %v2017_v36, %v2014_v35  ;;  %v7443_v36 = vld [vmem:[%s10359_s3 + $0x20] sm:$0xff]  }
 0x397   :  { %v2246_v41 = vpack.c.bf16 %v2009_v39, %v2006_v38  ;;  %v3437_v38 = vcombine.high %v3435_v10, %v3435_v10 }
 0x399   :  { %v7230_v42 = vpop.f32.mrb[80].mxu1 }
 0x39a   :  { %v2021_v43 = vpop.f32.mrb[81].mxu1  ;;  %3052 = vmatmul.mubr.bf16.gmra.mrb[80].mxu0 %v7440_v11  ;;  %v8471_v45 = vadd.f32 %v8454_v9, %v7230_v42  ;;  %v8554_v11 = vrot.slane %v3435_v10, %v8527_v24  ;;  %v8560_v42 = vrot.slane %v3437_v38, %v8527_v24 }
 0x39b   :  { %v7231_v44 = vpop.f32.mrb[82].mxu1  ;;  %3061 = vmatprep.mubr.bf16.mxu0 %v2246_v41  ;;  %v2022_v48 = vadd.f32 %v8454_v9, %v2021_v43  ;;  %v8557_v41 = vrot.slane %v3436_v37, %v8527_v24 }
 0x39c   :  { %v8474_v46 = vadd.f32 %v8454_v9, %v7231_v44  ;;  %v2024_v47 = vpop.f32.mrb[83].mxu1 }
 0x39d   :  { %v2025_v49 = vadd.f32 %v8454_v9, %v2024_v47 }
 0x39e   :  { %v2249_v50 = vpack.c.bf16 %v8474_v46, %v8471_v45  ;;  %v7444_v45 = vld [vmem:[%s10359_s3 + $0x28] sm:$0xff]  }
 0x39f   :  { %v2248_v52 = vpack.c.bf16 %v2025_v49, %v2022_v48 }
 0x3a1   :  { %v7234_v54 = vpop.f32.mrb[84].mxu1 }
 0x3a2   :  { %v2037_v56 = vpop.f32.mrb[85].mxu1  ;;  %3062 = vmatmul.mubr.bf16.gmra.mrb[84].mxu0 %v7441_v51  ;;  %v8496_v63 = vadd.f32 %v8454_v9, %v7234_v54 }
 0x3a3   :  { %v7235_v58 = vpop.f32.mrb[86].mxu1  ;;  %3071 = vmatprep.mubr.bf16.mxu0 %v2247_v40  ;;  %v2038_v0 = vadd.f32 %v8454_v9, %v2037_v56  ;;  %v8551_v40 = vrot.slane %v3428_v32, %v8527_v24 }
 0x3a4   :  { %v8500_v1 = vadd.f32 %v8454_v9, %v7235_v58  ;;  %v2040_v59 = vpop.f32.mrb[87].mxu1  ;;  %v2796_v58 = vpop.f32.mrb[72].mxu0 }
 0x3a5   :  { %v2041_v3 = vadd.f32 %v8454_v9, %v2040_v59  ;;  %v2797_v12 = vadd.f32 %v2796_v58, %v8504_v4 }
 0x3a6   :  { %v2251_v13 = vpack.c.bf16 %v8500_v1, %v8496_v63 }
 0x3a7   :  { %v2250_v15 = vpack.c.bf16 %v2041_v3, %v2038_v0  ;;  %v2798_v0 = vpop.f32.mrb[73].mxu0 }
 0x3a8   :  { %v2799_v5 = vadd.f32 %v2798_v0, %v8507_v6  ;;  %v2800_v7 = vpop.f32.mrb[74].mxu0 }
 0x3a9   :  { %v7238_v21 = vpop.f32.mrb[88].mxu1  ;;  %v2802_v18 = vpop.f32.mrb[75].mxu0 }
 0x3aa   :  { %v2053_v25 = vpop.f32.mrb[89].mxu1  ;;  %3072 = vmatmul.mubr.bf16.gmra.mrb[88].mxu0 %v7442_v14  ;;  %v8530_v29 = vadd.f32 %v8454_v9, %v7238_v21  ;;  %v3470_v21 = vcombine.low %v2797_v12, %v2799_v5  ;;  %v2803_v26 = vadd.f32 %v2802_v18, %v8507_v6 }
 0x3ab   :  { %v7239_v28 = vpop.f32.mrb[90].mxu1  ;;  %3081 = vmatprep.mubr.bf16.mxu0 %v2248_v52  ;;  %v8538_v33 = vadd.f32 %v8454_v9, %v2053_v25  ;;  %v3471_v25 = vcombine.high %v2797_v12, %v2799_v5  ;;  %v7446_v5 = vld [vmem:[%s10359_s3 + $0x38] sm:$0xff]  }
 0x3ac   :  { %v8533_v30 = vadd.f32 %v8454_v9, %v7239_v28  ;;  %v2056_v31 = vpop.f32.mrb[91].mxu1  ;;  %v3478_v28 = vrot.slane %v3470_v21, %v8527_v24 }
 0x3ad   :  { %v8541_v34 = vadd.f32 %v8454_v9, %v2056_v31  ;;  %v3485_v31 = vrot.slane %v3471_v25, %v8527_v24 }
 0x3ae   :  { %v2253_v35 = vpack.c.bf16 %v8533_v30, %v8530_v29  ;;  %v3486_v37 = vcombine.high %v3478_v28, %v3478_v28  ;;  %v7448_v29 = vld [vmem:[%s10359_s3 + $0x48] sm:$0xff]  }
 0x3af   :  { %v2252_v39 = vpack.c.bf16 %v8541_v34, %v8538_v33  ;;  %v3487_v38 = vcombine.high %v3485_v31, %v3485_v31  ;;  %v7447_v33 = vld [vmem:[%s10359_s3 + $0x40] sm:$0xff]  }
 0x3b1   :  { %v7242_v43 = vpop.f32.mrb[92].mxu1  ;;  %v8633_v63 = vrot.slane %v3487_v38, %v8527_v24 }
 0x3b2   :  { %v2069_v44 = vpop.f32.mrb[93].mxu1  ;;  %3082 = vmatmul.mubr.bf16.gmra.mrb[92].mxu0 %v7443_v36  ;;  %v8566_v48 = vadd.f32 %v8454_v9, %v7242_v43  ;;  %v8610_v43 = vrot.slane %v3478_v28, %v8527_v24 }
 0x3b3   :  { %v7243_v47 = vpop.f32.mrb[94].mxu1  ;;  %3091 = vmatprep.mubr.bf16.mxu0 %v2249_v50  ;;  %v8572_v52 = vadd.f32 %v8454_v9, %v2069_v44 }
 0x3b4   :  { %v8569_v49 = vadd.f32 %v8454_v9, %v7243_v47  ;;  %v2072_v51 = vpop.f32.mrb[95].mxu1  ;;  %v8619_v47 = vrot.slane %v3485_v31, %v8527_v24 }
 0x3b5   :  { %v8575_v54 = vadd.f32 %v8454_v9, %v2072_v51 }
 0x3b6   :  { %v2255_v56 = vpack.c.bf16 %v8569_v49, %v8566_v48 }
 0x3b7   :  { %v2254_v46 = vpack.c.bf16 %v8575_v54, %v8572_v52 }
 0x3b9   :  { %v7246_v50 = vpop.f32.mrb[96].mxu1 }
 0x3ba   :  { %v2085_v57 = vpop.f32.mrb[97].mxu1  ;;  %3092 = vmatmul.mubr.bf16.gmra.mrb[96].mxu0 %v7444_v45  ;;  %v8586_v59 = vadd.f32 %v8454_v9, %v7246_v50 }
 0x3bb   :  { %v7247_v60 = vpop.f32.mrb[98].mxu1  ;;  %3101 = vmatprep.mubr.bf16.mxu0 %v2250_v15  ;;  %v8593_v8 = vadd.f32 %v8454_v9, %v2085_v57  ;;  %v2801_v15 = vadd.f32 %v2800_v7, %v8504_v4 }
 0x3bc   :  { %v8589_v2 = vadd.f32 %v8454_v9, %v7247_v60  ;;  %v2088_v3 = vpop.f32.mrb[99].mxu1  ;;  %v8630_v60 = vrot.slane %v3486_v37, %v8527_v24 }
 0x3bd   :  { %v8596_v14 = vadd.f32 %v8454_v9, %v2088_v3  ;;  %v3520_v4 = vcombine.low %v2801_v15, %v2803_v26  ;;  %v3521_v32 = vcombine.high %v2801_v15, %v2803_v26 }
 0x3be   :  { %v2257_v19 = vpack.c.bf16 %v8589_v2, %v8586_v59 }
 0x3bf   :  { %v2256_v27 = vpack.c.bf16 %v8596_v14, %v8593_v8  ;;  %v3528_v51 = vrot.slane %v3520_v4, %v8527_v24  ;;  %v3535_v45 = vrot.slane %v3521_v32, %v8527_v24 }
 0x3c1   :  { %v7250_v10 = vpop.f32.mrb[100].mxu1  ;;  %v3537_v12 = vcombine.high %v3535_v45, %v3535_v45  ;;  %v8639_v0 = vrot.slane %v3528_v51, %v8527_v24  ;;  %v8647_v7 = vrot.slane %v3535_v45, %v8527_v24 }
 0x3c2   :  { %v2101_v36 = vpop.f32.mrb[101].mxu1  ;;  %3102 = vmatmul.mubr.bf16.gmra.mrb[100].mxu0 %v7445_v20  ;;  %v8613_v44 = vadd.f32 %v8454_v9, %v7250_v10 }
 0x3c3   :  { %v7251_v6 = vpop.f32.mrb[102].mxu1  ;;  %3111 = vmatprep.mubr.bf16.mxu0 %v2251_v13  ;;  %v8624_v50 = vadd.f32 %v8454_v9, %v2101_v36  ;;  %v3536_v13 = vcombine.high %v3528_v51, %v3528_v51  ;;  %v8655_v20 = vrot.slane %v3537_v12, %v8527_v24 }
 0x3c4   :  { %v8627_v57 = vadd.f32 %v8454_v9, %v7251_v6  ;;  %v2104_v58 = vpop.f32.mrb[103].mxu1 }
 0x3c5   :  { %v8636_v1 = vadd.f32 %v8454_v9, %v2104_v58  ;;  %v8652_v18 = vrot.slane %v3536_v13, %v8527_v24 }
 0x3c6   :  { %v2259_v3 = vpack.c.bf16 %v8627_v57, %v8613_v44  ;;  %v7462_v57 = vld [vmem:[%s10359_s3 + $0xd0] sm:$0xff]  }
 0x3c7   :  { %v2258_v15 = vpack.c.bf16 %v8636_v1, %v8624_v50 }
 0x3c9   :  { %v7254_v21 = vpop.f32.mrb[104].mxu1 }
 0x3ca   :  { %v2117_v25 = vpop.f32.mrb[105].mxu1  ;;  %3112 = vmatmul.mubr.bf16.gmra.mrb[104].mxu0 %v7446_v5  ;;  %v8661_v28 = vadd.f32 %v8454_v9, %v7254_v21 }
 0x3cb   :  { %v7255_v26 = vpop.f32.mrb[106].mxu1  ;;  %3121 = vmatprep.mubr.bf16.mxu0 %v2252_v39  ;;  %v8667_v32 = vadd.f32 %v8454_v9, %v2117_v25 }
 0x3cc   :  { %v8664_v31 = vadd.f32 %v8454_v9, %v7255_v26  ;;  %v2120_v4 = vpop.f32.mrb[107].mxu1 }
 0x3cd   :  { %v8670_v10 = vadd.f32 %v8454_v9, %v2120_v4 }
 0x3ce   :  { %v2261_v36 = vpack.c.bf16 %v8664_v31, %v8661_v28  ;;  %v7465_v28 = vld [vmem:[%s10359_s3 + $0x90] sm:$0xff]   ;;  %v7466_v31 = vld [vmem:[%s10359_s3 + $0xe0] sm:$0xff]  }
 0x3cf   :  { %v2260_v34 = vpack.c.bf16 %v8670_v10, %v8667_v32  ;;  %v7464_v32 = vld [vmem:[%s10359_s3 + $0xd8] sm:$0xff]  }
 0x3d0   :  { %v7467_v10 = vld [vmem:[%s10359_s3 + $0x98] sm:$0xff]  }
 0x3d1   :  { %v7258_v39 = vpop.f32.mrb[108].mxu1 }
 0x3d2   :  { %v2133_v37 = vpop.f32.mrb[109].mxu1  ;;  %3122 = vmatmul.mubr.bf16.gmra.mrb[108].mxu0 %v7447_v33  ;;  %v8683_v6 = vadd.f32 %v8454_v9, %v7258_v39 }
 0x3d3   :  { %v7259_v38 = vpop.f32.mrb[110].mxu1  ;;  %3131 = vmatprep.mubr.bf16.mxu0 %v2253_v35  ;;  %v8689_v58 = vadd.f32 %v8454_v9, %v2133_v37 }
 0x3d4   :  { %v8686_v51 = vadd.f32 %v8454_v9, %v7259_v38  ;;  %v2136_v45 = vpop.f32.mrb[111].mxu1  ;;  %v7449_v38 = vld [vmem:[%s10359_s3 + $0x50] sm:$0xff]  }
 0x3d5   :  { %v8692_v13 = vadd.f32 %v8454_v9, %v2136_v45  ;;  %v7450_v45 = vld [vmem:[%s10359_s3 + $0xa0] sm:$0xff]  }
 0x3d6   :  { %v2263_v12 = vpack.c.bf16 %v8686_v51, %v8683_v6  ;;  %v7470_v6 = vld [vmem:[%s10359_s3 + $0xf8] sm:$0xff]   ;;  %v3378_v51 = vrot.slane %v3370_v22, %v8527_v24 }
 0x3d7   :  { %v2262_v30 = vpack.c.bf16 %v8692_v13, %v8689_v58  ;;  %v2837_v58 = vld [vmem:[%s10361_s14] sm:$0x3] }
 0x3d8   :  { %v3394_v13 = vrot.slane %v3378_v51, %v8527_v24 }
 0x3d9   :  { %v7262_v35 = vpop.f32.mrb[112].mxu1 }
 0x3da   :  { %v2149_v5 = vpop.f32.mrb[113].mxu1  ;;  %3132 = vmatmul.mubr.bf16.gmra.mrb[112].mxu0 %v7448_v29  ;;  %v2158_v25 = vadd.f32 %v8454_v9, %v7262_v35 }
 0x3db   :  { %v7263_v21 = vpop.f32.mrb[114].mxu1  ;;  %3141 = vmatprep.mubr.bf16.mxu0 %v2254_v46  ;;  %v2150_v33 = vadd.f32 %v8454_v9, %v2149_v5 }
 0x3dc   :  { %v2161_v26 = vadd.f32 %v8454_v9, %v7263_v21  ;;  %v2152_v4 = vpop.f32.mrb[115].mxu1 }
 0x3dd   :  { %v2153_v39 = vadd.f32 %v8454_v9, %v2152_v4 }
 0x3de   :  { %v2265_v37 = vpack.c.bf16 %v2161_v26, %v2158_v25 }
 0x3df   :  { %v2264_v52 = vpack.c.bf16 %v2153_v39, %v2150_v33  ;;  %v7451_v33 = vld [vmem:[%s10359_s3 + $0x58] sm:$0xff]   ;;  %v7452_v39 = vld [vmem:[%s10359_s3 + $0xa8] sm:$0xff]  }
 0x3e1   :  { %v7266_v54 = vpop.f32.mrb[116].mxu1  ;;  %3241 = vmatprep.mubr.bf16.mxu1 %v2264_v52 }
 0x3e2   :  { %v2174_v46 = vadd.f32 %v8454_v9, %v7266_v54  ;;  %v2165_v29 = vpop.f32.mrb[117].mxu1  ;;  %3142 = vmatmul.mubr.bf16.gmra.mrb[116].mxu0 %v7449_v38  ;;  %3242 = vmatmul.mubr.bf16.vlgmr.msra.gmra.mrb[136].mxu1 %v7450_v45 }
 0x3e3   :  { %v2166_v35 = vadd.f32 %v8454_v9, %v2165_v29  ;;  %v7267_v5 = vpop.f32.mrb[118].mxu1  ;;  %3151 = vmatprep.mubr.bf16.mxu0 %v2255_v56  ;;  %3251 = vmatprep.mubr.bf16.mxu1 %v2265_v37  ;;  %v7453_v29 = vld [vmem:[%s10359_s3 + $0x60] sm:$0xff]  }
 0x3e4   :  { %v2177_v21 = vadd.f32 %v8454_v9, %v7267_v5  ;;  %v2168_v25 = vpop.f32.mrb[119].mxu1 }
 0x3e5   :  { %v2169_v26 = vadd.f32 %v8454_v9, %v2168_v25 }
 0x3e6   :  { %v2267_v4 = vpack.c.bf16 %v2177_v21, %v2174_v46 }
 0x3e7   :  { %v2266_v38 = vpack.c.bf16 %v2169_v26, %v2166_v35  ;;  %v7454_v35 = vld [vmem:[%s10359_s3 + $0xb0] sm:$0xff]  }
 0x3e9   :  { %v7270_v45 = vpop.f32.mrb[120].mxu1 }
 0x3ea   :  { %3152 = vmatmul.mubr.bf16.gmra.mrb[120].mxu0 %v7451_v33  ;;  %3252 = vmatmul.mubr.bf16.gmra.mrb[140].mxu1 %v7452_v39  ;;  %v2190_v48 = vadd.f32 %v8454_v9, %v7270_v45  ;;  %v2181_v49 = vpop.f32.mrb[121].mxu1  ;;  %v7455_v45 = vld [vmem:[%s10359_s3 + $0x68] sm:$0xff]  }
 0x3eb   :  { %3161 = vmatprep.mubr.bf16.mxu0 %v2256_v27  ;;  %3261 = vmatprep.mubr.bf16.mxu1 %v2266_v38  ;;  %v2182_v56 = vadd.f32 %v8454_v9, %v2181_v49  ;;  %v7271_v37 = vpop.f32.mrb[122].mxu1 }
 0x3ec   :  { %v2193_v52 = vadd.f32 %v8454_v9, %v7271_v37  ;;  %v2184_v54 = vpop.f32.mrb[123].mxu1 }
 0x3ed   :  { %v2185_v46 = vadd.f32 %v8454_v9, %v2184_v54 }
 0x3ee   :  { %v2269_v5 = vpack.c.bf16 %v2193_v52, %v2190_v48  ;;  %v7456_v48 = vld [vmem:[%s10359_s3 + $0xb8] sm:$0xff]  }
 0x3ef   :  { %v2268_v8 = vpack.c.bf16 %v2185_v46, %v2182_v56 }
 0x3f1   :  { %v7274_v14 = vpop.f32.mrb[124].mxu1 }
 0x3f2   :  { %3162 = vmatmul.mubr.bf16.gmra.mrb[124].mxu0 %v7453_v29  ;;  %3262 = vmatmul.mubr.bf16.gmra.mrb[144].mxu1 %v7454_v35  ;;  %v2206_v27 = vadd.f32 %v8454_v9, %v7274_v14  ;;  %v2197_v21 = vpop.f32.mrb[125].mxu1  ;;  %v7457_v29 = vld [vmem:[%s10359_s3 + $0x70] sm:$0xff]   ;;  %v7458_v35 = vld [vmem:[%s10359_s3 + $0xc0] sm:$0xff]  }
 0x3f3   :  { %3171 = vmatprep.mubr.bf16.mxu0 %v2257_v19  ;;  %3271 = vmatprep.mubr.bf16.mxu1 %v2267_v4  ;;  %v2198_v25 = vadd.f32 %v8454_v9, %v2197_v21  ;;  %v7275_v26 = vpop.f32.mrb[126].mxu1 }
 0x3f4   :  { %v2209_v33 = vadd.f32 %v8454_v9, %v7275_v26  ;;  %v2200_v39 = vpop.f32.mrb[127].mxu1 }
 0x3f5   :  { %v2201_v38 = vadd.f32 %v8454_v9, %v2200_v39  ;;  %v7459_v39 = vld [vmem:[%s10359_s3 + $0x78] sm:$0xff]  }
 0x3f6   :  { %v2271_v49 = vpack.c.bf16 %v2209_v33, %v2206_v27 }
 0x3f7   :  { %v2270_v59 = vpack.c.bf16 %v2201_v38, %v2198_v25  ;;  %v7460_v38 = vld [vmem:[%s10359_s3 + $0xc8] sm:$0xff]  }
 0x3f9   :  { %v7278_v2 = vpop.f32.mrb[128].mxu1 }
 0x3fa   :  { %3172 = vmatmul.mubr.bf16.gmra.mrb[128].mxu0 %v7455_v45  ;;  %3272 = vmatmul.mubr.bf16.gmra.mrb[148].mxu1 %v7456_v48  ;;  %v2222_v19 = vadd.f32 %v8454_v9, %v7278_v2  ;;  %v2213_v4 = vpop.f32.mrb[129].mxu1  ;;  %v3386_v48 = vcombine.high %v3378_v51, %v3378_v51  ;;  %v3573_v2 = vrot.slane %v3394_v13, %v8490_v61 }
 0x3fb   :  { %3181 = vmatprep.mubr.bf16.mxu0 %v2258_v15  ;;  %3281 = vmatprep.mubr.bf16.mxu1 %v2268_v8  ;;  %v2214_v56 = vadd.f32 %v8454_v9, %v2213_v4  ;;  %v7279_v37 = vpop.f32.mrb[130].mxu1  ;;  %v3577_v4 = vrot.slane %v3394_v13, %v8493_v62 }
 0x3fc   :  { %v2225_v52 = vadd.f32 %v8454_v9, %v7279_v37  ;;  %v2216_v54 = vpop.f32.mrb[131].mxu1 }
 0x3fd   :  { %v2217_v46 = vadd.f32 %v8454_v9, %v2216_v54 }
 0x3fe   :  { %v2273_v14 = vpack.c.bf16 %v2225_v52, %v2222_v19 }
 0x3ff   :  { %v2272_v50 = vpack.c.bf16 %v2217_v46, %v2214_v56 }
 0x401   :  { %v7282_v1 = vpop.f32.mrb[132].mxu1 }
 0x402   :  { %3182 = vmatmul.mubr.bf16.gmra.mrb[132].mxu0 %v7457_v29  ;;  %3282 = vmatmul.mubr.bf16.gmra.mrb[152].mxu1 %v7458_v35  ;;  %v2238_v15 = vadd.f32 %v8454_v9, %v7282_v1  ;;  %v2229_v8 = vpop.f32.mrb[133].mxu1  ;;  %v3408_v29 = vrot.slane %v3386_v48, %v8527_v24 }
 0x403   :  { %3191 = vmatprep.mubr.bf16.mxu0 %v2259_v3  ;;  %3291 = vmatprep.mubr.bf16.mxu1 %v2269_v5  ;;  %v2230_v27 = vadd.f32 %v8454_v9, %v2229_v8  ;;  %v7283_v21 = vpop.f32.mrb[134].mxu1  ;;  %v7463_v3 = vld [vmem:[%s10359_s3 + $0x88] sm:$0xff]  }
 0x404   :  { %v2241_v25 = vadd.f32 %v8454_v9, %v7283_v21  ;;  %v2232_v26 = vpop.f32.mrb[135].mxu1  ;;  %v3581_v21 = vrot.slane %v3408_v29, %v8490_v61 }
 0x405   :  { %v2233_v33 = vadd.f32 %v8454_v9, %v2232_v26  ;;  %v7461_v9 = vld [vmem:[%s10359_s3 + $0x80] sm:$0xff]  }
 0x406   :  { %v2275_v45 = vpack.c.bf16 %v2241_v25, %v2238_v15 }
 0x407   :  { %v2274_v44 = vpack.c.bf16 %v2233_v33, %v2230_v27  ;;  %v3585_v33 = vrot.slane %v3408_v29, %v8493_v62 }
 0x40a   :  { %3192 = vmatmul.mubr.bf16.gmra.mrb[136].mxu0 %v7459_v39  ;;  %3292 = vmatmul.mubr.bf16.gmra.mrb[156].mxu1 %v7460_v38 }
 0x40b   :  { %3201 = vmatprep.mubr.bf16.mxu0 %v2260_v34  ;;  %3301 = vmatprep.mubr.bf16.mxu1 %v2270_v59  ;;  %v7469_v34 = vld [vmem:[%s10359_s3 + $0xf0] sm:$0xff]  }
 0x412   :  { %3202 = vmatmul.mubr.bf16.gmra.mrb[140].mxu0 %v7461_v9  ;;  %3302 = vmatmul.mubr.bf16.gmra.mrb[160].mxu1 %v7462_v57 }
 0x413   :  { %3211 = vmatprep.mubr.bf16.mxu0 %v2261_v36  ;;  %3311 = vmatprep.mubr.bf16.mxu1 %v2271_v49  ;;  %v7468_v36 = vld [vmem:[%s10359_s3 + $0xe8] sm:$0xff]  }
 0x41a   :  { %3212 = vmatmul.mubr.bf16.gmra.mrb[144].mxu0 %v7463_v3  ;;  %3312 = vmatmul.mubr.bf16.gmra.mrb[164].mxu1 %v7464_v32  ;;  %v3416_v3 = vcombine.high %v3394_v13, %v3394_v13 }
 0x41b   :  { %3221 = vmatprep.mubr.bf16.mxu0 %v2262_v30  ;;  %3321 = vmatprep.mubr.bf16.mxu1 %v2272_v50  ;;  %v8833_v30 = vrot.slane %v2837_v58, %v8493_v62 }
 0x422   :  { %3222 = vmatmul.mubr.bf16.gmra.mrb[148].mxu0 %v7465_v28  ;;  %3322 = vmatmul.mubr.bf16.gmra.mrb[168].mxu1 %v7466_v31 }
 0x423   :  { %3231 = vmatprep.mubr.bf16.mxu0 %v2263_v12  ;;  %3331 = vmatprep.mubr.bf16.mxu1 %v2273_v14  ;;  %v8830_v12 = vrot.slane %v2837_v58, %v8490_v61  ;;  %v3593_v58 = vrot.slane %v3416_v3, %v8493_v62 }
 0x42a   :  { %3232 = vmatmul.mubr.bf16.gmra.mrb[152].mxu0 %v7467_v10  ;;  %3332 = vmatmul.mubr.bf16.gmra.mrb[172].mxu1 %v7468_v36 }
 0x42b   :  { %3341 = vmatprep.mubr.bf16.mxu1 %v2274_v44 }
 0x432   :  { %3342 = vmatmul.mubr.bf16.gmra.mrb[176].mxu1 %v7469_v34  ;;  %v3589_v34 = vrot.slane %v3416_v3, %v8490_v61 }
 0x433   :  { %3351 = vmatprep.mubr.bf16.mxu1 %v2275_v45 }
 0x43a   :  { %3352 = vmatmul.mubr.bf16.gmra.mrb[180].mxu1 %v7470_v6 }
 0x465   :  { %v3043_v5 = vpop.f32.mrb[76].mxu0 }
 0x466   :  { %v3044_v49 = vadd.f32 %v3043_v5, %v8830_v12  ;;  %v3045_v59 = vpop.f32.mrb[77].mxu0 }
 0x467   :  { %v3046_v22 = vadd.f32 %v3045_v59, %v8833_v30  ;;  %v3047_v19 = vpop.f32.mrb[78].mxu0 }
 0x468   :  { %v3048_v56 = vadd.f32 %v3047_v19, %v8830_v12  ;;  %v3049_v37 = vpop.f32.mrb[79].mxu0  ;;  %v3890_v52 = vmul.f32 %v3573_v2, %v3044_v49  ;;  %v3418_v19 = vcombine.high %v3408_v29, %v3408_v29 }
 0x469   :  { %v3050_v54 = vadd.f32 %v3049_v37, %v8833_v30  ;;  %v3891_v46 = vmul.f32 %v3577_v4, %v3046_v22 }
 0x46a   :  { %v3892_v35 = vmul.f32 %v3573_v2, %v3048_v56 }
 0x46b   :  { %v3893_v14 = vmul.f32 %v3577_v4, %v3050_v54  ;;  %v4018_v50 = vadd.f32 %v3891_v46, %v3890_v52  ;;  %v3385_v54 = vrot.slane %v3371_v23, %v8527_v24 }
 0x46d   :  { %v3053_v1 = vpop.f32.mrb[80].mxu0  ;;  %4019 = vadd.xlane.f32.xlu0 %v4018_v50  ;;  %v4021_v15 = vadd.f32 %v3893_v14, %v3892_v35  ;;  %v3597_v35 = vrot.slane %v3418_v19, %v8490_v61  ;;  %v3401_v16 = vrot.slane %v3385_v54, %v8527_v24 }
 0x46e   :  { %v3054_v8 = vadd.f32 %v3053_v1, %v8830_v12  ;;  %v3055_v27 = vpop.f32.mrb[81].mxu0  ;;  %v3601_v1 = vrot.slane %v3418_v19, %v8493_v62 }
 0x46f   :  { %v3056_v25 = vadd.f32 %v3055_v27, %v8833_v30  ;;  %v3057_v26 = vpop.f32.mrb[82].mxu0  ;;  %v3609_v3 = vrot.slane %v3401_v16, %v8493_v62 }
 0x470   :  { %v3058_v39 = vadd.f32 %v3057_v26, %v8830_v12  ;;  %v3059_v38 = vpop.f32.mrb[83].mxu0  ;;  %v3894_v45 = vmul.f32 %v3581_v21, %v3054_v8 }
 0x471   :  { %v3060_v44 = vadd.f32 %v3059_v38, %v8833_v30  ;;  %4022 = vadd.xlane.f32.xlu0 %v4021_v15  ;;  %v3895_v9 = vmul.f32 %v3585_v33, %v3056_v25  ;;  %v3387_v38 = vcombine.high %v3385_v54, %v3385_v54 }
 0x472   :  { %v3896_v57 = vmul.f32 %v3581_v21, %v3058_v39 }
 0x473   :  { %v3897_v32 = vmul.f32 %v3585_v33, %v3060_v44  ;;  %v4024_v28 = vadd.f32 %v3895_v9, %v3894_v45  ;;  %v3605_v44 = vrot.slane %v3401_v16, %v8490_v61 }
 0x475   :  { %v3063_v31 = vpop.f32.mrb[84].mxu0  ;;  %4025 = vadd.xlane.f32.xlu1 %v4024_v28  ;;  %v4027_v10 = vadd.f32 %v3897_v32, %v3896_v57 }
 0x476   :  { %v3064_v36 = vadd.f32 %v3063_v31, %v8830_v12  ;;  %v3065_v6 = vpop.f32.mrb[85].mxu0 }
 0x477   :  { %v3066_v51 = vadd.f32 %v3065_v6, %v8833_v30  ;;  %v3067_v5 = vpop.f32.mrb[86].mxu0  ;;  %v3415_v6 = vrot.slane %v3387_v38, %v8527_v24 }
 0x478   :  { %v3898_v48 = vmul.f32 %v3589_v34, %v3064_v36  ;;  %v3068_v49 = vadd.f32 %v3067_v5, %v8830_v12  ;;  %v3069_v59 = vpop.f32.mrb[87].mxu0 }
 0x479   :  { %v3899_v13 = vmul.f32 %v3593_v58, %v3066_v51  ;;  %v3070_v2 = vadd.f32 %v3069_v59, %v8833_v30  ;;  %4028 = vadd.xlane.f32.xlu1 %v4027_v10  ;;  %v3617_v19 = vrot.slane %v3415_v6, %v8493_v62 }
 0x47a   :  { %v3900_v22 = vmul.f32 %v3589_v34, %v3068_v49 }
 0x47b   :  { %v3901_v4 = vmul.f32 %v3593_v58, %v3070_v2  ;;  %v4030_v56 = vadd.f32 %v3899_v13, %v3898_v48  ;;  %v3613_v13 = vrot.slane %v3415_v6, %v8490_v61 }
 0x47d   :  { %v3073_v37 = vpop.f32.mrb[88].mxu0  ;;  %4031 = vadd.xlane.f32.xlu0 %v4030_v56  ;;  %v4033_v52 = vadd.f32 %v3901_v4, %v3900_v22 }
 0x47e   :  { %v3074_v46 = vadd.f32 %v3073_v37, %v8830_v12  ;;  %v3075_v14 = vpop.f32.mrb[89].mxu0 }
 0x47f   :  { %v3076_v50 = vadd.f32 %v3075_v14, %v8833_v30  ;;  %v3077_v29 = vpop.f32.mrb[90].mxu0  ;;  %4034 = vadd.xlane.f32.xlu1 %v4033_v52 }
 0x480   :  { %v3902_v15 = vmul.f32 %v3597_v35, %v3074_v46  ;;  %v3078_v8 = vadd.f32 %v3077_v29, %v8830_v12  ;;  %v3079_v27 = vpop.f32.mrb[91].mxu0 }
 0x481   :  { %v3903_v21 = vmul.f32 %v3601_v1, %v3076_v50  ;;  %v3080_v25 = vadd.f32 %v3079_v27, %v8833_v30 }
 0x482   :  { %v3904_v17 = vmul.f32 %v3597_v35, %v3078_v8  ;;  %v3417_v35 = vcombine.high %v3401_v16, %v3401_v16 }
 0x483   :  { %v3905_v23 = vmul.f32 %v3601_v1, %v3080_v25  ;;  %v4036_v26 = vadd.f32 %v3903_v21, %v3902_v15 }
 0x484   :  { %v3621_v8 = vrot.slane %v3417_v35, %v8490_v61  ;;  %v3625_v25 = vrot.slane %v3417_v35, %v8493_v62 }
 0x485   :  { %v3083_v33 = vpop.f32.mrb[92].mxu0  ;;  %4037 = vadd.xlane.f32.xlu0 %v4036_v26  ;;  %v4039_v39 = vadd.f32 %v3905_v23, %v3904_v17 }
 0x486   :  { %v3084_v45 = vadd.f32 %v3083_v33, %v8830_v12  ;;  %v3085_v9 = vpop.f32.mrb[93].mxu0 }
 0x487   :  { %v3086_v57 = vadd.f32 %v3085_v9, %v8833_v30  ;;  %v3087_v32 = vpop.f32.mrb[94].mxu0  ;;  %4040 = vadd.xlane.f32.xlu1 %v4039_v39 }
 0x488   :  { %v3906_v28 = vmul.f32 %v3605_v44, %v3084_v45  ;;  %v3088_v31 = vadd.f32 %v3087_v32, %v8830_v12  ;;  %v3089_v10 = vpop.f32.mrb[95].mxu0  ;;  %v3419_v45 = vcombine.high %v3415_v6, %v3415_v6 }
 0x489   :  { %v3907_v36 = vmul.f32 %v3609_v3, %v3086_v57  ;;  %v3090_v34 = vadd.f32 %v3089_v10, %v8833_v30 }
 0x48a   :  { %v3908_v51 = vmul.f32 %v3605_v44, %v3088_v31 }
 0x48b   :  { %v3909_v58 = vmul.f32 %v3609_v3, %v3090_v34  ;;  %v4042_v5 = vadd.f32 %v3907_v36, %v3906_v28  ;;  %v3629_v28 = vrot.slane %v3419_v45, %v8490_v61  ;;  %v3633_v36 = vrot.slane %v3419_v45, %v8493_v62 }
 0x48d   :  { %v3093_v48 = vpop.f32.mrb[96].mxu0  ;;  %4043 = vadd.xlane.f32.xlu0 %v4042_v5  ;;  %v4045_v49 = vadd.f32 %v3909_v58, %v3908_v51 }
 0x48e   :  { %v3094_v59 = vadd.f32 %v3093_v48, %v8830_v12  ;;  %v3095_v2 = vpop.f32.mrb[97].mxu0 }
 0x48f   :  { %v3096_v22 = vadd.f32 %v3095_v2, %v8833_v30  ;;  %v3097_v4 = vpop.f32.mrb[98].mxu0  ;;  %4046 = vadd.xlane.f32.xlu1 %v4045_v49 }
 0x490   :  { %v3910_v56 = vmul.f32 %v3613_v13, %v3094_v59  ;;  %v3098_v24 = vadd.f32 %v3097_v4, %v8830_v12  ;;  %v3099_v37 = vpop.f32.mrb[99].mxu0  ;;  %v3637_v4 = vrot.slane %v8551_v40, %v8490_v61 }
 0x491   :  { %v3911_v52 = vmul.f32 %v3617_v19, %v3096_v22  ;;  %v3100_v54 = vadd.f32 %v3099_v37, %v8833_v30  ;;  %v3641_v37 = vrot.slane %v8551_v40, %v8493_v62 }
 0x492   :  { %v3912_v46 = vmul.f32 %v3613_v13, %v3098_v24 }
 0x493   :  { %v3913_v14 = vmul.f32 %v3617_v19, %v3100_v54  ;;  %v4048_v50 = vadd.f32 %v3911_v52, %v3910_v56 }
 0x495   :  { %v3103_v1 = vpop.f32.mrb[100].mxu0  ;;  %4049 = vadd.xlane.f32.xlu0 %v4048_v50  ;;  %v4051_v29 = vadd.f32 %v3913_v14, %v3912_v46 }
 0x496   :  { %v3104_v15 = vadd.f32 %v3103_v1, %v8830_v12  ;;  %v3105_v27 = vpop.f32.mrb[101].mxu0 }
 0x497   :  { %v3106_v21 = vadd.f32 %v3105_v27, %v8833_v30  ;;  %v3107_v17 = vpop.f32.mrb[102].mxu0  ;;  %4052 = vadd.xlane.f32.xlu1 %v4051_v29 }
 0x498   :  { %v3914_v23 = vmul.f32 %v3621_v8, %v3104_v15  ;;  %v3108_v26 = vadd.f32 %v3107_v17, %v8830_v12  ;;  %v3109_v16 = vpop.f32.mrb[103].mxu0 }
 0x499   :  { %v3915_v33 = vmul.f32 %v3625_v25, %v3106_v21  ;;  %v3110_v39 = vadd.f32 %v3109_v16, %v8833_v30 }
 0x49a   :  { %v3916_v38 = vmul.f32 %v3621_v8, %v3108_v26  ;;  %v3649_v26 = vrot.slane %v8557_v41, %v8493_v62 }
 0x49b   :  { %v3917_v44 = vmul.f32 %v3625_v25, %v3110_v39  ;;  %v4054_v9 = vadd.f32 %v3915_v33, %v3914_v23  ;;  %v3645_v25 = vrot.slane %v8557_v41, %v8490_v61 }
 0x49d   :  { %v3113_v57 = vpop.f32.mrb[104].mxu0  ;;  %4055 = vadd.xlane.f32.xlu0 %v4054_v9  ;;  %v4057_v3 = vadd.f32 %v3917_v44, %v3916_v38 }
 0x49e   :  { %v3114_v32 = vadd.f32 %v3113_v57, %v8830_v12  ;;  %v3115_v31 = vpop.f32.mrb[105].mxu0  ;;  %v3466_v57 = vcombine.high %v8551_v40, %v8551_v40 }
 0x49f   :  { %v3116_v10 = vadd.f32 %v3115_v31, %v8833_v30  ;;  %v3117_v34 = vpop.f32.mrb[106].mxu0  ;;  %4058 = vadd.xlane.f32.xlu1 %v4057_v3 }
 0x4a0   :  { %v3918_v51 = vmul.f32 %v3629_v28, %v3114_v32  ;;  %v3118_v58 = vadd.f32 %v3117_v34, %v8830_v12  ;;  %v3119_v6 = vpop.f32.mrb[107].mxu0  ;;  %v3653_v34 = vrot.slane %v3466_v57, %v8490_v61  ;;  %v3657_v40 = vrot.slane %v3466_v57, %v8493_v62 }
 0x4a1   :  { %v3919_v5 = vmul.f32 %v3633_v36, %v3116_v10  ;;  %v3120_v48 = vadd.f32 %v3119_v6, %v8833_v30  ;;  %v3745_v57 = vrot.slane %v8633_v63, %v8493_v62 }
 0x4a2   :  { %v3920_v49 = vmul.f32 %v3629_v28, %v3118_v58  ;;  %v3733_v58 = vrot.slane %v8619_v47, %v8490_v61 }
 0x4a3   :  { %v3921_v59 = vmul.f32 %v3633_v36, %v3120_v48  ;;  %v4060_v13 = vadd.f32 %v3919_v5, %v3918_v51 }
 0x4a5   :  { %v3123_v2 = vpop.f32.mrb[108].mxu0  ;;  %4061 = vadd.xlane.f32.xlu0 %v4060_v13  ;;  %v4063_v22 = vadd.f32 %v3921_v59, %v3920_v49  ;;  %v3737_v59 = vrot.slane %v8619_v47, %v8493_v62 }
 0x4a6   :  { %v3124_v19 = vadd.f32 %v3123_v2, %v8830_v12  ;;  %v3125_v56 = vpop.f32.mrb[109].mxu0 }
 0x4a7   :  { %v3126_v24 = vadd.f32 %v3125_v56, %v8833_v30  ;;  %v3127_v52 = vpop.f32.mrb[110].mxu0  ;;  %4064 = vadd.xlane.f32.xlu1 %v4063_v22 }
 0x4a8   :  { %v3922_v54 = vmul.f32 %v3637_v4, %v3124_v19  ;;  %v3128_v46 = vadd.f32 %v3127_v52, %v8830_v12  ;;  %v3129_v35 = vpop.f32.mrb[111].mxu0 }
 0x4a9   :  { %v3923_v14 = vmul.f32 %v3641_v37, %v3126_v24  ;;  %v3130_v50 = vadd.f32 %v3129_v35, %v8833_v30 }
 0x4aa   :  { %v3924_v1 = vmul.f32 %v3637_v4, %v3128_v46 }
 0x4ab   :  { %v3925_v29 = vmul.f32 %v3641_v37, %v3130_v50  ;;  %v4066_v15 = vadd.f32 %v3923_v14, %v3922_v54 }
 0x4ad   :  { %v3133_v8 = vpop.f32.mrb[112].mxu0  ;;  %4067 = vadd.xlane.f32.xlu0 %v4066_v15  ;;  %v4069_v27 = vadd.f32 %v3925_v29, %v3924_v1  ;;  %v3468_v1 = vcombine.high %v8557_v41, %v8557_v41 }
 0x4ae   :  { %v3134_v21 = vadd.f32 %v3133_v8, %v8830_v12  ;;  %v3135_v17 = vpop.f32.mrb[113].mxu0 }
 0x4af   :  { %v3136_v23 = vadd.f32 %v3135_v17, %v8833_v30  ;;  %v3137_v16 = vpop.f32.mrb[114].mxu0  ;;  %4070 = vadd.xlane.f32.xlu1 %v4069_v27 }
 0x4b0   :  { %v3926_v33 = vmul.f32 %v3645_v25, %v3134_v21  ;;  %v3138_v39 = vadd.f32 %v3137_v16, %v8830_v12  ;;  %v3139_v38 = vpop.f32.mrb[115].mxu0  ;;  %v3661_v16 = vrot.slane %v3468_v1, %v8490_v61 }
 0x4b1   :  { %v3927_v45 = vmul.f32 %v3649_v26, %v3136_v23  ;;  %v3140_v44 = vadd.f32 %v3139_v38, %v8833_v30 }
 0x4b2   :  { %v3928_v9 = vmul.f32 %v3645_v25, %v3138_v39  ;;  %v3741_v39 = vrot.slane %v8633_v63, %v8490_v61 }
 0x4b3   :  { %v3929_v3 = vmul.f32 %v3649_v26, %v3140_v44  ;;  %v4072_v32 = vadd.f32 %v3927_v45, %v3926_v33  ;;  %v3665_v44 = vrot.slane %v3468_v1, %v8493_v62  ;;  %v3673_v1 = vrot.slane %v8554_v11, %v8493_v62 }
 0x4b5   :  { %v3143_v28 = vpop.f32.mrb[116].mxu0  ;;  %v3243_v31 = vpop.f32.mrb[136].mxu1  ;;  %4073 = vadd.xlane.f32.xlu0 %v4072_v32  ;;  %v4075_v10 = vadd.f32 %v3929_v3, %v3928_v9 }
 0x4b6   :  { %v3144_v36 = vadd.f32 %v3143_v28, %v8830_v12  ;;  %v3244_v51 = vadd.f32 %v3243_v31, %v8830_v12  ;;  %v3145_v6 = vpop.f32.mrb[117].mxu0  ;;  %v3245_v5 = vpop.f32.mrb[137].mxu1 }
 0x4b7   :  { %v3146_v48 = vadd.f32 %v3145_v6, %v8833_v30  ;;  %v3246_v49 = vadd.f32 %v3245_v5, %v8833_v30  ;;  %v3147_v13 = vpop.f32.mrb[118].mxu0  ;;  %v3247_v2 = vpop.f32.mrb[138].mxu1  ;;  %4076 = vadd.xlane.f32.xlu1 %v4075_v10 }
 0x4b8   :  { %v3930_v22 = vmul.f32 %v3653_v34, %v3144_v36  ;;  %v3970_v19 = vmul.f32 %v3733_v58, %v3244_v51  ;;  %v3148_v4 = vadd.f32 %v3147_v13, %v8830_v12  ;;  %v3248_v56 = vadd.f32 %v3247_v2, %v8830_v12  ;;  %v3149_v24 = vpop.f32.mrb[119].mxu0  ;;  %v3249_v37 = vpop.f32.mrb[139].mxu1 }
 0x4b9   :  { %v3931_v52 = vmul.f32 %v3657_v40, %v3146_v48  ;;  %v3971_v54 = vmul.f32 %v3737_v59, %v3246_v49  ;;  %v3150_v46 = vadd.f32 %v3149_v24, %v8833_v30  ;;  %v3250_v35 = vadd.f32 %v3249_v37, %v8833_v30 }
 0x4ba   :  { %v3932_v14 = vmul.f32 %v3653_v34, %v3148_v4  ;;  %v3972_v50 = vmul.f32 %v3733_v58, %v3248_v56 }
 0x4bb   :  { %v3933_v29 = vmul.f32 %v3657_v40, %v3150_v46  ;;  %v3973_v15 = vmul.f32 %v3737_v59, %v3250_v35  ;;  %v4078_v8 = vadd.f32 %v3931_v52, %v3930_v22  ;;  %v4138_v27 = vadd.f32 %v3971_v54, %v3970_v19 }
 0x4bc   :  { %v3517_v59 = vcombine.high %v8619_v47, %v8619_v47  ;;  %v3669_v54 = vrot.slane %v8554_v11, %v8490_v61 }
 0x4bd   :  { %v3153_v21 = vpop.f32.mrb[120].mxu0  ;;  %v3253_v25 = vpop.f32.mrb[140].mxu1  ;;  %4079 = vadd.xlane.f32.xlu0 %v4078_v8  ;;  %v4081_v17 = vadd.f32 %v3933_v29, %v3932_v14  ;;  %v4141_v23 = vadd.f32 %v3973_v15, %v3972_v50 }
 0x4be   :  { %v3154_v26 = vadd.f32 %v3153_v21, %v8830_v12  ;;  %v3254_v33 = vadd.f32 %v3253_v25, %v8830_v12  ;;  %v3155_v38 = vpop.f32.mrb[121].mxu0  ;;  %v3255_v41 = vpop.f32.mrb[141].mxu1  ;;  %v3749_v35 = vrot.slane %v3517_v59, %v8490_v61  ;;  %v3753_v15 = vrot.slane %v3517_v59, %v8493_v62 }
 0x4bf   :  { %v3156_v45 = vadd.f32 %v3155_v38, %v8833_v30  ;;  %v3256_v9 = vadd.f32 %v3255_v41, %v8833_v30  ;;  %v3157_v3 = vpop.f32.mrb[122].mxu0  ;;  %v3257_v32 = vpop.f32.mrb[142].mxu1  ;;  %4082 = vadd.xlane.f32.xlu1 %v4081_v17 }
 0x4c0   :  { %v3934_v28 = vmul.f32 %v3661_v16, %v3154_v26  ;;  %v3974_v31 = vmul.f32 %v3741_v39, %v3254_v33  ;;  %v3158_v10 = vadd.f32 %v3157_v3, %v8830_v12  ;;  %v3258_v36 = vadd.f32 %v3257_v32, %v8830_v12  ;;  %v3159_v34 = vpop.f32.mrb[123].mxu0  ;;  %v3259_v51 = vpop.f32.mrb[143].mxu1 }
 0x4c1   :  { %v3935_v58 = vmul.f32 %v3665_v44, %v3156_v45  ;;  %v3975_v6 = vmul.f32 %v3745_v57, %v3256_v9  ;;  %v3160_v5 = vadd.f32 %v3159_v34, %v8833_v30  ;;  %v3260_v48 = vadd.f32 %v3259_v51, %v8833_v30  ;;  %4139 = vadd.xlane.f32.xlu0 %v4138_v27 }
 0x4c2   :  { %v3936_v40 = vmul.f32 %v3661_v16, %v3158_v10  ;;  %v3976_v49 = vmul.f32 %v3741_v39, %v3258_v36  ;;  %v3519_v9 = vcombine.high %v8633_v63, %v8633_v63 }
 0x4c3   :  { %v3937_v13 = vmul.f32 %v3665_v44, %v3160_v5  ;;  %v3977_v2 = vmul.f32 %v3745_v57, %v3260_v48  ;;  %4142 = vadd.xlane.f32.xlu1 %v4141_v23  ;;  %v4084_v22 = vadd.f32 %v3935_v58, %v3934_v28  ;;  %v4144_v19 = vadd.f32 %v3975_v6, %v3974_v31 }
 0x4c4   :  { %v3677_v58 = vrot.slane %v8560_v42, %v8490_v61  ;;  %v3757_v5 = vrot.slane %v3519_v9, %v8490_v61 }
 0x4c5   :  { %v3163_v4 = vpop.f32.mrb[124].mxu0  ;;  %v3263_v56 = vpop.f32.mrb[144].mxu1  ;;  %4085 = vadd.xlane.f32.xlu0 %v4084_v22  ;;  %v4087_v24 = vadd.f32 %v3937_v13, %v3936_v40  ;;  %v4147_v37 = vadd.f32 %v3977_v2, %v3976_v49  ;;  %v3681_v49 = vrot.slane %v8560_v42, %v8493_v62  ;;  %v3761_v13 = vrot.slane %v3519_v9, %v8493_v62 }
 0x4c6   :  { %v3164_v52 = vadd.f32 %v3163_v4, %v8830_v12  ;;  %v3264_v46 = vadd.f32 %v3263_v56, %v8830_v12  ;;  %v3165_v47 = vpop.f32.mrb[125].mxu0  ;;  %v3265_v14 = vpop.f32.mrb[145].mxu1  ;;  %v3769_v9 = vrot.slane %v8639_v0, %v8493_v62 }
 0x4c7   :  { %v3166_v50 = vadd.f32 %v3165_v47, %v8833_v30  ;;  %v3266_v29 = vadd.f32 %v3265_v14, %v8833_v30  ;;  %v3167_v8 = vpop.f32.mrb[126].mxu0  ;;  %v3267_v27 = vpop.f32.mrb[146].mxu1  ;;  %4088 = vadd.xlane.f32.xlu1 %v4087_v24 }
 0x4c8   :  { %v3938_v21 = vmul.f32 %v3669_v54, %v3164_v52  ;;  %v3978_v25 = vmul.f32 %v3749_v35, %v3264_v46  ;;  %v3168_v17 = vadd.f32 %v3167_v8, %v8830_v12  ;;  %v3268_v23 = vadd.f32 %v3267_v27, %v8830_v12  ;;  %v3169_v26 = vpop.f32.mrb[127].mxu0  ;;  %v3269_v16 = vpop.f32.mrb[147].mxu1 }
 0x4c9   :  { %v3939_v33 = vmul.f32 %v3673_v1, %v3166_v50  ;;  %v3979_v39 = vmul.f32 %v3753_v15, %v3266_v29  ;;  %v3170_v38 = vadd.f32 %v3169_v26, %v8833_v30  ;;  %v3270_v41 = vadd.f32 %v3269_v16, %v8833_v30  ;;  %4145 = vadd.xlane.f32.xlu0 %v4144_v19 }
 0x4ca   :  { %v3940_v45 = vmul.f32 %v3669_v54, %v3168_v17  ;;  %v3980_v44 = vmul.f32 %v3749_v35, %v3268_v23 }
 0x4cb   :  { %v3941_v57 = vmul.f32 %v3673_v1, %v3170_v38  ;;  %v3981_v3 = vmul.f32 %v3753_v15, %v3270_v41  ;;  %4148 = vadd.xlane.f32.xlu1 %v4147_v37  ;;  %v4090_v32 = vadd.f32 %v3939_v33, %v3938_v21  ;;  %v4150_v28 = vadd.f32 %v3979_v39, %v3978_v25 }
 0x4cc   :  { %v3467_v1 = vcombine.high %v8554_v11, %v8554_v11  ;;  %v3765_v39 = vrot.slane %v8639_v0, %v8490_v61 }
 0x4cd   :  { %v3173_v31 = vpop.f32.mrb[128].mxu0  ;;  %v3273_v10 = vpop.f32.mrb[148].mxu1  ;;  %4091 = vadd.xlane.f32.xlu0 %v4090_v32  ;;  %v4093_v36 = vadd.f32 %v3941_v57, %v3940_v45  ;;  %v4153_v34 = vadd.f32 %v3981_v3, %v3980_v44 }
 0x4ce   :  { %v3174_v51 = vadd.f32 %v3173_v31, %v8830_v12  ;;  %v3274_v6 = vadd.f32 %v3273_v10, %v8830_v12  ;;  %v3175_v63 = vpop.f32.mrb[129].mxu0  ;;  %v3275_v48 = vpop.f32.mrb[149].mxu1  ;;  %v3685_v16 = vrot.slane %v3467_v1, %v8490_v61  ;;  %v3689_v45 = vrot.slane %v3467_v1, %v8493_v62 }
 0x4cf   :  { %v3176_v40 = vadd.f32 %v3175_v63, %v8833_v30  ;;  %v3276_v59 = vadd.f32 %v3275_v48, %v8833_v30  ;;  %v3177_v2 = vpop.f32.mrb[130].mxu0  ;;  %v3277_v22 = vpop.f32.mrb[150].mxu1  ;;  %4094 = vadd.xlane.f32.xlu1 %v4093_v36 }
 0x4d0   :  { %v3942_v19 = vmul.f32 %v3677_v58, %v3174_v51  ;;  %v3982_v4 = vmul.f32 %v3757_v5, %v3274_v6  ;;  %v3178_v56 = vadd.f32 %v3177_v2, %v8830_v12  ;;  %v3278_v24 = vadd.f32 %v3277_v22, %v8830_v12  ;;  %v3179_v37 = vpop.f32.mrb[131].mxu0  ;;  %v3279_v52 = vpop.f32.mrb[151].mxu1 }
 0x4d1   :  { %v3943_v54 = vmul.f32 %v3681_v49, %v3176_v40  ;;  %v3983_v46 = vmul.f32 %v3761_v13, %v3276_v59  ;;  %v3180_v35 = vadd.f32 %v3179_v37, %v8833_v30  ;;  %v3280_v47 = vadd.f32 %v3279_v52, %v8833_v30  ;;  %4151 = vadd.xlane.f32.xlu0 %v4150_v28 }
 0x4d2   :  { %v3944_v14 = vmul.f32 %v3677_v58, %v3178_v56  ;;  %v3984_v50 = vmul.f32 %v3757_v5, %v3278_v24  ;;  %v3469_v40 = vcombine.high %v8560_v42, %v8560_v42 }
 0x4d3   :  { %v3945_v29 = vmul.f32 %v3681_v49, %v3180_v35  ;;  %v3985_v15 = vmul.f32 %v3761_v13, %v3280_v47  ;;  %4154 = vadd.xlane.f32.xlu1 %v4153_v34  ;;  %v4096_v8 = vadd.f32 %v3943_v54, %v3942_v19  ;;  %v4156_v27 = vadd.f32 %v3983_v46, %v3982_v4 }
 0x4d4   :  { %v3693_v37 = vrot.slane %v3469_v40, %v8490_v61  ;;  %v3773_v54 = vrot.slane %v8652_v18, %v8490_v61  ;;  %v3697_v47 = vrot.slane %v3469_v40, %v8493_v62 }
 0x4d5   :  { %v3183_v21 = vpop.f32.mrb[132].mxu0  ;;  %v3283_v25 = vpop.f32.mrb[152].mxu1  ;;  %4097 = vadd.xlane.f32.xlu0 %v4096_v8  ;;  %v4099_v17 = vadd.f32 %v3945_v29, %v3944_v14  ;;  %v4159_v23 = vadd.f32 %v3985_v15, %v3984_v50  ;;  %v3777_v50 = vrot.slane %v8652_v18, %v8493_v62 }
 0x4d6   :  { %v3184_v26 = vadd.f32 %v3183_v21, %v8830_v12  ;;  %v3284_v33 = vadd.f32 %v3283_v25, %v8830_v12  ;;  %v3185_v11 = vpop.f32.mrb[133].mxu0  ;;  %v3285_v38 = vpop.f32.mrb[153].mxu1 }
 0x4d7   :  { %v3186_v41 = vadd.f32 %v3185_v11, %v8833_v30  ;;  %v3286_v44 = vadd.f32 %v3285_v38, %v8833_v30  ;;  %v3187_v57 = vpop.f32.mrb[134].mxu0  ;;  %v3287_v3 = vpop.f32.mrb[154].mxu1  ;;  %4100 = vadd.xlane.f32.xlu1 %v4099_v17  ;;  %v3566_v38 = vcombine.high %v8639_v0, %v8639_v0 }
 0x4d8   :  { %v3946_v32 = vmul.f32 %v3685_v16, %v3184_v26  ;;  %v3986_v28 = vmul.f32 %v3765_v39, %v3284_v33  ;;  %v3188_v31 = vadd.f32 %v3187_v57, %v8830_v12  ;;  %v3288_v10 = vadd.f32 %v3287_v3, %v8830_v12  ;;  %v3189_v36 = vpop.f32.mrb[135].mxu0  ;;  %v3289_v34 = vpop.f32.mrb[155].mxu1 }
 0x4d9   :  { %v3947_v51 = vmul.f32 %v3689_v45, %v3186_v41  ;;  %v3987_v58 = vmul.f32 %v3769_v9, %v3286_v44  ;;  %v3190_v6 = vadd.f32 %v3189_v36, %v8833_v30  ;;  %v3290_v5 = vadd.f32 %v3289_v34, %v8833_v30  ;;  %4157 = vadd.xlane.f32.xlu0 %v4156_v27 }
 0x4da   :  { %v3948_v63 = vmul.f32 %v3685_v16, %v3188_v31  ;;  %v3988_v48 = vmul.f32 %v3765_v39, %v3288_v10  ;;  %v3701_v10 = vrot.slane %v8610_v43, %v8490_v61  ;;  %v3781_v34 = vrot.slane %v3566_v38, %v8490_v61 }
 0x4db   :  { %v3949_v49 = vmul.f32 %v3689_v45, %v3190_v6  ;;  %v3989_v59 = vmul.f32 %v3769_v9, %v3290_v5  ;;  %4160 = vadd.xlane.f32.xlu1 %v4159_v23  ;;  %v4102_v13 = vadd.f32 %v3947_v51, %v3946_v32  ;;  %v4162_v2 = vadd.f32 %v3987_v58, %v3986_v28 }
 0x4dc   :  { %v3705_v6 = vrot.slane %v8610_v43, %v8493_v62 }
 0x4dd   :  { %v3193_v22 = vpop.f32.mrb[136].mxu0  ;;  %v3293_v19 = vpop.f32.mrb[156].mxu1  ;;  %4103 = vadd.xlane.f32.xlu0 %v4102_v13  ;;  %v4105_v4 = vadd.f32 %v3949_v49, %v3948_v63  ;;  %v4165_v56 = vadd.f32 %v3989_v59, %v3988_v48  ;;  %v3785_v63 = vrot.slane %v3566_v38, %v8493_v62 }
 0x4de   :  { %v3194_v24 = vadd.f32 %v3193_v22, %v8830_v12  ;;  %v3294_v52 = vadd.f32 %v3293_v19, %v8830_v12  ;;  %v3195_v42 = vpop.f32.mrb[137].mxu0  ;;  %v3295_v46 = vpop.f32.mrb[157].mxu1 }
 0x4df   :  { %v3196_v35 = vadd.f32 %v3195_v42, %v8833_v30  ;;  %v3296_v14 = vadd.f32 %v3295_v46, %v8833_v30  ;;  %v3197_v1 = vpop.f32.mrb[138].mxu0  ;;  %v3297_v29 = vpop.f32.mrb[158].mxu1  ;;  %4106 = vadd.xlane.f32.xlu1 %v4105_v4  ;;  %v3568_v42 = vcombine.high %v8652_v18, %v8652_v18 }
 0x4e0   :  { %v3950_v15 = vmul.f32 %v3693_v37, %v3194_v24  ;;  %v3990_v8 = vmul.f32 %v3773_v54, %v3294_v52  ;;  %v3198_v27 = vadd.f32 %v3197_v1, %v8830_v12  ;;  %v3298_v21 = vadd.f32 %v3297_v29, %v8830_v12  ;;  %v3199_v25 = vpop.f32.mrb[139].mxu0  ;;  %v3299_v17 = vpop.f32.mrb[159].mxu1 }
 0x4e1   :  { %v3951_v23 = vmul.f32 %v3697_v47, %v3196_v35  ;;  %v3991_v26 = vmul.f32 %v3777_v50, %v3296_v14  ;;  %v3200_v16 = vadd.f32 %v3199_v25, %v8833_v30  ;;  %v3300_v33 = vadd.f32 %v3299_v17, %v8833_v30  ;;  %4163 = vadd.xlane.f32.xlu0 %v4162_v2 }
 0x4e2   :  { %v3952_v39 = vmul.f32 %v3693_v37, %v3198_v27  ;;  %v3992_v11 = vmul.f32 %v3773_v54, %v3298_v21  ;;  %v3709_v27 = vrot.slane %v8630_v60, %v8490_v61  ;;  %v3789_v25 = vrot.slane %v3568_v42, %v8490_v61 }
 0x4e3   :  { %v3953_v41 = vmul.f32 %v3697_v47, %v3200_v16  ;;  %v3993_v45 = vmul.f32 %v3777_v50, %v3300_v33  ;;  %4166 = vadd.xlane.f32.xlu1 %v4165_v56  ;;  %v4108_v44 = vadd.f32 %v3951_v23, %v3950_v15  ;;  %v4168_v9 = vadd.f32 %v3991_v26, %v3990_v8 }
 0x4e4   :  { %v3713_v26 = vrot.slane %v8630_v60, %v8493_v62  ;;  %v3793_v33 = vrot.slane %v3568_v42, %v8493_v62 }
 0x4e5   :  { %v3203_v57 = vpop.f32.mrb[140].mxu0  ;;  %v3303_v3 = vpop.f32.mrb[160].mxu1  ;;  %4109 = vadd.xlane.f32.xlu0 %v4108_v44  ;;  %v4111_v32 = vadd.f32 %v3953_v41, %v3952_v39  ;;  %v4171_v28 = vadd.f32 %v3993_v45, %v3992_v11 }
 0x4e6   :  { %v3204_v31 = vadd.f32 %v3203_v57, %v8830_v12  ;;  %v3304_v36 = vadd.f32 %v3303_v3, %v8830_v12  ;;  %v3205_v0 = vpop.f32.mrb[141].mxu0  ;;  %v3305_v51 = vpop.f32.mrb[161].mxu1 }
 0x4e7   :  { %v3206_v58 = vadd.f32 %v3205_v0, %v8833_v30  ;;  %v3306_v5 = vadd.f32 %v3305_v51, %v8833_v30  ;;  %v3207_v48 = vpop.f32.mrb[142].mxu0  ;;  %v3307_v40 = vpop.f32.mrb[162].mxu1  ;;  %4112 = vadd.xlane.f32.xlu1 %v4111_v32 }
 0x4e8   :  { %v3954_v49 = vmul.f32 %v3701_v10, %v3204_v31  ;;  %v3994_v59 = vmul.f32 %v3781_v34, %v3304_v36  ;;  %v3208_v13 = vadd.f32 %v3207_v48, %v8830_v12  ;;  %v3308_v2 = vadd.f32 %v3307_v40, %v8830_v12  ;;  %v3209_v22 = vpop.f32.mrb[143].mxu0  ;;  %v3309_v19 = vpop.f32.mrb[163].mxu1 }
 0x4e9   :  { %v3955_v4 = vmul.f32 %v3705_v6, %v3206_v58  ;;  %v3995_v56 = vmul.f32 %v3785_v63, %v3306_v5  ;;  %v3210_v24 = vadd.f32 %v3209_v22, %v8833_v30  ;;  %v3310_v37 = vadd.f32 %v3309_v19, %v8833_v30  ;;  %4169 = vadd.xlane.f32.xlu0 %v4168_v9 }
 0x4ea   :  { %v3956_v52 = vmul.f32 %v3701_v10, %v3208_v13  ;;  %v3996_v54 = vmul.f32 %v3781_v34, %v3308_v2  ;;  %v3516_v34 = vcombine.high %v8610_v43, %v8610_v43  ;;  %v3797_v2 = vrot.slane %v8647_v7, %v8490_v61 }
 0x4eb   :  { %v3957_v46 = vmul.f32 %v3705_v6, %v3210_v24  ;;  %v3997_v35 = vmul.f32 %v3785_v63, %v3310_v37  ;;  %4172 = vadd.xlane.f32.xlu1 %v4171_v28  ;;  %v4114_v47 = vadd.f32 %v3955_v4, %v3954_v49  ;;  %v4174_v14 = vadd.f32 %v3995_v56, %v3994_v59 }
 0x4ec   :  { %v3717_v59 = vrot.slane %v3516_v34, %v8490_v61  ;;  %v3721_v4 = vrot.slane %v3516_v34, %v8493_v62  ;;  %v3801_v24 = vrot.slane %v8647_v7, %v8493_v62 }
 0x4ed   :  { %v3213_v50 = vpop.f32.mrb[144].mxu0  ;;  %v3313_v1 = vpop.f32.mrb[164].mxu1  ;;  %4115 = vadd.xlane.f32.xlu0 %v4114_v47  ;;  %v4117_v29 = vadd.f32 %v3957_v46, %v3956_v52  ;;  %v4177_v15 = vadd.f32 %v3997_v35, %v3996_v54 }
 0x4ee   :  { %v3214_v8 = vadd.f32 %v3213_v50, %v8830_v12  ;;  %v3314_v21 = vadd.f32 %v3313_v1, %v8830_v12  ;;  %v3215_v18 = vpop.f32.mrb[145].mxu0  ;;  %v3315_v17 = vpop.f32.mrb[165].mxu1 }
 0x4ef   :  { %v3216_v23 = vadd.f32 %v3215_v18, %v8833_v30  ;;  %v3316_v16 = vadd.f32 %v3315_v17, %v8833_v30  ;;  %v3217_v39 = vpop.f32.mrb[146].mxu0  ;;  %v3317_v11 = vpop.f32.mrb[166].mxu1  ;;  %4118 = vadd.xlane.f32.xlu1 %v4117_v29 }
 0x4f0   :  { %v3958_v38 = vmul.f32 %v3709_v27, %v3214_v8  ;;  %v3998_v41 = vmul.f32 %v3789_v25, %v3314_v21  ;;  %v3218_v45 = vadd.f32 %v3217_v39, %v8830_v12  ;;  %v3318_v44 = vadd.f32 %v3317_v11, %v8830_v12  ;;  %v3219_v9 = vpop.f32.mrb[147].mxu0  ;;  %v3319_v57 = vpop.f32.mrb[167].mxu1 }
 0x4f1   :  { %v3959_v3 = vmul.f32 %v3713_v26, %v3216_v23  ;;  %v3999_v32 = vmul.f32 %v3793_v33, %v3316_v16  ;;  %v3220_v28 = vadd.f32 %v3219_v9, %v8833_v30  ;;  %v3320_v31 = vadd.f32 %v3319_v57, %v8833_v30  ;;  %4175 = vadd.xlane.f32.xlu0 %v4174_v14 }
 0x4f2   :  { %v3960_v10 = vmul.f32 %v3709_v27, %v3218_v45  ;;  %v4000_v36 = vmul.f32 %v3789_v25, %v3318_v44  ;;  %v3518_v21 = vcombine.high %v8630_v60, %v8630_v60  ;;  %v3805_v45 = vrot.slane %v8655_v20, %v8490_v61 }
 0x4f3   :  { %v3961_v0 = vmul.f32 %v3713_v26, %v3220_v28  ;;  %v4001_v51 = vmul.f32 %v3793_v33, %v3320_v31  ;;  %4178 = vadd.xlane.f32.xlu1 %v4177_v15  ;;  %v4120_v58 = vadd.f32 %v3959_v3, %v3958_v38  ;;  %v4180_v6 = vadd.f32 %v3999_v32, %v3998_v41 }
 0x4f4   :  { %v3725_v38 = vrot.slane %v3518_v21, %v8490_v61  ;;  %v3729_v57 = vrot.slane %v3518_v21, %v8493_v62  ;;  %v3809_v32 = vrot.slane %v8655_v20, %v8493_v62 }
 0x4f5   :  { %v3223_v5 = vpop.f32.mrb[148].mxu0  ;;  %v3323_v63 = vpop.f32.mrb[168].mxu1  ;;  %4121 = vadd.xlane.f32.xlu0 %v4120_v58  ;;  %v4123_v48 = vadd.f32 %v3961_v0, %v3960_v10  ;;  %v4183_v40 = vadd.f32 %v4001_v51, %v4000_v36 }
 0x4f6   :  { %v3224_v49 = vadd.f32 %v3223_v5, %v8830_v12  ;;  %v3324_v13 = vadd.f32 %v3323_v63, %v8830_v12  ;;  %v3225_v43 = vpop.f32.mrb[149].mxu0  ;;  %v3325_v22 = vpop.f32.mrb[169].mxu1 }
 0x4f7   :  { %v3226_v19 = vadd.f32 %v3225_v43, %v8833_v30  ;;  %v3326_v56 = vadd.f32 %v3325_v22, %v8833_v30  ;;  %v3227_v37 = vpop.f32.mrb[150].mxu0  ;;  %v3327_v52 = vpop.f32.mrb[170].mxu1  ;;  %4124 = vadd.xlane.f32.xlu1 %v4123_v48 }
 0x4f8   :  { %v3962_v54 = vmul.f32 %v3717_v59, %v3224_v49  ;;  %v4002_v42 = vmul.f32 %v3797_v2, %v3324_v13  ;;  %v3228_v46 = vadd.f32 %v3227_v37, %v8830_v12  ;;  %v3328_v35 = vadd.f32 %v3327_v52, %v8830_v12  ;;  %v3229_v47 = vpop.f32.mrb[151].mxu0  ;;  %v3329_v14 = vpop.f32.mrb[171].mxu1 }
 0x4f9   :  { %v3963_v50 = vmul.f32 %v3721_v4, %v3226_v19  ;;  %v4003_v1 = vmul.f32 %v3801_v24, %v3326_v56  ;;  %v3230_v29 = vadd.f32 %v3229_v47, %v8833_v30  ;;  %v3330_v15 = vadd.f32 %v3329_v14, %v8833_v30  ;;  %4181 = vadd.xlane.f32.xlu0 %v4180_v6 }
 0x4fa   :  { %v3964_v8 = vmul.f32 %v3717_v59, %v3228_v46  ;;  %v4004_v27 = vmul.f32 %v3797_v2, %v3328_v35  ;;  %v3567_v49 = vcombine.high %v8647_v7, %v8647_v7 }
 0x4fb   :  { %v3965_v25 = vmul.f32 %v3721_v4, %v3230_v29  ;;  %v4005_v18 = vmul.f32 %v3801_v24, %v3330_v15  ;;  %4184 = vadd.xlane.f32.xlu1 %v4183_v40  ;;  %v4126_v17 = vadd.f32 %v3963_v50, %v3962_v54  ;;  %v4186_v23 = vadd.f32 %v4003_v1, %v4002_v42 }
 0x4fc   :  { %v3813_v24 = vrot.slane %v3567_v49, %v8490_v61  ;;  %v3817_v42 = vrot.slane %v3567_v49, %v8493_v62  ;;  %v3569_v29 = vcombine.high %v8655_v20, %v8655_v20 }
 0x4fd   :  { %v3233_v26 = vpop.f32.mrb[152].mxu0  ;;  %v3333_v16 = vpop.f32.mrb[172].mxu1  ;;  %4127 = vadd.xlane.f32.xlu0 %v4126_v17  ;;  %v4129_v33 = vadd.f32 %v3965_v25, %v3964_v8  ;;  %v4189_v39 = vadd.f32 %v4005_v18, %v4004_v27 }
 0x4fe   :  { %v3234_v11 = vadd.f32 %v3233_v26, %v8830_v12  ;;  %v3334_v41 = vadd.f32 %v3333_v16, %v8830_v12  ;;  %v3235_v60 = vpop.f32.mrb[153].mxu0  ;;  %v3335_v44 = vpop.f32.mrb[173].mxu1  ;;  %v3821_v18 = vrot.slane %v3569_v29, %v8490_v61  ;;  %v3825_v26 = vrot.slane %v3569_v29, %v8493_v62 }
 0x4ff   :  { %v3236_v9 = vadd.f32 %v3235_v60, %v8833_v30  ;;  %v3336_v3 = vadd.f32 %v3335_v44, %v8833_v30  ;;  %v3237_v28 = vpop.f32.mrb[154].mxu0  ;;  %4130 = vadd.xlane.f32.xlu1 %v4129_v33  ;;  %v3337_v34 = vpop.f32.mrb[174].mxu1 }
 0x500   :  { %v3966_v31 = vmul.f32 %v3725_v38, %v3234_v11  ;;  %v4006_v10 = vmul.f32 %v3805_v45, %v3334_v41  ;;  %v3238_v36 = vadd.f32 %v3237_v28, %v8830_v12  ;;  %v3239_v0 = vpop.f32.mrb[155].mxu0  ;;  %v3338_v6 = vadd.f32 %v3337_v34, %v8830_v12  ;;  %v3339_v63 = vpop.f32.mrb[175].mxu1 }
 0x501   :  { %v3967_v51 = vmul.f32 %v3729_v57, %v3236_v9  ;;  %v4007_v58 = vmul.f32 %v3809_v32, %v3336_v3  ;;  %v3240_v5 = vadd.f32 %v3239_v0, %v8833_v30  ;;  %4187 = vadd.xlane.f32.xlu0 %v4186_v23  ;;  %v3340_v40 = vadd.f32 %v3339_v63, %v8833_v30  ;;  %v9084_v9 = vpop.xlane.xlu0 %4019 }
 0x502   :  { %v3968_v48 = vmul.f32 %v3725_v38, %v3238_v36  ;;  %v4008_v59 = vmul.f32 %v3805_v45, %v3338_v6  ;;  %v9082_v45 = vpop.xlane.xlu1 %4025 }
 0x503   :  { %v3969_v13 = vmul.f32 %v3729_v57, %v3240_v5  ;;  %4190 = vadd.xlane.f32.xlu1 %v4189_v39  ;;  %v4132_v2 = vadd.f32 %v3967_v51, %v3966_v31  ;;  %v4009_v43 = vmul.f32 %v3809_v32, %v3340_v40  ;;  %v4192_v22 = vadd.f32 %v4007_v58, %v4006_v10 }
 0x504   :  { %v4275_v10 = vand.u32 127, %v2582_v53 }
 0x505   :  { %v3343_v19 = vpop.f32.mrb[176].mxu1  ;;  %4133 = vadd.xlane.f32.xlu0 %v4132_v2  ;;  %v4135_v4 = vadd.f32 %v3969_v13, %v3968_v48  ;;  %v4195_v52 = vadd.f32 %v4009_v43, %v4008_v59  ;;  %v9088_v32 = vpop.xlane.xlu0 %4022 }
 0x506   :  { %v3344_v56 = vadd.f32 %v3343_v19, %v8830_v12  ;;  %v3345_v37 = vpop.f32.mrb[177].mxu1  ;;  %v9086_v3 = vpop.xlane.xlu1 %4028  ;;  %v4280_v36 = vadd.s32 4294967288, %v4275_v10  ;;  %v9111_v5 = vsub.s32 %v4275_v10, %v8484_v55 }
 0x507   :  { %v3346_v54 = vadd.f32 %v3345_v37, %v8833_v30  ;;  %v3347_v7 = vpop.f32.mrb[178].mxu1  ;;  %4136 = vadd.xlane.f32.xlu1 %v4135_v4 }
 0x508   :  { %v4010_v46 = vmul.f32 %v3813_v24, %v3344_v56  ;;  %v3348_v35 = vadd.f32 %v3347_v7, %v8830_v12  ;;  %v3349_v47 = vpop.f32.mrb[179].mxu1  ;;  %v9104_v51 = vsub.s32 %v4280_v36, %v8484_v55  ;;  %10430 = vst [vmem:[#allocation3_spill] sm:$0xff] %v9111_v5  ;;  %v4290_v40 = vrot.slane %v9082_v45, %v9111_v5 }
 0x509   :  { %v4011_v14 = vmul.f32 %v3817_v42, %v3346_v54  ;;  %v3350_v50 = vadd.f32 %v3349_v47, %v8833_v30  ;;  %4193 = vadd.xlane.f32.xlu0 %v4192_v22  ;;  %v4279_v22 = vrot.slane %v9084_v9, %v9111_v5 }
 0x50a   :  { %v4012_v1 = vmul.f32 %v3813_v24, %v3348_v35  ;;  %10429 = vst [vmem:[#allocation2_spill] sm:$0xff] %v9104_v51  ;;  %v4294_v63 = vrot.slane %v9086_v3, %v9104_v51  ;;  %v4284_v48 = vrot.slane %v9088_v32, %v9104_v51 }
 0x50b   :  { %v4013_v15 = vmul.f32 %v3817_v42, %v3350_v50  ;;  %4196 = vadd.xlane.f32.xlu1 %v4195_v52  ;;  %v4198_v8 = vadd.f32 %v4011_v14, %v4010_v46 }
 0x50c   :  { %v9090_v28 = vpop.xlane.xlu1 %4034  ;;  %v4295_v19 = vsel %vm4285_vm6, %v4294_v63, %v4290_v40  ;;  %v4286_v54 = vsel %vm4285_vm6, %v4284_v48, %v4279_v22 }
 0x50d   :  { %v3353_v27 = vpop.f32.mrb[180].mxu1  ;;  %4199 = vadd.xlane.f32.xlu0 %v4198_v8  ;;  %v4201_v21 = vadd.f32 %v4013_v15, %v4012_v1  ;;  %v4303_v53 = vrot.slane %v9090_v28, %v9104_v51  ;;  %v4567_v46 = vsel %vm4566_vm5, %v4295_v19, %v4286_v54 }
 0x50e   :  { %v3354_v25 = vadd.f32 %v3353_v27, %v8830_v12  ;;  %v3355_v17 = vpop.f32.mrb[181].mxu1 }
 0x50f   :  { %v3356_v23 = vadd.f32 %v3355_v17, %v8833_v30  ;;  %v3357_v16 = vpop.f32.mrb[182].mxu1  ;;  %4202 = vadd.xlane.f32.xlu1 %v4201_v21 }
 0x510   :  { %v4014_v33 = vmul.f32 %v3821_v18, %v3354_v25  ;;  %v3358_v20 = vadd.f32 %v3357_v16, %v8830_v12  ;;  %v3359_v39 = vpop.f32.mrb[183].mxu1  ;;  %v9092_v12 = vpop.xlane.xlu0 %4031 }
 0x511   :  { %v4015_v11 = vmul.f32 %v3825_v26, %v3356_v23  ;;  %v3360_v38 = vadd.f32 %v3359_v39, %v8833_v30  ;;  %v4299_v13 = vrot.slane %v9092_v12, %v9111_v5 }
 0x512   :  { %v4016_v41 = vmul.f32 %v3821_v18, %v3358_v20 }
 0x513   :  { %v4017_v60 = vmul.f32 %v3825_v26, %v3360_v38  ;;  %v4204_v44 = vadd.f32 %v4015_v11, %v4014_v33  ;;  %v4304_v24 = vsel %vm4285_vm6, %v4303_v53, %v4299_v13 }
 0x514   :  { %v9094_v31 = vpop.xlane.xlu1 %4040  ;;  %v9096_v30 = vpop.xlane.xlu0 %4037  ;;  %v4569_v50 = vsel %vm4568_vm7, %v4304_v24, %v4567_v46 }
 0x515   :  { %4205 = vadd.xlane.f32.xlu0 %v4204_v44  ;;  %v4207_v57 = vadd.f32 %v4017_v60, %v4016_v41  ;;  %v4312_v49 = vrot.slane %v9094_v31, %v9104_v51  ;;  %v4308_v4 = vrot.slane %v9096_v30, %v9111_v5  ;;  %v7613_v41 = vmov 0  }
 0x516   :  { %7332 = vset.pattern.permute.xlu1 %v7613_v41  ;;  %7331 = vset.pattern.permute.xlu0 %v7613_v41 }
 0x517   :  { %4208 = vadd.xlane.f32.xlu1 %v4207_v57  ;;  %v4313_v42 = vsel %vm4285_vm6, %v4312_v49, %v4308_v4 }
 0x518   :  { %v4571_v29 = vsel %vm4570_vm8, %v4313_v42, %v4569_v50 }
 0x51a   :  { %v9101_v0 = vpop.xlane.xlu0 %4043 }
 0x51b   :  { %v4317_v37 = vrot.slane %v9101_v0, %v9111_v5 }
 0x51c   :  { %v9099_v34 = vpop.xlane.xlu1 %4046 }
 0x51d   :  { %v4321_v2 = vrot.slane %v9099_v34, %v9104_v51 }
 0x51f   :  { %v4322_v35 = vsel %vm4285_vm6, %v4321_v2, %v4317_v37 }
 0x520   :  { %v4573_v25 = vsel %vm4572_vm9, %v4322_v35, %v4571_v29 }
 0x522   :  { %v9108_v6 = vpop.xlane.xlu0 %4049 }
 0x523   :  { %v4326_v7 = vrot.slane %v9108_v6, %v9111_v5 }
 0x524   :  { %v9106_v58 = vpop.xlane.xlu1 %4052 }
 0x525   :  { %v4330_v56 = vrot.slane %v9106_v58, %v9104_v51 }
 0x527   :  { %v4331_v1 = vsel %vm4285_vm6, %v4330_v56, %v4326_v7 }
 0x528   :  { %v4575_v18 = vsel %vm4574_vm10, %v4331_v1, %v4573_v25 }
 0x52a   :  { %v9129_v43 = vpop.xlane.xlu0 %4055 }
 0x52b   :  { %v4335_v47 = vrot.slane %v9129_v43, %v9111_v5 }
 0x52c   :  { %v9123_v59 = vpop.xlane.xlu1 %4058 }
 0x52d   :  { %v4339_v52 = vrot.slane %v9123_v59, %v9104_v51 }
 0x52f   :  { %v4340_v8 = vsel %vm4285_vm6, %v4339_v52, %v4335_v47 }
 0x530   :  { %v4577_v23 = vsel %vm4576_vm11, %v4340_v8, %v4575_v18 }
 0x532   :  { %v9151_v14 = vpop.xlane.xlu0 %4061 }
 0x533   :  { %v4344_v27 = vrot.slane %v9151_v14, %v9111_v5 }
 0x534   :  { %v9156_v15 = vpop.xlane.xlu1 %4064 }
 0x535   :  { %v4348_v21 = vrot.slane %v9156_v15, %v9104_v51 }
 0x537   :  { %v4349_v17 = vsel %vm4285_vm6, %v4348_v21, %v4344_v27 }
 0x538   :  { %v4579_v26 = vsel %vm4578_vm12, %v4349_v17, %v4577_v23 }
 0x539   :  { %v4606_v16 = vsel %vm4605_vm13, %v4579_v26, -inf }
 0x53a   :  { %4607 = vmax.xlane.f32.xlu0 %v4606_v16  ;;  %v9169_v33 = vpop.xlane.xlu0 %4067 }
 0x53b   :  { %v4353_v50 = vrot.slane %v9169_v33, %v9111_v5 }
 0x53c   :  { %v9171_v20 = vpop.xlane.xlu1 %4070 }
 0x53d   :  { %v4357_v54 = vrot.slane %v9171_v20, %v9104_v51 }
 0x53f   :  { %v4358_v17 = vsel %vm4285_vm6, %v4357_v54, %v4353_v50 }
 0x542   :  { %v9173_v39 = vpop.xlane.xlu0 %4073 }
 0x543   :  { %v4362_v42 = vrot.slane %v9173_v39, %v9111_v5 }
 0x544   :  { %v9175_v11 = vpop.xlane.xlu1 %4076 }
 0x545   :  { %v4366_v24 = vrot.slane %v9175_v11, %v9104_v51 }
 0x547   :  { %v4367_v1 = vsel %vm4285_vm6, %v4366_v24, %v4362_v42 }
 0x548   :  { %v4580_v16 = vsel %vm4566_vm5, %v4367_v1, %v4358_v17 }
 0x54a   :  { %v9177_v38 = vpop.xlane.xlu0 %4079 }
 0x54b   :  { %v4371_v46 = vrot.slane %v9177_v38, %v9111_v5 }
 0x54c   :  { %v9179_v60 = vpop.xlane.xlu1 %4082 }
 0x54d   :  { %v4375_v37 = vrot.slane %v9179_v60, %v9104_v51 }
 0x54e   :  { %v9181_v44 = vpop.xlane.xlu0 %4139 }
 0x54f   :  { %10431 = vst [vmem:[#allocation4_spill] sm:$0xff] %v9181_v44  ;;  %v4376_v27 = vsel %vm4285_vm6, %v4375_v37, %v4371_v46 }
 0x550   :  { %v9183_v57 = vpop.xlane.xlu1 %4142  ;;  %v4581_v42 = vsel %vm4568_vm7, %v4376_v27, %v4580_v16 }
 0x551   :  { %10432 = vst [vmem:[#allocation5_spill] sm:$0xff] %v9183_v57 }
 0x552   :  { %v9185_v10 = vpop.xlane.xlu0 %4085 }
 0x553   :  { %v4380_v29 = vrot.slane %v9185_v10, %v9111_v5 }
 0x554   :  { %v9187_v36 = vpop.xlane.xlu1 %4088 }
 0x555   :  { %v4384_v7 = vrot.slane %v9187_v36, %v9104_v51 }
 0x556   :  { %v9189_v63 = vpop.xlane.xlu0 %4145 }
 0x557   :  { %v4385_v23 = vsel %vm4285_vm6, %v4384_v7, %v4380_v29 }
 0x558   :  { %v9191_v53 = vpop.xlane.xlu1 %4148  ;;  %v4582_v54 = vsel %vm4570_vm8, %v4385_v23, %v4581_v42 }
 0x559   :  { %10433 = vst [vmem:[#allocation6_spill] sm:$0xff] %v9191_v53 }
 0x55a   :  { %v9193_v48 = vpop.xlane.xlu0 %4091 }
 0x55b   :  { %v4389_v21 = vrot.slane %v9193_v48, %v9111_v5 }
 0x55c   :  { %v9195_v40 = vpop.xlane.xlu1 %4094 }
 0x55d   :  { %v4393_v35 = vrot.slane %v9195_v40, %v9104_v51 }
 0x55e   :  { %v9197_v49 = vpop.xlane.xlu0 %4151 }
 0x55f   :  { %v4394_v41 = vsel %vm4285_vm6, %v4393_v35, %v4389_v21 }
 0x560   :  { %v9199_v13 = vpop.xlane.xlu1 %4154  ;;  %v4583_v29 = vsel %vm4572_vm9, %v4394_v41, %v4582_v54 }
 0x561   :  { %10434 = vst [vmem:[#allocation7_spill] sm:$0xff] %v9199_v13 }
 0x562   :  { %v9201_v2 = vpop.xlane.xlu0 %4097 }
 0x563   :  { %10435 = vst [vmem:[#allocation8_spill] sm:$0xff] %v9201_v2  ;;  %v4398_v26 = vrot.slane %v9201_v2, %v9111_v5 }
 0x564   :  { %v9203_v22 = vpop.xlane.xlu1 %4100 }
 0x565   :  { %10436 = vst [vmem:[#allocation9_spill] sm:$0xff] %v9203_v22  ;;  %v4402_v8 = vrot.slane %v9203_v22, %v9104_v51 }
 0x566   :  { %v9205_v19 = vpop.xlane.xlu0 %4157 }
 0x567   :  { %v4403_v46 = vsel %vm4285_vm6, %v4402_v8, %v4398_v26 }
 0x568   :  { %v9207_v4 = vpop.xlane.xlu1 %4160  ;;  %v4584_v27 = vsel %vm4574_vm10, %v4403_v46, %v4583_v29 }
 0x569   :  { %10437 = vst [vmem:[#allocation10_spill] sm:$0xff] %v9207_v4 }
 0x56a   :  { %v9209_v56 = vpop.xlane.xlu0 %4103 }
 0x56b   :  { %10438 = vst [vmem:[#allocation11_spill] sm:$0xff] %v9209_v56  ;;  %v4407_v24 = vrot.slane %v9209_v56, %v9111_v5 }
 0x56c   :  { %v9215_v52 = vpop.xlane.xlu1 %4106 }
 0x56d   :  { %10439 = vst [vmem:[#allocation12_spill] sm:$0xff] %v9215_v52  ;;  %v4411_v25 = vrot.slane %v9215_v52, %v9104_v51 }
 0x56e   :  { %v9227_v47 = vpop.xlane.xlu0 %4163 }
 0x56f   :  { %v4412_v7 = vsel %vm4285_vm6, %v4411_v25, %v4407_v24 }
 0x570   :  { %v9241_v18 = vpop.xlane.xlu1 %4166  ;;  %v4585_v17 = vsel %vm4576_vm11, %v4412_v7, %v4584_v27 }
 0x572   :  { %v9251_v37 = vpop.xlane.xlu0 %4109 }
 0x573   :  { %10440 = vst [vmem:[#allocation13_spill] sm:$0xff] %v9251_v37  ;;  %v4416_v1 = vrot.slane %v9251_v37, %v9111_v5 }
 0x574   :  { %v9256_v50 = vpop.xlane.xlu1 %4112 }
 0x575   :  { %10441 = vst [vmem:[#allocation14_spill] sm:$0xff] %v9256_v50  ;;  %v4420_v35 = vrot.slane %v9256_v50, %v9104_v51 }
 0x576   :  { %v9264_v21 = vpop.xlane.xlu0 %4169 }
 0x577   :  { %v4421_v8 = vsel %vm4285_vm6, %v4420_v35, %v4416_v1 }
 0x578   :  { %v9269_v23 = vpop.xlane.xlu1 %4172  ;;  %v4586_v25 = vsel %vm4578_vm12, %v4421_v8, %v4585_v17 }
 0x579   :  { %v4609_v26 = vsel %vm4605_vm13, %v4586_v25, -inf }
 0x57a   :  { %4610 = vmax.xlane.f32.xlu1 %v4609_v26  ;;  %v9273_v16 = vpop.xlane.xlu0 %4115 }
 0x57b   :  { %10442 = vst [vmem:[#allocation15_spill] sm:$0xff] %v9273_v16  ;;  %v4425_v56 = vrot.slane %v9273_v16, %v9111_v5 }
 0x57c   :  { %v9275_v24 = vpop.xlane.xlu1 %4118 }
 0x57d   :  { %10443 = vst [vmem:[#allocation16_spill] sm:$0xff] %v9275_v24  ;;  %v4429_v26 = vrot.slane %v9275_v24, %v9104_v51  ;;  %v4474_v24 = vrot.slane %v9191_v53, %v9104_v51 }
 0x57e   :  { %v9277_v41 = vpop.xlane.xlu0 %4175 }
 0x580   :  { %v9279_v42 = vpop.xlane.xlu1 %4178 }
 0x582   :  { %v9281_v46 = vpop.xlane.xlu0 %4121 }
 0x583   :  { %10444 = vst [vmem:[#allocation17_spill] sm:$0xff] %v9281_v46  ;;  %v4434_v50 = vrot.slane %v9281_v46, %v9111_v5  ;;  %v4430_v46 = vsel %vm4285_vm6, %v4429_v26, %v4425_v56  ;;  %v4492_v56 = vrot.slane %v9207_v4, %v9104_v51  ;;  %v4488_v4 = vrot.slane %v9205_v19, %v9111_v5 }
 0x584   :  { %v9283_v54 = vpop.xlane.xlu1 %4124 }
 0x585   :  { %10445 = vst [vmem:[#allocation18_spill] sm:$0xff] %v9283_v54  ;;  %v4438_v8 = vrot.slane %v9283_v54, %v9104_v51 }
 0x586   :  { %v9285_v7 = vpop.xlane.xlu0 %4181 }
 0x587   :  { %v4439_v54 = vsel %vm4285_vm6, %v4438_v8, %v4434_v50  ;;  %v4461_v50 = vrot.slane %v9181_v44, %v9111_v5  ;;  %v4483_v8 = vrot.slane %v9199_v13, %v9104_v51 }
 0x588   :  { %v9287_v1 = vpop.xlane.xlu1 %4184 }
 0x589   :  { %10446 = vst [vmem:[#allocation19_spill] sm:$0xff] %v9287_v1 }
 0x58a   :  { %v9289_v35 = vpop.xlane.xlu0 %4127 }
 0x58b   :  { %10447 = vst [vmem:[#allocation20_spill] sm:$0xff] %v9289_v35  ;;  %v4443_v37 = vrot.slane %v9289_v35, %v9111_v5 }
 0x58c   :  { %v9291_v29 = vpop.xlane.xlu1 %4130 }
 0x58d   :  { %10448 = vst [vmem:[#allocation21_spill] sm:$0xff] %v9291_v29  ;;  %v4447_v17 = vrot.slane %v9291_v29, %v9104_v51  ;;  %v4465_v29 = vrot.slane %v9183_v57, %v9104_v51 }
 0x58e   :  { %v9293_v27 = vpop.xlane.xlu0 %4187 }
 0x58f   :  { %v4448_v22 = vsel %vm4285_vm6, %v4447_v17, %v4443_v37  ;;  %v4587_v37 = vsel %vm4566_vm5, %v4439_v54, %v4430_v46  ;;  %v4470_v17 = vrot.slane %v9189_v63, %v9111_v5  ;;  %v4466_v57 = vsel %vm4285_vm6, %v4465_v29, %v4461_v50 }
 0x590   :  { %v9299_v25 = vpop.xlane.xlu1 %4190  ;;  %v4588_v26 = vsel %vm4568_vm7, %v4448_v22, %v4587_v37  ;;  %v4510_v29 = vrot.slane %v9269_v23, %v9104_v51  ;;  %v4519_v37 = vrot.slane %v9279_v42, %v9104_v51 }
 0x591   :  { %10449 = vst [vmem:[#allocation22_spill] sm:$0xff] %v9299_v25  ;;  %v4475_v54 = vsel %vm4285_vm6, %v4474_v24, %v4470_v17  ;;  %v4501_v17 = vrot.slane %v9241_v18, %v9104_v51 }
 0x592   :  { %v9307_v52 = vpop.xlane.xlu0 %4133 }
 0x593   :  { %v4452_v35 = vrot.slane %v9307_v52, %v9111_v5 }
 0x594   :  { %v9315_v2 = vpop.xlane.xlu1 %4136 }
 0x595   :  { %10450 = vst [vmem:[#allocation23_spill] sm:$0xff] %v9315_v2  ;;  %v4456_v16 = vrot.slane %v9315_v2, %v9104_v51  ;;  %v4479_v2 = vrot.slane %v9197_v49, %v9111_v5 }
 0x596   :  { %v9339_v13 = vpop.xlane.xlu0 %4193 }
 0x597   :  { %v4457_v53 = vsel %vm4285_vm6, %v4456_v16, %v4452_v35  ;;  %v4484_v16 = vsel %vm4285_vm6, %v4483_v8, %v4479_v2  ;;  %v4515_v8 = vrot.slane %v9277_v41, %v9111_v5 }
 0x598   :  { %v4589_v44 = vsel %vm4570_vm8, %v4457_v53, %v4588_v26  ;;  %v9341_v46 = vpop.xlane.xlu1 %4196  ;;  %v4493_v53 = vsel %vm4285_vm6, %v4492_v56, %v4488_v4  ;;  %v4537_v56 = vrot.slane %v9299_v25, %v9104_v51 }
 0x599   :  { %10451 = vst [vmem:[#allocation24_spill] sm:$0xff] %v9341_v46  ;;  %v4590_v22 = vsel %vm4572_vm9, %v4466_v57, %v4589_v44  ;;  %v4506_v44 = vrot.slane %v9264_v21, %v9111_v5  ;;  %v4528_v57 = vrot.slane %v9287_v1, %v9104_v51 }
 0x59a   :  { %v4591_v35 = vsel %vm4574_vm10, %v4475_v54, %v4590_v22  ;;  %v9369_v26 = vpop.xlane.xlu0 %4199  ;;  %v4497_v54 = vrot.slane %v9227_v47, %v9111_v5 }
 0x59b   :  { %v4592_v50 = vsel %vm4576_vm11, %v4484_v16, %v4591_v35  ;;  %v4511_v22 = vsel %vm4285_vm6, %v4510_v29, %v4506_v44  ;;  %v4524_v16 = vrot.slane %v9285_v7, %v9111_v5  ;;  %v4546_v35 = vrot.slane %v9341_v46, %v9104_v51 }
 0x59c   :  { %v4593_v24 = vsel %vm4578_vm12, %v4493_v53, %v4592_v50  ;;  %v9362_v2 = vpop.xlane.xlu1 %4202  ;;  %v4520_v53 = vsel %vm4285_vm6, %v4519_v37, %v4515_v8  ;;  %v4533_v50 = vrot.slane %v9293_v27, %v9111_v5  ;;  %v4542_v29 = vrot.slane %v9339_v13, %v9111_v5 }
 0x59d   :  { %10452 = vst [vmem:[#allocation25_spill] sm:$0xff] %v9362_v2  ;;  %v4612_v4 = vsel %vm4605_vm13, %v4593_v24, -inf  ;;  %v4555_v24 = vrot.slane %v9362_v2, %v9104_v51  ;;  %v4529_v25 = vsel %vm4285_vm6, %v4528_v57, %v4524_v16  ;;  %v4551_v37 = vrot.slane %v9369_v26, %v9111_v5 }
 0x59e   :  { %4613 = vmax.xlane.f32.xlu0 %v4612_v4  ;;  %v4502_v4 = vsel %vm4285_vm6, %v4501_v17, %v4497_v54  ;;  %v4538_v1 = vsel %vm4285_vm6, %v4537_v56, %v4533_v50  ;;  %v4547_v2 = vsel %vm4285_vm6, %v4546_v35, %v4542_v29 }
 0x59f   :  { %v4594_v44 = vsel %vm4566_vm5, %v4511_v22, %v4502_v4  ;;  %v4556_v57 = vsel %vm4285_vm6, %v4555_v24, %v4551_v37  ;;  %v9410_v24 = vsub.s32 4, %v8484_v55  ;;  %v9413_v4 = vsub.s32 5, %v8484_v55 }
 0x5a0   :  { %v4595_v46 = vsel %vm4568_vm7, %v4520_v53, %v4594_v44  ;;  %v9421_v37 = vsub.s32 2, %v8484_v55 }
 0x5a1   :  { %v4596_v17 = vsel %vm4570_vm8, %v4529_v25, %v4595_v46 }
 0x5a2   :  { %v9391_v8 = vpop.xlane.xlu0 %4205  ;;  %v4597_v16 = vsel %vm4572_vm9, %v4538_v1, %v4596_v17 }
 0x5a3   :  { %v4560_v22 = vrot.slane %v9391_v8, %v9111_v5  ;;  %v4598_v50 = vsel %vm4574_vm10, %v4547_v2, %v4597_v16 }
 0x5a4   :  { %v9396_v54 = vpop.xlane.xlu1 %4208  ;;  %v4599_v35 = vsel %vm4576_vm11, %v4556_v57, %v4598_v50 }
 0x5a5   :  { %v4564_v56 = vrot.slane %v9396_v54, %v9104_v51 }
 0x5a7   :  { %v4565_v53 = vsel %vm4285_vm6, %v4564_v56, %v4560_v22  ;;  %v9427_v56 = vsub.s32 6, %v8484_v55 }
 0x5a8   :  { %v4600_v25 = vsel %vm4578_vm12, %v4565_v53, %v4599_v35 }
 0x5a9   :  { %v4615_v46 = vsel %vm4605_vm13, %v4600_v25, -inf  ;;  %v9435_v25 = vsub.s32 7, %v8484_v55 }
 0x5aa   :  { %4616 = vmax.xlane.f32.xlu1 %v4615_v46 }
 0x5c7   :  { %v4608_v29 = vpop.xlane.xlu0 %4607 }
 0x5c8   :  { %v4625_v1 = vrot.slane %v4608_v29, %v8490_v61  ;;  %v4629_v2 = vrot.slane %v4608_v29, %v8493_v62  ;;  %v9418_v44 = vrot.slane %v4608_v29, %v9410_v24  ;;  %v9430_v16 = vrot.slane %v4608_v29, %v9413_v4 }
 0x5c9   :  { %v4649_v46 = vrot.slane %v4608_v29, %v9427_v56  ;;  %v4653_v51 = vrot.slane %v4608_v29, %v9435_v25 }
 0x5ca   :  { %v4783_v17 = vsub.f32 %v9088_v32, %v4625_v1  ;;  %v4782_v57 = vsub.f32 %v9084_v9, %v4625_v1  ;;  %v4784_v22 = vsub.f32 %v9082_v45, %v4629_v2  ;;  %v4791_v50 = vsub.f32 %v9099_v34, %v9418_v44 }
 0x5cb   :  { %v4633_v32 = vrot.slane %v4608_v29, %v9421_v37  ;;  %v4785_v45 = vsub.f32 %v9086_v3, %v4629_v2  ;;  %v4793_v5 = vsub.f32 %v9106_v58, %v9430_v16  ;;  %v9443_v34 = vsub.s32 3, %v8484_v55 }
 0x5cc   :  { %v4848_v53 = vmul.f32 1.442695, %v4783_v17  ;;  %v4846_v35 = vmul.f32 1.442695, %v4782_v57  ;;  %v4850_v9 = vmul.f32 1.442695, %v4784_v22  ;;  %v4795_v3 = vsub.f32 %v9123_v59, %v4649_v46 }
 0x5cd   :  { %v4864_v1 = vmul.f32 1.442695, %v4791_v50  ;;  %v4852_v17 = vmul.f32 1.442695, %v4785_v45  ;;  %v4786_v57 = vsub.f32 %v9092_v12, %v4633_v32  ;;  %v4868_v22 = vmul.f32 1.442695, %v4793_v5 }
 0x5ce   :  { %7471 = vpow2.f32 %v4848_v53  ;;  %v4637_v2 = vrot.slane %v4608_v29, %v9443_v34  ;;  %v4787_v53 = vsub.f32 %v9090_v28, %v4633_v32  ;;  %v4872_v58 = vmul.f32 1.442695, %v4795_v3 }
 0x5cf   :  { %7473 = vpow2.f32 %v4846_v35  ;;  %v4854_v50 = vmul.f32 1.442695, %v4786_v57  ;;  %v4797_v55 = vsub.f32 %v9156_v15, %v4653_v51  ;;  %v4792_v3 = vsub.f32 %v9108_v6, %v9430_v16 }
 0x5d0   :  { %7475 = vpow2.f32 %v4850_v9  ;;  %v4856_v12 = vmul.f32 1.442695, %v4787_v53  ;;  %v4788_v5 = vsub.f32 %v9096_v30, %v4637_v2  ;;  %v4789_v32 = vsub.f32 %v9094_v31, %v4637_v2 }
 0x5d1   :  { %7477 = vpow2.f32 %v4864_v1  ;;  %v4876_v59 = vmul.f32 1.442695, %v4797_v55  ;;  %v4796_v6 = vsub.f32 %v9151_v14, %v4653_v51 }
 0x5d2   :  { %7479 = vpow2.f32 %v4852_v17  ;;  %v4858_v15 = vmul.f32 1.442695, %v4788_v5  ;;  %v4860_v30 = vmul.f32 1.442695, %v4789_v32  ;;  %v4790_v17 = vsub.f32 %v9101_v0, %v9418_v44 }
 0x5d3   :  { %7481 = vpow2.f32 %v4868_v22  ;;  %v4866_v0 = vmul.f32 1.442695, %v4792_v3  ;;  %v4794_v44 = vsub.f32 %v9129_v43, %v4649_v46  ;;  %v4874_v55 = vmul.f32 1.442695, %v4796_v6 }
 0x5d4   :  { %7483 = vpow2.f32 %v4854_v50  ;;  %v4862_v31 = vmul.f32 1.442695, %v4790_v17 }
 0x5d5   :  { %7485 = vpow2.f32 %v4872_v58  ;;  %v4870_v58 = vmul.f32 1.442695, %v4794_v44 }
 0x5d6   :  { %7487 = vpow2.f32 %v4856_v12 }
 0x5d7   :  { %7489 = vpow2.f32 %v4876_v59 }
 0x5d8   :  { %v9451_v35 = vpop.eup %7471  ;;  %7491 = vpow2.f32 %v4858_v15 }
 0x5d9   :  { %v9453_v9 = vpop.eup %7473  ;;  %5042 = vperm.xlu1 %7332, %v9451_v35   ;;  %7493 = vpow2.f32 %v4860_v30 }
 0x5da   :  { %5039 = vperm.xlu0 %7331, %v9453_v9   ;;  %v9458_v29 = vpop.eup %7475  ;;  %7495 = vpow2.f32 %v4862_v31 }
 0x5db   :  { %v9460_v28 = vpop.eup %7477  ;;  %7497 = vpow2.f32 %v4866_v0 }
 0x5dc   :  { %v9465_v45 = vpop.eup %7479  ;;  %7499 = vpow2.f32 %v4870_v58 }
 0x5dd   :  { %5045 = vperm.xlu1 %7332, %v9458_v29   ;;  %v9467_v1 = vpop.eup %7481  ;;  %7501 = vpow2.f32 %v4874_v55 }
 0x5de   :  { %5066 = vperm.xlu0 %7331, %v9460_v28   ;;  %v9473_v57 = vpop.eup %7483 }
 0x5df   :  { %v9475_v22 = vpop.eup %7485 }
 0x5e0   :  { %v9481_v2 = vpop.eup %7487 }
 0x5e1   :  { %5048 = vperm.xlu1 %7332, %v9465_v45   ;;  %v9483_v50 = vpop.eup %7489 }
 0x5e2   :  { %5072 = vperm.xlu0 %7331, %v9467_v1   ;;  %v9488_v53 = vpop.eup %7491 }
 0x5e3   :  { %v9492_v16 = vpop.eup %7493 }
 0x5e4   :  { %v9495_v12 = vpop.eup %7495 }
 0x5e5   :  { %5051 = vperm.xlu1 %7332, %v9473_v57   ;;  %v9498_v43 = vpop.eup %7497 }
 0x5e6   :  { %5078 = vperm.xlu0 %7331, %v9475_v22   ;;  %v9501_v46 = vpop.eup %7499 }
 0x5e7   :  { %v9504_v51 = vpop.eup %7501 }
 0x5e9   :  { %5054 = vperm.xlu1 %7332, %v9481_v2  }
 0x5ea   :  { %5084 = vperm.xlu0 %7331, %v9483_v50  }
 0x5ed   :  { %5057 = vperm.xlu1 %7332, %v9488_v53  }
 0x5f1   :  { %5060 = vperm.xlu1 %7332, %v9492_v16  }
 0x5f5   :  { %5063 = vperm.xlu1 %7332, %v9495_v12  }
 0x5f9   :  { %5069 = vperm.xlu1 %7332, %v9498_v43  }
 0x5fd   :  { %5075 = vperm.xlu1 %7332, %v9501_v46  }
 0x601   :  { %5081 = vperm.xlu1 %7332, %v9504_v51  }
 0x607   :  { %v4611_v14 = vpop.xlane.xlu1 %4610 }
 0x608   :  { %v4657_v5 = vrot.slane %v4611_v14, %v8490_v61  ;;  %v4661_v59 = vrot.slane %v4611_v14, %v8493_v62  ;;  %v4665_v30 = vrot.slane %v4611_v14, %v9421_v37  ;;  %v4669_v44 = vrot.slane %v4611_v14, %v9443_v34 }
 0x60a   :  { %v4798_v15 = vsub.f32 %v9169_v33, %v4657_v5  ;;  %v4799_v32 = vsub.f32 %v9171_v20, %v4657_v5  ;;  %v4800_v31 = vsub.f32 %v9173_v39, %v4661_v59  ;;  %v4801_v0 = vsub.f32 %v9175_v11, %v4661_v59 }
 0x60b   :  { %v4802_v6 = vsub.f32 %v9177_v38, %v4665_v30  ;;  %v4803_v33 = vsub.f32 %v9179_v60, %v4665_v30  ;;  %v4673_v20 = vrot.slane %v4611_v14, %v9410_v24  ;;  %v4677_v59 = vrot.slane %v4611_v14, %v9413_v4 }
 0x60c   :  { %v4878_v17 = vmul.f32 1.442695, %v4798_v15  ;;  %v4880_v3 = vmul.f32 1.442695, %v4799_v32  ;;  %v4882_v58 = vmul.f32 1.442695, %v4800_v31  ;;  %v4804_v15 = vsub.f32 %v9185_v10, %v4669_v44 }
 0x60d   :  { %v4884_v55 = vmul.f32 1.442695, %v4801_v0  ;;  %v4886_v5 = vmul.f32 1.442695, %v4802_v6  ;;  %v4888_v39 = vmul.f32 1.442695, %v4803_v33  ;;  %v4805_v32 = vsub.f32 %v9187_v36, %v4669_v44 }
 0x60e   :  { %7503 = vpow2.f32 %v4878_v17  ;;  %v4806_v38 = vsub.f32 %v9193_v48, %v4673_v20  ;;  %v4890_v17 = vmul.f32 1.442695, %v4804_v15  ;;  %v4807_v30 = vsub.f32 %v9195_v40, %v4673_v20  ;;  %v10453_v31 = vld [vmem:[#allocation8_spill] sm:$0xff] }
 0x60f   :  { %7505 = vpow2.f32 %v4880_v3  ;;  %v4892_v60 = vmul.f32 1.442695, %v4805_v32  ;;  %v4681_v10 = vrot.slane %v4611_v14, %v9427_v56  ;;  %v4808_v3 = vsub.f32 %v10453_v31, %v4677_v59  ;;  %v10457_v32 = vld [vmem:[#allocation12_spill] sm:$0xff] }
 0x610   :  { %7507 = vpow2.f32 %v4882_v58  ;;  %v4894_v0 = vmul.f32 1.442695, %v4806_v38  ;;  %v4896_v48 = vmul.f32 1.442695, %v4807_v30  ;;  %v10454_v58 = vld [vmem:[#allocation9_spill] sm:$0xff]  ;;  %v4685_v40 = vrot.slane %v4611_v14, %v9435_v25 }
 0x611   :  { %7509 = vpow2.f32 %v4884_v55  ;;  %v4809_v6 = vsub.f32 %v10454_v58, %v4677_v59  ;;  %v10455_v55 = vld [vmem:[#allocation11_spill] sm:$0xff]  ;;  %v4898_v20 = vmul.f32 1.442695, %v4808_v3  ;;  %v4811_v38 = vsub.f32 %v10457_v32, %v4681_v10  ;;  %v10460_v3 = vld [vmem:[#allocation14_spill] sm:$0xff] }
 0x612   :  { %7511 = vpow2.f32 %v4886_v5  ;;  %v4810_v33 = vsub.f32 %v10455_v55, %v4681_v10  ;;  %v10465_v32 = vld [vmem:[#allocation15_spill] sm:$0xff] }
 0x613   :  { %7513 = vpow2.f32 %v4888_v39  ;;  %v4900_v39 = vmul.f32 1.442695, %v4809_v6  ;;  %v4904_v31 = vmul.f32 1.442695, %v4811_v38 }
 0x614   :  { %7515 = vpow2.f32 %v4890_v17  ;;  %v10458_v17 = vld [vmem:[#allocation13_spill] sm:$0xff]  ;;  %v4902_v14 = vmul.f32 1.442695, %v4810_v33 }
 0x615   :  { %7517 = vpow2.f32 %v4892_v60  ;;  %v4812_v59 = vsub.f32 %v10458_v17, %v4685_v40 }
 0x616   :  { %7519 = vpow2.f32 %v4894_v0  ;;  %v4813_v0 = vsub.f32 %v10460_v3, %v4685_v40 }
 0x617   :  { %7521 = vpow2.f32 %v4896_v48  ;;  %v4906_v48 = vmul.f32 1.442695, %v4812_v59  ;;  %v10466_v59 = vld [vmem:[#allocation17_spill] sm:$0xff] }
 0x618   :  { %v9520_v11 = vpop.eup %7503  ;;  %7523 = vpow2.f32 %v4898_v20  ;;  %v4908_v55 = vmul.f32 1.442695, %v4813_v0 }
 0x619   :  { %5087 = vperm.xlu1 %7332, %v9520_v11   ;;  %v9528_v36 = vpop.eup %7505  ;;  %7525 = vpow2.f32 %v4900_v39 }
 0x61a   :  { %v9530_v44 = vpop.eup %7507  ;;  %5090 = vperm.xlu0 %7331, %v9528_v36   ;;  %7527 = vpow2.f32 %v4902_v14 }
 0x61b   :  { %v9537_v5 = vpop.eup %7509  ;;  %7529 = vpow2.f32 %v4904_v31 }
 0x61c   :  { %v9539_v15 = vpop.eup %7511  ;;  %7531 = vpow2.f32 %v4906_v48 }
 0x61d   :  { %5093 = vperm.xlu1 %7332, %v9530_v44   ;;  %10456 = vst [vmem:[#allocation8_spill] sm:$0xff] %v9539_v15  ;;  %v9545_v60 = vpop.eup %7513  ;;  %7533 = vpow2.f32 %v4908_v55 }
 0x61e   :  { %5096 = vperm.xlu0 %7331, %v9537_v5   ;;  %v9547_v30 = vpop.eup %7515 }
 0x61f   :  { %10459 = vst [vmem:[#allocation9_spill] sm:$0xff] %v9547_v30  ;;  %v9552_v58 = vpop.eup %7517 }
 0x620   :  { %10461 = vst [vmem:[#allocation11_spill] sm:$0xff] %v9552_v58  ;;  %v9554_v10 = vpop.eup %7519 }
 0x621   :  { %5099 = vperm.xlu1 %7332, %v9539_v15   ;;  %10462 = vst [vmem:[#allocation12_spill] sm:$0xff] %v9554_v10  ;;  %v9562_v40 = vpop.eup %7521 }
 0x622   :  { %5102 = vperm.xlu0 %7331, %v9545_v60   ;;  %10463 = vst [vmem:[#allocation13_spill] sm:$0xff] %v9562_v40  ;;  %v9564_v39 = vpop.eup %7523 }
 0x623   :  { %10464 = vst [vmem:[#allocation14_spill] sm:$0xff] %v9564_v39  ;;  %v9574_v31 = vpop.eup %7525 }
 0x624   :  { %10467 = vst [vmem:[#allocation15_spill] sm:$0xff] %v9574_v31  ;;  %v9576_v0 = vpop.eup %7527 }
 0x625   :  { %5105 = vperm.xlu1 %7332, %v9547_v30   ;;  %10468 = vst [vmem:[#allocation17_spill] sm:$0xff] %v9576_v0 }
 0x626   :  { %5108 = vperm.xlu0 %7331, %v9552_v58  }
 0x629   :  { %5111 = vperm.xlu1 %7332, %v9554_v10  }
 0x62a   :  { %5114 = vperm.xlu0 %7331, %v9562_v40  }
 0x62b   :  { %v4614_v6 = vpop.xlane.xlu0 %4613 }
 0x62c   :  { %v4689_v33 = vrot.slane %v4614_v6, %v8490_v61  ;;  %v9560_v20 = vrot.slane %v4614_v6, %v8493_v62  ;;  %v9569_v17 = vrot.slane %v4614_v6, %v9421_v37  ;;  %v9580_v48 = vrot.slane %v4614_v6, %v9443_v34 }
 0x62d   :  { %5117 = vperm.xlu1 %7332, %v9564_v39  }
 0x62e   :  { %v4814_v38 = vsub.f32 %v10465_v32, %v4689_v33  ;;  %v4816_v14 = vsub.f32 %v10466_v59, %v9560_v20  ;;  %5120 = vperm.xlu0 %7331, %v9574_v31   ;;  %v10469_v32 = vld [vmem:[#allocation20_spill] sm:$0xff]  ;;  %v9585_v59 = vpop.eup %7529  ;;  %v4820_v39 = vsub.f32 %v9307_v52, %v9580_v48 }
 0x62f   :  { %v4818_v10 = vsub.f32 %v10469_v32, %v9569_v17  ;;  %10470 = vst [vmem:[#allocation20_spill] sm:$0xff] %v9585_v59  ;;  %v9587_v55 = vpop.eup %7531 }
 0x630   :  { %v4910_v3 = vmul.f32 1.442695, %v4814_v38  ;;  %v4914_v40 = vmul.f32 1.442695, %v4816_v14  ;;  %10471 = vst [vmem:[#allocation26_spill] sm:$0xff] %v9587_v55  ;;  %v9591_v38 = vrot.slane %v4614_v6, %v9410_v24  ;;  %v10472_v14 = vld [vmem:[#allocation16_spill] sm:$0xff] }
 0x631   :  { %5123 = vperm.xlu1 %7332, %v9576_v0   ;;  %v4918_v31 = vmul.f32 1.442695, %v4818_v10  ;;  %v4815_v32 = vsub.f32 %v10472_v14, %v4689_v33  ;;  %v9601_v0 = vrot.slane %v4614_v6, %v9413_v4  ;;  %v4922_v58 = vmul.f32 1.442695, %v4820_v39 }
 0x632   :  { %7535 = vpow2.f32 %v4910_v3  ;;  %5126 = vperm.xlu0 %7331, %v9585_v59   ;;  %v9596_v3 = vpop.eup %7533  ;;  %v10473_v59 = vld [vmem:[#allocation4_spill] sm:$0xff]  ;;  %v9609_v10 = vrot.slane %v4614_v6, %v9427_v56  ;;  %v9617_v39 = vrot.slane %v4614_v6, %v9435_v25 }
 0x633   :  { %7537 = vpow2.f32 %v4914_v40  ;;  %v4822_v30 = vsub.f32 %v10473_v59, %v9591_v38  ;;  %v4912_v52 = vmul.f32 1.442695, %v4815_v32  ;;  %v4824_v33 = vsub.f32 %v9189_v63, %v9601_v0 }
 0x634   :  { %7539 = vpow2.f32 %v4918_v31  ;;  %v4826_v31 = vsub.f32 %v9197_v49, %v9609_v10  ;;  %v4828_v63 = vsub.f32 %v9205_v19, %v9617_v39  ;;  %v10478_v49 = vld [vmem:[#allocation18_spill] sm:$0xff] }
 0x635   :  { %5129 = vperm.xlu1 %7332, %v9587_v55   ;;  %7541 = vpow2.f32 %v4922_v58  ;;  %v4926_v40 = vmul.f32 1.442695, %v4822_v30  ;;  %v4930_v59 = vmul.f32 1.442695, %v4824_v33 }
 0x636   :  { %5132 = vperm.xlu0 %7331, %v9596_v3   ;;  %7543 = vpow2.f32 %v4912_v52  ;;  %v4934_v30 = vmul.f32 1.442695, %v4826_v31  ;;  %v4817_v52 = vsub.f32 %v10478_v49, %v9560_v20 }
 0x637   :  { %7545 = vpow2.f32 %v4926_v40  ;;  %v9621_v32 = vpop.xlane.xlu1 %4616  ;;  %v4938_v40 = vmul.f32 1.442695, %v4828_v63 }
 0x638   :  { %7547 = vpow2.f32 %v4930_v59  ;;  %v9630_v58 = vrot.slane %v9621_v32, %v8490_v61  ;;  %v9641_v19 = vrot.slane %v9621_v32, %v8493_v62  ;;  %v4916_v49 = vmul.f32 1.442695, %v4817_v52 }
 0x639   :  { %7549 = vpow2.f32 %v4934_v30  ;;  %v9653_v63 = vrot.slane %v9621_v32, %v9421_v37 }
 0x63a   :  { %v4830_v31 = vsub.f32 %v9227_v47, %v9630_v58  ;;  %7551 = vpow2.f32 %v4938_v40  ;;  %v4832_v30 = vsub.f32 %v9264_v21, %v9641_v19  ;;  %v10484_v40 = vld [vmem:[#allocation5_spill] sm:$0xff] }
 0x63b   :  { %7553 = vpow2.f32 %v4916_v49 }
 0x63c   :  { %v9605_v15 = vpop.eup %7535  ;;  %v4946_v52 = vmul.f32 1.442695, %v4832_v30  ;;  %v10486_v30 = vld [vmem:[#allocation6_spill] sm:$0xff] }
 0x63d   :  { %10474 = vst [vmem:[#allocation16_spill] sm:$0xff] %v9605_v15  ;;  %5135 = vperm.xlu1 %7332, %v9605_v15   ;;  %v9613_v14 = vpop.eup %7537 }
 0x63e   :  { %10475 = vst [vmem:[#allocation4_spill] sm:$0xff] %v9613_v14  ;;  %v9623_v15 = vpop.eup %7539 }
 0x63f   :  { %10476 = vst [vmem:[#allocation27_spill] sm:$0xff] %v9623_v15  ;;  %v9632_v6 = vpop.eup %7541 }
 0x640   :  { %10477 = vst [vmem:[#allocation28_spill] sm:$0xff] %v9632_v6  ;;  %v9637_v33 = vpop.eup %7543 }
 0x641   :  { %5141 = vperm.xlu1 %7332, %v9613_v14   ;;  %10479 = vst [vmem:[#allocation18_spill] sm:$0xff] %v9637_v33  ;;  %5138 = vperm.xlu0 %7331, %v9637_v33   ;;  %v9646_v59 = vpop.eup %7545  ;;  %v10482_v14 = vld [vmem:[#allocation23_spill] sm:$0xff] }
 0x642   :  { %v9657_v47 = vpop.eup %7547  ;;  %v4821_v33 = vsub.f32 %v10482_v14, %v9580_v48  ;;  %v9675_v14 = vrot.slane %v9621_v32, %v9410_v24 }
 0x643   :  { %v9668_v21 = vpop.eup %7549 }
 0x644   :  { %10483 = vst [vmem:[#allocation23_spill] sm:$0xff] %v9668_v21  ;;  %v4924_v48 = vmul.f32 1.442695, %v4821_v33  ;;  %v9681_v49 = vpop.eup %7551  ;;  %v9688_v33 = vrot.slane %v9621_v32, %v9413_v4 }
 0x645   :  { %5147 = vperm.xlu1 %7332, %v9623_v15   ;;  %v10480_v15 = vld [vmem:[#allocation21_spill] sm:$0xff]  ;;  %10485 = vst [vmem:[#allocation5_spill] sm:$0xff] %v9681_v49 }
 0x646   :  { %v4819_v20 = vsub.f32 %v10480_v15, %v9569_v17  ;;  %10481 = vst [vmem:[#allocation21_spill] sm:$0xff] %v9657_v47  ;;  %v9664_v15 = vrot.slane %v9621_v32, %v9443_v34  ;;  %v4834_v17 = vsub.f32 %v9277_v41, %v9653_v63 }
 0x648   :  { %v4920_v55 = vmul.f32 1.442695, %v4819_v20  ;;  %v4836_v20 = vsub.f32 %v9285_v7, %v9664_v15  ;;  %v4950_v41 = vmul.f32 1.442695, %v4834_v17  ;;  %v4838_v7 = vsub.f32 %v9293_v27, %v9675_v14 }
 0x649   :  { %5153 = vperm.xlu1 %7332, %v9632_v6   ;;  %v4942_v6 = vmul.f32 1.442695, %v4830_v31  ;;  %v4823_v31 = vsub.f32 %v10484_v40, %v9591_v38  ;;  %v4825_v38 = vsub.f32 %v10486_v30, %v9601_v0  ;;  %v10488_v0 = vld [vmem:[#allocation7_spill] sm:$0xff]  ;;  %v9704_v27 = vrot.slane %v9621_v32, %v9427_v56 }
 0x64a   :  { %v4954_v17 = vmul.f32 1.442695, %v4836_v20  ;;  %v4840_v20 = vsub.f32 %v9339_v13, %v9688_v33  ;;  %v9720_v13 = vrot.slane %v9621_v32, %v9435_v25 }
 0x64b   :  { %7555 = vpow2.f32 %v4942_v6 }
 0x64c   :  { %7557 = vpow2.f32 %v4920_v55  ;;  %v4928_v55 = vmul.f32 1.442695, %v4823_v31  ;;  %v4827_v31 = vsub.f32 %v10488_v0, %v9609_v10  ;;  %v10490_v10 = vld [vmem:[#allocation10_spill] sm:$0xff] }
 0x64d   :  { %5159 = vperm.xlu1 %7332, %v9646_v59   ;;  %7559 = vpow2.f32 %v4946_v52  ;;  %v9692_v52 = vpop.eup %7553 }
 0x64e   :  { %7561 = vpow2.f32 %v4924_v48  ;;  %5144 = vperm.xlu0 %7331, %v9692_v52   ;;  %v4932_v48 = vmul.f32 1.442695, %v4825_v38  ;;  %v4829_v38 = vsub.f32 %v10490_v10, %v9617_v39  ;;  %v4833_v10 = vsub.f32 %v9269_v23, %v9641_v19 }
 0x64f   :  { %7563 = vpow2.f32 %v4950_v41  ;;  %v4958_v41 = vmul.f32 1.442695, %v4838_v7  ;;  %v4842_v7 = vsub.f32 %v9369_v26, %v9704_v27  ;;  %v4844_v26 = vsub.f32 %v9391_v8, %v9720_v13 }
 0x650   :  { %7565 = vpow2.f32 %v4928_v55  ;;  %v4936_v55 = vmul.f32 1.442695, %v4827_v31  ;;  %v4940_v39 = vmul.f32 1.442695, %v4829_v38  ;;  %v4831_v31 = vsub.f32 %v9241_v18, %v9630_v58 }
 0x651   :  { %5165 = vperm.xlu1 %7332, %v9657_v47   ;;  %7567 = vpow2.f32 %v4954_v17  ;;  %v4962_v17 = vmul.f32 1.442695, %v4840_v20  ;;  %v4966_v32 = vmul.f32 1.442695, %v4842_v7  ;;  %v4970_v58 = vmul.f32 1.442695, %v4844_v26 }
 0x652   :  { %7569 = vpow2.f32 %v4932_v48  ;;  %v4944_v18 = vmul.f32 1.442695, %v4831_v31  ;;  %v4835_v7 = vsub.f32 %v9279_v42, %v9653_v63 }
 0x653   :  { %7571 = vpow2.f32 %v4958_v41 }
 0x654   :  { %7573 = vpow2.f32 %v4936_v55  ;;  %v4952_v26 = vmul.f32 1.442695, %v4835_v7 }
 0x655   :  { %5171 = vperm.xlu1 %7332, %v9668_v21   ;;  %v9696_v21 = vpop.eup %7555  ;;  %7575 = vpow2.f32 %v4962_v17  ;;  %v4948_v17 = vmul.f32 1.442695, %v4833_v10  ;;  %v10500_v10 = vld [vmem:[#allocation22_spill] sm:$0xff] }
 0x656   :  { %10487 = vst [vmem:[#allocation6_spill] sm:$0xff] %v9696_v21  ;;  %v9708_v30 = vpop.eup %7557  ;;  %7577 = vpow2.f32 %v4940_v39  ;;  %v10497_v39 = vld [vmem:[#allocation19_spill] sm:$0xff] }
 0x657   :  { %v9712_v47 = vpop.eup %7559  ;;  %5150 = vperm.xlu0 %7331, %v9708_v30   ;;  %7579 = vpow2.f32 %v4966_v32  ;;  %v4837_v31 = vsub.f32 %v10497_v39, %v9664_v15  ;;  %v10503_v39 = vld [vmem:[#allocation24_spill] sm:$0xff] }
 0x658   :  { %v9679_v6 = vpop.permute.xlu1 %5042  ;;  %10489 = vst [vmem:[#allocation7_spill] sm:$0xff] %v9712_v47  ;;  %v9724_v0 = vpop.eup %7561  ;;  %7581 = vpow2.f32 %v4944_v18  ;;  %v4839_v18 = vsub.f32 %v10500_v10, %v9675_v14 }
 0x659   :  { %5177 = vperm.xlu1 %7332, %v9681_v49   ;;  %7583 = vpow2.f32 %v4970_v58  ;;  %v4956_v58 = vmul.f32 1.442695, %v4837_v31  ;;  %v10505_v31 = vld [vmem:[#allocation25_spill] sm:$0xff] }
 0x65a   :  { %7585 = vpow2.f32 %v4948_v17 }
 0x65b   :  { %5156 = vperm.xlu0 %7331, %v9724_v0   ;;  %7587 = vpow2.f32 %v4952_v26  ;;  %v4843_v26 = vsub.f32 %v10505_v31, %v9704_v27 }
 0x65c   :  { %v9694_v40 = vpop.permute.xlu1 %5045  ;;  %7589 = vpow2.f32 %v4956_v58 }
 0x65d   :  { %5183 = vperm.xlu1 %7332, %v9696_v21   ;;  %v9726_v21 = vpop.eup %7563 }
 0x65e   :  { %10491 = vst [vmem:[#allocation10_spill] sm:$0xff] %v9726_v21  ;;  %v9736_v20 = vpop.eup %7565 }
 0x65f   :  { %v9738_v41 = vpop.eup %7567  ;;  %5162 = vperm.xlu0 %7331, %v9736_v20  }
 0x660   :  { %v9710_v49 = vpop.permute.xlu1 %5048  ;;  %10492 = vst [vmem:[#allocation29_spill] sm:$0xff] %v9738_v41  ;;  %v9744_v38 = vpop.eup %7569 }
 0x661   :  { %5189 = vperm.xlu1 %7332, %v9712_v47   ;;  %10493 = vst [vmem:[#allocation30_spill] sm:$0xff] %v9744_v38  ;;  %v9748_v55 = vpop.eup %7571 }
 0x662   :  { %10494 = vst [vmem:[#allocation31_spill] sm:$0xff] %v9748_v55  ;;  %v9754_v23 = vpop.eup %7573 }
 0x663   :  { %5168 = vperm.xlu0 %7331, %v9744_v38   ;;  %10495 = vst [vmem:[#allocation32_spill] sm:$0xff] %v9754_v23  ;;  %v9756_v19 = vpop.eup %7575 }
 0x664   :  { %v9731_v48 = vpop.permute.xlu1 %5051  ;;  %10496 = vst [vmem:[#allocation33_spill] sm:$0xff] %v9756_v19  ;;  %v9764_v42 = vpop.eup %7577 }
 0x665   :  { %5195 = vperm.xlu1 %7332, %v9726_v21   ;;  %10498 = vst [vmem:[#allocation19_spill] sm:$0xff] %v9764_v42  ;;  %v9766_v63 = vpop.eup %7579 }
 0x666   :  { %10499 = vst [vmem:[#allocation34_spill] sm:$0xff] %v9766_v63  ;;  %v9772_v15 = vpop.eup %7581 }
 0x667   :  { %5174 = vperm.xlu0 %7331, %v9754_v23   ;;  %10501 = vst [vmem:[#allocation22_spill] sm:$0xff] %v9772_v15  ;;  %v9774_v17 = vpop.eup %7583 }
 0x668   :  { %v9746_v8 = vpop.permute.xlu1 %5054  ;;  %10502 = vst [vmem:[#allocation35_spill] sm:$0xff] %v9774_v17  ;;  %v9780_v14 = vpop.eup %7585 }
 0x669   :  { %5201 = vperm.xlu1 %7332, %v9738_v41   ;;  %v5040_v41 = vpop.permute.xlu0 %5039  ;;  %10504 = vst [vmem:[#allocation24_spill] sm:$0xff] %v9780_v14  ;;  %v9785_v21 = vpop.eup %7587 }
 0x66a   :  { %10506 = vst [vmem:[#allocation25_spill] sm:$0xff] %v9785_v21  ;;  %v9790_v58 = vpop.eup %7589 }
 0x66b   :  { %5180 = vperm.xlu0 %7331, %v9764_v42   ;;  %10507 = vst [vmem:[#allocation36_spill] sm:$0xff] %v9790_v58 }
 0x66c   :  { %v9761_v32 = vpop.permute.xlu1 %5057 }
 0x66d   :  { %5207 = vperm.xlu1 %7332, %v9748_v55   ;;  %v4960_v55 = vmul.f32 1.442695, %v4839_v18  ;;  %v5067_v47 = vpop.permute.xlu0 %5066  ;;  %v4968_v18 = vmul.f32 1.442695, %v4843_v26 }
 0x66f   :  { %5186 = vperm.xlu0 %7331, %v9772_v15   ;;  %7591 = vpow2.f32 %v4960_v55 }
 0x670   :  { %v5061_v7 = vpop.permute.xlu1 %5060 }
 0x671   :  { %5213 = vperm.xlu1 %7332, %v9756_v19   ;;  %v4841_v19 = vsub.f32 %v10503_v39, %v9688_v33  ;;  %v4845_v33 = vsub.f32 %v9396_v54, %v9720_v13  ;;  %v5073_v55 = vpop.permute.xlu0 %5072  ;;  %v10510_v54 = vld [vmem:[#allocation2_spill] sm:$0xff] }
 0x672   :  { %v5246_v13 = vrot.slane %v9710_v49, %v10510_v54  ;;  %v5255_v26 = vrot.slane %v9746_v8, %v10510_v54 }
 0x673   :  { %5192 = vperm.xlu0 %7331, %v9780_v14   ;;  %v4964_v10 = vmul.f32 1.442695, %v4841_v19  ;;  %v4972_v27 = vmul.f32 1.442695, %v4845_v33  ;;  %v10511_v33 = vld [vmem:[#allocation3_spill] sm:$0xff] }
 0x674   :  { %v5251_v49 = vrot.slane %v9731_v48, %v10511_v33 }
 0x675   :  { %5219 = vperm.xlu1 %7332, %v9766_v63   ;;  %v5064_v63 = vpop.permute.xlu1 %5063  ;;  %7593 = vpow2.f32 %v4964_v10  ;;  %v5237_v10 = vrot.slane %v9679_v6, %v10510_v54  ;;  %v5260_v6 = vrot.slane %v9761_v32, %v10511_v33 }
 0x676   :  { %7595 = vpow2.f32 %v4968_v18  ;;  %v5233_v18 = vrot.slane %v5040_v41, %v10511_v33 }
 0x677   :  { %5198 = vperm.xlu0 %7331, %v9785_v21   ;;  %7597 = vpow2.f32 %v4972_v27  ;;  %v5079_v21 = vpop.permute.xlu0 %5078  ;;  %v5242_v27 = vrot.slane %v9694_v40, %v10511_v33  ;;  %v5273_v40 = vrot.slane %v5067_v47, %v10510_v54 }
 0x678   :  { %v5238_v48 = vsel %vm4285_vm6, %v5237_v10, %v5233_v18 }
 0x679   :  { %5225 = vperm.xlu1 %7332, %v9774_v17   ;;  %v5070_v39 = vpop.permute.xlu1 %5069  ;;  %v9793_v19 = vpop.eup %7591  ;;  %v5247_v8 = vsel %vm4285_vm6, %v5246_v13, %v5242_v27 }
 0x67a   :  { %10508 = vst [vmem:[#allocation37_spill] sm:$0xff] %v9793_v19  ;;  %v5278_v41 = vrot.slane %v5070_v39, %v10511_v33  ;;  %v5291_v39 = vrot.slane %v5079_v21, %v10510_v54 }
 0x67b   :  { %5204 = vperm.xlu0 %7331, %v9790_v58   ;;  %v5085_v15 = vpop.permute.xlu0 %5084 }
 0x67d   :  { %v5076_v31 = vpop.permute.xlu1 %5075 }
 0x67e   :  { %v5287_v42 = vrot.slane %v5076_v31, %v10511_v33  ;;  %v5300_v31 = vrot.slane %v5085_v15, %v10510_v54 }
 0x67f   :  { %5210 = vperm.xlu0 %7331, %v9793_v19   ;;  %v9796_v17 = vpop.eup %7593  ;;  %v5264_v19 = vrot.slane %v5061_v7, %v10510_v54  ;;  %v5256_v7 = vsel %vm4285_vm6, %v5255_v26, %v5251_v49 }
 0x680   :  { %10509 = vst [vmem:[#allocation38_spill] sm:$0xff] %v9796_v17  ;;  %v9809_v58 = vpop.eup %7595 }
 0x681   :  { %10512 = vst [vmem:[#allocation2_spill] sm:$0xff] %v9809_v58  ;;  %v5082_v14 = vpop.permute.xlu1 %5081  ;;  %v5265_v13 = vsel %vm4285_vm6, %v5264_v19, %v5260_v6  ;;  %v9826_v32 = vpop.eup %7597 }
 0x682   :  { %v5296_v27 = vrot.slane %v5082_v14, %v10511_v33  ;;  %10513 = vst [vmem:[#allocation3_spill] sm:$0xff] %v9826_v32  ;;  %v5292_v14 = vsel %vm4285_vm6, %v5291_v39, %v5287_v42 }
 0x683   :  { %5216 = vperm.xlu0 %7331, %v9796_v17   ;;  %v5269_v17 = vrot.slane %v5064_v63, %v10511_v33  ;;  %v5282_v63 = vrot.slane %v5073_v55, %v10510_v54 }
 0x684   :  { %v5301_v18 = vsel %vm4285_vm6, %v5300_v31, %v5296_v27 }
 0x685   :  { %v5274_v47 = vsel %vm4285_vm6, %v5273_v40, %v5269_v17  ;;  %v5283_v10 = vsel %vm4285_vm6, %v5282_v63, %v5278_v41 }
 0x687   :  { %5222 = vperm.xlu0 %7331, %v9809_v58   ;;  %v5518_v58 = vsel %vm4566_vm5, %v5247_v8, %v5238_v48 }
 0x688   :  { %v5519_v26 = vsel %vm4568_vm7, %v5256_v7, %v5518_v58 }
 0x689   :  { %v5520_v55 = vsel %vm4570_vm8, %v5265_v13, %v5519_v26 }
 0x68a   :  { %v5521_v19 = vsel %vm4572_vm9, %v5274_v47, %v5520_v55 }
 0x68b   :  { %5228 = vperm.xlu0 %7331, %v9826_v32   ;;  %v5522_v21 = vsel %vm4574_vm10, %v5283_v10, %v5521_v19 }
 0x68c   :  { %v5523_v17 = vsel %vm4576_vm11, %v5292_v14, %v5522_v21 }
 0x68d   :  { %v5524_v58 = vsel %vm4578_vm12, %v5301_v18, %v5523_v17 }
 0x68e   :  { %v5550_v8 = vsel %vm4605_vm13, %v5524_v58, 0.0 }
 0x698   :  { %v5088_v49 = vpop.permute.xlu1 %5087 }
 0x699   :  { %v5091_v15 = vpop.permute.xlu0 %5090  ;;  %v5305_v55 = vrot.slane %v5088_v49, %v10511_v33 }
 0x69a   :  { %v5309_v14 = vrot.slane %v5091_v15, %v10510_v54 }
 0x69c   :  { %v5094_v6 = vpop.permute.xlu1 %5093 }
 0x69d   :  { %5551 = vadd.xlane.f32.xlu1 %v5550_v8  ;;  %v5097_v41 = vpop.permute.xlu0 %5096  ;;  %v5314_v39 = vrot.slane %v5094_v6, %v10511_v33 }
 0x69e   :  { %v5318_v47 = vrot.slane %v5097_v41, %v10510_v54 }
 0x6a0   :  { %v5100_v40 = vpop.permute.xlu1 %5099  ;;  %v5319_v8 = vsel %vm4285_vm6, %v5318_v47, %v5314_v39 }
 0x6a1   :  { %v5103_v7 = vpop.permute.xlu0 %5102  ;;  %v5323_v26 = vrot.slane %v5100_v40, %v10511_v33 }
 0x6a2   :  { %v5327_v31 = vrot.slane %v5103_v7, %v10510_v54  ;;  %v5310_v7 = vsel %vm4285_vm6, %v5309_v14, %v5305_v55 }
 0x6a4   :  { %v5106_v42 = vpop.permute.xlu1 %5105  ;;  %v5328_v40 = vsel %vm4285_vm6, %v5327_v31, %v5323_v26 }
 0x6a5   :  { %v5109_v48 = vpop.permute.xlu0 %5108  ;;  %v5332_v19 = vrot.slane %v5106_v42, %v10511_v33 }
 0x6a6   :  { %v5336_v18 = vrot.slane %v5109_v48, %v10510_v54 }
 0x6a8   :  { %v5112_v63 = vpop.permute.xlu1 %5111  ;;  %v5337_v42 = vsel %vm4285_vm6, %v5336_v18, %v5332_v19 }
 0x6a9   :  { %v5115_v13 = vpop.permute.xlu0 %5114  ;;  %v5341_v17 = vrot.slane %v5112_v63, %v10511_v33 }
 0x6aa   :  { %v5345_v58 = vrot.slane %v5115_v13, %v10510_v54  ;;  %v5525_v13 = vsel %vm4566_vm5, %v5319_v8, %v5310_v7 }
 0x6ac   :  { %v5118_v27 = vpop.permute.xlu1 %5117  ;;  %v5346_v39 = vsel %vm4285_vm6, %v5345_v58, %v5341_v17 }
 0x6ad   :  { %v5121_v10 = vpop.permute.xlu0 %5120  ;;  %v5350_v6 = vrot.slane %v5118_v27, %v10511_v33  ;;  %v5526_v27 = vsel %vm4568_vm7, %v5328_v40, %v5525_v13 }
 0x6ae   :  { %v5354_v41 = vrot.slane %v5121_v10, %v10510_v54  ;;  %v5527_v31 = vsel %vm4570_vm8, %v5337_v42, %v5526_v27 }
 0x6af   :  { %v5528_v14 = vsel %vm4572_vm9, %v5346_v39, %v5527_v31 }
 0x6b0   :  { %v5124_v21 = vpop.permute.xlu1 %5123  ;;  %v5355_v47 = vsel %vm4285_vm6, %v5354_v41, %v5350_v6 }
 0x6b1   :  { %v5359_v49 = vrot.slane %v5124_v21, %v10511_v33  ;;  %v5127_v15 = vpop.permute.xlu0 %5126  ;;  %v5529_v18 = vsel %vm4574_vm10, %v5355_v47, %v5528_v14 }
 0x6b2   :  { %v5363_v48 = vrot.slane %v5127_v15, %v10510_v54 }
 0x6b4   :  { %v5130_v63 = vpop.permute.xlu1 %5129  ;;  %v5364_v10 = vsel %vm4285_vm6, %v5363_v48, %v5359_v49 }
 0x6b5   :  { %v5368_v26 = vrot.slane %v5130_v63, %v10511_v33  ;;  %v5133_v55 = vpop.permute.xlu0 %5132  ;;  %v5530_v17 = vsel %vm4576_vm11, %v5364_v10, %v5529_v18 }
 0x6b6   :  { %v5372_v19 = vrot.slane %v5133_v55, %v10510_v54 }
 0x6b8   :  { %v5373_v21 = vsel %vm4285_vm6, %v5372_v19, %v5368_v26 }
 0x6b9   :  { %v5531_v58 = vsel %vm4578_vm12, %v5373_v21, %v5530_v17 }
 0x6ba   :  { %v5553_v6 = vsel %vm4605_vm13, %v5531_v58, 0.0 }
 0x6bb   :  { %5554 = vadd.xlane.f32.xlu0 %v5553_v6 }
 0x6bc   :  { %v5136_v8 = vpop.permute.xlu1 %5135 }
 0x6bd   :  { %v5377_v21 = vrot.slane %v5136_v8, %v10511_v33 }
 0x6c0   :  { %v5142_v41 = vpop.permute.xlu1 %5141  ;;  %v5139_v42 = vpop.permute.xlu0 %5138 }
 0x6c1   :  { %v5386_v31 = vrot.slane %v5142_v41, %v10511_v33  ;;  %v5381_v17 = vrot.slane %v5139_v42, %v10510_v54 }
 0x6c3   :  { %v5382_v42 = vsel %vm4285_vm6, %v5381_v17, %v5377_v21 }
 0x6c4   :  { %v5148_v40 = vpop.permute.xlu1 %5147 }
 0x6c5   :  { %v5395_v55 = vrot.slane %v5148_v40, %v10511_v33 }
 0x6c8   :  { %v5154_v49 = vpop.permute.xlu1 %5153 }
 0x6c9   :  { %v5404_v58 = vrot.slane %v5154_v49, %v10511_v33 }
 0x6cc   :  { %v5160_v15 = vpop.permute.xlu1 %5159 }
 0x6cd   :  { %v5145_v63 = vpop.permute.xlu0 %5144  ;;  %v5413_v32 = vrot.slane %v5160_v15, %v10511_v33 }
 0x6ce   :  { %v5390_v10 = vrot.slane %v5145_v63, %v10510_v54 }
 0x6d0   :  { %v5166_v7 = vpop.permute.xlu1 %5165  ;;  %v5391_v63 = vsel %vm4285_vm6, %v5390_v10, %v5386_v31 }
 0x6d1   :  { %v5422_v40 = vrot.slane %v5166_v7, %v10511_v33  ;;  %v5532_v15 = vsel %vm4566_vm5, %v5391_v63, %v5382_v42 }
 0x6d4   :  { %v5172_v48 = vpop.permute.xlu1 %5171 }
 0x6d5   :  { %v5431_v8 = vrot.slane %v5172_v48, %v10511_v33 }
 0x6d6   :  { %v5151_v13 = vpop.permute.xlu0 %5150 }
 0x6d7   :  { %v5399_v14 = vrot.slane %v5151_v13, %v10510_v54 }
 0x6d8   :  { %v5178_v39 = vpop.permute.xlu1 %5177 }
 0x6d9   :  { %v5400_v23 = vsel %vm4285_vm6, %v5399_v14, %v5395_v55  ;;  %v5440_v55 = vrot.slane %v5178_v39, %v10511_v33 }
 0x6da   :  { %v5157_v27 = vpop.permute.xlu0 %5156  ;;  %v5533_v7 = vsel %vm4568_vm7, %v5400_v23, %v5532_v15 }
 0x6db   :  { %v5408_v6 = vrot.slane %v5157_v27, %v10510_v54 }
 0x6dc   :  { %v9875_v47 = vpop.permute.xlu1 %5183 }
 0x6dd   :  { %v5409_v49 = vsel %vm4285_vm6, %v5408_v6, %v5404_v58 }
 0x6de   :  { %v5163_v26 = vpop.permute.xlu0 %5162  ;;  %v5534_v48 = vsel %vm4570_vm8, %v5409_v49, %v5533_v7 }
 0x6df   :  { %v5417_v41 = vrot.slane %v5163_v26, %v10510_v54 }
 0x6e0   :  { %v5190_v18 = vpop.permute.xlu1 %5189 }
 0x6e1   :  { %v5418_v26 = vsel %vm4285_vm6, %v5417_v41, %v5413_v32  ;;  %v5458_v15 = vrot.slane %v5190_v18, %v10511_v33 }
 0x6e2   :  { %v5169_v19 = vpop.permute.xlu0 %5168  ;;  %v5535_v21 = vsel %vm4572_vm9, %v5418_v26, %v5534_v48  ;;  %v5449_v48 = vrot.slane %v9875_v47, %v10511_v33 }
 0x6e3   :  { %v5426_v13 = vrot.slane %v5169_v19, %v10510_v54 }
 0x6e4   :  { %v5196_v31 = vpop.permute.xlu1 %5195 }
 0x6e5   :  { %v5427_v10 = vsel %vm4285_vm6, %v5426_v13, %v5422_v40  ;;  %v5467_v7 = vrot.slane %v5196_v31, %v10511_v33 }
 0x6e6   :  { %v5175_v38 = vpop.permute.xlu0 %5174  ;;  %v5536_v17 = vsel %vm4574_vm10, %v5427_v10, %v5535_v21 }
 0x6e7   :  { %v5435_v27 = vrot.slane %v5175_v38, %v10510_v54 }
 0x6e8   :  { %v5202_v41 = vpop.permute.xlu1 %5201 }
 0x6e9   :  { %v5436_v14 = vsel %vm4285_vm6, %v5435_v27, %v5431_v8 }
 0x6ea   :  { %v5181_v19 = vpop.permute.xlu0 %5180  ;;  %v5537_v58 = vsel %vm4576_vm11, %v5436_v14, %v5536_v17 }
 0x6eb   :  { %v5444_v38 = vrot.slane %v5181_v19, %v10510_v54  ;;  %v5476_v19 = vrot.slane %v5202_v41, %v10511_v33 }
 0x6ec   :  { %v5208_v40 = vpop.permute.xlu1 %5207 }
 0x6ed   :  { %v5445_v32 = vsel %vm4285_vm6, %v5444_v38, %v5440_v55  ;;  %v5485_v38 = vrot.slane %v5208_v40, %v10511_v33 }
 0x6ee   :  { %v5187_v23 = vpop.permute.xlu0 %5186  ;;  %v5538_v6 = vsel %vm4578_vm12, %v5445_v32, %v5537_v58 }
 0x6ef   :  { %v5556_v39 = vsel %vm4605_vm13, %v5538_v6, 0.0  ;;  %v5453_v14 = vrot.slane %v5187_v23, %v10510_v54 }
 0x6f0   :  { %5557 = vadd.xlane.f32.xlu0 %v5556_v39  ;;  %v5214_v42 = vpop.permute.xlu1 %5213 }
 0x6f1   :  { %v5494_v31 = vrot.slane %v5214_v42, %v10511_v33  ;;  %v5454_v41 = vsel %vm4285_vm6, %v5453_v14, %v5449_v48 }
 0x6f2   :  { %v5193_v63 = vpop.permute.xlu0 %5192 }
 0x6f3   :  { %v5462_v26 = vrot.slane %v5193_v63, %v10510_v54 }
 0x6f4   :  { %v5220_v27 = vpop.permute.xlu1 %5219 }
 0x6f5   :  { %v5463_v17 = vsel %vm4285_vm6, %v5462_v26, %v5458_v15  ;;  %v5503_v47 = vrot.slane %v5220_v27, %v10511_v33 }
 0x6f6   :  { %v5199_v13 = vpop.permute.xlu0 %5198  ;;  %v5539_v40 = vsel %vm4566_vm5, %v5463_v17, %v5454_v41 }
 0x6f7   :  { %v5471_v10 = vrot.slane %v5199_v13, %v10510_v54 }
 0x6f8   :  { %v5226_v23 = vpop.permute.xlu1 %5225 }
 0x6f9   :  { %v5472_v58 = vsel %vm4285_vm6, %v5471_v10, %v5467_v7 }
 0x6fa   :  { %v5205_v8 = vpop.permute.xlu0 %5204 }
 0x6fb   :  { %v5480_v21 = vrot.slane %v5205_v8, %v10510_v54  ;;  %v5540_v8 = vsel %vm4568_vm7, %v5472_v58, %v5539_v40 }
 0x6fd   :  { %v5481_v39 = vsel %vm4285_vm6, %v5480_v21, %v5476_v19 }
 0x6fe   :  { %v5211_v49 = vpop.permute.xlu0 %5210  ;;  %v5541_v27 = vsel %vm4570_vm8, %v5481_v39, %v5540_v8 }
 0x6ff   :  { %v5489_v18 = vrot.slane %v5211_v49, %v10510_v54  ;;  %v5512_v49 = vrot.slane %v5226_v23, %v10511_v33 }
 0x701   :  { %v5490_v13 = vsel %vm4285_vm6, %v5489_v18, %v5485_v38 }
 0x702   :  { %v5217_v55 = vpop.permute.xlu0 %5216  ;;  %v5542_v7 = vsel %vm4572_vm9, %v5490_v13, %v5541_v27 }
 0x703   :  { %v5498_v32 = vrot.slane %v5217_v55, %v10510_v54 }
 0x705   :  { %v5499_v42 = vsel %vm4285_vm6, %v5498_v32, %v5494_v31 }
 0x706   :  { %v5223_v6 = vpop.permute.xlu0 %5222  ;;  %v5543_v55 = vsel %vm4574_vm10, %v5499_v42, %v5542_v7 }
 0x707   :  { %v5507_v63 = vrot.slane %v5223_v6, %v10510_v54 }
 0x709   :  { %v5508_v15 = vsel %vm4285_vm6, %v5507_v63, %v5503_v47 }
 0x70a   :  { %v5229_v26 = vpop.permute.xlu0 %5228  ;;  %v5544_v14 = vsel %vm4576_vm11, %v5508_v15, %v5543_v55  ;;  %v10514_v15 = vld [vmem:[#allocation8_spill] sm:$0xff] }
 0x70b   :  { %v5516_v10 = vrot.slane %v5229_v26, %v10510_v54 }
 0x70d   :  { %v5517_v48 = vsel %vm4285_vm6, %v5516_v10, %v5512_v49  ;;  %v10516_v10 = vld [vmem:[#allocation9_spill] sm:$0xff] }
 0x70e   :  { %v5545_v19 = vsel %vm4578_vm12, %v5517_v48, %v5544_v14  ;;  %v10518_v14 = vld [vmem:[#allocation12_spill] sm:$0xff] }
 0x70f   :  { %v5559_v21 = vsel %vm4605_vm13, %v5545_v19, 0.0 }
 0x710   :  { %5560 = vadd.xlane.f32.xlu1 %v5559_v21  ;;  %v10519_v21 = vld [vmem:[#allocation15_spill] sm:$0xff] }
 0x72a   :  { %v5552_v33 = vpop.xlane.xlu1 %5551 }
 0x72b   :  { %7599 = vrcp.f32 %v5552_v33 }
 0x735   :  { %v7600_v38 = vpop.eup %7599 }
 0x736   :  { %v5573_v18 = vrot.slane %v7600_v38, %v8490_v61  ;;  %v5577_v31 = vrot.slane %v7600_v38, %v8493_v62  ;;  %v5581_v47 = vrot.slane %v7600_v38, %v9421_v37 }
 0x738   :  { %v5730_v17 = vmul.f32 %v9453_v9, %v5573_v18  ;;  %v5731_v54 = vmul.f32 %v9451_v35, %v5573_v18  ;;  %v5733_v32 = vmul.f32 %v9465_v45, %v5577_v31  ;;  %v5732_v58 = vmul.f32 %v9458_v29, %v5577_v31 }
 0x739   :  { %v5735_v6 = vmul.f32 %v9481_v2, %v5581_v47  ;;  %v5734_v23 = vmul.f32 %v9473_v57, %v5581_v47  ;;  %v5585_v9 = vrot.slane %v7600_v38, %v9443_v34  ;;  %v5589_v45 = vrot.slane %v7600_v38, %v9410_v24 }
 0x73a   :  { %5860 = vperm.xlu0 %7331, %v5730_v17   ;;  %5865 = vperm.xlu1 %7332, %v5731_v54   ;;  %v5593_v2 = vrot.slane %v7600_v38, %v9413_v4  ;;  %v10521_v54 = vld [vmem:[#allocation20_spill] sm:$0xff] }
 0x73b   :  { %v5737_v35 = vmul.f32 %v9492_v16, %v5585_v9  ;;  %v5736_v41 = vmul.f32 %v9488_v53, %v5585_v9  ;;  %v5739_v29 = vmul.f32 %v9460_v28, %v5589_v45  ;;  %v5738_v39 = vmul.f32 %v9495_v12, %v5589_v45 }
 0x73c   :  { %v5741_v63 = vmul.f32 %v9467_v1, %v5593_v2  ;;  %v5740_v16 = vmul.f32 %v9498_v43, %v5593_v2  ;;  %v5597_v53 = vrot.slane %v7600_v38, %v9427_v56  ;;  %v5601_v12 = vrot.slane %v7600_v38, %v9435_v25  ;;  %v10520_v38 = vld [vmem:[#allocation14_spill] sm:$0xff]  ;;  %v10525_v2 = vld [vmem:[#allocation16_spill] sm:$0xff] }
 0x73e   :  { %5875 = vperm.xlu0 %7331, %v5733_v32   ;;  %5870 = vperm.xlu1 %7332, %v5732_v58   ;;  %v5743_v40 = vmul.f32 %v9475_v22, %v5597_v53  ;;  %v5742_v28 = vmul.f32 %v9501_v46, %v5597_v53  ;;  %v5745_v13 = vmul.f32 %v9483_v50, %v5601_v12  ;;  %v10522_v32 = vld [vmem:[#allocation17_spill] sm:$0xff] }
 0x73f   :  { %v5744_v8 = vmul.f32 %v9504_v51, %v5601_v12  ;;  %v10527_v12 = vld [vmem:[#allocation27_spill] sm:$0xff] }
 0x742   :  { %5885 = vperm.xlu0 %7331, %v5735_v6   ;;  %5880 = vperm.xlu1 %7332, %v5734_v23   ;;  %v10523_v23 = vld [vmem:[#allocation26_spill] sm:$0xff] }
 0x746   :  { %5895 = vperm.xlu0 %7331, %v5737_v35   ;;  %5890 = vperm.xlu1 %7332, %v5736_v41  }
 0x748   :  { %v5555_v57 = vpop.xlane.xlu0 %5554 }
 0x749   :  { %7601 = vrcp.f32 %v5555_v57 }
 0x74a   :  { %5905 = vperm.xlu0 %7331, %v5739_v29   ;;  %5900 = vperm.xlu1 %7332, %v5738_v39   ;;  %v10524_v29 = vld [vmem:[#allocation18_spill] sm:$0xff] }
 0x74e   :  { %5915 = vperm.xlu0 %7331, %v5741_v63   ;;  %5910 = vperm.xlu1 %7332, %v5740_v16  }
 0x752   :  { %5925 = vperm.xlu0 %7331, %v5743_v40   ;;  %5920 = vperm.xlu1 %7332, %v5742_v28  }
 0x753   :  { %v7602_v42 = vpop.eup %7601 }
 0x754   :  { %v5605_v1 = vrot.slane %v7602_v42, %v8490_v61  ;;  %v5609_v22 = vrot.slane %v7602_v42, %v8493_v62  ;;  %v5613_v50 = vrot.slane %v7602_v42, %v9421_v37  ;;  %v5629_v17 = vrot.slane %v7602_v42, %v9427_v56 }
 0x755   :  { %v5633_v47 = vrot.slane %v7602_v42, %v9435_v25 }
 0x756   :  { %5935 = vperm.xlu0 %7331, %v5745_v13   ;;  %5930 = vperm.xlu1 %7332, %v5744_v8   ;;  %v5747_v43 = vmul.f32 %v9528_v36, %v5605_v1  ;;  %v5746_v49 = vmul.f32 %v9520_v11, %v5605_v1  ;;  %v5749_v46 = vmul.f32 %v9537_v5, %v5609_v22  ;;  %v10515_v11 = vld [vmem:[#allocation11_spill] sm:$0xff]  ;;  %v10528_v1 = vld [vmem:[#allocation28_spill] sm:$0xff] }
 0x757   :  { %v5748_v27 = vmul.f32 %v9530_v44, %v5609_v22  ;;  %v5751_v51 = vmul.f32 %v9545_v60, %v5613_v50  ;;  %v5750_v26 = vmul.f32 %v10514_v15, %v5613_v50  ;;  %v5617_v36 = vrot.slane %v7602_v42, %v9443_v34  ;;  %v10517_v44 = vld [vmem:[#allocation13_spill] sm:$0xff] }
 0x758   :  { %v5621_v5 = vrot.slane %v7602_v42, %v9410_v24  ;;  %v5625_v60 = vrot.slane %v7602_v42, %v9413_v4  ;;  %v5759_v31 = vmul.f32 %v10521_v54, %v5629_v17  ;;  %v5758_v58 = vmul.f32 %v10522_v32, %v5629_v17  ;;  %v10538_v17 = vld [vmem:[#allocation7_spill] sm:$0xff] }
 0x759   :  { %v5753_v7 = vmul.f32 %v10515_v11, %v5617_v36  ;;  %v5752_v55 = vmul.f32 %v10516_v10, %v5617_v36  ;;  %v5761_v6 = vmul.f32 %v9596_v3, %v5633_v47  ;;  %v5760_v9 = vmul.f32 %v10523_v23, %v5633_v47  ;;  %v10526_v3 = vld [vmem:[#allocation4_spill] sm:$0xff]  ;;  %v10532_v11 = vld [vmem:[#allocation23_spill] sm:$0xff] }
 0x75a   :  { %5945 = vperm.xlu0 %7331, %v5747_v43   ;;  %5940 = vperm.xlu1 %7332, %v5746_v49   ;;  %v5755_v48 = vmul.f32 %v10517_v44, %v5621_v5  ;;  %v5754_v19 = vmul.f32 %v10518_v14, %v5621_v5  ;;  %v5757_v33 = vmul.f32 %v10519_v21, %v5625_v60  ;;  %v10535_v14 = vld [vmem:[#allocation22_spill] sm:$0xff]  ;;  %v5796_v47 = vld [vmem:[%s10362_s4 + $0x10] sm:$0xff] }
 0x75b   :  { %v5756_v18 = vmul.f32 %v10520_v38, %v5625_v60  ;;  %v10536_v60 = vld [vmem:[#allocation6_spill] sm:$0xff]  ;;  %v10537_v38 = vld [vmem:[#allocation24_spill] sm:$0xff] }
 0x75e   :  { %5955 = vperm.xlu0 %7331, %v5749_v46   ;;  %5950 = vperm.xlu1 %7332, %v5748_v27   ;;  %v10529_v27 = vld [vmem:[#allocation30_spill] sm:$0xff] }
 0x762   :  { %5965 = vperm.xlu0 %7331, %v5751_v51   ;;  %5960 = vperm.xlu1 %7332, %v5750_v26   ;;  %v10530_v51 = vld [vmem:[#allocation21_spill] sm:$0xff]  ;;  %v10531_v26 = vld [vmem:[#allocation32_spill] sm:$0xff] }
 0x766   :  { %5975 = vperm.xlu0 %7331, %v5753_v7   ;;  %5970 = vperm.xlu1 %7332, %v5752_v55   ;;  %v10533_v7 = vld [vmem:[#allocation19_spill] sm:$0xff]  ;;  %v10534_v55 = vld [vmem:[#allocation5_spill] sm:$0xff] }
 0x76a   :  { %5985 = vperm.xlu0 %7331, %v5755_v48   ;;  %5980 = vperm.xlu1 %7332, %v5754_v19  }
 0x76e   :  { %5995 = vperm.xlu0 %7331, %v5757_v33   ;;  %5990 = vperm.xlu1 %7332, %v5756_v18  }
 0x772   :  { %6005 = vperm.xlu0 %7331, %v5759_v31   ;;  %6000 = vperm.xlu1 %7332, %v5758_v58  }
 0x776   :  { %6015 = vperm.xlu0 %7331, %v5761_v6   ;;  %6010 = vperm.xlu1 %7332, %v5760_v9   ;;  %v10539_v6 = vld [vmem:[#allocation25_spill] sm:$0xff]  ;;  %v10540_v9 = vld [vmem:[#allocation10_spill] sm:$0xff] }
 0x77d   :  { %v5558_v35 = vpop.xlane.xlu0 %5557 }
 0x77e   :  { %7603 = vrcp.f32 %v5558_v35 }
 0x788   :  { %v7604_v41 = vpop.eup %7603 }
 0x789   :  { %v5637_v45 = vrot.slane %v7604_v41, %v8490_v61  ;;  %v5641_v63 = vrot.slane %v7604_v41, %v8493_v62  ;;  %v5645_v40 = vrot.slane %v7604_v41, %v9421_v37  ;;  %v5649_v8 = vrot.slane %v7604_v41, %v9443_v34 }
 0x78a   :  { %v5661_v15 = vrot.slane %v7604_v41, %v9427_v56 }
 0x78b   :  { %v5763_v39 = vmul.f32 %v10524_v29, %v5637_v45  ;;  %v5762_v57 = vmul.f32 %v10525_v2, %v5637_v45  ;;  %v5765_v16 = vmul.f32 %v9692_v52, %v5641_v63  ;;  %v5764_v53 = vmul.f32 %v10526_v3, %v5641_v63  ;;  %v5798_v3 = vld [vmem:[%s10362_s4 + $0x20] sm:$0xff] }
 0x78c   :  { %v5767_v28 = vmul.f32 %v9708_v30, %v5645_v40  ;;  %v5766_v13 = vmul.f32 %v10527_v12, %v5645_v40  ;;  %v5769_v42 = vmul.f32 %v9724_v0, %v5649_v8  ;;  %v5768_v43 = vmul.f32 %v10528_v1, %v5649_v8 }
 0x78d   :  { %6025 = vperm.xlu0 %7331, %v5763_v39   ;;  %6020 = vperm.xlu1 %7332, %v5762_v57   ;;  %v5653_v52 = vrot.slane %v7604_v41, %v9410_v24  ;;  %v5657_v30 = vrot.slane %v7604_v41, %v9413_v4  ;;  %v5775_v36 = vmul.f32 %v10531_v26, %v5661_v15 }
 0x78f   :  { %v5771_v49 = vmul.f32 %v9736_v20, %v5653_v52  ;;  %v5770_v22 = vmul.f32 %v9646_v59, %v5653_v52  ;;  %v5773_v50 = vmul.f32 %v10529_v27, %v5657_v30  ;;  %v5772_v0 = vmul.f32 %v10530_v51, %v5657_v30  ;;  %v5800_v27 = vld [vmem:[%s10362_s4 + $0x30] sm:$0xff]  ;;  %v10544_v51 = vld [vmem:[#allocation31_spill] sm:$0xff] }
 0x790   :  { %v5774_v20 = vmul.f32 %v10532_v11, %v5661_v15  ;;  %v5665_v59 = vrot.slane %v7604_v41, %v9435_v25 }
 0x791   :  { %6035 = vperm.xlu0 %7331, %v5765_v16   ;;  %6030 = vperm.xlu1 %7332, %v5764_v53   ;;  %v10541_v53 = vld [vmem:[#allocation36_spill] sm:$0xff] }
 0x792   :  { %v5777_v10 = vmul.f32 %v10533_v7, %v5665_v59  ;;  %v5776_v5 = vmul.f32 %v10534_v55, %v5665_v59  ;;  %v10545_v55 = vld [vmem:[#allocation38_spill] sm:$0xff] }
 0x795   :  { %6045 = vperm.xlu0 %7331, %v5767_v28   ;;  %6040 = vperm.xlu1 %7332, %v5766_v13   ;;  %v10542_v28 = vld [vmem:[#allocation29_spill] sm:$0xff] }
 0x799   :  { %6055 = vperm.xlu0 %7331, %v5769_v42   ;;  %6050 = vperm.xlu1 %7332, %v5768_v43  }
 0x79d   :  { %v5561_v46 = vpop.xlane.xlu1 %5560  ;;  %6065 = vperm.xlu0 %7331, %v5771_v49   ;;  %6060 = vperm.xlu1 %7332, %v5770_v22   ;;  %v10543_v22 = vld [vmem:[#allocation37_spill] sm:$0xff] }
 0x79e   :  { %7605 = vrcp.f32 %v5561_v46 }
 0x7a1   :  { %6075 = vperm.xlu0 %7331, %v5773_v50   ;;  %6070 = vperm.xlu1 %7332, %v5772_v0   ;;  %v5801_v50 = vld [vmem:[%s10362_s4 + $0x38] sm:$0xff] }
 0x7a5   :  { %6085 = vperm.xlu0 %7331, %v5775_v36   ;;  %6080 = vperm.xlu1 %7332, %v5774_v20  }
 0x7a8   :  { %v10014_v44 = vpop.eup %7605 }
 0x7a9   :  { %6095 = vperm.xlu0 %7331, %v5777_v10   ;;  %6090 = vperm.xlu1 %7332, %v5776_v5   ;;  %v5669_v48 = vrot.slane %v10014_v44, %v8490_v61  ;;  %v5673_v33 = vrot.slane %v10014_v44, %v8493_v62  ;;  %v5677_v31 = vrot.slane %v10014_v44, %v9421_v37  ;;  %v5795_v61 = vld [vmem:[%s10362_s4 + $0x8] sm:$0xff]  ;;  %v5794_v62 = vld [vmem:[%s10362_s4] sm:$0xff]  ;;  %v5797_v37 = vld [vmem:[%s10362_s4 + $0x18] sm:$0xff] }
 0x7aa   :  { %v5681_v41 = vrot.slane %v10014_v44, %v9443_v34  ;;  %v5685_v16 = vrot.slane %v10014_v44, %v9410_v24  ;;  %v5799_v34 = vld [vmem:[%s10362_s4 + $0x28] sm:$0xff]  ;;  %v5689_v46 = vrot.slane %v10014_v44, %v9413_v4 }
 0x7ab   :  { %v5779_v19 = vmul.f32 %v10535_v14, %v5669_v48  ;;  %v5778_v21 = vmul.f32 %v10536_v60, %v5669_v48  ;;  %v5781_v18 = vmul.f32 %v10537_v38, %v5673_v33  ;;  %v5780_v54 = vmul.f32 %v10538_v17, %v5673_v33  ;;  %v5802_v14 = vld [vmem:[%s10362_s4 + $0x40] sm:$0xff]  ;;  %v10546_v60 = vld [vmem:[#allocation33_spill] sm:$0xff] }
 0x7ac   :  { %v5783_v23 = vmul.f32 %v10539_v6, %v5677_v31  ;;  %v5782_v35 = vmul.f32 %v10540_v9, %v5677_v31  ;;  %v5785_v40 = vmul.f32 %v10541_v53, %v5681_v41  ;;  %v5784_v12 = vmul.f32 %v10542_v28, %v5681_v41  ;;  %v5805_v9 = vld [vmem:[%s10362_s4 + $0x58] sm:$0xff]  ;;  %v10549_v53 = vld [vmem:[#allocation3_spill] sm:$0xff] }
 0x7ad   :  { %6105 = vperm.xlu0 %7331, %v5779_v19   ;;  %6100 = vperm.xlu1 %7332, %v5778_v21   ;;  %v5787_v30 = vmul.f32 %v10543_v22, %v5685_v16  ;;  %v5786_v0 = vmul.f32 %v10544_v51, %v5685_v16  ;;  %v5789_v5 = vmul.f32 %v10545_v55, %v5689_v46  ;;  %v5803_v19 = vld [vmem:[%s10362_s4 + $0x48] sm:$0xff] }
 0x7ae   :  { %v5693_v48 = vrot.slane %v10014_v44, %v9427_v56  ;;  %v5788_v21 = vmul.f32 %v10546_v60, %v5689_v46 }
 0x7b1   :  { %6115 = vperm.xlu0 %7331, %v5781_v18   ;;  %6110 = vperm.xlu1 %7332, %v5780_v54  }
 0x7b5   :  { %6125 = vperm.xlu0 %7331, %v5783_v23   ;;  %6120 = vperm.xlu1 %7332, %v5782_v35   ;;  %v5804_v23 = vld [vmem:[%s10362_s4 + $0x50] sm:$0xff]  ;;  %v10548_v35 = vld [vmem:[#allocation34_spill] sm:$0xff] }
 0x7b6   :  { %v5790_v41 = vmul.f32 %v10548_v35, %v5693_v48 }
 0x7b9   :  { %v5866_v32 = vpop.permute.xlu1 %5865  ;;  %v5861_v58 = vpop.permute.xlu0 %5860  ;;  %6135 = vperm.xlu0 %7331, %v5785_v40   ;;  %6130 = vperm.xlu1 %7332, %v5784_v12   ;;  %v5806_v12 = vld [vmem:[%s10362_s4 + $0x60] sm:$0xff] }
 0x7ba   :  { %v6179_v45 = vmul.f32 %v5866_v32, %v5795_v61  ;;  %v6178_v2 = vmul.f32 %v5861_v58, %v5794_v62  ;;  %v10547_v62 = vld [vmem:[#allocation2_spill] sm:$0xff] }
 0x7bc   :  { %v6244_v24 = vsel %vm6242_vm14, %v6179_v45, 0.0  ;;  %v6243_v43 = vsel %vm6242_vm14, %v6178_v2, 0.0 }
 0x7bd   :  { %v5871_v29 = vpop.permute.xlu1 %5870  ;;  %v5876_v39 = vpop.permute.xlu0 %5875  ;;  %v6245_v11 = vadd.f32 %v6244_v24, %v6243_v43  ;;  %6145 = vperm.xlu0 %7331, %v5787_v30   ;;  %6140 = vperm.xlu1 %7332, %v5786_v0  }
 0x7be   :  { %v6180_v57 = vmul.f32 %v5871_v29, %v5796_v47  ;;  %v6181_v63 = vmul.f32 %v5876_v39, %v5797_v37  ;;  %v5791_v47 = vmul.f32 %v10547_v62, %v5693_v48  ;;  %v5697_v37 = vrot.slane %v10014_v44, %v9435_v25 }
 0x7bf   :  { %v6246_v17 = vrot.slane %v6245_v11, 4 }
 0x7c0   :  { %v6252_v13 = vsel %vm6242_vm14, %v6180_v57, 0.0  ;;  %v6253_v8 = vsel %vm6242_vm14, %v6181_v63, 0.0  ;;  %v5793_v40 = vmul.f32 %v10549_v53, %v5697_v37 }
 0x7c1   :  { %v5881_v42 = vpop.permute.xlu1 %5880  ;;  %v5886_v1 = vpop.permute.xlu0 %5885  ;;  %v6254_v15 = vadd.f32 %v6253_v8, %v6252_v13  ;;  %6155 = vperm.xlu0 %7331, %v5789_v5   ;;  %6150 = vperm.xlu1 %7332, %v5788_v21   ;;  %v6247_v2 = vadd.f32 %v6246_v17, %v6245_v11  ;;  %v5807_v13 = vld [vmem:[%s10362_s4 + $0x68] sm:$0xff]  ;;  %v5809_v11 = vld [vmem:[%s10362_s4 + $0x78] sm:$0xff] }
 0x7c2   :  { %v6182_v52 = vmul.f32 %v5881_v42, %v5798_v3  ;;  %v6183_v49 = vmul.f32 %v5886_v1, %v5799_v34  ;;  %v10550_v8 = vld [vmem:[#allocation35_spill] sm:$0xff] }
 0x7c3   :  { %v6255_v33 = vrot.slane %v6254_v15, 4  ;;  %v5792_v42 = vmul.f32 %v10550_v8, %v5697_v37 }
 0x7c4   :  { %v6261_v26 = vsel %vm6242_vm14, %v6182_v52, 0.0  ;;  %v6262_v36 = vsel %vm6242_vm14, %v6183_v49, 0.0 }
 0x7c5   :  { %v6263_v20 = vadd.f32 %v6262_v36, %v6261_v26  ;;  %v5891_v59 = vpop.permute.xlu1 %5890  ;;  %v5896_v7 = vpop.permute.xlu0 %5895  ;;  %v6256_v45 = vadd.f32 %v6255_v33, %v6254_v15  ;;  %6165 = vperm.xlu0 %7331, %v5791_v47   ;;  %6160 = vperm.xlu1 %7332, %v5790_v41   ;;  %v5808_v36 = vld [vmem:[%s10362_s4 + $0x70] sm:$0xff] }
 0x7c6   :  { %v6184_v4 = vmul.f32 %v5891_v59, %v5800_v27  ;;  %v6185_v10 = vmul.f32 %v5896_v7, %v5801_v50  ;;  %v6248_v27 = vrot.slane %v6247_v2, 2 }
 0x7c7   :  { %v6264_v54 = vrot.slane %v6263_v20, 4  ;;  %v6257_v1 = vrot.slane %v6256_v45, 2 }
 0x7c8   :  { %v6270_v38 = vsel %vm6242_vm14, %v6184_v4, 0.0  ;;  %v6271_v18 = vsel %vm6242_vm14, %v6185_v10, 0.0 }
 0x7c9   :  { %v6272_v31 = vadd.f32 %v6271_v18, %v6270_v38  ;;  %v5901_v32 = vpop.permute.xlu1 %5900  ;;  %v5906_v56 = vpop.permute.xlu0 %5905  ;;  %v6265_v57 = vadd.f32 %v6264_v54, %v6263_v20  ;;  %6175 = vperm.xlu0 %7331, %v5793_v40   ;;  %6170 = vperm.xlu1 %7332, %v5792_v42   ;;  %v6258_v20 = vadd.f32 %v6257_v1, %v6256_v45 }
 0x7ca   :  { %v6186_v58 = vmul.f32 %v5901_v32, %v5802_v14  ;;  %v6187_v61 = vmul.f32 %v5906_v56, %v5803_v19  ;;  %v6249_v14 = vadd.f32 %v6248_v27, %v6247_v2 }
 0x7cb   :  { %v6273_v6 = vrot.slane %v6272_v31, 4  ;;  %v6266_v52 = vrot.slane %v6265_v57, 2  ;;  %v6259_v17 = vrot.slane %v6258_v20, 1 }
 0x7cc   :  { %v6279_v29 = vsel %vm6242_vm14, %v6186_v58, 0.0  ;;  %v6280_v39 = vsel %vm6242_vm14, %v6187_v61, 0.0  ;;  %v6250_v62 = vrot.slane %v6249_v14, 1 }
 0x7cd   :  { %v6281_v63 = vadd.f32 %v6280_v39, %v6279_v29  ;;  %v5911_v25 = vpop.permute.xlu1 %5910  ;;  %v5916_v44 = vpop.permute.xlu0 %5915  ;;  %v6274_v16 = vadd.f32 %v6273_v6, %v6272_v31  ;;  %v6267_v4 = vadd.f32 %v6266_v52, %v6265_v57  ;;  %v6260_v41 = vadd.f32 %v6259_v17, %v6258_v20  ;;  %v5812_v57 = vld [vmem:[%s10362_s4 + $0x90] sm:$0xff] }
 0x7ce   :  { %v6188_v3 = vmul.f32 %v5911_v25, %v5804_v23  ;;  %v6189_v34 = vmul.f32 %v5916_v44, %v5805_v9  ;;  %v6251_v25 = vadd.f32 %v6250_v62, %v6249_v14 }
 0x7cf   :  { %v6282_v28 = vrot.slane %v6281_v63, 4  ;;  %v6275_v50 = vrot.slane %v6274_v16, 2  ;;  %v6268_v32 = vrot.slane %v6267_v4, 1 }
 0x7d0   :  { %v6288_v24 = vsel %vm6242_vm14, %v6188_v3, 0.0  ;;  %v6289_v43 = vsel %vm6242_vm14, %v6189_v34, 0.0 }
 0x7d1   :  { %v6283_v49 = vadd.f32 %v6282_v28, %v6281_v63  ;;  %v6290_v22 = vadd.f32 %v6289_v43, %v6288_v24  ;;  %v5921_v30 = vpop.permute.xlu1 %5920  ;;  %v5926_v46 = vpop.permute.xlu0 %5925  ;;  %v6276_v19 = vadd.f32 %v6275_v50, %v6274_v16  ;;  %v6269_v45 = vadd.f32 %v6268_v32, %v6267_v4  ;;  %v5813_v63 = vld [vmem:[%s10362_s4 + $0x98] sm:$0xff]  ;;  %v5810_v16 = vld [vmem:[%s10362_s4 + $0x80] sm:$0xff] }
 0x7d2   :  { %v6190_v51 = vmul.f32 %v5921_v30, %v5806_v12  ;;  %v6191_v0 = vmul.f32 %v5926_v46, %v5807_v13  ;;  %v5811_v12 = vld [vmem:[%s10362_s4 + $0x88] sm:$0xff]  ;;  %v6563_v13 = vsel %vm4566_vm5, %v6260_v41, %v6251_v25  ;;  %v5818_v32 = vld [vmem:[%s10362_s4 + $0xc0] sm:$0xff] }
 0x7d3   :  { %v6284_v15 = vrot.slane %v6283_v49, 2  ;;  %v6291_v26 = vrot.slane %v6290_v22, 4  ;;  %v6277_v47 = vrot.slane %v6276_v19, 1  ;;  %v6564_v1 = vsel %vm4568_vm7, %v6269_v45, %v6563_v13  ;;  %v5822_v13 = vld [vmem:[%s10362_s4 + $0xe0] sm:$0xff] }
 0x7d4   :  { %v6297_v59 = vsel %vm6242_vm14, %v6190_v51, 0.0  ;;  %v6298_v7 = vsel %vm6242_vm14, %v6191_v0, 0.0 }
 0x7d5   :  { %v6292_v10 = vadd.f32 %v6291_v26, %v6290_v22  ;;  %v6299_v55 = vadd.f32 %v6298_v7, %v6297_v59  ;;  %v5931_v5 = vpop.permute.xlu1 %5930  ;;  %v5936_v48 = vpop.permute.xlu0 %5935  ;;  %v6285_v33 = vadd.f32 %v6284_v15, %v6283_v49  ;;  %v6278_v44 = vadd.f32 %v6277_v47, %v6276_v19  ;;  %v5814_v49 = vld [vmem:[%s10362_s4 + $0xa0] sm:$0xff]  ;;  %v5815_v22 = vld [vmem:[%s10362_s4 + $0xa8] sm:$0xff] }
 0x7d6   :  { %v6192_v60 = vmul.f32 %v5931_v5, %v5808_v36  ;;  %v6193_v21 = vmul.f32 %v5936_v48, %v5809_v11 }
 0x7d7   :  { %v6293_v38 = vrot.slane %v6292_v10, 2  ;;  %v6300_v18 = vrot.slane %v6299_v55, 4  ;;  %v6286_v23 = vrot.slane %v6285_v33, 1  ;;  %v6565_v30 = vsel %vm4570_vm8, %v6278_v44, %v6564_v1 }
 0x7d8   :  { %v6306_v54 = vsel %vm6242_vm14, %v6192_v60, 0.0  ;;  %v6307_v31 = vsel %vm6242_vm14, %v6193_v21, 0.0 }
 0x7d9   :  { %v6294_v56 = vadd.f32 %v6293_v38, %v6292_v10  ;;  %v6301_v58 = vadd.f32 %v6300_v18, %v6299_v55  ;;  %v6308_v61 = vadd.f32 %v6307_v31, %v6306_v54  ;;  %v5941_v37 = vpop.permute.xlu1 %5940  ;;  %v5946_v6 = vpop.permute.xlu0 %5945  ;;  %v6287_v53 = vadd.f32 %v6286_v23, %v6285_v33  ;;  %v5816_v10 = vld [vmem:[%s10362_s4 + $0xb0] sm:$0xff]  ;;  %v5817_v55 = vld [vmem:[%s10362_s4 + $0xb8] sm:$0xff] }
 0x7da   :  { %v6194_v52 = vmul.f32 %v5941_v37, %v5810_v16  ;;  %v6195_v27 = vmul.f32 %v5946_v6, %v5811_v12 }
 0x7db   :  { %v6302_v9 = vrot.slane %v6301_v58, 2  ;;  %v6309_v35 = vrot.slane %v6308_v61, 4  ;;  %v6295_v29 = vrot.slane %v6294_v56, 1  ;;  %v6566_v0 = vsel %vm4572_vm9, %v6287_v53, %v6565_v30 }
 0x7dc   :  { %v6315_v4 = vsel %vm6242_vm14, %v6194_v52, 0.0  ;;  %v6316_v48 = vsel %vm6242_vm14, %v6195_v27, 0.0 }
 0x7dd   :  { %v6303_v39 = vadd.f32 %v6302_v9, %v6301_v58  ;;  %v6310_v2 = vadd.f32 %v6309_v35, %v6308_v61  ;;  %v5951_v3 = vpop.permute.xlu1 %5950  ;;  %v5956_v34 = vpop.permute.xlu0 %5955  ;;  %v6296_v24 = vadd.f32 %v6295_v29, %v6294_v56  ;;  %v6317_v31 = vadd.f32 %v6316_v48, %v6315_v4  ;;  %v5819_v56 = vld [vmem:[%s10362_s4 + $0xc8] sm:$0xff]  ;;  %v5820_v29 = vld [vmem:[%s10362_s4 + $0xd0] sm:$0xff] }
 0x7de   :  { %v6196_v8 = vmul.f32 %v5951_v3, %v5812_v57  ;;  %v6197_v42 = vmul.f32 %v5956_v34, %v5813_v63 }
 0x7df   :  { %v6304_v40 = vrot.slane %v6303_v39, 1  ;;  %v6311_v28 = vrot.slane %v6310_v2, 2  ;;  %v6567_v59 = vsel %vm4574_vm10, %v6296_v24, %v6566_v0  ;;  %v6318_v41 = vrot.slane %v6317_v31, 4 }
 0x7e0   :  { %v6324_v26 = vsel %vm6242_vm14, %v6196_v8, 0.0  ;;  %v6325_v36 = vsel %vm6242_vm14, %v6197_v42, 0.0  ;;  %v5823_v8 = vld [vmem:[%s10362_s4 + $0xe8] sm:$0xff] }
 0x7e1   :  { %v6312_v43 = vadd.f32 %v6311_v28, %v6310_v2  ;;  %v6305_v46 = vadd.f32 %v6304_v40, %v6303_v39  ;;  %v5961_v50 = vpop.permute.xlu1 %5960  ;;  %v5966_v51 = vpop.permute.xlu0 %5965  ;;  %v6326_v38 = vadd.f32 %v6325_v36, %v6324_v26  ;;  %v5821_v39 = vld [vmem:[%s10362_s4 + $0xd8] sm:$0xff]  ;;  %v6319_v40 = vadd.f32 %v6318_v41, %v6317_v31 }
 0x7e2   :  { %v6198_v11 = vmul.f32 %v5961_v50, %v5814_v49  ;;  %v6199_v20 = vmul.f32 %v5966_v51, %v5815_v22  ;;  %v5825_v26 = vld [vmem:[%s10362_s4 + $0xf8] sm:$0xff] }
 0x7e3   :  { %v6313_v15 = vrot.slane %v6312_v43, 1  ;;  %v6568_v5 = vsel %vm4576_vm11, %v6305_v46, %v6567_v59  ;;  %v6327_v37 = vrot.slane %v6326_v38, 4  ;;  %v6320_v50 = vrot.slane %v6319_v40, 2 }
 0x7e4   :  { %v6333_v14 = vsel %vm6242_vm14, %v6198_v11, 0.0  ;;  %v6334_v19 = vsel %vm6242_vm14, %v6199_v20, 0.0 }
 0x7e5   :  { %v6314_v7 = vadd.f32 %v6313_v15, %v6312_v43  ;;  %v5971_v60 = vpop.permute.xlu1 %5970  ;;  %v5976_v21 = vpop.permute.xlu0 %5975  ;;  %v6335_v18 = vadd.f32 %v6334_v19, %v6333_v14  ;;  %v6328_v44 = vadd.f32 %v6327_v37, %v6326_v38  ;;  %v5824_v15 = vld [vmem:[%s10362_s4 + $0xf0] sm:$0xff]  ;;  %v6321_v19 = vadd.f32 %v6320_v50, %v6319_v40 }
 0x7e6   :  { %v6200_v17 = vmul.f32 %v5971_v60, %v5816_v10  ;;  %v6201_v54 = vmul.f32 %v5976_v21, %v5817_v55 }
 0x7e7   :  { %v6569_v33 = vsel %vm4578_vm12, %v6314_v7, %v6568_v5  ;;  %v6336_v23 = vrot.slane %v6335_v18, 4  ;;  %v6329_v52 = vrot.slane %v6328_v44, 2 }
 0x7e8   :  { %6595 = vst.msk [vmem:[%s10363_s15] sm:$0xff] %vm6242_vm14, %v6569_v33  ;;  %v6342_v58 = vsel %vm6242_vm14, %v6200_v17, 0.0  ;;  %v6343_v61 = vsel %vm6242_vm14, %v6201_v54, 0.0 }
 0x7e9   :  { %v5981_v62 = vpop.permute.xlu1 %5980  ;;  %v5986_v47 = vpop.permute.xlu0 %5985  ;;  %v6344_v6 = vadd.f32 %v6343_v61, %v6342_v58  ;;  %v6337_v3 = vadd.f32 %v6336_v23, %v6335_v18  ;;  %v6330_v4 = vadd.f32 %v6329_v52, %v6328_v44  ;;  %v6322_v61 = vrot.slane %v6321_v19, 1  ;;  %v5827_v52 = vld [vmem:[%s10362_s4 + $0x108] sm:$0xff] }
 0x7ea   :  { %v6202_v9 = vmul.f32 %v5981_v62, %v5818_v32  ;;  %v6203_v35 = vmul.f32 %v5986_v47, %v5819_v56 }
 0x7eb   :  { %v6345_v45 = vrot.slane %v6344_v6, 4  ;;  %v6338_v30 = vrot.slane %v6337_v3, 2  ;;  %v6331_v54 = vrot.slane %v6330_v4, 1 }
 0x7ec   :  { %v6351_v2 = vsel %vm6242_vm14, %v6202_v9, 0.0  ;;  %v6352_v57 = vsel %vm6242_vm14, %v6203_v35, 0.0 }
 0x7ed   :  { %v5991_v63 = vpop.permute.xlu1 %5990  ;;  %v5996_v25 = vpop.permute.xlu0 %5995  ;;  %v6353_v16 = vadd.f32 %v6352_v57, %v6351_v2  ;;  %v6346_v28 = vadd.f32 %v6345_v45, %v6344_v6  ;;  %v6339_v5 = vadd.f32 %v6338_v30, %v6337_v3  ;;  %v6332_v23 = vadd.f32 %v6331_v54, %v6330_v4 }
 0x7ee   :  { %v6204_v34 = vmul.f32 %v5991_v63, %v5820_v29  ;;  %v6205_v53 = vmul.f32 %v5996_v25, %v5821_v39  ;;  %v6323_v29 = vadd.f32 %v6322_v61, %v6321_v19 }
 0x7ef   :  { %v6354_v12 = vrot.slane %v6353_v16, 4  ;;  %v6347_v51 = vrot.slane %v6346_v28, 2  ;;  %v6340_v58 = vrot.slane %v6339_v5, 1 }
 0x7f0   :  { %v6360_v42 = vsel %vm6242_vm14, %v6204_v34, 0.0  ;;  %v6361_v1 = vsel %vm6242_vm14, %v6205_v53, 0.0  ;;  %v6570_v25 = vsel %vm4566_vm5, %v6332_v23, %v6323_v29  ;;  %v5836_v29 = vld [vmem:[%s10362_s4 + $0x150] sm:$0xff] }
 0x7f1   :  { %v6001_v24 = vpop.permute.xlu1 %6000  ;;  %v6006_v43 = vpop.permute.xlu0 %6005  ;;  %v6355_v49 = vadd.f32 %v6354_v12, %v6353_v16  ;;  %v6362_v22 = vadd.f32 %v6361_v1, %v6360_v42  ;;  %v6348_v60 = vadd.f32 %v6347_v51, %v6346_v28  ;;  %v6341_v45 = vadd.f32 %v6340_v58, %v6339_v5 }
 0x7f2   :  { %v6206_v46 = vmul.f32 %v6001_v24, %v5822_v13  ;;  %v6207_v27 = vmul.f32 %v6006_v43, %v5823_v8  ;;  %v5826_v43 = vld [vmem:[%s10362_s4 + $0x100] sm:$0xff] }
 0x7f3   :  { %v6363_v0 = vrot.slane %v6362_v22, 4  ;;  %v6356_v36 = vrot.slane %v6355_v49, 2  ;;  %v6349_v62 = vrot.slane %v6348_v60, 1  ;;  %v6571_v3 = vsel %vm4568_vm7, %v6341_v45, %v6570_v25 }
 0x7f4   :  { %v6369_v11 = vsel %vm6242_vm14, %v6206_v46, 0.0  ;;  %v6370_v20 = vsel %vm6242_vm14, %v6207_v27, 0.0 }
 0x7f5   :  { %v6011_v59 = vpop.permute.xlu1 %6010  ;;  %v6016_v7 = vpop.permute.xlu0 %6015  ;;  %v6364_v10 = vadd.f32 %v6363_v0, %v6362_v22  ;;  %v6371_v55 = vadd.f32 %v6370_v20, %v6369_v11  ;;  %v6357_v38 = vadd.f32 %v6356_v36, %v6355_v49  ;;  %v6350_v39 = vadd.f32 %v6349_v62, %v6348_v60  ;;  %v5828_v49 = vld [vmem:[%s10362_s4 + $0x110] sm:$0xff]  ;;  %v5829_v22 = vld [vmem:[%s10362_s4 + $0x118] sm:$0xff] }
 0x7f6   :  { %v6208_v48 = vmul.f32 %v6011_v59, %v5824_v15  ;;  %v6209_v14 = vmul.f32 %v6016_v7, %v5825_v26  ;;  %v5830_v15 = vld [vmem:[%s10362_s4 + $0x120] sm:$0xff]  ;;  %v5831_v26 = vld [vmem:[%s10362_s4 + $0x128] sm:$0xff] }
 0x7f7   :  { %v6365_v21 = vrot.slane %v6364_v10, 2  ;;  %v6372_v33 = vrot.slane %v6371_v55, 4  ;;  %v6358_v6 = vrot.slane %v6357_v38, 1  ;;  %v6572_v53 = vsel %vm4570_vm8, %v6350_v39, %v6571_v3  ;;  %v5837_v39 = vld [vmem:[%s10362_s4 + $0x158] sm:$0xff] }
 0x7f8   :  { %v6378_v18 = vsel %vm6242_vm14, %v6208_v48, 0.0  ;;  %v6379_v17 = vsel %vm6242_vm14, %v6209_v14, 0.0  ;;  %v5832_v48 = vld [vmem:[%s10362_s4 + $0x130] sm:$0xff]  ;;  %v5833_v14 = vld [vmem:[%s10362_s4 + $0x138] sm:$0xff] }
 0x7f9   :  { %v6366_v31 = vadd.f32 %v6365_v21, %v6364_v10  ;;  %v6373_v32 = vadd.f32 %v6372_v33, %v6371_v55  ;;  %v6380_v56 = vadd.f32 %v6379_v17, %v6378_v18  ;;  %v6359_v63 = vadd.f32 %v6358_v6, %v6357_v38 }
 0x7fb   :  { %v6374_v47 = vrot.slane %v6373_v32, 2  ;;  %v6381_v37 = vrot.slane %v6380_v56, 4  ;;  %v6367_v9 = vrot.slane %v6366_v31, 1  ;;  %v6573_v28 = vsel %vm4572_vm9, %v6359_v63, %v6572_v53 }
 0x7fd   :  { %v6375_v35 = vadd.f32 %v6374_v47, %v6373_v32  ;;  %v6382_v41 = vadd.f32 %v6381_v37, %v6380_v56  ;;  %v6368_v44 = vadd.f32 %v6367_v9, %v6366_v31  ;;  %v5834_v32 = vld [vmem:[%s10362_s4 + $0x140] sm:$0xff]  ;;  %v5835_v56 = vld [vmem:[%s10362_s4 + $0x148] sm:$0xff] }
 0x7ff   :  { %v6376_v2 = vrot.slane %v6375_v35, 1  ;;  %v6383_v57 = vrot.slane %v6382_v41, 2  ;;  %v6574_v12 = vsel %vm4574_vm10, %v6368_v44, %v6573_v28 }
 0x801   :  { %v6384_v16 = vadd.f32 %v6383_v57, %v6382_v41  ;;  %v6377_v34 = vadd.f32 %v6376_v2, %v6375_v35 }
 0x803   :  { %v6385_v40 = vrot.slane %v6384_v16, 1  ;;  %v6575_v8 = vsel %vm4576_vm11, %v6377_v34, %v6574_v12 }
 0x805   :  { %v6386_v13 = vadd.f32 %v6385_v40, %v6384_v16 }
 0x807   :  { %v6576_v42 = vsel %vm4578_vm12, %v6386_v13, %v6575_v8  ;;  %v5838_v13 = vld [vmem:[%s10362_s4 + $0x160] sm:$0xff]  ;;  %v5839_v8 = vld [vmem:[%s10362_s4 + $0x168] sm:$0xff] }
 0x808   :  { %6596 = vst.msk [vmem:[%s10363_s15 + $0x8] sm:$0xff] %vm6242_vm14, %v6576_v42 }
 0x80c   :  { %v6021_v1 = vpop.permute.xlu1 %6020  ;;  %v6026_v24 = vpop.permute.xlu0 %6025 }
 0x80d   :  { %v6210_v30 = vmul.f32 %v6021_v1, %v5826_v43  ;;  %v6211_v46 = vmul.f32 %v6026_v24, %v5827_v52 }
 0x80f   :  { %v6387_v20 = vsel %vm6242_vm14, %v6210_v30, 0.0  ;;  %v6388_v59 = vsel %vm6242_vm14, %v6211_v46, 0.0 }
 0x810   :  { %v6031_v27 = vpop.permute.xlu1 %6030  ;;  %v6036_v50 = vpop.permute.xlu0 %6035  ;;  %v6389_v19 = vadd.f32 %v6388_v59, %v6387_v20 }
 0x811   :  { %v6212_v51 = vmul.f32 %v6031_v27, %v5828_v49  ;;  %v6213_v0 = vmul.f32 %v6036_v50, %v5829_v22 }
 0x812   :  { %v6390_v58 = vrot.slane %v6389_v19, 4 }
 0x813   :  { %v6396_v36 = vsel %vm6242_vm14, %v6212_v51, 0.0  ;;  %v6397_v11 = vsel %vm6242_vm14, %v6213_v0, 0.0 }
 0x814   :  { %v6041_v7 = vpop.permute.xlu1 %6040  ;;  %v6046_v4 = vpop.permute.xlu0 %6045  ;;  %v6398_v5 = vadd.f32 %v6397_v11, %v6396_v36  ;;  %v6391_v2 = vadd.f32 %v6390_v58, %v6389_v19  ;;  %v5841_v36 = vld [vmem:[%s10362_s4 + $0x178] sm:$0xff] }
 0x815   :  { %v6214_v10 = vmul.f32 %v6041_v7, %v5830_v15  ;;  %v6215_v55 = vmul.f32 %v6046_v4, %v5831_v26  ;;  %v5840_v26 = vld [vmem:[%s10362_s4 + $0x170] sm:$0xff] }
 0x816   :  { %v6399_v31 = vrot.slane %v6398_v5, 4  ;;  %v6392_v42 = vrot.slane %v6391_v2, 2 }
 0x817   :  { %v6405_v60 = vsel %vm6242_vm14, %v6214_v10, 0.0  ;;  %v6406_v21 = vsel %vm6242_vm14, %v6215_v55, 0.0 }
 0x818   :  { %v6407_v33 = vadd.f32 %v6406_v21, %v6405_v60  ;;  %v6051_v38 = vpop.permute.xlu1 %6050  ;;  %v6056_v18 = vpop.permute.xlu0 %6055  ;;  %v6400_v41 = vadd.f32 %v6399_v31, %v6398_v5  ;;  %v6393_v11 = vadd.f32 %v6392_v42, %v6391_v2  ;;  %v5847_v42 = vld [vmem:[%s10362_s4 + $0x1a8] sm:$0xff] }
 0x819   :  { %v6216_v17 = vmul.f32 %v6051_v38, %v5832_v48  ;;  %v6217_v54 = vmul.f32 %v6056_v18, %v5833_v14 }
 0x81a   :  { %v6408_v61 = vrot.slane %v6407_v33, 4  ;;  %v6401_v28 = vrot.slane %v6400_v41, 2  ;;  %v6394_v18 = vrot.slane %v6393_v11, 1 }
 0x81b   :  { %v6414_v62 = vsel %vm6242_vm14, %v6216_v17, 0.0  ;;  %v6415_v47 = vsel %vm6242_vm14, %v6217_v54, 0.0 }
 0x81c   :  { %v6416_v37 = vadd.f32 %v6415_v47, %v6414_v62  ;;  %v6061_v6 = vpop.permute.xlu1 %6060  ;;  %v6066_v23 = vpop.permute.xlu0 %6065  ;;  %v6409_v57 = vadd.f32 %v6408_v61, %v6407_v33  ;;  %v6402_v51 = vadd.f32 %v6401_v28, %v6400_v41  ;;  %v5845_v41 = vld [vmem:[%s10362_s4 + $0x198] sm:$0xff] }
 0x81d   :  { %v6218_v9 = vmul.f32 %v6061_v6, %v5834_v32  ;;  %v6219_v35 = vmul.f32 %v6066_v23, %v5835_v56 }
 0x81e   :  { %v6417_v45 = vrot.slane %v6416_v37, 4  ;;  %v6410_v1 = vrot.slane %v6409_v57, 2  ;;  %v6403_v60 = vrot.slane %v6402_v51, 1 }
 0x81f   :  { %v6423_v63 = vsel %vm6242_vm14, %v6218_v9, 0.0  ;;  %v6424_v25 = vsel %vm6242_vm14, %v6219_v35, 0.0  ;;  %v5844_v35 = vld [vmem:[%s10362_s4 + $0x190] sm:$0xff] }
 0x820   :  { %v6418_v44 = vadd.f32 %v6417_v45, %v6416_v37  ;;  %v6425_v16 = vadd.f32 %v6424_v25, %v6423_v63  ;;  %v6071_v3 = vpop.permute.xlu1 %6070  ;;  %v6076_v34 = vpop.permute.xlu0 %6075  ;;  %v6411_v20 = vadd.f32 %v6410_v1, %v6409_v57  ;;  %v6404_v37 = vadd.f32 %v6403_v60, %v6402_v51  ;;  %v5842_v25 = vld [vmem:[%s10362_s4 + $0x180] sm:$0xff] }
 0x821   :  { %v6220_v53 = vmul.f32 %v6071_v3, %v5836_v29  ;;  %v6221_v40 = vmul.f32 %v6076_v34, %v5837_v39  ;;  %v6395_v45 = vadd.f32 %v6394_v18, %v6393_v11  ;;  %v5848_v11 = vld [vmem:[%s10362_s4 + $0x1b0] sm:$0xff] }
 0x822   :  { %v6426_v12 = vrot.slane %v6425_v16, 4  ;;  %v6419_v52 = vrot.slane %v6418_v44, 2  ;;  %v6412_v17 = vrot.slane %v6411_v20, 1 }
 0x823   :  { %v6432_v24 = vsel %vm6242_vm14, %v6220_v53, 0.0  ;;  %v6433_v43 = vsel %vm6242_vm14, %v6221_v40, 0.0  ;;  %v6577_v40 = vsel %vm4566_vm5, %v6404_v37, %v6395_v45  ;;  %v5853_v45 = vld [vmem:[%s10362_s4 + $0x1d8] sm:$0xff] }
 0x824   :  { %v6427_v49 = vadd.f32 %v6426_v12, %v6425_v16  ;;  %v6434_v22 = vadd.f32 %v6433_v43, %v6432_v24  ;;  %v6081_v30 = vpop.permute.xlu1 %6080  ;;  %v6086_v46 = vpop.permute.xlu0 %6085  ;;  %v6420_v4 = vadd.f32 %v6419_v52, %v6418_v44  ;;  %v6413_v29 = vadd.f32 %v6412_v17, %v6411_v20  ;;  %v5843_v44 = vld [vmem:[%s10362_s4 + $0x188] sm:$0xff]  ;;  %v5849_v20 = vld [vmem:[%s10362_s4 + $0x1b8] sm:$0xff] }
 0x825   :  { %v6222_v27 = vmul.f32 %v6081_v30, %v5838_v13  ;;  %v6223_v50 = vmul.f32 %v6086_v46, %v5839_v8  ;;  %v5846_v8 = vld [vmem:[%s10362_s4 + $0x1a0] sm:$0xff] }
 0x826   :  { %v6428_v0 = vrot.slane %v6427_v49, 2  ;;  %v6435_v15 = vrot.slane %v6434_v22, 4  ;;  %v6421_v32 = vrot.slane %v6420_v4, 1  ;;  %v6578_v1 = vsel %vm4568_vm7, %v6413_v29, %v6577_v40 }
 0x827   :  { %v6441_v59 = vsel %vm6242_vm14, %v6222_v27, 0.0  ;;  %v6442_v7 = vsel %vm6242_vm14, %v6223_v50, 0.0 }
 0x828   :  { %v6436_v10 = vadd.f32 %v6435_v15, %v6434_v22  ;;  %v6443_v55 = vadd.f32 %v6442_v7, %v6441_v59  ;;  %v6091_v5 = vpop.permute.xlu1 %6090  ;;  %v6096_v48 = vpop.permute.xlu0 %6095  ;;  %v6429_v21 = vadd.f32 %v6428_v0, %v6427_v49  ;;  %v6422_v39 = vadd.f32 %v6421_v32, %v6420_v4 }
 0x829   :  { %v6224_v14 = vmul.f32 %v6091_v5, %v5840_v26  ;;  %v6225_v19 = vmul.f32 %v6096_v48, %v5841_v36 }
 0x82a   :  { %v6437_v33 = vrot.slane %v6436_v10, 2  ;;  %v6444_v38 = vrot.slane %v6443_v55, 4  ;;  %v6430_v6 = vrot.slane %v6429_v21, 1  ;;  %v6579_v52 = vsel %vm4570_vm8, %v6422_v39, %v6578_v1 }
 0x82b   :  { %v6450_v54 = vsel %vm6242_vm14, %v6224_v14, 0.0  ;;  %v6451_v31 = vsel %vm6242_vm14, %v6225_v19, 0.0 }
 0x82c   :  { %v6438_v56 = vadd.f32 %v6437_v33, %v6436_v10  ;;  %v6445_v58 = vadd.f32 %v6444_v38, %v6443_v55  ;;  %v6452_v61 = vadd.f32 %v6451_v31, %v6450_v54  ;;  %v6101_v62 = vpop.permute.xlu1 %6100  ;;  %v6106_v47 = vpop.permute.xlu0 %6105  ;;  %v6431_v28 = vadd.f32 %v6430_v6, %v6429_v21  ;;  %v5850_v54 = vld [vmem:[%s10362_s4 + $0x1c0] sm:$0xff]  ;;  %v5851_v31 = vld [vmem:[%s10362_s4 + $0x1c8] sm:$0xff] }
 0x82d   :  { %v6226_v24 = vmul.f32 %v6101_v62, %v5842_v25  ;;  %v6227_v43 = vmul.f32 %v6106_v47, %v5843_v44 }
 0x82e   :  { %v6446_v23 = vrot.slane %v6445_v58, 2  ;;  %v6453_v9 = vrot.slane %v6452_v61, 4  ;;  %v6439_v2 = vrot.slane %v6438_v56, 1  ;;  %v6580_v26 = vsel %vm4572_vm9, %v6431_v28, %v6579_v52  ;;  %v5854_v28 = vld [vmem:[%s10362_s4 + $0x1e0] sm:$0xff] }
 0x82f   :  { %v6459_v59 = vsel %vm6242_vm14, %v6226_v24, 0.0  ;;  %v6460_v7 = vsel %vm6242_vm14, %v6227_v43, 0.0 }
 0x830   :  { %v6447_v57 = vadd.f32 %v6446_v23, %v6445_v58  ;;  %v6454_v63 = vadd.f32 %v6453_v9, %v6452_v61  ;;  %v6111_v16 = vpop.permute.xlu1 %6110  ;;  %v6116_v3 = vpop.permute.xlu0 %6115  ;;  %v6440_v49 = vadd.f32 %v6439_v2, %v6438_v56  ;;  %v6461_v17 = vadd.f32 %v6460_v7, %v6459_v59 }
 0x831   :  { %v6228_v34 = vmul.f32 %v6111_v16, %v5844_v35  ;;  %v6229_v53 = vmul.f32 %v6116_v3, %v5845_v41  ;;  %v5852_v41 = vld [vmem:[%s10362_s4 + $0x1d0] sm:$0xff] }
 0x832   :  { %v6448_v12 = vrot.slane %v6447_v57, 1  ;;  %v6455_v13 = vrot.slane %v6454_v63, 2  ;;  %v6581_v55 = vsel %vm4574_vm10, %v6440_v49, %v6580_v26  ;;  %v6462_v9 = vrot.slane %v6461_v17, 4 }
 0x833   :  { %v6468_v30 = vsel %vm6242_vm14, %v6228_v34, 0.0  ;;  %v6469_v51 = vsel %vm6242_vm14, %v6229_v53, 0.0 }
 0x834   :  { %v6456_v22 = vadd.f32 %v6455_v13, %v6454_v63  ;;  %v6121_v46 = vpop.permute.xlu1 %6120  ;;  %v6126_v27 = vpop.permute.xlu0 %6125  ;;  %v6449_v50 = vadd.f32 %v6448_v12, %v6447_v57  ;;  %v6470_v48 = vadd.f32 %v6469_v51, %v6468_v30  ;;  %v6463_v34 = vadd.f32 %v6462_v9, %v6461_v17  ;;  %v5855_v12 = vld [vmem:[%s10362_s4 + $0x1e8] sm:$0xff]  ;;  %v5856_v51 = vld [vmem:[%s10362_s4 + $0x1f0] sm:$0xff] }
 0x835   :  { %v6230_v0 = vmul.f32 %v6121_v46, %v5846_v8  ;;  %v6231_v15 = vmul.f32 %v6126_v27, %v5847_v42 }
 0x836   :  { %v6457_v36 = vrot.slane %v6456_v22, 1  ;;  %v6582_v60 = vsel %vm4576_vm11, %v6449_v50, %v6581_v55  ;;  %v6471_v58 = vrot.slane %v6470_v48, 4  ;;  %v6464_v46 = vrot.slane %v6463_v34, 2 }
 0x837   :  { %v6477_v4 = vsel %vm6242_vm14, %v6230_v0, 0.0  ;;  %v6478_v10 = vsel %vm6242_vm14, %v6231_v15, 0.0  ;;  %v5857_v0 = vld [vmem:[%s10362_s4 + $0x1f8] sm:$0xff] }
 0x838   :  { %v6458_v5 = vadd.f32 %v6457_v36, %v6456_v22  ;;  %v6131_v14 = vpop.permute.xlu1 %6130  ;;  %v6136_v19 = vpop.permute.xlu0 %6135  ;;  %v6479_v21 = vadd.f32 %v6478_v10, %v6477_v4  ;;  %v6472_v2 = vadd.f32 %v6471_v58, %v6470_v48  ;;  %v6465_v48 = vadd.f32 %v6464_v46, %v6463_v34 }
 0x839   :  { %v6232_v33 = vmul.f32 %v6131_v14, %v5848_v11  ;;  %v6233_v38 = vmul.f32 %v6136_v19, %v5849_v20 }
 0x83a   :  { %v6583_v18 = vsel %vm4578_vm12, %v6458_v5, %v6582_v60  ;;  %v6480_v37 = vrot.slane %v6479_v21, 4  ;;  %v6473_v42 = vrot.slane %v6472_v2, 2 }
 0x83b   :  { %6597 = vst.msk [vmem:[%s10363_s15 + $0x10] sm:$0xff] %vm6242_vm14, %v6583_v18  ;;  %v6486_v32 = vsel %vm6242_vm14, %v6232_v33, 0.0  ;;  %v6487_v56 = vsel %vm6242_vm14, %v6233_v38, 0.0 }
 0x83c   :  { %v6488_v61 = vadd.f32 %v6487_v56, %v6486_v32  ;;  %v6141_v62 = vpop.permute.xlu1 %6140  ;;  %v6146_v47 = vpop.permute.xlu0 %6145  ;;  %v6481_v44 = vadd.f32 %v6480_v37, %v6479_v21  ;;  %v6474_v11 = vadd.f32 %v6473_v42, %v6472_v2  ;;  %v6466_v56 = vrot.slane %v6465_v48, 1 }
 0x83d   :  { %v6234_v6 = vmul.f32 %v6141_v62, %v5850_v54  ;;  %v6235_v23 = vmul.f32 %v6146_v47, %v5851_v31 }
 0x83e   :  { %v6489_v35 = vrot.slane %v6488_v61, 4  ;;  %v6482_v49 = vrot.slane %v6481_v44, 2  ;;  %v6475_v18 = vrot.slane %v6474_v11, 1 }
 0x83f   :  { %v6495_v29 = vsel %vm6242_vm14, %v6234_v6, 0.0  ;;  %v6496_v39 = vsel %vm6242_vm14, %v6235_v23, 0.0 }
 0x840   :  { %v6497_v57 = vadd.f32 %v6496_v39, %v6495_v29  ;;  %v6151_v63 = vpop.permute.xlu1 %6150  ;;  %v6156_v25 = vpop.permute.xlu0 %6155  ;;  %v6490_v53 = vadd.f32 %v6489_v35, %v6488_v61  ;;  %v6483_v10 = vadd.f32 %v6482_v49, %v6481_v44  ;;  %v6476_v37 = vadd.f32 %v6475_v18, %v6474_v11 }
 0x841   :  { %v6236_v16 = vmul.f32 %v6151_v63, %v5852_v41  ;;  %v6237_v3 = vmul.f32 %v6156_v25, %v5853_v45  ;;  %v6467_v41 = vadd.f32 %v6466_v56, %v6465_v48 }
 0x842   :  { %v6498_v40 = vrot.slane %v6497_v57, 4  ;;  %v6491_v27 = vrot.slane %v6490_v53, 2  ;;  %v6484_v32 = vrot.slane %v6483_v10, 1 }
 0x843   :  { %v6504_v13 = vsel %vm6242_vm14, %v6236_v16, 0.0  ;;  %v6505_v8 = vsel %vm6242_vm14, %v6237_v3, 0.0 }
 0x844   :  { %v6499_v1 = vadd.f32 %v6498_v40, %v6497_v57  ;;  %v6506_v24 = vadd.f32 %v6505_v8, %v6504_v13  ;;  %v6161_v43 = vpop.permute.xlu1 %6160  ;;  %v6166_v52 = vpop.permute.xlu0 %6165  ;;  %v6492_v14 = vadd.f32 %v6491_v27, %v6490_v53  ;;  %v6485_v35 = vadd.f32 %v6484_v32, %v6483_v10 }
 0x845   :  { %v6238_v22 = vmul.f32 %v6161_v43, %v5854_v28  ;;  %v6239_v30 = vmul.f32 %v6166_v52, %v5855_v12  ;;  %v6584_v57 = vsel %vm4566_vm5, %v6476_v37, %v6467_v41 }
 0x846   :  { %v6507_v50 = vrot.slane %v6506_v24, 4  ;;  %v6500_v15 = vrot.slane %v6499_v1, 2  ;;  %v6493_v58 = vrot.slane %v6492_v14, 1  ;;  %v6585_v44 = vsel %vm4568_vm7, %v6485_v35, %v6584_v57 }
 0x847   :  { %v6513_v26 = vsel %vm6242_vm14, %v6238_v22, 0.0  ;;  %v6514_v36 = vsel %vm6242_vm14, %v6239_v30, 0.0 }
 0x848   :  { %v6508_v20 = vadd.f32 %v6507_v50, %v6506_v24  ;;  %v6515_v59 = vadd.f32 %v6514_v36, %v6513_v26  ;;  %v6171_v7 = vpop.permute.xlu1 %6170  ;;  %v6176_v4 = vpop.permute.xlu0 %6175  ;;  %v6501_v21 = vadd.f32 %v6500_v15, %v6499_v1  ;;  %v6494_v45 = vadd.f32 %v6493_v58, %v6492_v14 }
 0x849   :  { %v6240_v55 = vmul.f32 %v6171_v7, %v5856_v51  ;;  %v6241_v5 = vmul.f32 %v6176_v4, %v5857_v0 }
 0x84a   :  { %v6509_v19 = vrot.slane %v6508_v20, 2  ;;  %v6516_v60 = vrot.slane %v6515_v59, 4  ;;  %v6502_v47 = vrot.slane %v6501_v21, 1  ;;  %v6586_v3 = vsel %vm4570_vm8, %v6494_v45, %v6585_v44 }
 0x84b   :  { %v6522_v33 = vsel %vm6242_vm14, %v6240_v55, 0.0  ;;  %v6523_v38 = vsel %vm6242_vm14, %v6241_v5, 0.0 }
 0x84c   :  { %v6510_v17 = vadd.f32 %v6509_v19, %v6508_v20  ;;  %v6517_v54 = vadd.f32 %v6516_v60, %v6515_v59  ;;  %v6524_v31 = vadd.f32 %v6523_v38, %v6522_v33  ;;  %v6503_v2 = vadd.f32 %v6502_v47, %v6501_v21 }
 0x84e   :  { %v6518_v61 = vrot.slane %v6517_v54, 2  ;;  %v6525_v62 = vrot.slane %v6524_v31, 4  ;;  %v6511_v6 = vrot.slane %v6510_v17, 1  ;;  %v6587_v53 = vsel %vm4572_vm9, %v6503_v2, %v6586_v3 }
 0x850   :  { %v6519_v23 = vadd.f32 %v6518_v61, %v6517_v54  ;;  %v6526_v9 = vadd.f32 %v6525_v62, %v6524_v31  ;;  %v6512_v63 = vadd.f32 %v6511_v6, %v6510_v17 }
 0x852   :  { %v6520_v29 = vrot.slane %v6519_v23, 1  ;;  %v6527_v39 = vrot.slane %v6526_v9, 2  ;;  %v6588_v40 = vsel %vm4574_vm10, %v6512_v63, %v6587_v53 }
 0x854   :  { %v6528_v25 = vadd.f32 %v6527_v39, %v6526_v9  ;;  %v6521_v16 = vadd.f32 %v6520_v29, %v6519_v23 }
 0x856   :  { %v6529_v34 = vrot.slane %v6528_v25, 1  ;;  %v6589_v12 = vsel %vm4576_vm11, %v6521_v16, %v6588_v40 }
 0x858   :  { %v6530_v28 = vadd.f32 %v6529_v34, %v6528_v25 }
 0x85a   :  { %v6590_v13 = vsel %vm4578_vm12, %v6530_v28, %v6589_v12 }
 0x85b   :  { %6598 = vst.msk [vmem:[%s10363_s15 + $0x18] sm:$0xff] %vm6242_vm14, %v6590_v13 }

</bundles_post_ra>
